<compile_context>
chip_gen: v5e
topology: v5e:2x2
jax: 0.10.0
libtpu: 0.0.40
codegen_flags: <defaults>
</compile_context>

<pallas_src>
import functools

import numpy as np
import jax
import jax.numpy as jnp
from jax import lax
from jax.experimental import pallas as pl
from jax.experimental.pallas import tpu as pltpu


MXU_DTYPE = jnp.bfloat16      # matmul-operand dtype (accumulation stays f32)


# -----------------------------------------------------------------------------
# pltpu.roll semantics probe (cached, one tiny compile at build time).
# We need  y[:, p] = v[:, (p + d) % n].  With jnp.roll-like semantics this is
# pltpu.roll(v, -d % n, axis=1)  (sign = -1).  A concat fallback is kept only
# as an emergency path; it should never trigger.
# -----------------------------------------------------------------------------
_ROLL_MODE = None


def _probe_roll_mode():
    global _ROLL_MODE
    if _ROLL_MODE is not None:
        return _ROLL_MODE
    n = 1024
    x = jnp.broadcast_to(jnp.arange(n, dtype=jnp.float32)[None, :], (8, n))

    def k(x_ref, o_ref):
        o_ref[...] = pltpu.roll(x_ref[...], 3, axis=1)

    try:
        y = pl.pallas_call(
            k, out_shape=jax.ShapeDtypeStruct((8, n), jnp.float32))(x)
        y00 = float(y[0, 0])
        if y00 == float(n - 3):      # jnp.roll convention: y[0] = x[-3]
            _ROLL_MODE = ("roll", -1)
        elif y00 == 3.0:             # opposite convention: y[0] = x[+3]
            _ROLL_MODE = ("roll", 1)
        else:
            _ROLL_MODE = ("concat", 0)
    except Exception:
        _ROLL_MODE = ("concat", 0)
    return _ROLL_MODE


def _const_spec(a):
    nd = a.ndim
    return pl.BlockSpec(a.shape, lambda n, _nd=nd: (0,) * _nd)


# -----------------------------------------------------------------------------
# Host-side (trace-time) constant builders -- all float64 numpy.
# -----------------------------------------------------------------------------
def _interp_matrix(out_size, in_size):
    """Exact PyTorch bilinear (align_corners=False) interpolation matrix."""
    scale = in_size / out_size
    coord = (np.arange(out_size, dtype=np.float64) + 0.5) * scale - 0.5
    coord = np.maximum(coord, 0.0)
    i0 = np.minimum(np.floor(coord).astype(np.int64), in_size - 1)
    i1 = np.minimum(i0 + 1, in_size - 1)
    lam = coord - i0
    mat = np.zeros((out_size, in_size), np.float64)
    mat[np.arange(out_size), i0] += 1.0 - lam
    mat[np.arange(out_size), i1] += lam
    return mat


def _conv3x3_same_dense(w, hh, ww):
    """Dense matrix M of a 3x3 same-padding conv on an hh x ww map.
    Layouts are spatial-major: vout[p*O + o] = sum_q,i M[p*O+o, q*I+i]*vin[q*I+i]."""
    O, I = w.shape[0], w.shape[1]
    S = hh * ww
    M = np.zeros((S * O, S * I), np.float64)
    for pi in range(hh):
        for pj in range(ww):
            p = pi * ww + pj
            for a in range(3):
                for b in range(3):
                    qi, qj = pi + a - 1, pj + b - 1
                    if 0 <= qi < hh and 0 <= qj < ww:
                        q = qi * ww + qj
                        M[p * O:(p + 1) * O, q * I:(q + 1) * I] += w[:, :, a, b]
    return M


def _shift_masks(H, W):
    """(9, 1, HW) 0/1 masks, tap order t = (di+1)*3 + (dj+1)."""
    r = np.arange(H * W) // W
    c = np.arange(H * W) % W
    m = np.zeros((9, 1, H * W), np.float32)
    t = 0
    for di in (-1, 0, 1):
        for dj in (-1, 0, 1):
            ok = (r + di >= 0) & (r + di < H) & (c + dj >= 0) & (c + dj < W)
            m[t, 0] = ok.astype(np.float32)
            t += 1
    return m


def _pool_negmask(H, W):
    """Additive masks (0 on selected lanes, -1e30 elsewhere) picking, for each
    max_pool2d(7,3) window, the lanes of the full conv map that correspond to
    the stride-2 conv samples inside that window."""
    oh, ow = (H - 3) // 2 + 1, (W - 3) // 2 + 1
    ph, pw = (oh - 7) // 3 + 1, (ow - 7) // 3 + 1
    r = np.arange(H * W) // W
    c = np.arange(H * W) % W
    on_grid = (r % 2 == 0) & (c % 2 == 0) & (r // 2 < oh) & (c // 2 < ow)
    i, j = r // 2, c // 2
    neg = np.full((ph * pw, 1, H * W), -1e30, np.float32)
    for pi in range(ph):
        for pj in range(pw):
            sel = (on_grid & (i >= 3 * pi) & (i < 3 * pi + 7)
                   & (j >= 3 * pj) & (j < 3 * pj + 7))
            neg[pi * pw + pj, 0, sel] = 0.0
    return neg, ph, pw


# -----------------------------------------------------------------------------
# The fused kernel: one batch element per grid step, everything in VMEM.
# -----------------------------------------------------------------------------
def _cell_kernel(x_ref,
                 masks_ref, negm_ref,
                 w1_ref, b1_ref, a1_ref,
                 w2_ref, b2_ref, a2_ref,
                 w3_ref, b3_ref, a3_ref,
                 wz_ref, bz_ref,
                 wc1_ref, bc1_ref,
                 wcf_ref, bcf_ref,
                 we2_ref, be2_ref,
                 dmaxt_ref, bmax_ref,
                 d3_ref, b3c_ref,
                 d3bt_ref, b3b_ref,
                 a4_ref, bt_ref, w4_ref, b4_ref,
                 o_ref,
                 tap_ref, cat_ref,
                 *, H, W, C, f, n_pool, shift_mode):
    f32 = jnp.float32
    mxu = tap_ref.dtype
    HW = H * W
    mode, sign = shift_mode

    def shift(v, d):
        """y[:, p] = v[:, (p + d) % HW]  (wrap handled by masks / unused lanes)."""
        dd = d % HW
        if dd == 0:
            return v
        if mode == "roll":
            return pltpu.roll(v, (sign * d) % HW, axis=1)
        # TODO(synk): slow emergency fallback if pltpu.roll semantics ever differ.
        return jnp.concatenate([v[:, dd:], v[:, :dd]], axis=1)

    def conv1x1(v, w_ref, b_ref):
        return jnp.dot(w_ref[...], v.astype(mxu),
                       preferred_element_type=f32) + b_ref[...]

    def prelu(y, a_ref):
        a = a_ref[...]
        return jnp.where(y >= 0.0, y, y * a)

    def conv3x3(v, wcat_ref, b_ref):
        # 9 shifted + masked taps stacked along K -> ONE (C, 9C)@(9C, HW) matmul.
        t = 0
        for di in (-1, 0, 1):
            for dj in (-1, 0, 1):
                vs = shift(v, di * W + dj)
                if di != 0 or dj != 0:
                    vs = vs * masks_ref[t]          # precomputed 0/1 boundary mask
                tap_ref[t * C:(t + 1) * C, :] = vs.astype(mxu)
                t += 1
        return jnp.dot(wcat_ref[...], tap_ref[...],
                       preferred_element_type=f32) + b_ref[...]

    x = x_ref[0].astype(f32)                                      # (C, HW)

    # ---- trunk: conv1 (1x1), conv2/conv3 (3x3), folded branches + fuse ------
    out1 = prelu(conv1x1(x, w1_ref, b1_ref), a1_ref)
    out2 = prelu(conv3x3(out1, w2_ref, b2_ref), a2_ref)
    out3 = prelu(conv3x3(out2, w3_ref, b3_ref), a3_ref)

    cat_ref[0 * C:1 * C, :] = x.astype(mxu)
    cat_ref[1 * C:2 * C, :] = out1.astype(mxu)
    cat_ref[2 * C:3 * C, :] = out2.astype(mxu)
    cat_ref[3 * C:4 * C, :] = out3.astype(mxu)
    z = (jnp.dot(wz_ref[...], cat_ref[...], preferred_element_type=f32)
         + bz_ref[...])                                           # (C, HW)

    # ---- ESA ----------------------------------------------------------------
    c1_ = conv1x1(z, wc1_ref, bc1_ref)                            # (f, HW)
    cf = conv1x1(c1_, wcf_ref, bcf_ref)                           # (f, HW)

    # conv2 (3x3, stride 2, valid): evaluate the tap sum anchored at every
    # pixel; only stride-2-valid lanes are consumed by the pool masks below,
    # so no boundary masking is needed here.
    acc = jnp.zeros((f, HW), f32)
    t = 0
    for a in range(3):
        for b in range(3):
            acc = acc + jnp.dot(we2_ref[t], shift(c1_, a * W + b),
                                preferred_element_type=f32)
            t += 1
    cfull = acc + be2_ref[...]                                    # (f, HW)

    # F.max_pool2d(kernel=7, stride=3): one masked lane-max per pool window.
    pooled = [jnp.max(cfull + negm_ref[k], axis=1, keepdims=True)
              for k in range(n_pool)]                             # n_pool x (f, 1)

    # conv_max / conv3 / conv3_ on the tiny pooled map: dense maps evaluated on
    # the VPU (broadcast-multiply + cross-lane reduce) -- no MXU weight pushes.
    v1 = bmax_ref[...]                                            # (1, n_pool*f)
    for k in range(n_pool):
        v1 = v1 + jnp.sum(dmaxt_ref[k] * pooled[k], axis=0, keepdims=True)
    v1 = jnp.maximum(v1, 0.0)
    v2 = jnp.maximum(jnp.sum(d3_ref[...] * v1, axis=1, keepdims=True)
                     + b3c_ref[...], 0.0)                         # (n_pool*f, 1)
    v3 = jnp.sum(d3bt_ref[...] * v2, axis=0, keepdims=True) + b3b_ref[...]

    # conv4(bilinear_upsample(c3) + cf) folded: y = (A4*v3) @ BT + W4 @ cf + b4.
    y = jnp.dot((a4_ref[...] * v3).astype(mxu), bt_ref[...],
                preferred_element_type=f32)
    y = y + jnp.dot(w4_ref[...], cf.astype(mxu), preferred_element_type=f32)
    y = y + b4_ref[...]

    m = 1.0 / (1.0 + jnp.exp(-y))                                 # exact sigmoid
    o_ref[0] = (z * m + x).astype(o_ref.dtype)


# -----------------------------------------------------------------------------
# Builder: folds all weights (numpy float64), returns a jitted forward(x).
# -----------------------------------------------------------------------------
def build_cell_forward(params, n_feats, H, W, mxu_dtype=MXU_DTYPE):
    C, f, half, HW = n_feats, n_feats // 4, n_feats // 2, H * W
    oh, ow = (H - 3) // 2 + 1, (W - 3) // 2 + 1
    assert oh >= 7 and ow >= 7, "spatial size too small for ESA max_pool2d(7, 3)"
    negmask, ph, pw = _pool_negmask(H, W)
    n_pool = ph * pw

    g = lambda a: np.asarray(jax.device_get(a), dtype=np.float64)
    mx = lambda a: jnp.asarray(np.asarray(a), dtype=mxu_dtype)
    f32 = lambda a: jnp.asarray(np.asarray(a), dtype=jnp.float32)
    col = lambda a: f32(np.reshape(a, (-1, 1)))
    row = lambda a: f32(np.reshape(a, (1, -1)))
    # (O, I, 3, 3) -> (O, 9*I), tap index t = a*3 + b (matches kernel loop order)
    cat3 = lambda w: np.transpose(w, (0, 2, 3, 1)).reshape(w.shape[0], 9 * w.shape[1])

    # branches + fuse fold:  z = Wz @ [x; out1; out2; out3] + bz
    fw, fb = g(params["fuse_w"]), g(params["fuse_b"])
    wz = np.concatenate(
        [fw[:, k * half:(k + 1) * half] @ g(params["branch_w"][k])
         for k in range(4)], axis=1)                                  # (C, 4C)
    bz = fb + sum(fw[:, k * half:(k + 1) * half] @ g(params["branch_b"][k])
                  for k in range(4))

    # ESA conv_max / conv3 / conv3_ as dense maps on the ph x pw pooled grid.
    dmax = _conv3x3_same_dense(g(params["esa_cmax_w"]), ph, pw)
    d3 = _conv3x3_same_dense(g(params["esa_c3_w"]), ph, pw)
    d3b = _conv3x3_same_dense(g(params["esa_c3__w"]), ph, pw)
    dmaxt = np.stack([dmax[:, k * f:(k + 1) * f].T for k in range(n_pool)], 0)

    # bilinear upsample (PyTorch align_corners=False) + conv4 fold.
    U = np.einsum("Ip,Jq->IJpq", _interp_matrix(H, ph),
                  _interp_matrix(W, pw)).reshape(HW, n_pool)          # (HW, n_pool)
    bt = np.repeat(U.T, f, axis=0)                                    # (n_pool*f, HW)
    w4 = g(params["esa_c4_w"])                                        # (C, f)
    a4 = np.tile(w4, (1, n_pool))                                     # (C, n_pool*f)

    consts = [
        f32(_shift_masks(H, W)), f32(negmask),
        mx(g(params["conv1_w"])), col(g(params["conv1_b"])), col(g(params["conv1_a"])),
        mx(cat3(g(params["conv2_w"]))), col(g(params["conv2_b"])), col(g(params["conv2_a"])),
        mx(cat3(g(params["conv3_w"]))), col(g(params["conv3_b"])), col(g(params["conv3_a"])),
        mx(wz), col(bz),
        mx(g(params["esa_c1_w"])), col(g(params["esa_c1_b"])),
        mx(g(params["esa_cf_w"])), col(g(params["esa_cf_b"])),
        f32(np.transpose(g(params["esa_c2_w"]), (2, 3, 0, 1)).reshape(9, f, f)),
        col(g(params["esa_c2_b"])),
        f32(dmaxt), row(np.tile(g(params["esa_cmax_b"]), n_pool)),
        f32(d3), col(np.tile(g(params["esa_c3_b"]), n_pool)),
        f32(d3b.T), row(np.tile(g(params["esa_c3__b"]), n_pool)),
        f32(a4), mx(bt), mx(w4), col(g(params["esa_c4_b"])),
    ]

    kernel = functools.partial(_cell_kernel, H=H, W=W, C=C, f=f,
                               n_pool=n_pool, shift_mode=_probe_roll_mode())
    in_specs = ([pl.BlockSpec((1, C, HW), lambda n: (n, 0, 0))]
                + [_const_spec(a) for a in consts])
    out_spec = pl.BlockSpec((1, C, HW), lambda n: (n, 0, 0))

    # TODO(synk): the whole H*W plane is resident per grid step; add an
    # HW-tiled grid axis (with 3x3 halo handling) before scaling resolution,
    # especially on v7x (64 MiB VMEM).
    @jax.jit
    def forward(x_nchw):
        N = x_nchw.shape[0]
        x_flat = x_nchw.reshape(N, C, HW)       # NCHW -> (N, C, HW): pure reshape
        out = pl.pallas_call(
            kernel,
            out_shape=jax.ShapeDtypeStruct((N, C, HW), x_flat.dtype),
            grid=(N,),
            in_specs=in_specs,
            out_specs=out_spec,
            scratch_shapes=[pltpu.VMEM((9 * C, HW), mxu_dtype),   # conv taps
                            pltpu.VMEM((4 * C, HW), mxu_dtype)],  # fuse stack
            input_output_aliases={0: 0},        # residual input reuses the buffer
            compiler_params=pltpu.CompilerParams(
                dimension_semantics=("parallel",)),               # v7x: 2 TCs
        )(x_flat, *consts)
        return out.reshape(N, C, H, W)

    return forward


# -----------------------------------------------------------------------------
# Parameters (deterministic, synthetic), PyTorch layouts.
# -----------------------------------------------------------------------------
def init_params(key, n_feats):
    f = n_feats // 4
    half = n_feats // 2
    keys = iter(jax.random.split(key, 64))
    w_ = lambda shape, s=0.1: s * jax.random.normal(next(keys), shape, jnp.float32)
    b_ = lambda c: 0.01 * jax.random.normal(next(keys), (c,), jnp.float32)
    prelu = lambda c: jnp.full((c,), 0.25, jnp.float32)
    return {
        "conv1_w": w_((n_feats, n_feats)), "conv1_b": b_(n_feats), "conv1_a": prelu(n_feats),
        "conv2_w": w_((n_feats, n_feats, 3, 3)), "conv2_b": b_(n_feats), "conv2_a": prelu(n_feats),
        "conv3_w": w_((n_feats, n_feats, 3, 3)), "conv3_b": b_(n_feats), "conv3_a": prelu(n_feats),
        "branch_w": [w_((half, n_feats)) for _ in range(4)],
        "branch_b": [b_(half) for _ in range(4)],
        "fuse_w": w_((n_feats, 2 * n_feats)), "fuse_b": b_(n_feats),
        "esa_c1_w": w_((f, n_feats)), "esa_c1_b": b_(f),
        "esa_c2_w": w_((f, f, 3, 3)), "esa_c2_b": b_(f),
        "esa_cmax_w": w_((f, f, 3, 3)), "esa_cmax_b": b_(f),
        "esa_c3_w": w_((f, f, 3, 3)), "esa_c3_b": b_(f),
        "esa_c3__w": w_((f, f, 3, 3)), "esa_c3__b": b_(f),
        "esa_cf_w": w_((f, f)), "esa_cf_b": b_(f),
        "esa_c4_w": w_((n_feats, f)), "esa_c4_b": b_(n_feats),
    }


# -----------------------------------------------------------------------------
# Pure-JAX reference (numerical sanity check of the fused kernel).
# -----------------------------------------------------------------------------
def reference_forward(params, x):
    HIGH = lax.Precision.HIGHEST

    def conv(v, w, b, stride=1, pad=0):
        if w.ndim == 2:
            w = w[:, :, None, None]
        y = lax.conv_general_dilated(
            v, w, (stride, stride), [(pad, pad), (pad, pad)],
            dimension_numbers=("NCHW", "OIHW", "NCHW"), precision=HIGH)
        return y + b.reshape(1, -1, 1, 1)

    prelu = lambda v, a: jnp.where(v >= 0, v, v * a.reshape(1, -1, 1, 1))

    _, _, H, W = x.shape
    out1 = prelu(conv(x, params["conv1_w"], params["conv1_b"]), params["conv1_a"])
    out2 = prelu(conv(out1, params["conv2_w"], params["conv2_b"], pad=1), params["conv2_a"])
    out3 = prelu(conv(out2, params["conv3_w"], params["conv3_b"], pad=1), params["conv3_a"])
    br = [conv(t, params["branch_w"][k], params["branch_b"][k])
          for k, t in enumerate([x, out1, out2, out3])]
    z = conv(jnp.concatenate(br, axis=1), params["fuse_w"], params["fuse_b"])
    # ESA
    c1_ = conv(z, params["esa_c1_w"], params["esa_c1_b"])
    c1 = conv(c1_, params["esa_c2_w"], params["esa_c2_b"], stride=2, pad=0)
    vmax = lax.reduce_window(c1, -jnp.inf, lax.max,
                             (1, 1, 7, 7), (1, 1, 3, 3), "VALID")
    vrange = jax.nn.relu(conv(vmax, params["esa_cmax_w"], params["esa_cmax_b"], pad=1))
    c3 = jax.nn.relu(conv(vrange, params["esa_c3_w"], params["esa_c3_b"], pad=1))
    c3 = conv(c3, params["esa_c3__w"], params["esa_c3__b"], pad=1)
    my = jnp.asarray(_interp_matrix(H, c3.shape[2]), dtype=jnp.float32)
    mx = jnp.asarray(_interp_matrix(W, c3.shape[3]), dtype=jnp.float32)
    c3 = jnp.einsum("Hh,nchw,Ww->ncHW", my, c3, mx, precision=HIGH)
    cf = conv(c1_, params["esa_cf_w"], params["esa_cf_b"])
    c4 = conv(c3 + cf, params["esa_c4_w"], params["esa_c4_b"])
    m = jax.nn.sigmoid(c4)
    return z * m + x


# -----------------------------------------------------------------------------
if __name__ == "__main__":
    n_feats, N, H, W = 16, 2, 32, 32
    key = jax.random.PRNGKey(0)
    pkey, xkey = jax.random.split(key)
    params = init_params(pkey, n_feats)
    x = jax.random.normal(xkey, (N, n_feats, H, W), jnp.float32)   # NCHW input

    _probe_roll_mode()                      # resolve roll semantics outside jit
    fwd = build_cell_forward(params, n_feats, H, W)

    out = jax.block_until_ready(fwd(x))
    assert out.shape == (N, n_feats, H, W) and out.dtype == jnp.float32
    assert bool(jnp.all(jnp.isfinite(out)))

    ref = jax.block_until_ready(jax.jit(reference_forward)(params, x))
    err = float(jnp.max(jnp.abs(out - ref)))
    assert err < 3e-2, f"mismatch vs pure-JAX reference: max abs err = {err}"

    print("KERNEL_OK")
</pallas_src>

<mosaic_0001>
module attributes {stable_mosaic.version = 11 : i64} {
  func.func @k(%arg0: memref<8x1024xf32, #tpu.memory_space<vmem>>, %arg1: memref<8x1024xf32, #tpu.memory_space<vmem>>) attributes {dimension_semantics = [], scalar_prefetch = 0 : i64, scratch_operands = 0 : i64, tpu.core_type = #tpu.core_type<tc>} {
    %c0 = arith.constant 0 : index
    %c0_0 = arith.constant 0 : index
    %0 = vector.load %arg0[%c0, %c0_0] : memref<8x1024xf32, #tpu.memory_space<vmem>>, vector<8x1024xf32>
    %c3_i32 = arith.constant 3 : i32
    %1 = tpu.dynamic_rotate %0 by %c3_i32 dim 1 : vector<8x1024xf32>, i32 -> vector<8x1024xf32>
    %c0_1 = arith.constant 0 : index
    %c0_2 = arith.constant 0 : index
    %2 = vector.load %arg1[%c0_1, %c0_2] : memref<8x1024xf32, #tpu.memory_space<vmem>>, vector<8x1024xf32>
    tpu.vector_store %arg1[%c0_1, %c0_2], %1 {strides = array<i32>} : memref<8x1024xf32, #tpu.memory_space<vmem>>, vector<8x1024xf32>,
    return
  }
}

module attributes {stable_mosaic.version = 11 : i64} {
  func.func @_cell_kernel(%arg0: i32, %arg1: memref<1x16x1024xf32, #tpu.memory_space<vmem>>, %arg2: memref<9x1x1024xf32, #tpu.memory_space<vmem>>, %arg3: memref<9x1x1024xf32, #tpu.memory_space<vmem>>, %arg4: memref<16x16xbf16, #tpu.memory_space<vmem>>, %arg5: memref<16x1xf32, #tpu.memory_space<vmem>>, %arg6: memref<16x1xf32, #tpu.memory_space<vmem>>, %arg7: memref<16x144xbf16, #tpu.memory_space<vmem>>, %arg8: memref<16x1xf32, #tpu.memory_space<vmem>>, %arg9: memref<16x1xf32, #tpu.memory_space<vmem>>, %arg10: memref<16x144xbf16, #tpu.memory_space<vmem>>, %arg11: memref<16x1xf32, #tpu.memory_space<vmem>>, %arg12: memref<16x1xf32, #tpu.memory_space<vmem>>, %arg13: memref<16x64xbf16, #tpu.memory_space<vmem>>, %arg14: memref<16x1xf32, #tpu.memory_space<vmem>>, %arg15: memref<4x16xbf16, #tpu.memory_space<vmem>>, %arg16: memref<4x1xf32, #tpu.memory_space<vmem>>, %arg17: memref<4x4xbf16, #tpu.memory_space<vmem>>, %arg18: memref<4x1xf32, #tpu.memory_space<vmem>>, %arg19: memref<9x4x4xf32, #tpu.memory_space<vmem>>, %arg20: memref<4x1xf32, #tpu.memory_space<vmem>>, %arg21: memref<9x4x36xf32, #tpu.memory_space<vmem>>, %arg22: memref<1x36xf32, #tpu.memory_space<vmem>>, %arg23: memref<36x36xf32, #tpu.memory_space<vmem>>, %arg24: memref<36x1xf32, #tpu.memory_space<vmem>>, %arg25: memref<36x36xf32, #tpu.memory_space<vmem>>, %arg26: memref<1x36xf32, #tpu.memory_space<vmem>>, %arg27: memref<16x36xf32, #tpu.memory_space<vmem>>, %arg28: memref<36x1024xbf16, #tpu.memory_space<vmem>>, %arg29: memref<16x4xbf16, #tpu.memory_space<vmem>>, %arg30: memref<16x1xf32, #tpu.memory_space<vmem>>, %arg31: memref<1x16x1024xf32, #tpu.memory_space<vmem>>, %arg32: memref<144x1024xbf16, #tpu.memory_space<vmem>>, %arg33: memref<64x1024xbf16, #tpu.memory_space<vmem>>) attributes {dimension_semantics = [#tpu.dimension_semantics<parallel>], iteration_bounds = array<i64: 2>, scalar_prefetch = 0 : i64, scratch_operands = 2 : i64, tpu.core_type = #tpu.core_type<tc>, window_params = [{transform_indices = @transform_0, window_bounds = array<i64: 1, 16, 1024>}, {pipeline_mode = #tpu.pipeline_mode<synchronous>, transform_indices = @transform_1, window_bounds = array<i64: 9, 1, 1024>}, {pipeline_mode = #tpu.pipeline_mode<synchronous>, transform_indices = @transform_2, window_bounds = array<i64: 9, 1, 1024>}, {pipeline_mode = #tpu.pipeline_mode<synchronous>, transform_indices = @transform_3, window_bounds = array<i64: 16, 16>}, {pipeline_mode = #tpu.pipeline_mode<synchronous>, transform_indices = @transform_4, window_bounds = array<i64: 16, 1>}, {pipeline_mode = #tpu.pipeline_mode<synchronous>, transform_indices = @transform_5, window_bounds = array<i64: 16, 1>}, {pipeline_mode = #tpu.pipeline_mode<synchronous>, transform_indices = @transform_6, window_bounds = array<i64: 16, 144>}, {pipeline_mode = #tpu.pipeline_mode<synchronous>, transform_indices = @transform_7, window_bounds = array<i64: 16, 1>}, {pipeline_mode = #tpu.pipeline_mode<synchronous>, transform_indices = @transform_8, window_bounds = array<i64: 16, 1>}, {pipeline_mode = #tpu.pipeline_mode<synchronous>, transform_indices = @transform_9, window_bounds = array<i64: 16, 144>}, {pipeline_mode = #tpu.pipeline_mode<synchronous>, transform_indices = @transform_10, window_bounds = array<i64: 16, 1>}, {pipeline_mode = #tpu.pipeline_mode<synchronous>, transform_indices = @transform_11, window_bounds = array<i64: 16, 1>}, {pipeline_mode = #tpu.pipeline_mode<synchronous>, transform_indices = @transform_12, window_bounds = array<i64: 16, 64>}, {pipeline_mode = #tpu.pipeline_mode<synchronous>, transform_indices = @transform_13, window_bounds = array<i64: 16, 1>}, {pipeline_mode = #tpu.pipeline_mode<synchronous>, transform_indices = @transform_14, window_bounds = array<i64: 4, 16>}, {pipeline_mode = #tpu.pipeline_mode<synchronous>, transform_indices = @transform_15, window_bounds = array<i64: 4, 1>}, {pipeline_mode = #tpu.pipeline_mode<synchronous>, transform_indices = @transform_16, window_bounds = array<i64: 4, 4>}, {pipeline_mode = #tpu.pipeline_mode<synchronous>, transform_indices = @transform_17, window_bounds = array<i64: 4, 1>}, {pipeline_mode = #tpu.pipeline_mode<synchronous>, transform_indices = @transform_18, window_bounds = array<i64: 9, 4, 4>}, {pipeline_mode = #tpu.pipeline_mode<synchronous>, transform_indices = @transform_19, window_bounds = array<i64: 4, 1>}, {pipeline_mode = #tpu.pipeline_mode<synchronous>, transform_indices = @transform_20, window_bounds = array<i64: 9, 4, 36>}, {pipeline_mode = #tpu.pipeline_mode<synchronous>, transform_indices = @transform_21, window_bounds = array<i64: 1, 36>}, {pipeline_mode = #tpu.pipeline_mode<synchronous>, transform_indices = @transform_22, window_bounds = array<i64: 36, 36>}, {pipeline_mode = #tpu.pipeline_mode<synchronous>, transform_indices = @transform_23, window_bounds = array<i64: 36, 1>}, {pipeline_mode = #tpu.pipeline_mode<synchronous>, transform_indices = @transform_24, window_bounds = array<i64: 36, 36>}, {pipeline_mode = #tpu.pipeline_mode<synchronous>, transform_indices = @transform_25, window_bounds = array<i64: 1, 36>}, {pipeline_mode = #tpu.pipeline_mode<synchronous>, transform_indices = @transform_26, window_bounds = array<i64: 16, 36>}, {pipeline_mode = #tpu.pipeline_mode<synchronous>, transform_indices = @transform_27, window_bounds = array<i64: 36, 1024>}, {pipeline_mode = #tpu.pipeline_mode<synchronous>, transform_indices = @transform_28, window_bounds = array<i64: 16, 4>}, {pipeline_mode = #tpu.pipeline_mode<synchronous>, transform_indices = @transform_29, window_bounds = array<i64: 16, 1>}, {transform_indices = @transform_30, window_bounds = array<i64: 1, 16, 1024>}]} {
    %c0 = arith.constant 0 : index
    %c0_0 = arith.constant 0 : index
    %c0_1 = arith.constant 0 : index
    %0 = vector.load %arg1[%c0, %c0_0, %c0_1] : memref<1x16x1024xf32, #tpu.memory_space<vmem>>, vector<1x16x1024xf32>
    %1 = vector.shape_cast %0 : vector<1x16x1024xf32> to vector<16x1024xf32>
    %c0_2 = arith.constant 0 : index
    %c0_3 = arith.constant 0 : index
    %2 = vector.load %arg4[%c0_2, %c0_3] : memref<16x16xbf16, #tpu.memory_space<vmem>>, vector<16x16xbf16>
    %3 = arith.truncf %1 : vector<16x1024xf32> to vector<16x1024xbf16>
    %cst = arith.constant dense<0.000000e+00> : vector<16x1024xf32>
    %4 = tpu.matmul %2, %3, %cst {dimension_numbers = #tpu.dot_dimension_numbers<[1], [0], [0], [1], [0, 0, 1, 1], [], []>} : vector<16x16xbf16>, vector<16x1024xbf16>, vector<16x1024xf32> -> vector<16x1024xf32>
    %c0_4 = arith.constant 0 : index
    %c0_5 = arith.constant 0 : index
    %5 = vector.load %arg5[%c0_4, %c0_5] : memref<16x1xf32, #tpu.memory_space<vmem>>, vector<16x1xf32>
    %6 = vector.broadcast %5 : vector<16x1xf32> to vector<16x1024xf32>
    %7 = arith.addf %4, %6 : vector<16x1024xf32>
    %c0_6 = arith.constant 0 : index
    %c0_7 = arith.constant 0 : index
    %8 = vector.load %arg6[%c0_6, %c0_7] : memref<16x1xf32, #tpu.memory_space<vmem>>, vector<16x1xf32>
    %cst_8 = arith.constant 0.000000e+00 : f32
    %9 = vector.broadcast %cst_8 : f32 to vector<16x1024xf32>
    %10 = arith.cmpf oge, %7, %9 : vector<16x1024xf32>
    %11 = vector.broadcast %8 : vector<16x1xf32> to vector<16x1024xf32>
    %12 = arith.mulf %7, %11 : vector<16x1024xf32>
    %13 = arith.select %10, %7, %12 : vector<16x1024xi1>, vector<16x1024xf32>
    %14 = vector.extract_strided_slice %13 {offsets = [0, 991], sizes = [16, 33], strides = [1, 1]} : vector<16x1024xf32> to vector<16x33xf32>
    %15 = vector.extract_strided_slice %13 {offsets = [0, 0], sizes = [16, 991], strides = [1, 1]} : vector<16x1024xf32> to vector<16x991xf32>
    %16 = tpu.concatenate %14, %15 in 1 : vector<16x33xf32>, vector<16x991xf32> -> vector<16x1024xf32>
    %c0_9 = arith.constant 0 : index
    %c0_10 = arith.constant 0 : index
    %c0_11 = arith.constant 0 : index
    %17 = vector.load %arg2[%c0_9, %c0_10, %c0_11] : memref<9x1x1024xf32, #tpu.memory_space<vmem>>, vector<1x1x1024xf32>
    %18 = vector.shape_cast %17 : vector<1x1x1024xf32> to vector<1x1024xf32>
    %19 = vector.broadcast %18 : vector<1x1024xf32> to vector<16x1024xf32>
    %20 = arith.mulf %16, %19 : vector<16x1024xf32>
    %21 = arith.truncf %20 : vector<16x1024xf32> to vector<16x1024xbf16>
    %c0_12 = arith.constant 0 : index
    %c0_13 = arith.constant 0 : index
    %22 = vector.load %arg32[%c0_12, %c0_13] : memref<144x1024xbf16, #tpu.memory_space<vmem>>, vector<16x1024xbf16>
    tpu.vector_store %arg32[%c0_12, %c0_13], %21 {strides = array<i32>} : memref<144x1024xbf16, #tpu.memory_space<vmem>>, vector<16x1024xbf16>,
    %23 = vector.extract_strided_slice %13 {offsets = [0, 992], sizes = [16, 32], strides = [1, 1]} : vector<16x1024xf32> to vector<16x32xf32>
    %24 = vector.extract_strided_slice %13 {offsets = [0, 0], sizes = [16, 992], strides = [1, 1]} : vector<16x1024xf32> to vector<16x992xf32>
    %25 = tpu.concatenate %23, %24 in 1 : vector<16x32xf32>, vector<16x992xf32> -> vector<16x1024xf32>
    %c1 = arith.constant 1 : index
    %c0_14 = arith.constant 0 : index
    %c0_15 = arith.constant 0 : index
    %26 = vector.load %arg2[%c1, %c0_14, %c0_15] : memref<9x1x1024xf32, #tpu.memory_space<vmem>>, vector<1x1x1024xf32>
    %27 = vector.shape_cast %26 : vector<1x1x1024xf32> to vector<1x1024xf32>
    %28 = vector.broadcast %27 : vector<1x1024xf32> to vector<16x1024xf32>
    %29 = arith.mulf %25, %28 : vector<16x1024xf32>
    %30 = arith.truncf %29 : vector<16x1024xf32> to vector<16x1024xbf16>
    %c16 = arith.constant 16 : index
    %c0_16 = arith.constant 0 : index
    %31 = vector.load %arg32[%c16, %c0_16] : memref<144x1024xbf16, #tpu.memory_space<vmem>>, vector<16x1024xbf16>
    tpu.vector_store %arg32[%c16, %c0_16], %30 {strides = array<i32>} : memref<144x1024xbf16, #tpu.memory_space<vmem>>, vector<16x1024xbf16>,
    %32 = vector.extract_strided_slice %13 {offsets = [0, 993], sizes = [16, 31], strides = [1, 1]} : vector<16x1024xf32> to vector<16x31xf32>
    %33 = vector.extract_strided_slice %13 {offsets = [0, 0], sizes = [16, 993], strides = [1, 1]} : vector<16x1024xf32> to vector<16x993xf32>
    %34 = tpu.concatenate %32, %33 in 1 : vector<16x31xf32>, vector<16x993xf32> -> vector<16x1024xf32>
    %c2 = arith.constant 2 : index
    %c0_17 = arith.constant 0 : index
    %c0_18 = arith.constant 0 : index
    %35 = vector.load %arg2[%c2, %c0_17, %c0_18] : memref<9x1x1024xf32, #tpu.memory_space<vmem>>, vector<1x1x1024xf32>
    %36 = vector.shape_cast %35 : vector<1x1x1024xf32> to vector<1x1024xf32>
    %37 = vector.broadcast %36 : vector<1x1024xf32> to vector<16x1024xf32>
    %38 = arith.mulf %34, %37 : vector<16x1024xf32>
    %39 = arith.truncf %38 : vector<16x1024xf32> to vector<16x1024xbf16>
    %c32 = arith.constant 32 : index
    %c0_19 = arith.constant 0 : index
    %40 = vector.load %arg32[%c32, %c0_19] : memref<144x1024xbf16, #tpu.memory_space<vmem>>, vector<16x1024xbf16>
    tpu.vector_store %arg32[%c32, %c0_19], %39 {strides = array<i32>} : memref<144x1024xbf16, #tpu.memory_space<vmem>>, vector<16x1024xbf16>,
    %41 = vector.extract_strided_slice %13 {offsets = [0, 1023], sizes = [16, 1], strides = [1, 1]} : vector<16x1024xf32> to vector<16x1xf32>
    %42 = vector.extract_strided_slice %13 {offsets = [0, 0], sizes = [16, 1023], strides = [1, 1]} : vector<16x1024xf32> to vector<16x1023xf32>
    %43 = tpu.concatenate %41, %42 in 1 : vector<16x1xf32>, vector<16x1023xf32> -> vector<16x1024xf32>
    %c3 = arith.constant 3 : index
    %c0_20 = arith.constant 0 : index
    %c0_21 = arith.constant 0 : index
    %44 = vector.load %arg2[%c3, %c0_20, %c0_21] : memref<9x1x1024xf32, #tpu.memory_space<vmem>>, vector<1x1x1024xf32>
    %45 = vector.shape_cast %44 : vector<1x1x1024xf32> to vector<1x1024xf32>
    %46 = vector.broadcast %45 : vector<1x1024xf32> to vector<16x1024xf32>
    %47 = arith.mulf %43, %46 : vector<16x1024xf32>
    %48 = arith.truncf %47 : vector<16x1024xf32> to vector<16x1024xbf16>
    %c48 = arith.constant 48 : index
    %c0_22 = arith.constant 0 : index
    %49 = vector.load %arg32[%c48, %c0_22] : memref<144x1024xbf16, #tpu.memory_space<vmem>>, vector<16x1024xbf16>
    tpu.vector_store %arg32[%c48, %c0_22], %48 {strides = array<i32>} : memref<144x1024xbf16, #tpu.memory_space<vmem>>, vector<16x1024xbf16>,
    %50 = arith.truncf %13 : vector<16x1024xf32> to vector<16x1024xbf16>
    %c64 = arith.constant 64 : index
    %c0_23 = arith.constant 0 : index
    %51 = vector.load %arg32[%c64, %c0_23] : memref<144x1024xbf16, #tpu.memory_space<vmem>>, vector<16x1024xbf16>
    tpu.vector_store %arg32[%c64, %c0_23], %50 {strides = array<i32>} : memref<144x1024xbf16, #tpu.memory_space<vmem>>, vector<16x1024xbf16>,
    %52 = vector.extract_strided_slice %13 {offsets = [0, 1], sizes = [16, 1023], strides = [1, 1]} : vector<16x1024xf32> to vector<16x1023xf32>
    %53 = vector.extract_strided_slice %13 {offsets = [0, 0], sizes = [16, 1], strides = [1, 1]} : vector<16x1024xf32> to vector<16x1xf32>
    %54 = tpu.concatenate %52, %53 in 1 : vector<16x1023xf32>, vector<16x1xf32> -> vector<16x1024xf32>
    %c5 = arith.constant 5 : index
    %c0_24 = arith.constant 0 : index
    %c0_25 = arith.constant 0 : index
    %55 = vector.load %arg2[%c5, %c0_24, %c0_25] : memref<9x1x1024xf32, #tpu.memory_space<vmem>>, vector<1x1x1024xf32>
    %56 = vector.shape_cast %55 : vector<1x1x1024xf32> to vector<1x1024xf32>
    %57 = vector.broadcast %56 : vector<1x1024xf32> to vector<16x1024xf32>
    %58 = arith.mulf %54, %57 : vector<16x1024xf32>
    %59 = arith.truncf %58 : vector<16x1024xf32> to vector<16x1024xbf16>
    %c80 = arith.constant 80 : index
    %c0_26 = arith.constant 0 : index
    %60 = vector.load %arg32[%c80, %c0_26] : memref<144x1024xbf16, #tpu.memory_space<vmem>>, vector<16x1024xbf16>
    tpu.vector_store %arg32[%c80, %c0_26], %59 {strides = array<i32>} : memref<144x1024xbf16, #tpu.memory_space<vmem>>, vector<16x1024xbf16>,
    %61 = vector.extract_strided_slice %13 {offsets = [0, 31], sizes = [16, 993], strides = [1, 1]} : vector<16x1024xf32> to vector<16x993xf32>
    %62 = vector.extract_strided_slice %13 {offsets = [0, 0], sizes = [16, 31], strides = [1, 1]} : vector<16x1024xf32> to vector<16x31xf32>
    %63 = tpu.concatenate %61, %62 in 1 : vector<16x993xf32>, vector<16x31xf32> -> vector<16x1024xf32>
    %c6 = arith.constant 6 : index
    %c0_27 = arith.constant 0 : index
    %c0_28 = arith.constant 0 : index
    %64 = vector.load %arg2[%c6, %c0_27, %c0_28] : memref<9x1x1024xf32, #tpu.memory_space<vmem>>, vector<1x1x1024xf32>
    %65 = vector.shape_cast %64 : vector<1x1x1024xf32> to vector<1x1024xf32>
    %66 = vector.broadcast %65 : vector<1x1024xf32> to vector<16x1024xf32>
    %67 = arith.mulf %63, %66 : vector<16x1024xf32>
    %68 = arith.truncf %67 : vector<16x1024xf32> to vector<16x1024xbf16>
    %c96 = arith.constant 96 : index
    %c0_29 = arith.constant 0 : index
    %69 = vector.load %arg32[%c96, %c0_29] : memref<144x1024xbf16, #tpu.memory_space<vmem>>, vector<16x1024xbf16>
    tpu.vector_store %arg32[%c96, %c0_29], %68 {strides = array<i32>} : memref<144x1024xbf16, #tpu.memory_space<vmem>>, vector<16x1024xbf16>,
    %70 = vector.extract_strided_slice %13 {offsets = [0, 32], sizes = [16, 992], strides = [1, 1]} : vector<16x1024xf32> to vector<16x992xf32>
    %71 = vector.extract_strided_slice %13 {offsets = [0, 0], sizes = [16, 32], strides = [1, 1]} : vector<16x1024xf32> to vector<16x32xf32>
    %72 = tpu.concatenate %70, %71 in 1 : vector<16x992xf32>, vector<16x32xf32> -> vector<16x1024xf32>
    %c7 = arith.constant 7 : index
    %c0_30 = arith.constant 0 : index
    %c0_31 = arith.constant 0 : index
    %73 = vector.load %arg2[%c7, %c0_30, %c0_31] : memref<9x1x1024xf32, #tpu.memory_space<vmem>>, vector<1x1x1024xf32>
    %74 = vector.shape_cast %73 : vector<1x1x1024xf32> to vector<1x1024xf32>
    %75 = vector.broadcast %74 : vector<1x1024xf32> to vector<16x1024xf32>
    %76 = arith.mulf %72, %75 : vector<16x1024xf32>
    %77 = arith.truncf %76 : vector<16x1024xf32> to vector<16x1024xbf16>
    %c112 = arith.constant 112 : index
    %c0_32 = arith.constant 0 : index
    %78 = vector.load %arg32[%c112, %c0_32] : memref<144x1024xbf16, #tpu.memory_space<vmem>>, vector<16x1024xbf16>
    tpu.vector_store %arg32[%c112, %c0_32], %77 {strides = array<i32>} : memref<144x1024xbf16, #tpu.memory_space<vmem>>, vector<16x1024xbf16>,
    %79 = vector.extract_strided_slice %13 {offsets = [0, 33], sizes = [16, 991], strides = [1, 1]} : vector<16x1024xf32> to vector<16x991xf32>
    %80 = vector.extract_strided_slice %13 {offsets = [0, 0], sizes = [16, 33], strides = [1, 1]} : vector<16x1024xf32> to vector<16x33xf32>
    %81 = tpu.concatenate %79, %80 in 1 : vector<16x991xf32>, vector<16x33xf32> -> vector<16x1024xf32>
    %c8 = arith.constant 8 : index
    %c0_33 = arith.constant 0 : index
    %c0_34 = arith.constant 0 : index
    %82 = vector.load %arg2[%c8, %c0_33, %c0_34] : memref<9x1x1024xf32, #tpu.memory_space<vmem>>, vector<1x1x1024xf32>
    %83 = vector.shape_cast %82 : vector<1x1x1024xf32> to vector<1x1024xf32>
    %84 = vector.broadcast %83 : vector<1x1024xf32> to vector<16x1024xf32>
    %85 = arith.mulf %81, %84 : vector<16x1024xf32>
    %86 = arith.truncf %85 : vector<16x1024xf32> to vector<16x1024xbf16>
    %c128 = arith.constant 128 : index
    %c0_35 = arith.constant 0 : index
    %87 = vector.load %arg32[%c128, %c0_35] : memref<144x1024xbf16, #tpu.memory_space<vmem>>, vector<16x1024xbf16>
    tpu.vector_store %arg32[%c128, %c0_35], %86 {strides = array<i32>} : memref<144x1024xbf16, #tpu.memory_space<vmem>>, vector<16x1024xbf16>,
    %c0_36 = arith.constant 0 : index
    %c0_37 = arith.constant 0 : index
    %88 = vector.load %arg7[%c0_36, %c0_37] : memref<16x144xbf16, #tpu.memory_space<vmem>>, vector<16x144xbf16>
    %c0_38 = arith.constant 0 : index
    %c0_39 = arith.constant 0 : index
    %89 = vector.load %arg32[%c0_38, %c0_39] : memref<144x1024xbf16, #tpu.memory_space<vmem>>, vector<144x1024xbf16>
    %cst_40 = arith.constant dense<0.000000e+00> : vector<16x1024xf32>
    %90 = tpu.matmul %88, %89, %cst_40 {dimension_numbers = #tpu.dot_dimension_numbers<[1], [0], [0], [1], [0, 0, 1, 1], [], []>} : vector<16x144xbf16>, vector<144x1024xbf16>, vector<16x1024xf32> -> vector<16x1024xf32>
    %c0_41 = arith.constant 0 : index
    %c0_42 = arith.constant 0 : index
    %91 = vector.load %arg8[%c0_41, %c0_42] : memref<16x1xf32, #tpu.memory_space<vmem>>, vector<16x1xf32>
    %92 = vector.broadcast %91 : vector<16x1xf32> to vector<16x1024xf32>
    %93 = arith.addf %90, %92 : vector<16x1024xf32>
    %c0_43 = arith.constant 0 : index
    %c0_44 = arith.constant 0 : index
    %94 = vector.load %arg9[%c0_43, %c0_44] : memref<16x1xf32, #tpu.memory_space<vmem>>, vector<16x1xf32>
    %cst_45 = arith.constant 0.000000e+00 : f32
    %95 = vector.broadcast %cst_45 : f32 to vector<16x1024xf32>
    %96 = arith.cmpf oge, %93, %95 : vector<16x1024xf32>
    %97 = vector.broadcast %94 : vector<16x1xf32> to vector<16x1024xf32>
    %98 = arith.mulf %93, %97 : vector<16x1024xf32>
    %99 = arith.select %96, %93, %98 : vector<16x1024xi1>, vector<16x1024xf32>
    %100 = vector.extract_strided_slice %99 {offsets = [0, 991], sizes = [16, 33], strides = [1, 1]} : vector<16x1024xf32> to vector<16x33xf32>
    %101 = vector.extract_strided_slice %99 {offsets = [0, 0], sizes = [16, 991], strides = [1, 1]} : vector<16x1024xf32> to vector<16x991xf32>
    %102 = tpu.concatenate %100, %101 in 1 : vector<16x33xf32>, vector<16x991xf32> -> vector<16x1024xf32>
    %c0_46 = arith.constant 0 : index
    %c0_47 = arith.constant 0 : index
    %c0_48 = arith.constant 0 : index
    %103 = vector.load %arg2[%c0_46, %c0_47, %c0_48] : memref<9x1x1024xf32, #tpu.memory_space<vmem>>, vector<1x1x1024xf32>
    %104 = vector.shape_cast %103 : vector<1x1x1024xf32> to vector<1x1024xf32>
    %105 = vector.broadcast %104 : vector<1x1024xf32> to vector<16x1024xf32>
    %106 = arith.mulf %102, %105 : vector<16x1024xf32>
    %107 = arith.truncf %106 : vector<16x1024xf32> to vector<16x1024xbf16>
    %c0_49 = arith.constant 0 : index
    %c0_50 = arith.constant 0 : index
    %108 = vector.load %arg32[%c0_49, %c0_50] : memref<144x1024xbf16, #tpu.memory_space<vmem>>, vector<16x1024xbf16>
    tpu.vector_store %arg32[%c0_49, %c0_50], %107 {strides = array<i32>} : memref<144x1024xbf16, #tpu.memory_space<vmem>>, vector<16x1024xbf16>,
    %109 = vector.extract_strided_slice %99 {offsets = [0, 992], sizes = [16, 32], strides = [1, 1]} : vector<16x1024xf32> to vector<16x32xf32>
    %110 = vector.extract_strided_slice %99 {offsets = [0, 0], sizes = [16, 992], strides = [1, 1]} : vector<16x1024xf32> to vector<16x992xf32>
    %111 = tpu.concatenate %109, %110 in 1 : vector<16x32xf32>, vector<16x992xf32> -> vector<16x1024xf32>
    %c1_51 = arith.constant 1 : index
    %c0_52 = arith.constant 0 : index
    %c0_53 = arith.constant 0 : index
    %112 = vector.load %arg2[%c1_51, %c0_52, %c0_53] : memref<9x1x1024xf32, #tpu.memory_space<vmem>>, vector<1x1x1024xf32>
    %113 = vector.shape_cast %112 : vector<1x1x1024xf32> to vector<1x1024xf32>
    %114 = vector.broadcast %113 : vector<1x1024xf32> to vector<16x1024xf32>
    %115 = arith.mulf %111, %114 : vector<16x1024xf32>
    %116 = arith.truncf %115 : vector<16x1024xf32> to vector<16x1024xbf16>
    %c16_54 = arith.constant 16 : index
    %c0_55 = arith.constant 0 : index
    %117 = vector.load %arg32[%c16_54, %c0_55] : memref<144x1024xbf16, #tpu.memory_space<vmem>>, vector<16x1024xbf16>
    tpu.vector_store %arg32[%c16_54, %c0_55], %116 {strides = array<i32>} : memref<144x1024xbf16, #tpu.memory_space<vmem>>, vector<16x1024xbf16>,
    %118 = vector.extract_strided_slice %99 {offsets = [0, 993], sizes = [16, 31], strides = [1, 1]} : vector<16x1024xf32> to vector<16x31xf32>
    %119 = vector.extract_strided_slice %99 {offsets = [0, 0], sizes = [16, 993], strides = [1, 1]} : vector<16x1024xf32> to vector<16x993xf32>
    %120 = tpu.concatenate %118, %119 in 1 : vector<16x31xf32>, vector<16x993xf32> -> vector<16x1024xf32>
    %c2_56 = arith.constant 2 : index
    %c0_57 = arith.constant 0 : index
    %c0_58 = arith.constant 0 : index
    %121 = vector.load %arg2[%c2_56, %c0_57, %c0_58] : memref<9x1x1024xf32, #tpu.memory_space<vmem>>, vector<1x1x1024xf32>
    %122 = vector.shape_cast %121 : vector<1x1x1024xf32> to vector<1x1024xf32>
    %123 = vector.broadcast %122 : vector<1x1024xf32> to vector<16x1024xf32>
    %124 = arith.mulf %120, %123 : vector<16x1024xf32>
    %125 = arith.truncf %124 : vector<16x1024xf32> to vector<16x1024xbf16>
    %c32_59 = arith.constant 32 : index
    %c0_60 = arith.constant 0 : index
    %126 = vector.load %arg32[%c32_59, %c0_60] : memref<144x1024xbf16, #tpu.memory_space<vmem>>, vector<16x1024xbf16>
    tpu.vector_store %arg32[%c32_59, %c0_60], %125 {strides = array<i32>} : memref<144x1024xbf16, #tpu.memory_space<vmem>>, vector<16x1024xbf16>,
    %127 = vector.extract_strided_slice %99 {offsets = [0, 1023], sizes = [16, 1], strides = [1, 1]} : vector<16x1024xf32> to vector<16x1xf32>
    %128 = vector.extract_strided_slice %99 {offsets = [0, 0], sizes = [16, 1023], strides = [1, 1]} : vector<16x1024xf32> to vector<16x1023xf32>
    %129 = tpu.concatenate %127, %128 in 1 : vector<16x1xf32>, vector<16x1023xf32> -> vector<16x1024xf32>
    %c3_61 = arith.constant 3 : index
    %c0_62 = arith.constant 0 : index
    %c0_63 = arith.constant 0 : index
    %130 = vector.load %arg2[%c3_61, %c0_62, %c0_63] : memref<9x1x1024xf32, #tpu.memory_space<vmem>>, vector<1x1x1024xf32>
    %131 = vector.shape_cast %130 : vector<1x1x1024xf32> to vector<1x1024xf32>
    %132 = vector.broadcast %131 : vector<1x1024xf32> to vector<16x1024xf32>
    %133 = arith.mulf %129, %132 : vector<16x1024xf32>
    %134 = arith.truncf %133 : vector<16x1024xf32> to vector<16x1024xbf16>
    %c48_64 = arith.constant 48 : index
    %c0_65 = arith.constant 0 : index
    %135 = vector.load %arg32[%c48_64, %c0_65] : memref<144x1024xbf16, #tpu.memory_space<vmem>>, vector<16x1024xbf16>
    tpu.vector_store %arg32[%c48_64, %c0_65], %134 {strides = array<i32>} : memref<144x1024xbf16, #tpu.memory_space<vmem>>, vector<16x1024xbf16>,
    %136 = arith.truncf %99 : vector<16x1024xf32> to vector<16x1024xbf16>
    %c64_66 = arith.constant 64 : index
    %c0_67 = arith.constant 0 : index
    %137 = vector.load %arg32[%c64_66, %c0_67] : memref<144x1024xbf16, #tpu.memory_space<vmem>>, vector<16x1024xbf16>
    tpu.vector_store %arg32[%c64_66, %c0_67], %136 {strides = array<i32>} : memref<144x1024xbf16, #tpu.memory_space<vmem>>, vector<16x1024xbf16>,
    %138 = vector.extract_strided_slice %99 {offsets = [0, 1], sizes = [16, 1023], strides = [1, 1]} : vector<16x1024xf32> to vector<16x1023xf32>
    %139 = vector.extract_strided_slice %99 {offsets = [0, 0], sizes = [16, 1], strides = [1, 1]} : vector<16x1024xf32> to vector<16x1xf32>
    %140 = tpu.concatenate %138, %139 in 1 : vector<16x1023xf32>, vector<16x1xf32> -> vector<16x1024xf32>
    %c5_68 = arith.constant 5 : index
    %c0_69 = arith.constant 0 : index
    %c0_70 = arith.constant 0 : index
    %141 = vector.load %arg2[%c5_68, %c0_69, %c0_70] : memref<9x1x1024xf32, #tpu.memory_space<vmem>>, vector<1x1x1024xf32>
    %142 = vector.shape_cast %141 : vector<1x1x1024xf32> to vector<1x1024xf32>
    %143 = vector.broadcast %142 : vector<1x1024xf32> to vector<16x1024xf32>
    %144 = arith.mulf %140, %143 : vector<16x1024xf32>
    %145 = arith.truncf %144 : vector<16x1024xf32> to vector<16x1024xbf16>
    %c80_71 = arith.constant 80 : index
    %c0_72 = arith.constant 0 : index
    %146 = vector.load %arg32[%c80_71, %c0_72] : memref<144x1024xbf16, #tpu.memory_space<vmem>>, vector<16x1024xbf16>
    tpu.vector_store %arg32[%c80_71, %c0_72], %145 {strides = array<i32>} : memref<144x1024xbf16, #tpu.memory_space<vmem>>, vector<16x1024xbf16>,
    %147 = vector.extract_strided_slice %99 {offsets = [0, 31], sizes = [16, 993], strides = [1, 1]} : vector<16x1024xf32> to vector<16x993xf32>
    %148 = vector.extract_strided_slice %99 {offsets = [0, 0], sizes = [16, 31], strides = [1, 1]} : vector<16x1024xf32> to vector<16x31xf32>
    %149 = tpu.concatenate %147, %148 in 1 : vector<16x993xf32>, vector<16x31xf32> -> vector<16x1024xf32>
    %c6_73 = arith.constant 6 : index
    %c0_74 = arith.constant 0 : index
    %c0_75 = arith.constant 0 : index
    %150 = vector.load %arg2[%c6_73, %c0_74, %c0_75] : memref<9x1x1024xf32, #tpu.memory_space<vmem>>, vector<1x1x1024xf32>
    %151 = vector.shape_cast %150 : vector<1x1x1024xf32> to vector<1x1024xf32>
    %152 = vector.broadcast %151 : vector<1x1024xf32> to vector<16x1024xf32>
    %153 = arith.mulf %149, %152 : vector<16x1024xf32>
    %154 = arith.truncf %153 : vector<16x1024xf32> to vector<16x1024xbf16>
    %c96_76 = arith.constant 96 : index
    %c0_77 = arith.constant 0 : index
    %155 = vector.load %arg32[%c96_76, %c0_77] : memref<144x1024xbf16, #tpu.memory_space<vmem>>, vector<16x1024xbf16>
    tpu.vector_store %arg32[%c96_76, %c0_77], %154 {strides = array<i32>} : memref<144x1024xbf16, #tpu.memory_space<vmem>>, vector<16x1024xbf16>,
    %156 = vector.extract_strided_slice %99 {offsets = [0, 32], sizes = [16, 992], strides = [1, 1]} : vector<16x1024xf32> to vector<16x992xf32>
    %157 = vector.extract_strided_slice %99 {offsets = [0, 0], sizes = [16, 32], strides = [1, 1]} : vector<16x1024xf32> to vector<16x32xf32>
    %158 = tpu.concatenate %156, %157 in 1 : vector<16x992xf32>, vector<16x32xf32> -> vector<16x1024xf32>
    %c7_78 = arith.constant 7 : index
    %c0_79 = arith.constant 0 : index
    %c0_80 = arith.constant 0 : index
    %159 = vector.load %arg2[%c7_78, %c0_79, %c0_80] : memref<9x1x1024xf32, #tpu.memory_space<vmem>>, vector<1x1x1024xf32>
    %160 = vector.shape_cast %159 : vector<1x1x1024xf32> to vector<1x1024xf32>
    %161 = vector.broadcast %160 : vector<1x1024xf32> to vector<16x1024xf32>
    %162 = arith.mulf %158, %161 : vector<16x1024xf32>
    %163 = arith.truncf %162 : vector<16x1024xf32> to vector<16x1024xbf16>
    %c112_81 = arith.constant 112 : index
    %c0_82 = arith.constant 0 : index
    %164 = vector.load %arg32[%c112_81, %c0_82] : memref<144x1024xbf16, #tpu.memory_space<vmem>>, vector<16x1024xbf16>
    tpu.vector_store %arg32[%c112_81, %c0_82], %163 {strides = array<i32>} : memref<144x1024xbf16, #tpu.memory_space<vmem>>, vector<16x1024xbf16>,
    %165 = vector.extract_strided_slice %99 {offsets = [0, 33], sizes = [16, 991], strides = [1, 1]} : vector<16x1024xf32> to vector<16x991xf32>
    %166 = vector.extract_strided_slice %99 {offsets = [0, 0], sizes = [16, 33], strides = [1, 1]} : vector<16x1024xf32> to vector<16x33xf32>
    %167 = tpu.concatenate %165, %166 in 1 : vector<16x991xf32>, vector<16x33xf32> -> vector<16x1024xf32>
    %c8_83 = arith.constant 8 : index
    %c0_84 = arith.constant 0 : index
    %c0_85 = arith.constant 0 : index
    %168 = vector.load %arg2[%c8_83, %c0_84, %c0_85] : memref<9x1x1024xf32, #tpu.memory_space<vmem>>, vector<1x1x1024xf32>
    %169 = vector.shape_cast %168 : vector<1x1x1024xf32> to vector<1x1024xf32>
    %170 = vector.broadcast %169 : vector<1x1024xf32> to vector<16x1024xf32>
    %171 = arith.mulf %167, %170 : vector<16x1024xf32>
    %172 = arith.truncf %171 : vector<16x1024xf32> to vector<16x1024xbf16>
    %c128_86 = arith.constant 128 : index
    %c0_87 = arith.constant 0 : index
    %173 = vector.load %arg32[%c128_86, %c0_87] : memref<144x1024xbf16, #tpu.memory_space<vmem>>, vector<16x1024xbf16>
    tpu.vector_store %arg32[%c128_86, %c0_87], %172 {strides = array<i32>} : memref<144x1024xbf16, #tpu.memory_space<vmem>>, vector<16x1024xbf16>,
    %c0_88 = arith.constant 0 : index
    %c0_89 = arith.constant 0 : index
    %174 = vector.load %arg10[%c0_88, %c0_89] : memref<16x144xbf16, #tpu.memory_space<vmem>>, vector<16x144xbf16>
    %c0_90 = arith.constant 0 : index
    %c0_91 = arith.constant 0 : index
    %175 = vector.load %arg32[%c0_90, %c0_91] : memref<144x1024xbf16, #tpu.memory_space<vmem>>, vector<144x1024xbf16>
    %cst_92 = arith.constant dense<0.000000e+00> : vector<16x1024xf32>
    %176 = tpu.matmul %174, %175, %cst_92 {dimension_numbers = #tpu.dot_dimension_numbers<[1], [0], [0], [1], [0, 0, 1, 1], [], []>} : vector<16x144xbf16>, vector<144x1024xbf16>, vector<16x1024xf32> -> vector<16x1024xf32>
    %c0_93 = arith.constant 0 : index
    %c0_94 = arith.constant 0 : index
    %177 = vector.load %arg11[%c0_93, %c0_94] : memref<16x1xf32, #tpu.memory_space<vmem>>, vector<16x1xf32>
    %178 = vector.broadcast %177 : vector<16x1xf32> to vector<16x1024xf32>
    %179 = arith.addf %176, %178 : vector<16x1024xf32>
    %c0_95 = arith.constant 0 : index
    %c0_96 = arith.constant 0 : index
    %180 = vector.load %arg12[%c0_95, %c0_96] : memref<16x1xf32, #tpu.memory_space<vmem>>, vector<16x1xf32>
    %cst_97 = arith.constant 0.000000e+00 : f32
    %181 = vector.broadcast %cst_97 : f32 to vector<16x1024xf32>
    %182 = arith.cmpf oge, %179, %181 : vector<16x1024xf32>
    %183 = vector.broadcast %180 : vector<16x1xf32> to vector<16x1024xf32>
    %184 = arith.mulf %179, %183 : vector<16x1024xf32>
    %185 = arith.select %182, %179, %184 : vector<16x1024xi1>, vector<16x1024xf32>
    %186 = arith.truncf %1 : vector<16x1024xf32> to vector<16x1024xbf16>
    %c0_98 = arith.constant 0 : index
    %c0_99 = arith.constant 0 : index
    %187 = vector.load %arg33[%c0_98, %c0_99] : memref<64x1024xbf16, #tpu.memory_space<vmem>>, vector<16x1024xbf16>
    tpu.vector_store %arg33[%c0_98, %c0_99], %186 {strides = array<i32>} : memref<64x1024xbf16, #tpu.memory_space<vmem>>, vector<16x1024xbf16>,
    %188 = arith.truncf %13 : vector<16x1024xf32> to vector<16x1024xbf16>
    %c16_100 = arith.constant 16 : index
    %c0_101 = arith.constant 0 : index
    %189 = vector.load %arg33[%c16_100, %c0_101] : memref<64x1024xbf16, #tpu.memory_space<vmem>>, vector<16x1024xbf16>
    tpu.vector_store %arg33[%c16_100, %c0_101], %188 {strides = array<i32>} : memref<64x1024xbf16, #tpu.memory_space<vmem>>, vector<16x1024xbf16>,
    %190 = arith.truncf %99 : vector<16x1024xf32> to vector<16x1024xbf16>
    %c32_102 = arith.constant 32 : index
    %c0_103 = arith.constant 0 : index
    %191 = vector.load %arg33[%c32_102, %c0_103] : memref<64x1024xbf16, #tpu.memory_space<vmem>>, vector<16x1024xbf16>
    tpu.vector_store %arg33[%c32_102, %c0_103], %190 {strides = array<i32>} : memref<64x1024xbf16, #tpu.memory_space<vmem>>, vector<16x1024xbf16>,
    %192 = arith.truncf %185 : vector<16x1024xf32> to vector<16x1024xbf16>
    %c48_104 = arith.constant 48 : index
    %c0_105 = arith.constant 0 : index
    %193 = vector.load %arg33[%c48_104, %c0_105] : memref<64x1024xbf16, #tpu.memory_space<vmem>>, vector<16x1024xbf16>
    tpu.vector_store %arg33[%c48_104, %c0_105], %192 {strides = array<i32>} : memref<64x1024xbf16, #tpu.memory_space<vmem>>, vector<16x1024xbf16>,
    %c0_106 = arith.constant 0 : index
    %c0_107 = arith.constant 0 : index
    %194 = vector.load %arg13[%c0_106, %c0_107] : memref<16x64xbf16, #tpu.memory_space<vmem>>, vector<16x64xbf16>
    %c0_108 = arith.constant 0 : index
    %c0_109 = arith.constant 0 : index
    %195 = vector.load %arg33[%c0_108, %c0_109] : memref<64x1024xbf16, #tpu.memory_space<vmem>>, vector<64x1024xbf16>
    %cst_110 = arith.constant dense<0.000000e+00> : vector<16x1024xf32>
    %196 = tpu.matmul %194, %195, %cst_110 {dimension_numbers = #tpu.dot_dimension_numbers<[1], [0], [0], [1], [0, 0, 1, 1], [], []>} : vector<16x64xbf16>, vector<64x1024xbf16>, vector<16x1024xf32> -> vector<16x1024xf32>
    %c0_111 = arith.constant 0 : index
    %c0_112 = arith.constant 0 : index
    %197 = vector.load %arg14[%c0_111, %c0_112] : memref<16x1xf32, #tpu.memory_space<vmem>>, vector<16x1xf32>
    %198 = vector.broadcast %197 : vector<16x1xf32> to vector<16x1024xf32>
    %199 = arith.addf %196, %198 : vector<16x1024xf32>
    %c0_113 = arith.constant 0 : index
    %c0_114 = arith.constant 0 : index
    %200 = vector.load %arg15[%c0_113, %c0_114] : memref<4x16xbf16, #tpu.memory_space<vmem>>, vector<4x16xbf16>
    %201 = arith.truncf %199 : vector<16x1024xf32> to vector<16x1024xbf16>
    %cst_115 = arith.constant dense<0.000000e+00> : vector<4x1024xf32>
    %202 = tpu.matmul %200, %201, %cst_115 {dimension_numbers = #tpu.dot_dimension_numbers<[1], [0], [0], [1], [0, 0, 1, 1], [], []>} : vector<4x16xbf16>, vector<16x1024xbf16>, vector<4x1024xf32> -> vector<4x1024xf32>
    %c0_116 = arith.constant 0 : index
    %c0_117 = arith.constant 0 : index
    %203 = vector.load %arg16[%c0_116, %c0_117] : memref<4x1xf32, #tpu.memory_space<vmem>>, vector<4x1xf32>
    %204 = vector.broadcast %203 : vector<4x1xf32> to vector<4x1024xf32>
    %205 = arith.addf %202, %204 : vector<4x1024xf32>
    %c0_118 = arith.constant 0 : index
    %c0_119 = arith.constant 0 : index
    %206 = vector.load %arg17[%c0_118, %c0_119] : memref<4x4xbf16, #tpu.memory_space<vmem>>, vector<4x4xbf16>
    %207 = arith.truncf %205 : vector<4x1024xf32> to vector<4x1024xbf16>
    %cst_120 = arith.constant dense<0.000000e+00> : vector<4x1024xf32>
    %208 = tpu.matmul %206, %207, %cst_120 {dimension_numbers = #tpu.dot_dimension_numbers<[1], [0], [0], [1], [0, 0, 1, 1], [], []>} : vector<4x4xbf16>, vector<4x1024xbf16>, vector<4x1024xf32> -> vector<4x1024xf32>
    %c0_121 = arith.constant 0 : index
    %c0_122 = arith.constant 0 : index
    %209 = vector.load %arg18[%c0_121, %c0_122] : memref<4x1xf32, #tpu.memory_space<vmem>>, vector<4x1xf32>
    %210 = vector.broadcast %209 : vector<4x1xf32> to vector<4x1024xf32>
    %211 = arith.addf %208, %210 : vector<4x1024xf32>
    %cst_123 = arith.constant 0.000000e+00 : f32
    %212 = vector.broadcast %cst_123 : f32 to vector<4x1024xf32>
    %c0_124 = arith.constant 0 : index
    %c0_125 = arith.constant 0 : index
    %c0_126 = arith.constant 0 : index
    %213 = vector.load %arg19[%c0_124, %c0_125, %c0_126] : memref<9x4x4xf32, #tpu.memory_space<vmem>>, vector<1x4x4xf32>
    %214 = vector.shape_cast %213 : vector<1x4x4xf32> to vector<4x4xf32>
    %cst_127 = arith.constant dense<0.000000e+00> : vector<4x1024xf32>
    %215 = tpu.matmul %214, %205, %cst_127 {dimension_numbers = #tpu.dot_dimension_numbers<[1], [0], [0], [1], [0, 0, 1, 1], [], []>} : vector<4x4xf32>, vector<4x1024xf32>, vector<4x1024xf32> -> vector<4x1024xf32>
    %216 = arith.addf %212, %215 : vector<4x1024xf32>
    %c1_128 = arith.constant 1 : index
    %c0_129 = arith.constant 0 : index
    %c0_130 = arith.constant 0 : index
    %217 = vector.load %arg19[%c1_128, %c0_129, %c0_130] : memref<9x4x4xf32, #tpu.memory_space<vmem>>, vector<1x4x4xf32>
    %218 = vector.shape_cast %217 : vector<1x4x4xf32> to vector<4x4xf32>
    %219 = vector.extract_strided_slice %205 {offsets = [0, 1], sizes = [4, 1023], strides = [1, 1]} : vector<4x1024xf32> to vector<4x1023xf32>
    %220 = vector.extract_strided_slice %205 {offsets = [0, 0], sizes = [4, 1], strides = [1, 1]} : vector<4x1024xf32> to vector<4x1xf32>
    %221 = tpu.concatenate %219, %220 in 1 : vector<4x1023xf32>, vector<4x1xf32> -> vector<4x1024xf32>
    %cst_131 = arith.constant dense<0.000000e+00> : vector<4x1024xf32>
    %222 = tpu.matmul %218, %221, %cst_131 {dimension_numbers = #tpu.dot_dimension_numbers<[1], [0], [0], [1], [0, 0, 1, 1], [], []>} : vector<4x4xf32>, vector<4x1024xf32>, vector<4x1024xf32> -> vector<4x1024xf32>
    %223 = arith.addf %216, %222 : vector<4x1024xf32>
    %c2_132 = arith.constant 2 : index
    %c0_133 = arith.constant 0 : index
    %c0_134 = arith.constant 0 : index
    %224 = vector.load %arg19[%c2_132, %c0_133, %c0_134] : memref<9x4x4xf32, #tpu.memory_space<vmem>>, vector<1x4x4xf32>
    %225 = vector.shape_cast %224 : vector<1x4x4xf32> to vector<4x4xf32>
    %226 = vector.extract_strided_slice %205 {offsets = [0, 2], sizes = [4, 1022], strides = [1, 1]} : vector<4x1024xf32> to vector<4x1022xf32>
    %227 = vector.extract_strided_slice %205 {offsets = [0, 0], sizes = [4, 2], strides = [1, 1]} : vector<4x1024xf32> to vector<4x2xf32>
    %228 = tpu.concatenate %226, %227 in 1 : vector<4x1022xf32>, vector<4x2xf32> -> vector<4x1024xf32>
    %cst_135 = arith.constant dense<0.000000e+00> : vector<4x1024xf32>
    %229 = tpu.matmul %225, %228, %cst_135 {dimension_numbers = #tpu.dot_dimension_numbers<[1], [0], [0], [1], [0, 0, 1, 1], [], []>} : vector<4x4xf32>, vector<4x1024xf32>, vector<4x1024xf32> -> vector<4x1024xf32>
    %230 = arith.addf %223, %229 : vector<4x1024xf32>
    %c3_136 = arith.constant 3 : index
    %c0_137 = arith.constant 0 : index
    %c0_138 = arith.constant 0 : index
    %231 = vector.load %arg19[%c3_136, %c0_137, %c0_138] : memref<9x4x4xf32, #tpu.memory_space<vmem>>, vector<1x4x4xf32>
    %232 = vector.shape_cast %231 : vector<1x4x4xf32> to vector<4x4xf32>
    %233 = vector.extract_strided_slice %205 {offsets = [0, 32], sizes = [4, 992], strides = [1, 1]} : vector<4x1024xf32> to vector<4x992xf32>
    %234 = vector.extract_strided_slice %205 {offsets = [0, 0], sizes = [4, 32], strides = [1, 1]} : vector<4x1024xf32> to vector<4x32xf32>
    %235 = tpu.concatenate %233, %234 in 1 : vector<4x992xf32>, vector<4x32xf32> -> vector<4x1024xf32>
    %cst_139 = arith.constant dense<0.000000e+00> : vector<4x1024xf32>
    %236 = tpu.matmul %232, %235, %cst_139 {dimension_numbers = #tpu.dot_dimension_numbers<[1], [0], [0], [1], [0, 0, 1, 1], [], []>} : vector<4x4xf32>, vector<4x1024xf32>, vector<4x1024xf32> -> vector<4x1024xf32>
    %237 = arith.addf %230, %236 : vector<4x1024xf32>
    %c4 = arith.constant 4 : index
    %c0_140 = arith.constant 0 : index
    %c0_141 = arith.constant 0 : index
    %238 = vector.load %arg19[%c4, %c0_140, %c0_141] : memref<9x4x4xf32, #tpu.memory_space<vmem>>, vector<1x4x4xf32>
    %239 = vector.shape_cast %238 : vector<1x4x4xf32> to vector<4x4xf32>
    %240 = vector.extract_strided_slice %205 {offsets = [0, 33], sizes = [4, 991], strides = [1, 1]} : vector<4x1024xf32> to vector<4x991xf32>
    %241 = vector.extract_strided_slice %205 {offsets = [0, 0], sizes = [4, 33], strides = [1, 1]} : vector<4x1024xf32> to vector<4x33xf32>
    %242 = tpu.concatenate %240, %241 in 1 : vector<4x991xf32>, vector<4x33xf32> -> vector<4x1024xf32>
    %cst_142 = arith.constant dense<0.000000e+00> : vector<4x1024xf32>
    %243 = tpu.matmul %239, %242, %cst_142 {dimension_numbers = #tpu.dot_dimension_numbers<[1], [0], [0], [1], [0, 0, 1, 1], [], []>} : vector<4x4xf32>, vector<4x1024xf32>, vector<4x1024xf32> -> vector<4x1024xf32>
    %244 = arith.addf %237, %243 : vector<4x1024xf32>
    %c5_143 = arith.constant 5 : index
    %c0_144 = arith.constant 0 : index
    %c0_145 = arith.constant 0 : index
    %245 = vector.load %arg19[%c5_143, %c0_144, %c0_145] : memref<9x4x4xf32, #tpu.memory_space<vmem>>, vector<1x4x4xf32>
    %246 = vector.shape_cast %245 : vector<1x4x4xf32> to vector<4x4xf32>
    %247 = vector.extract_strided_slice %205 {offsets = [0, 34], sizes = [4, 990], strides = [1, 1]} : vector<4x1024xf32> to vector<4x990xf32>
    %248 = vector.extract_strided_slice %205 {offsets = [0, 0], sizes = [4, 34], strides = [1, 1]} : vector<4x1024xf32> to vector<4x34xf32>
    %249 = tpu.concatenate %247, %248 in 1 : vector<4x990xf32>, vector<4x34xf32> -> vector<4x1024xf32>
    %cst_146 = arith.constant dense<0.000000e+00> : vector<4x1024xf32>
    %250 = tpu.matmul %246, %249, %cst_146 {dimension_numbers = #tpu.dot_dimension_numbers<[1], [0], [0], [1], [0, 0, 1, 1], [], []>} : vector<4x4xf32>, vector<4x1024xf32>, vector<4x1024xf32> -> vector<4x1024xf32>
    %251 = arith.addf %244, %250 : vector<4x1024xf32>
    %c6_147 = arith.constant 6 : index
    %c0_148 = arith.constant 0 : index
    %c0_149 = arith.constant 0 : index
    %252 = vector.load %arg19[%c6_147, %c0_148, %c0_149] : memref<9x4x4xf32, #tpu.memory_space<vmem>>, vector<1x4x4xf32>
    %253 = vector.shape_cast %252 : vector<1x4x4xf32> to vector<4x4xf32>
    %254 = vector.extract_strided_slice %205 {offsets = [0, 64], sizes = [4, 960], strides = [1, 1]} : vector<4x1024xf32> to vector<4x960xf32>
    %255 = vector.extract_strided_slice %205 {offsets = [0, 0], sizes = [4, 64], strides = [1, 1]} : vector<4x1024xf32> to vector<4x64xf32>
    %256 = tpu.concatenate %254, %255 in 1 : vector<4x960xf32>, vector<4x64xf32> -> vector<4x1024xf32>
    %cst_150 = arith.constant dense<0.000000e+00> : vector<4x1024xf32>
    %257 = tpu.matmul %253, %256, %cst_150 {dimension_numbers = #tpu.dot_dimension_numbers<[1], [0], [0], [1], [0, 0, 1, 1], [], []>} : vector<4x4xf32>, vector<4x1024xf32>, vector<4x1024xf32> -> vector<4x1024xf32>
    %258 = arith.addf %251, %257 : vector<4x1024xf32>
    %c7_151 = arith.constant 7 : index
    %c0_152 = arith.constant 0 : index
    %c0_153 = arith.constant 0 : index
    %259 = vector.load %arg19[%c7_151, %c0_152, %c0_153] : memref<9x4x4xf32, #tpu.memory_space<vmem>>, vector<1x4x4xf32>
    %260 = vector.shape_cast %259 : vector<1x4x4xf32> to vector<4x4xf32>
    %261 = vector.extract_strided_slice %205 {offsets = [0, 65], sizes = [4, 959], strides = [1, 1]} : vector<4x1024xf32> to vector<4x959xf32>
    %262 = vector.extract_strided_slice %205 {offsets = [0, 0], sizes = [4, 65], strides = [1, 1]} : vector<4x1024xf32> to vector<4x65xf32>
    %263 = tpu.concatenate %261, %262 in 1 : vector<4x959xf32>, vector<4x65xf32> -> vector<4x1024xf32>
    %cst_154 = arith.constant dense<0.000000e+00> : vector<4x1024xf32>
    %264 = tpu.matmul %260, %263, %cst_154 {dimension_numbers = #tpu.dot_dimension_numbers<[1], [0], [0], [1], [0, 0, 1, 1], [], []>} : vector<4x4xf32>, vector<4x1024xf32>, vector<4x1024xf32> -> vector<4x1024xf32>
    %265 = arith.addf %258, %264 : vector<4x1024xf32>
    %c8_155 = arith.constant 8 : index
    %c0_156 = arith.constant 0 : index
    %c0_157 = arith.constant 0 : index
    %266 = vector.load %arg19[%c8_155, %c0_156, %c0_157] : memref<9x4x4xf32, #tpu.memory_space<vmem>>, vector<1x4x4xf32>
    %267 = vector.shape_cast %266 : vector<1x4x4xf32> to vector<4x4xf32>
    %268 = vector.extract_strided_slice %205 {offsets = [0, 66], sizes = [4, 958], strides = [1, 1]} : vector<4x1024xf32> to vector<4x958xf32>
    %269 = vector.extract_strided_slice %205 {offsets = [0, 0], sizes = [4, 66], strides = [1, 1]} : vector<4x1024xf32> to vector<4x66xf32>
    %270 = tpu.concatenate %268, %269 in 1 : vector<4x958xf32>, vector<4x66xf32> -> vector<4x1024xf32>
    %cst_158 = arith.constant dense<0.000000e+00> : vector<4x1024xf32>
    %271 = tpu.matmul %267, %270, %cst_158 {dimension_numbers = #tpu.dot_dimension_numbers<[1], [0], [0], [1], [0, 0, 1, 1], [], []>} : vector<4x4xf32>, vector<4x1024xf32>, vector<4x1024xf32> -> vector<4x1024xf32>
    %272 = arith.addf %265, %271 : vector<4x1024xf32>
    %c0_159 = arith.constant 0 : index
    %c0_160 = arith.constant 0 : index
    %273 = vector.load %arg20[%c0_159, %c0_160] : memref<4x1xf32, #tpu.memory_space<vmem>>, vector<4x1xf32>
    %274 = vector.broadcast %273 : vector<4x1xf32> to vector<4x1024xf32>
    %275 = arith.addf %272, %274 : vector<4x1024xf32>
    %c0_161 = arith.constant 0 : index
    %c0_162 = arith.constant 0 : index
    %c0_163 = arith.constant 0 : index
    %276 = vector.load %arg3[%c0_161, %c0_162, %c0_163] : memref<9x1x1024xf32, #tpu.memory_space<vmem>>, vector<1x1x1024xf32>
    %277 = vector.shape_cast %276 : vector<1x1x1024xf32> to vector<1x1024xf32>
    %278 = vector.broadcast %277 : vector<1x1024xf32> to vector<4x1024xf32>
    %279 = arith.addf %275, %278 : vector<4x1024xf32>
    %cst_164 = arith.constant dense<0xFF800000> : vector<4xf32>
    %280 = vector.multi_reduction <maximumf>, %279, %cst_164 [1] : vector<4x1024xf32> to vector<4xf32>
    %281 = vector.shape_cast %280 : vector<4xf32> to vector<4x1xf32>
    %c1_165 = arith.constant 1 : index
    %c0_166 = arith.constant 0 : index
    %c0_167 = arith.constant 0 : index
    %282 = vector.load %arg3[%c1_165, %c0_166, %c0_167] : memref<9x1x1024xf32, #tpu.memory_space<vmem>>, vector<1x1x1024xf32>
    %283 = vector.shape_cast %282 : vector<1x1x1024xf32> to vector<1x1024xf32>
    %284 = vector.broadcast %283 : vector<1x1024xf32> to vector<4x1024xf32>
    %285 = arith.addf %275, %284 : vector<4x1024xf32>
    %cst_168 = arith.constant dense<0xFF800000> : vector<4xf32>
    %286 = vector.multi_reduction <maximumf>, %285, %cst_168 [1] : vector<4x1024xf32> to vector<4xf32>
    %287 = vector.shape_cast %286 : vector<4xf32> to vector<4x1xf32>
    %c2_169 = arith.constant 2 : index
    %c0_170 = arith.constant 0 : index
    %c0_171 = arith.constant 0 : index
    %288 = vector.load %arg3[%c2_169, %c0_170, %c0_171] : memref<9x1x1024xf32, #tpu.memory_space<vmem>>, vector<1x1x1024xf32>
    %289 = vector.shape_cast %288 : vector<1x1x1024xf32> to vector<1x1024xf32>
    %290 = vector.broadcast %289 : vector<1x1024xf32> to vector<4x1024xf32>
    %291 = arith.addf %275, %290 : vector<4x1024xf32>
    %cst_172 = arith.constant dense<0xFF800000> : vector<4xf32>
    %292 = vector.multi_reduction <maximumf>, %291, %cst_172 [1] : vector<4x1024xf32> to vector<4xf32>
    %293 = vector.shape_cast %292 : vector<4xf32> to vector<4x1xf32>
    %c3_173 = arith.constant 3 : index
    %c0_174 = arith.constant 0 : index
    %c0_175 = arith.constant 0 : index
    %294 = vector.load %arg3[%c3_173, %c0_174, %c0_175] : memref<9x1x1024xf32, #tpu.memory_space<vmem>>, vector<1x1x1024xf32>
    %295 = vector.shape_cast %294 : vector<1x1x1024xf32> to vector<1x1024xf32>
    %296 = vector.broadcast %295 : vector<1x1024xf32> to vector<4x1024xf32>
    %297 = arith.addf %275, %296 : vector<4x1024xf32>
    %cst_176 = arith.constant dense<0xFF800000> : vector<4xf32>
    %298 = vector.multi_reduction <maximumf>, %297, %cst_176 [1] : vector<4x1024xf32> to vector<4xf32>
    %299 = vector.shape_cast %298 : vector<4xf32> to vector<4x1xf32>
    %c4_177 = arith.constant 4 : index
    %c0_178 = arith.constant 0 : index
    %c0_179 = arith.constant 0 : index
    %300 = vector.load %arg3[%c4_177, %c0_178, %c0_179] : memref<9x1x1024xf32, #tpu.memory_space<vmem>>, vector<1x1x1024xf32>
    %301 = vector.shape_cast %300 : vector<1x1x1024xf32> to vector<1x1024xf32>
    %302 = vector.broadcast %301 : vector<1x1024xf32> to vector<4x1024xf32>
    %303 = arith.addf %275, %302 : vector<4x1024xf32>
    %cst_180 = arith.constant dense<0xFF800000> : vector<4xf32>
    %304 = vector.multi_reduction <maximumf>, %303, %cst_180 [1] : vector<4x1024xf32> to vector<4xf32>
    %305 = vector.shape_cast %304 : vector<4xf32> to vector<4x1xf32>
    %c5_181 = arith.constant 5 : index
    %c0_182 = arith.constant 0 : index
    %c0_183 = arith.constant 0 : index
    %306 = vector.load %arg3[%c5_181, %c0_182, %c0_183] : memref<9x1x1024xf32, #tpu.memory_space<vmem>>, vector<1x1x1024xf32>
    %307 = vector.shape_cast %306 : vector<1x1x1024xf32> to vector<1x1024xf32>
    %308 = vector.broadcast %307 : vector<1x1024xf32> to vector<4x1024xf32>
    %309 = arith.addf %275, %308 : vector<4x1024xf32>
    %cst_184 = arith.constant dense<0xFF800000> : vector<4xf32>
    %310 = vector.multi_reduction <maximumf>, %309, %cst_184 [1] : vector<4x1024xf32> to vector<4xf32>
    %311 = vector.shape_cast %310 : vector<4xf32> to vector<4x1xf32>
    %c6_185 = arith.constant 6 : index
    %c0_186 = arith.constant 0 : index
    %c0_187 = arith.constant 0 : index
    %312 = vector.load %arg3[%c6_185, %c0_186, %c0_187] : memref<9x1x1024xf32, #tpu.memory_space<vmem>>, vector<1x1x1024xf32>
    %313 = vector.shape_cast %312 : vector<1x1x1024xf32> to vector<1x1024xf32>
    %314 = vector.broadcast %313 : vector<1x1024xf32> to vector<4x1024xf32>
    %315 = arith.addf %275, %314 : vector<4x1024xf32>
    %cst_188 = arith.constant dense<0xFF800000> : vector<4xf32>
    %316 = vector.multi_reduction <maximumf>, %315, %cst_188 [1] : vector<4x1024xf32> to vector<4xf32>
    %317 = vector.shape_cast %316 : vector<4xf32> to vector<4x1xf32>
    %c7_189 = arith.constant 7 : index
    %c0_190 = arith.constant 0 : index
    %c0_191 = arith.constant 0 : index
    %318 = vector.load %arg3[%c7_189, %c0_190, %c0_191] : memref<9x1x1024xf32, #tpu.memory_space<vmem>>, vector<1x1x1024xf32>
    %319 = vector.shape_cast %318 : vector<1x1x1024xf32> to vector<1x1024xf32>
    %320 = vector.broadcast %319 : vector<1x1024xf32> to vector<4x1024xf32>
    %321 = arith.addf %275, %320 : vector<4x1024xf32>
    %cst_192 = arith.constant dense<0xFF800000> : vector<4xf32>
    %322 = vector.multi_reduction <maximumf>, %321, %cst_192 [1] : vector<4x1024xf32> to vector<4xf32>
    %323 = vector.shape_cast %322 : vector<4xf32> to vector<4x1xf32>
    %c8_193 = arith.constant 8 : index
    %c0_194 = arith.constant 0 : index
    %c0_195 = arith.constant 0 : index
    %324 = vector.load %arg3[%c8_193, %c0_194, %c0_195] : memref<9x1x1024xf32, #tpu.memory_space<vmem>>, vector<1x1x1024xf32>
    %325 = vector.shape_cast %324 : vector<1x1x1024xf32> to vector<1x1024xf32>
    %326 = vector.broadcast %325 : vector<1x1024xf32> to vector<4x1024xf32>
    %327 = arith.addf %275, %326 : vector<4x1024xf32>
    %cst_196 = arith.constant dense<0xFF800000> : vector<4xf32>
    %328 = vector.multi_reduction <maximumf>, %327, %cst_196 [1] : vector<4x1024xf32> to vector<4xf32>
    %329 = vector.shape_cast %328 : vector<4xf32> to vector<4x1xf32>
    %c0_197 = arith.constant 0 : index
    %c0_198 = arith.constant 0 : index
    %330 = vector.load %arg22[%c0_197, %c0_198] : memref<1x36xf32, #tpu.memory_space<vmem>>, vector<1x36xf32>
    %c0_199 = arith.constant 0 : index
    %c0_200 = arith.constant 0 : index
    %c0_201 = arith.constant 0 : index
    %331 = vector.load %arg21[%c0_199, %c0_200, %c0_201] : memref<9x4x36xf32, #tpu.memory_space<vmem>>, vector<1x4x36xf32>
    %332 = vector.shape_cast %331 : vector<1x4x36xf32> to vector<4x36xf32>
    %333 = vector.broadcast %281 : vector<4x1xf32> to vector<4x36xf32>
    %334 = arith.mulf %332, %333 : vector<4x36xf32>
    %cst_202 = arith.constant dense<0.000000e+00> : vector<36xf32>
    %335 = vector.multi_reduction <add>, %334, %cst_202 [0] : vector<4x36xf32> to vector<36xf32>
    %336 = vector.shape_cast %335 : vector<36xf32> to vector<1x36xf32>
    %337 = arith.addf %330, %336 : vector<1x36xf32>
    %c1_203 = arith.constant 1 : index
    %c0_204 = arith.constant 0 : index
    %c0_205 = arith.constant 0 : index
    %338 = vector.load %arg21[%c1_203, %c0_204, %c0_205] : memref<9x4x36xf32, #tpu.memory_space<vmem>>, vector<1x4x36xf32>
    %339 = vector.shape_cast %338 : vector<1x4x36xf32> to vector<4x36xf32>
    %340 = vector.broadcast %287 : vector<4x1xf32> to vector<4x36xf32>
    %341 = arith.mulf %339, %340 : vector<4x36xf32>
    %cst_206 = arith.constant dense<0.000000e+00> : vector<36xf32>
    %342 = vector.multi_reduction <add>, %341, %cst_206 [0] : vector<4x36xf32> to vector<36xf32>
    %343 = vector.shape_cast %342 : vector<36xf32> to vector<1x36xf32>
    %344 = arith.addf %337, %343 : vector<1x36xf32>
    %c2_207 = arith.constant 2 : index
    %c0_208 = arith.constant 0 : index
    %c0_209 = arith.constant 0 : index
    %345 = vector.load %arg21[%c2_207, %c0_208, %c0_209] : memref<9x4x36xf32, #tpu.memory_space<vmem>>, vector<1x4x36xf32>
    %346 = vector.shape_cast %345 : vector<1x4x36xf32> to vector<4x36xf32>
    %347 = vector.broadcast %293 : vector<4x1xf32> to vector<4x36xf32>
    %348 = arith.mulf %346, %347 : vector<4x36xf32>
    %cst_210 = arith.constant dense<0.000000e+00> : vector<36xf32>
    %349 = vector.multi_reduction <add>, %348, %cst_210 [0] : vector<4x36xf32> to vector<36xf32>
    %350 = vector.shape_cast %349 : vector<36xf32> to vector<1x36xf32>
    %351 = arith.addf %344, %350 : vector<1x36xf32>
    %c3_211 = arith.constant 3 : index
    %c0_212 = arith.constant 0 : index
    %c0_213 = arith.constant 0 : index
    %352 = vector.load %arg21[%c3_211, %c0_212, %c0_213] : memref<9x4x36xf32, #tpu.memory_space<vmem>>, vector<1x4x36xf32>
    %353 = vector.shape_cast %352 : vector<1x4x36xf32> to vector<4x36xf32>
    %354 = vector.broadcast %299 : vector<4x1xf32> to vector<4x36xf32>
    %355 = arith.mulf %353, %354 : vector<4x36xf32>
    %cst_214 = arith.constant dense<0.000000e+00> : vector<36xf32>
    %356 = vector.multi_reduction <add>, %355, %cst_214 [0] : vector<4x36xf32> to vector<36xf32>
    %357 = vector.shape_cast %356 : vector<36xf32> to vector<1x36xf32>
    %358 = arith.addf %351, %357 : vector<1x36xf32>
    %c4_215 = arith.constant 4 : index
    %c0_216 = arith.constant 0 : index
    %c0_217 = arith.constant 0 : index
    %359 = vector.load %arg21[%c4_215, %c0_216, %c0_217] : memref<9x4x36xf32, #tpu.memory_space<vmem>>, vector<1x4x36xf32>
    %360 = vector.shape_cast %359 : vector<1x4x36xf32> to vector<4x36xf32>
    %361 = vector.broadcast %305 : vector<4x1xf32> to vector<4x36xf32>
    %362 = arith.mulf %360, %361 : vector<4x36xf32>
    %cst_218 = arith.constant dense<0.000000e+00> : vector<36xf32>
    %363 = vector.multi_reduction <add>, %362, %cst_218 [0] : vector<4x36xf32> to vector<36xf32>
    %364 = vector.shape_cast %363 : vector<36xf32> to vector<1x36xf32>
    %365 = arith.addf %358, %364 : vector<1x36xf32>
    %c5_219 = arith.constant 5 : index
    %c0_220 = arith.constant 0 : index
    %c0_221 = arith.constant 0 : index
    %366 = vector.load %arg21[%c5_219, %c0_220, %c0_221] : memref<9x4x36xf32, #tpu.memory_space<vmem>>, vector<1x4x36xf32>
    %367 = vector.shape_cast %366 : vector<1x4x36xf32> to vector<4x36xf32>
    %368 = vector.broadcast %311 : vector<4x1xf32> to vector<4x36xf32>
    %369 = arith.mulf %367, %368 : vector<4x36xf32>
    %cst_222 = arith.constant dense<0.000000e+00> : vector<36xf32>
    %370 = vector.multi_reduction <add>, %369, %cst_222 [0] : vector<4x36xf32> to vector<36xf32>
    %371 = vector.shape_cast %370 : vector<36xf32> to vector<1x36xf32>
    %372 = arith.addf %365, %371 : vector<1x36xf32>
    %c6_223 = arith.constant 6 : index
    %c0_224 = arith.constant 0 : index
    %c0_225 = arith.constant 0 : index
    %373 = vector.load %arg21[%c6_223, %c0_224, %c0_225] : memref<9x4x36xf32, #tpu.memory_space<vmem>>, vector<1x4x36xf32>
    %374 = vector.shape_cast %373 : vector<1x4x36xf32> to vector<4x36xf32>
    %375 = vector.broadcast %317 : vector<4x1xf32> to vector<4x36xf32>
    %376 = arith.mulf %374, %375 : vector<4x36xf32>
    %cst_226 = arith.constant dense<0.000000e+00> : vector<36xf32>
    %377 = vector.multi_reduction <add>, %376, %cst_226 [0] : vector<4x36xf32> to vector<36xf32>
    %378 = vector.shape_cast %377 : vector<36xf32> to vector<1x36xf32>
    %379 = arith.addf %372, %378 : vector<1x36xf32>
    %c7_227 = arith.constant 7 : index
    %c0_228 = arith.constant 0 : index
    %c0_229 = arith.constant 0 : index
    %380 = vector.load %arg21[%c7_227, %c0_228, %c0_229] : memref<9x4x36xf32, #tpu.memory_space<vmem>>, vector<1x4x36xf32>
    %381 = vector.shape_cast %380 : vector<1x4x36xf32> to vector<4x36xf32>
    %382 = vector.broadcast %323 : vector<4x1xf32> to vector<4x36xf32>
    %383 = arith.mulf %381, %382 : vector<4x36xf32>
    %cst_230 = arith.constant dense<0.000000e+00> : vector<36xf32>
    %384 = vector.multi_reduction <add>, %383, %cst_230 [0] : vector<4x36xf32> to vector<36xf32>
    %385 = vector.shape_cast %384 : vector<36xf32> to vector<1x36xf32>
    %386 = arith.addf %379, %385 : vector<1x36xf32>
    %c8_231 = arith.constant 8 : index
    %c0_232 = arith.constant 0 : index
    %c0_233 = arith.constant 0 : index
    %387 = vector.load %arg21[%c8_231, %c0_232, %c0_233] : memref<9x4x36xf32, #tpu.memory_space<vmem>>, vector<1x4x36xf32>
    %388 = vector.shape_cast %387 : vector<1x4x36xf32> to vector<4x36xf32>
    %389 = vector.broadcast %329 : vector<4x1xf32> to vector<4x36xf32>
    %390 = arith.mulf %388, %389 : vector<4x36xf32>
    %cst_234 = arith.constant dense<0.000000e+00> : vector<36xf32>
    %391 = vector.multi_reduction <add>, %390, %cst_234 [0] : vector<4x36xf32> to vector<36xf32>
    %392 = vector.shape_cast %391 : vector<36xf32> to vector<1x36xf32>
    %393 = arith.addf %386, %392 : vector<1x36xf32>
    %cst_235 = arith.constant 0.000000e+00 : f32
    %394 = vector.broadcast %cst_235 : f32 to vector<1x36xf32>
    %395 = arith.maximumf %393, %394 : vector<1x36xf32>
    %c0_236 = arith.constant 0 : index
    %c0_237 = arith.constant 0 : index
    %396 = vector.load %arg23[%c0_236, %c0_237] : memref<36x36xf32, #tpu.memory_space<vmem>>, vector<36x36xf32>
    %397 = vector.broadcast %395 : vector<1x36xf32> to vector<36x36xf32>
    %398 = arith.mulf %396, %397 : vector<36x36xf32>
    %cst_238 = arith.constant dense<0.000000e+00> : vector<36xf32>
    %399 = vector.multi_reduction <add>, %398, %cst_238 [1] : vector<36x36xf32> to vector<36xf32>
    %400 = vector.shape_cast %399 : vector<36xf32> to vector<36x1xf32>
    %c0_239 = arith.constant 0 : index
    %c0_240 = arith.constant 0 : index
    %401 = vector.load %arg24[%c0_239, %c0_240] : memref<36x1xf32, #tpu.memory_space<vmem>>, vector<36x1xf32>
    %402 = arith.addf %400, %401 : vector<36x1xf32>
    %cst_241 = arith.constant 0.000000e+00 : f32
    %403 = vector.broadcast %cst_241 : f32 to vector<36x1xf32>
    %404 = arith.maximumf %402, %403 : vector<36x1xf32>
    %c0_242 = arith.constant 0 : index
    %c0_243 = arith.constant 0 : index
    %405 = vector.load %arg25[%c0_242, %c0_243] : memref<36x36xf32, #tpu.memory_space<vmem>>, vector<36x36xf32>
    %406 = vector.broadcast %404 : vector<36x1xf32> to vector<36x36xf32>
    %407 = arith.mulf %405, %406 : vector<36x36xf32>
    %cst_244 = arith.constant dense<0.000000e+00> : vector<36xf32>
    %408 = vector.multi_reduction <add>, %407, %cst_244 [0] : vector<36x36xf32> to vector<36xf32>
    %409 = vector.shape_cast %408 : vector<36xf32> to vector<1x36xf32>
    %c0_245 = arith.constant 0 : index
    %c0_246 = arith.constant 0 : index
    %410 = vector.load %arg26[%c0_245, %c0_246] : memref<1x36xf32, #tpu.memory_space<vmem>>, vector<1x36xf32>
    %411 = arith.addf %409, %410 : vector<1x36xf32>
    %c0_247 = arith.constant 0 : index
    %c0_248 = arith.constant 0 : index
    %412 = vector.load %arg27[%c0_247, %c0_248] : memref<16x36xf32, #tpu.memory_space<vmem>>, vector<16x36xf32>
    %413 = vector.broadcast %411 : vector<1x36xf32> to vector<16x36xf32>
    %414 = arith.mulf %412, %413 : vector<16x36xf32>
    %415 = arith.truncf %414 : vector<16x36xf32> to vector<16x36xbf16>
    %c0_249 = arith.constant 0 : index
    %c0_250 = arith.constant 0 : index
    %416 = vector.load %arg28[%c0_249, %c0_250] : memref<36x1024xbf16, #tpu.memory_space<vmem>>, vector<36x1024xbf16>
    %cst_251 = arith.constant dense<0.000000e+00> : vector<16x1024xf32>
    %417 = tpu.matmul %415, %416, %cst_251 {dimension_numbers = #tpu.dot_dimension_numbers<[1], [0], [0], [1], [0, 0, 1, 1], [], []>} : vector<16x36xbf16>, vector<36x1024xbf16>, vector<16x1024xf32> -> vector<16x1024xf32>
    %c0_252 = arith.constant 0 : index
    %c0_253 = arith.constant 0 : index
    %418 = vector.load %arg29[%c0_252, %c0_253] : memref<16x4xbf16, #tpu.memory_space<vmem>>, vector<16x4xbf16>
    %419 = arith.truncf %211 : vector<4x1024xf32> to vector<4x1024xbf16>
    %cst_254 = arith.constant dense<0.000000e+00> : vector<16x1024xf32>
    %420 = tpu.matmul %418, %419, %cst_254 {dimension_numbers = #tpu.dot_dimension_numbers<[1], [0], [0], [1], [0, 0, 1, 1], [], []>} : vector<16x4xbf16>, vector<4x1024xbf16>, vector<16x1024xf32> -> vector<16x1024xf32>
    %421 = arith.addf %417, %420 : vector<16x1024xf32>
    %c0_255 = arith.constant 0 : index
    %c0_256 = arith.constant 0 : index
    %422 = vector.load %arg30[%c0_255, %c0_256] : memref<16x1xf32, #tpu.memory_space<vmem>>, vector<16x1xf32>
    %423 = vector.broadcast %422 : vector<16x1xf32> to vector<16x1024xf32>
    %424 = arith.addf %421, %423 : vector<16x1024xf32>
    %cst_257 = arith.constant 0.000000e+00 : f32
    %425 = vector.broadcast %cst_257 : f32 to vector<16x1024xf32>
    %426 = arith.subf %425, %424 : vector<16x1024xf32>
    %427 = math.exp %426 : vector<16x1024xf32>
    %cst_258 = arith.constant 1.000000e+00 : f32
    %428 = vector.broadcast %cst_258 : f32 to vector<16x1024xf32>
    %429 = arith.addf %428, %427 : vector<16x1024xf32>
    %cst_259 = arith.constant 1.000000e+00 : f32
    %430 = vector.broadcast %cst_259 : f32 to vector<16x1024xf32>
    %431 = arith.divf %430, %429 : vector<16x1024xf32>
    %432 = arith.mulf %199, %431 : vector<16x1024xf32>
    %433 = arith.addf %432, %1 : vector<16x1024xf32>
    %c0_260 = arith.constant 0 : index
    %c0_261 = arith.constant 0 : index
    %c0_262 = arith.constant 0 : index
    %434 = vector.load %arg31[%c0_260, %c0_261, %c0_262] : memref<1x16x1024xf32, #tpu.memory_space<vmem>>, vector<1x16x1024xf32>
    %435 = vector.shape_cast %434 : vector<1x16x1024xf32> to vector<16x1024xf32>
    %436 = vector.shape_cast %433 : vector<16x1024xf32> to vector<1x16x1024xf32>
    tpu.vector_store %arg31[%c0_260, %c0_261, %c0_262], %436 {strides = array<i32>} : memref<1x16x1024xf32, #tpu.memory_space<vmem>>, vector<1x16x1024xf32>,
    return
  }
  func.func @transform_0(%arg0: i32) -> (i32, i32, i32) {
    %c0_i32 = arith.constant 0 : i32
    %c0_i32_0 = arith.constant 0 : i32
    %c0_i32_1 = arith.constant 0 : i32
    return %arg0, %c0_i32, %c0_i32_0 : i32, i32, i32
  }
  func.func @transform_1(%arg0: i32) -> (i32, i32, i32) {
    %c0_i32 = arith.constant 0 : i32
    %c0_i32_0 = arith.constant 0 : i32
    %c0_i32_1 = arith.constant 0 : i32
    %c0_i32_2 = arith.constant 0 : i32
    return %c0_i32, %c0_i32_0, %c0_i32_1 : i32, i32, i32
  }
  func.func @transform_2(%arg0: i32) -> (i32, i32, i32) {
    %c0_i32 = arith.constant 0 : i32
    %c0_i32_0 = arith.constant 0 : i32
    %c0_i32_1 = arith.constant 0 : i32
    %c0_i32_2 = arith.constant 0 : i32
    return %c0_i32, %c0_i32_0, %c0_i32_1 : i32, i32, i32
  }
  func.func @transform_3(%arg0: i32) -> (i32, i32) {
    %c0_i32 = arith.constant 0 : i32
    %c0_i32_0 = arith.constant 0 : i32
    %c0_i32_1 = arith.constant 0 : i32
    return %c0_i32, %c0_i32_0 : i32, i32
  }
  func.func @transform_4(%arg0: i32) -> (i32, i32) {
    %c0_i32 = arith.constant 0 : i32
    %c0_i32_0 = arith.constant 0 : i32
    %c0_i32_1 = arith.constant 0 : i32
    return %c0_i32, %c0_i32_0 : i32, i32
  }
  func.func @transform_5(%arg0: i32) -> (i32, i32) {
    %c0_i32 = arith.constant 0 : i32
    %c0_i32_0 = arith.constant 0 : i32
    %c0_i32_1 = arith.constant 0 : i32
    return %c0_i32, %c0_i32_0 : i32, i32
  }
  func.func @transform_6(%arg0: i32) -> (i32, i32) {
    %c0_i32 = arith.constant 0 : i32
    %c0_i32_0 = arith.constant 0 : i32
    %c0_i32_1 = arith.constant 0 : i32
    return %c0_i32, %c0_i32_0 : i32, i32
  }
  func.func @transform_7(%arg0: i32) -> (i32, i32) {
    %c0_i32 = arith.constant 0 : i32
    %c0_i32_0 = arith.constant 0 : i32
    %c0_i32_1 = arith.constant 0 : i32
    return %c0_i32, %c0_i32_0 : i32, i32
  }
  func.func @transform_8(%arg0: i32) -> (i32, i32) {
    %c0_i32 = arith.constant 0 : i32
    %c0_i32_0 = arith.constant 0 : i32
    %c0_i32_1 = arith.constant 0 : i32
    return %c0_i32, %c0_i32_0 : i32, i32
  }
  func.func @transform_9(%arg0: i32) -> (i32, i32) {
    %c0_i32 = arith.constant 0 : i32
    %c0_i32_0 = arith.constant 0 : i32
    %c0_i32_1 = arith.constant 0 : i32
    return %c0_i32, %c0_i32_0 : i32, i32
  }
  func.func @transform_10(%arg0: i32) -> (i32, i32) {
    %c0_i32 = arith.constant 0 : i32
    %c0_i32_0 = arith.constant 0 : i32
    %c0_i32_1 = arith.constant 0 : i32
    return %c0_i32, %c0_i32_0 : i32, i32
  }
  func.func @transform_11(%arg0: i32) -> (i32, i32) {
    %c0_i32 = arith.constant 0 : i32
    %c0_i32_0 = arith.constant 0 : i32
    %c0_i32_1 = arith.constant 0 : i32
    return %c0_i32, %c0_i32_0 : i32, i32
  }
  func.func @transform_12(%arg0: i32) -> (i32, i32) {
    %c0_i32 = arith.constant 0 : i32
    %c0_i32_0 = arith.constant 0 : i32
    %c0_i32_1 = arith.constant 0 : i32
    return %c0_i32, %c0_i32_0 : i32, i32
  }
  func.func @transform_13(%arg0: i32) -> (i32, i32) {
    %c0_i32 = arith.constant 0 : i32
    %c0_i32_0 = arith.constant 0 : i32
    %c0_i32_1 = arith.constant 0 : i32
    return %c0_i32, %c0_i32_0 : i32, i32
  }
  func.func @transform_14(%arg0: i32) -> (i32, i32) {
    %c0_i32 = arith.constant 0 : i32
    %c0_i32_0 = arith.constant 0 : i32
    %c0_i32_1 = arith.constant 0 : i32
    return %c0_i32, %c0_i32_0 : i32, i32
  }
  func.func @transform_15(%arg0: i32) -> (i32, i32) {
    %c0_i32 = arith.constant 0 : i32
    %c0_i32_0 = arith.constant 0 : i32
    %c0_i32_1 = arith.constant 0 : i32
    return %c0_i32, %c0_i32_0 : i32, i32
  }
  func.func @transform_16(%arg0: i32) -> (i32, i32) {
    %c0_i32 = arith.constant 0 : i32
    %c0_i32_0 = arith.constant 0 : i32
    %c0_i32_1 = arith.constant 0 : i32
    return %c0_i32, %c0_i32_0 : i32, i32
  }
  func.func @transform_17(%arg0: i32) -> (i32, i32) {
    %c0_i32 = arith.constant 0 : i32
    %c0_i32_0 = arith.constant 0 : i32
    %c0_i32_1 = arith.constant 0 : i32
    return %c0_i32, %c0_i32_0 : i32, i32
  }
  func.func @transform_18(%arg0: i32) -> (i32, i32, i32) {
    %c0_i32 = arith.constant 0 : i32
    %c0_i32_0 = arith.constant 0 : i32
    %c0_i32_1 = arith.constant 0 : i32
    %c0_i32_2 = arith.constant 0 : i32
    return %c0_i32, %c0_i32_0, %c0_i32_1 : i32, i32, i32
  }
  func.func @transform_19(%arg0: i32) -> (i32, i32) {
    %c0_i32 = arith.constant 0 : i32
    %c0_i32_0 = arith.constant 0 : i32
    %c0_i32_1 = arith.constant 0 : i32
    return %c0_i32, %c0_i32_0 : i32, i32
  }
  func.func @transform_20(%arg0: i32) -> (i32, i32, i32) {
    %c0_i32 = arith.constant 0 : i32
    %c0_i32_0 = arith.constant 0 : i32
    %c0_i32_1 = arith.constant 0 : i32
    %c0_i32_2 = arith.constant 0 : i32
    return %c0_i32, %c0_i32_0, %c0_i32_1 : i32, i32, i32
  }
  func.func @transform_21(%arg0: i32) -> (i32, i32) {
    %c0_i32 = arith.constant 0 : i32
    %c0_i32_0 = arith.constant 0 : i32
    %c0_i32_1 = arith.constant 0 : i32
    return %c0_i32, %c0_i32_0 : i32, i32
  }
  func.func @transform_22(%arg0: i32) -> (i32, i32) {
    %c0_i32 = arith.constant 0 : i32
    %c0_i32_0 = arith.constant 0 : i32
    %c0_i32_1 = arith.constant 0 : i32
    return %c0_i32, %c0_i32_0 : i32, i32
  }
  func.func @transform_23(%arg0: i32) -> (i32, i32) {
    %c0_i32 = arith.constant 0 : i32
    %c0_i32_0 = arith.constant 0 : i32
    %c0_i32_1 = arith.constant 0 : i32
    return %c0_i32, %c0_i32_0 : i32, i32
  }
  func.func @transform_24(%arg0: i32) -> (i32, i32) {
    %c0_i32 = arith.constant 0 : i32
    %c0_i32_0 = arith.constant 0 : i32
    %c0_i32_1 = arith.constant 0 : i32
    return %c0_i32, %c0_i32_0 : i32, i32
  }
  func.func @transform_25(%arg0: i32) -> (i32, i32) {
    %c0_i32 = arith.constant 0 : i32
    %c0_i32_0 = arith.constant 0 : i32
    %c0_i32_1 = arith.constant 0 : i32
    return %c0_i32, %c0_i32_0 : i32, i32
  }
  func.func @transform_26(%arg0: i32) -> (i32, i32) {
    %c0_i32 = arith.constant 0 : i32
    %c0_i32_0 = arith.constant 0 : i32
    %c0_i32_1 = arith.constant 0 : i32
    return %c0_i32, %c0_i32_0 : i32, i32
  }
  func.func @transform_27(%arg0: i32) -> (i32, i32) {
    %c0_i32 = arith.constant 0 : i32
    %c0_i32_0 = arith.constant 0 : i32
    %c0_i32_1 = arith.constant 0 : i32
    return %c0_i32, %c0_i32_0 : i32, i32
  }
  func.func @transform_28(%arg0: i32) -> (i32, i32) {
    %c0_i32 = arith.constant 0 : i32
    %c0_i32_0 = arith.constant 0 : i32
    %c0_i32_1 = arith.constant 0 : i32
    return %c0_i32, %c0_i32_0 : i32, i32
  }
  func.func @transform_29(%arg0: i32) -> (i32, i32) {
    %c0_i32 = arith.constant 0 : i32
    %c0_i32_0 = arith.constant 0 : i32
    %c0_i32_1 = arith.constant 0 : i32
    return %c0_i32, %c0_i32_0 : i32, i32
  }
  func.func @transform_30(%arg0: i32) -> (i32, i32, i32) {
    %c0_i32 = arith.constant 0 : i32
    %c0_i32_0 = arith.constant 0 : i32
    %c0_i32_1 = arith.constant 0 : i32
    return %arg0, %c0_i32, %c0_i32_0 : i32, i32, i32
  }
}

</mosaic_0001>

<bundles_post_ra>
// kernel: tpu_custom_call.1
= control target key start
LH: loop header
LB: loop body
LE: loop exit
PB: predicated region body
PF: predicated region fallthrough
CT: control target
= control target key end

     0   :  { %6 = vsyncpa [#allocation3], 0  ;;  %s165_s0 = inlined_call_operand.hbm [shape: f32[8,1024], index: 0, kind: input, shape index: {}]   ;;  %s166_s1 = inlined_call_operand.hbm [shape: f32[8,1024], index: 1, kind: output, shape index: {}]  }
   0x1   :  { %7 = vsyncpa [#allocation4], 0  ;;  %s13_s8 = sshll.u32 %s165_s0, 4  ;;  %s138_s9 = smov [#allocation2]   ;;  %s14_s8 = int_to_ptr.hbm [resolvable:$true] %s13_s8 }
   0x2   :  { %s15_s10 = sshll.u32 %s138_s9, 4  ;;  %s16_s10 = int_to_ptr.vmem [resolvable:$true] %s15_s10 }
   0x3   :  { %18 = dma.hbm_to_vmem [thread:$0]  %s14_s8, 1024, %s16_s10, [#allocation3]  }
   0x4   :  { %134 = dma.done.wait [#allocation3], 1024  }
   0x5   :  { %135 = vsyncadd [#allocation3], 4294966272  ;;  %v25_v0 = vld [vmem:[#allocation2 + $0x10] sm:$0xff]  ;;  %v23_v1 = vld [vmem:[#allocation2] sm:$0xff]  ;;  %s139_s11 = smov 3   ;;  %v47_v8 = vlaneseq  ;;  %s140_s0 = smov [#allocation5]  }
   0x6   :  { %35 = vrot.lane.b32.xlu1 %v25_v0, %s139_s11  ;;  %31 = vrot.lane.b32.xlu0 %v23_v1, %s139_s11  ;;  %v27_v2 = vld [vmem:[#allocation2 + $0x20] sm:$0xff]  ;;  %v26_v3 = vld [vmem:[#allocation2 + $0x18] sm:$0xff]  ;;  %v24_v4 = vld [vmem:[#allocation2 + $0x8] sm:$0xff]  ;;  %s71_s12 = sshll.u32 %s140_s0, 4  ;;  %s73_s15 = sshll.u32 %s166_s1, 4  ;;  %s72_s12 = int_to_ptr.vmem [resolvable:$true] %s71_s12  ;;  %s74_s15 = int_to_ptr.hbm [resolvable:$true] %s73_s15 }
   0x7   :  { %39 = vrot.lane.b32.xlu2 %v27_v2, %s139_s11  ;;  %v28_v5 = vld [vmem:[#allocation2 + $0x28] sm:$0xff]  ;;  %v30_v6 = vld [vmem:[#allocation2 + $0x38] sm:$0xff]  ;;  %v29_v7 = vld [vmem:[#allocation2 + $0x30] sm:$0xff]  ;;  %v48_v10 = vand.u32 127, %v47_v8 }
   0x9   :  { %vm49_vm0 = vcmp.lt.s32.totalorder %v48_v10, 3 }
   0xe   :  { %37 = vrot.lane.b32.xlu1 %v26_v3, %s139_s11  ;;  %33 = vrot.lane.b32.xlu0 %v24_v4, %s139_s11 }
   0xf   :  { %41 = vrot.lane.b32.xlu2 %v28_v5, %s139_s11 }
  0x16   :  { %45 = vrot.lane.b32.xlu1 %v30_v6, %s139_s11  ;;  %43 = vrot.lane.b32.xlu0 %v29_v7, %s139_s11 }
  0x61   :  { %v40_v9 = vpop.permute.xlu2 %39 }
  0x69   :  { %v42_v11 = vpop.permute.xlu2 %41 }
  0x6a   :  { %v52_v12 = vsel %vm49_vm0, %v40_v9, %v42_v11 }
  0x6b   :  { %63 = vst [vmem:[#allocation5 + $0x28] sm:$0xff] %v52_v12 }
  0x78   :  { %v36_v13 = vpop.permute.xlu1 %35  ;;  %v32_v14 = vpop.permute.xlu0 %31 }
  0x80   :  { %v38_v15 = vpop.permute.xlu1 %37  ;;  %v34_v16 = vpop.permute.xlu0 %33 }
  0x81   :  { %v53_v17 = vsel %vm49_vm0, %v38_v15, %v40_v9  ;;  %v54_v18 = vsel %vm49_vm0, %v36_v13, %v38_v15  ;;  %v56_v19 = vsel %vm49_vm0, %v32_v14, %v34_v16  ;;  %v55_v20 = vsel %vm49_vm0, %v34_v16, %v36_v13 }
  0x82   :  { %61 = vst [vmem:[#allocation5 + $0x18] sm:$0xff] %v54_v18 }
  0x83   :  { %62 = vst [vmem:[#allocation5 + $0x20] sm:$0xff] %v53_v17 }
  0x84   :  { %59 = vst [vmem:[#allocation5 + $0x8] sm:$0xff] %v56_v19 }
  0x85   :  { %60 = vst [vmem:[#allocation5 + $0x10] sm:$0xff] %v55_v20 }
  0x88   :  { %v46_v21 = vpop.permute.xlu1 %45  ;;  %v44_v22 = vpop.permute.xlu0 %43 }
  0x89   :  { %v57_v23 = vsel %vm49_vm0, %v46_v21, %v32_v14  ;;  %v50_v24 = vsel %vm49_vm0, %v44_v22, %v46_v21  ;;  %v51_v25 = vsel %vm49_vm0, %v42_v11, %v44_v22 }
  0x8a   :  { %58 = vst [vmem:[#allocation5] sm:$0xff] %v57_v23 }
  0x8b   :  { %64 = vst [vmem:[#allocation5 + $0x30] sm:$0xff] %v51_v25 }
  0x8c   :  { %65 = vst [vmem:[#allocation5 + $0x38] sm:$0xff] %v50_v24 }
  0x8d   :  { %76 = dma.vmem_to_hbm [thread:$0]  %s72_s12, 1024, %s74_s15, [#allocation4]  }
  0x8e   :  { %136 = dma.done.wait [#allocation4], 1024  }
  0x8f   :  { %137 = vsyncadd [#allocation4], 4294966272 }
  0x90   :  { %81 = vsyncpa [#allocation3], 1 }
  0x91   :  { %82 = vsyncpa [#allocation4], 1 }

// kernel: forward.1
= control target key start
LH: loop header
LB: loop body
LE: loop exit
PB: predicated region body
PF: predicated region fallthrough
CT: control target
= control target key end

     0   :  { %s10047_s6 = smov 1   ;;  %s10048_s10 = smov 2   ;;  %s13874_s0 = inlined_call_operand.smem [shape: u32[31], index: -1, kind: input, shape index: {}] }
   0x1   :  { %s10099_s5 = sld [smem:[%s13874_s0]]   ;;  %s10049_s14 = smov 3  }
   0x2   :  { %s10104_s9 = sld [smem:[%s13874_s0 + %s10047_s6]]   ;;  %s10050_s18 = smov 4  }
   0x3   :  { %s10109_s13 = sld [smem:[%s13874_s0 + %s10048_s10]]   ;;  %s10051_s22 = smov 5  }
   0x4   :  { %s10114_s17 = sld [smem:[%s13874_s0 + %s10049_s14]]   ;;  %s10052_s26 = smov 6  }
   0x5   :  { %s10119_s21 = sld [smem:[%s13874_s0 + %s10050_s18]]   ;;  %s10053_s30 = smov 7  }
   0x6   :  { %s10124_s25 = sld [smem:[%s13874_s0 + %s10051_s22]]   ;;  %s10054_s4 = smov 8  }
   0x7   :  { %s10129_s29 = sld [smem:[%s13874_s0 + %s10052_s26]]   ;;  %s10055_s10 = smov 9  }
   0x8   :  { %s10134_s3 = sld [smem:[%s13874_s0 + %s10053_s30]]   ;;  %s10056_s15 = smov 10  }
   0x9   :  { %13943 = sst [smem:[#allocation4_spill]] %s10109_s13  ;;  %s10057_s20 = smov 11  }
   0xa   :  { %s10139_s8 = sld [smem:[%s13874_s0 + %s10054_s4]]   ;;  %s10058_s26 = smov 12  }
   0xb   :  { %s10144_s14 = sld [smem:[%s13874_s0 + %s10055_s10]]   ;;  %s10059_s1 = smov 13  }
   0xc   :  { %s10149_s19 = sld [smem:[%s13874_s0 + %s10056_s15]]   ;;  %s10060_s7 = smov 14  }
   0xd   :  { %s10154_s24 = sld [smem:[%s13874_s0 + %s10057_s20]]   ;;  %s10061_s15 = smov 15  }
   0xe   :  { %s10159_s30 = sld [smem:[%s13874_s0 + %s10058_s26]]   ;;  %s10062_s22 = smov 16  }
   0xf   :  { %s10164_s6 = sld [smem:[%s13874_s0 + %s10059_s1]]   ;;  %s10063_s28 = smov 17  }
  0x10   :  { %s10169_s12 = sld [smem:[%s13874_s0 + %s10060_s7]]   ;;  %s10064_s7 = smov 18  }
  0x11   :  { %s10174_s20 = sld [smem:[%s13874_s0 + %s10061_s15]]   ;;  %s10065_s15 = smov 19  }
  0x12   :  { %s10179_s27 = sld [smem:[%s13874_s0 + %s10062_s22]]   ;;  %s10066_s22 = smov 20  }
  0x13   :  { %s10184_s4 = sld [smem:[%s13874_s0 + %s10063_s28]]   ;;  %s10067_s28 = smov 21  }
  0x14   :  { %s10189_s13 = sld [smem:[%s13874_s0 + %s10064_s7]]   ;;  %s10068_s7 = smov 22  }
  0x16   :  { %13944 = sst [smem:[#allocation5_spill]] %s10169_s12 }
  0x17   :  { %s10194_s12 = sld [smem:[%s13874_s0 + %s10065_s15]]   ;;  %s10069_s15 = smov 23  }
  0x18   :  { %13945 = sst [smem:[#allocation6_spill]] %s10179_s27 }
  0x19   :  { %13946 = sst [smem:[#allocation7_spill]] %s10184_s4 }
  0x1a   :  { %13947 = sst [smem:[#allocation8_spill]] %s10189_s13 }
  0x1b   :  { %s10199_s27 = sld [smem:[%s13874_s0 + %s10066_s22]]   ;;  %s10070_s22 = smov 24  }
  0x1c   :  { %s10204_s4 = sld [smem:[%s13874_s0 + %s10067_s28]]   ;;  %s10071_s28 = smov 25  }
  0x1d   :  { %13948 = sst [smem:[#allocation9_spill]] %s10194_s12 }
  0x1e   :  { %s10209_s13 = sld [smem:[%s13874_s0 + %s10068_s7]]   ;;  %s10072_s7 = smov 26  }
  0x1f   :  { %s10214_s12 = sld [smem:[%s13874_s0 + %s10069_s15]]   ;;  %s10073_s15 = smov 27  }
  0x21   :  { %13949 = sst [smem:[#allocation10_spill]] %s10199_s27 }
  0x22   :  { %13950 = sst [smem:[#allocation11_spill]] %s10204_s4 }
  0x23   :  { %s10219_s27 = sld [smem:[%s13874_s0 + %s10070_s22]]   ;;  %s10074_s22 = smov 28  }
  0x24   :  { %13951 = sst [smem:[#allocation12_spill]] %s10209_s13 }
  0x25   :  { %13952 = sst [smem:[#allocation13_spill]] %s10214_s12 }
  0x26   :  { %s10224_s4 = sld [smem:[%s13874_s0 + %s10071_s28]]   ;;  %s10075_s28 = smov 29  }
  0x27   :  { %s10229_s13 = sld [smem:[%s13874_s0 + %s10072_s7]]   ;;  %s10076_s7 = smov 30  }
  0x28   :  { %s10234_s12 = sld [smem:[%s13874_s0 + %s10073_s15]]   ;;  %s10251_s15 = smov 0  }
  0x29   :  { %13953 = sst [smem:[#allocation14_spill]] %s10219_s27 }
  0x2a   :  { %s10239_s27 = sld [smem:[%s13874_s0 + %s10074_s22]]  }
  0x2c   :  { %13954 = sst [smem:[#allocation15_spill]] %s10224_s4 }
  0x2d   :  { %13955 = sst [smem:[#allocation16_spill]] %s10229_s13 }
  0x2e   :  { %s10244_s4 = sld [smem:[%s13874_s0 + %s10075_s28]]  }
  0x2f   :  { %s10249_s13 = sld [smem:[%s13874_s0 + %s10076_s7]]  }
  0x30 LB: > { %s8650_s16 = sadd.s32 4294967295, %s10045_s15   ;;  %p8654_p0 = scmp.ge.s32.totalorder %s10045_s15, 1  ;;  %s10045_s15 = sphi %s10251_s15, %s71_s15  }
  0x31   : > { %p843_p1 = scmp.lt.s32.totalorder %s10045_s15, 3 }
  0x33   : > { %p844_p2 = pnand %p8654_p0, %p843_p1 }
  0x35   : > { %847 = sbr.rel (%p844_p2) target bundleno = 2707 (0xa93), region = 140 }
  0x3a   : > { %p921_p3 = scmp.lt.s32.totalorder %s8650_s16, 1  ;;  %v958_v0 = vld [vmem:[%s10119_s21] sm:$0xff]  ;;  %v10077_v2 = vmov 0   ;;  %v959_v3 = vld [vmem:[%s10119_s21 + $0x8] sm:$0xff]  ;;  %vm1015_vm0 = vcmask 130048   ;;  %s10078_s22 = smov 1  }
  0x3b   : > { %v1131_v1 = vld [vmem:[%s10124_s25] sm:$0xff]  ;;  %9956 = vset.pattern.permute.xlu0 %v10077_v2  ;;  %9957 = vset.pattern.permute.xlu1 %v10077_v2  ;;  %v1132_v4 = vld [vmem:[%s10124_s25 + $0x8] sm:$0xff]  ;;  %s10079_s23 = smov 97   ;;  %s10080_s26 = smov 96  }
  0x3c   : > { %s14123_s16 = smov (!%p921_p3, %s8650_s16), 1  ;;  %962 = vperm.xlu0 %9956, %v958_v0   ;;  %1151 = vperm.xlu1 %9957, %v1131_v1   ;;  %v9705_v41 = vld [vmem:[%s10114_s17] sm:$0xff]  ;;  %s10081_s28 = smov 31  }
  0x3d   : > { %9958 = vset.pattern.permute.xlu2 %v10077_v2  ;;  %s9703_s0 = sshll.u32 %s14123_s16, 7  ;;  %s10082_s1 = smov 127  }
  0x3e   : > { %s10267_s18 = scalar_lea.vmem %s10099_s5, %s9703_s0  ;;  %s10083_s2 = smov 33  }
  0x3f   : > { %v932_v5 = vld [vmem:[%s10267_s18] sm:$0xff]  ;;  %v933_v6 = vld [vmem:[%s10267_s18 + $0x8] sm:$0xff]  ;;  %v10280_v10 = vld [vmem:[%s10267_s18 + $0x10] sm:$0xff]  ;;  %s10084_s7 = smov 32   ;;  %s10085_s10 = smov 95  }
  0x40   : > { %v10274_v7 = vld [vmem:[%s10267_s18 + $0x40] sm:$0xff]  ;;  %v10277_v8 = vld [vmem:[%s10267_s18 + $0x48] sm:$0xff]  ;;  %v950_v9 = vpack.c.bf16 %v933_v6, %v932_v5  ;;  %13958 = vst [vmem:[#allocation19_spill] sm:$0xff] %v10280_v10  ;;  %v10283_v11 = vld [vmem:[%s10267_s18 + $0x18] sm:$0xff]  ;;  %s14020_s11 = sld [smem:[#allocation5_spill]] }
  0x41   : > { %13956 = vst [vmem:[#allocation17_spill] sm:$0xff] %v10274_v7  ;;  %v954_v12 = vpack.c.bf16 %v10277_v8, %v10274_v7  ;;  %v10288_v13 = vld [vmem:[%s10267_s18 + $0x50] sm:$0xff]  ;;  %v10291_v14 = vld [vmem:[%s10267_s18 + $0x58] sm:$0xff]  ;;  %v951_v15 = vpack.c.bf16 %v10283_v11, %v10280_v10  ;;  %v10296_v16 = vld [vmem:[%s10267_s18 + $0x20] sm:$0xff] }
  0x42   : > { %13957 = vst [vmem:[#allocation18_spill] sm:$0xff] %v10277_v8  ;;  %v983_v17 = vunpack.c.l.b16 %v950_v9  ;;  %v984_v18 = vunpack.c.h.b16 %v950_v9  ;;  %v955_v19 = vpack.c.bf16 %v10291_v14, %v10288_v13  ;;  %v10301_v20 = vld [vmem:[%s10267_s18 + $0x28] sm:$0xff]  ;;  %v10304_v21 = vld [vmem:[%s10267_s18 + $0x60] sm:$0xff]  ;;  %v10310_v27 = vld [vmem:[%s10267_s18 + $0x30] sm:$0xff] }
  0x43   : > { %13959 = vst [vmem:[#allocation20_spill] sm:$0xff] %v10283_v11  ;;  %v10307_v22 = vld [vmem:[%s10267_s18 + $0x68] sm:$0xff]  ;;  %v991_v23 = vunpack.c.l.b16 %v954_v12  ;;  %v992_v24 = vunpack.c.h.b16 %v954_v12  ;;  %v985_v25 = vunpack.c.l.b16 %v951_v15  ;;  %v986_v26 = vunpack.c.h.b16 %v951_v15  ;;  %v10313_v28 = vld [vmem:[%s10267_s18 + $0x38] sm:$0xff]  ;;  %v10316_v29 = vld [vmem:[%s10267_s18 + $0x70] sm:$0xff] }
  0x44   : > { %13960 = vst [vmem:[#allocation21_spill] sm:$0xff] %v10288_v13  ;;  %967 = vperm.xlu0 %9956, %v959_v3   ;;  %1156 = vperm.xlu1 %9957, %v1132_v4   ;;  %v993_v30 = vunpack.c.l.b16 %v955_v19  ;;  %v994_v31 = vunpack.c.h.b16 %v955_v19  ;;  %v952_v32 = vpack.c.bf16 %v10301_v20, %v10296_v16  ;;  %v956_v33 = vpack.c.bf16 %v10307_v22, %v10304_v21  ;;  %v10323_v34 = vld [vmem:[%s10267_s18 + $0x78] sm:$0xff] }
  0x45   : > { %13961 = vst [vmem:[#allocation22_spill] sm:$0xff] %v10291_v14  ;;  %v999_v35 = vpack.c.b16 %v991_v23, %v983_v17  ;;  %v1000_v36 = vpack.c.b16 %v992_v24, %v984_v18  ;;  %v953_v37 = vpack.c.bf16 %v10313_v28, %v10310_v27  ;;  %v957_v38 = vpack.c.bf16 %v10323_v34, %v10316_v29 }
  0x46   : > { %13962 = vst [vmem:[#allocation23_spill] sm:$0xff] %v10296_v16  ;;  %v1001_v39 = vpack.c.b16 %v993_v30, %v985_v25  ;;  %v1002_v40 = vpack.c.b16 %v994_v31, %v986_v26  ;;  %v987_v42 = vunpack.c.l.b16 %v952_v32  ;;  %v995_v43 = vunpack.c.l.b16 %v956_v33 }
  0x47   : > { %4610 = vst [vmem:[#allocation3] sm:$0xff] %v950_v9  ;;  %1026 = vmatpush.bf16.msra.mxu0 %v999_v35  ;;  %1040 = vmatpush.bf16.msra.mxu1 %v1000_v36  ;;  %v988_v44 = vunpack.c.h.b16 %v952_v32  ;;  %v996_v45 = vunpack.c.h.b16 %v956_v33  ;;  %v989_v46 = vunpack.c.l.b16 %v953_v37  ;;  %v997_v47 = vunpack.c.l.b16 %v957_v38 }
  0x48   : > { %13963 = vst [vmem:[#allocation24_spill] sm:$0xff] %v10301_v20  ;;  %1054 = vmatpush.bf16.msra.mxu2 %v1001_v39  ;;  %1068 = vmatpush.bf16.msra.mxu3 %v1002_v40  ;;  %v1003_v48 = vpack.c.b16 %v995_v43, %v987_v42  ;;  %v990_v49 = vunpack.c.h.b16 %v953_v37  ;;  %v998_v50 = vunpack.c.h.b16 %v957_v38 }
  0x49   : > { %13964 = vst [vmem:[#allocation25_spill] sm:$0xff] %v10304_v21  ;;  %v1004_v51 = vpack.c.b16 %v996_v45, %v988_v44  ;;  %v1005_v52 = vpack.c.b16 %v997_v47, %v989_v46 }
  0x4a   : > { %13965 = vst [vmem:[#allocation26_spill] sm:$0xff] %v10307_v22  ;;  %8663 = vmatmul.msk.bf16.vlgmr.msra.gmra.mxu0 %vm1015_vm0, %v9705_v41  ;;  %8664 = vmatmul.msk.bf16.vlgmr.msra.gmra.mxu1 %vm1015_vm0, %v9705_v41  ;;  %v1006_v53 = vpack.c.b16 %v998_v50, %v990_v49 }
  0x4b   : > { %4614 = vst [vmem:[#allocation3 + $0x20] sm:$0xff] %v954_v12  ;;  %8665 = vmatmul.msk.bf16.vlgmr.msra.gmra.mxu2 %vm1015_vm0, %v9705_v41  ;;  %8666 = vmatmul.msk.bf16.vlgmr.msra.gmra.mxu3 %vm1015_vm0, %v9705_v41 }
  0x4c   : > { %13966 = vst [vmem:[#allocation27_spill] sm:$0xff] %v10310_v27  ;;  %1082 = vmatpush.bf16.msrb.mxu0 %v1003_v48  ;;  %1096 = vmatpush.bf16.msrb.mxu1 %v1004_v51 }
  0x4d   : > { %13967 = vst [vmem:[#allocation28_spill] sm:$0xff] %v10313_v28  ;;  %1110 = vmatpush.bf16.msrb.mxu2 %v1005_v52  ;;  %1124 = vmatpush.bf16.msrb.mxu3 %v1006_v53 }
  0x4e   : > { %13968 = vst [vmem:[#allocation29_spill] sm:$0xff] %v10316_v29 }
  0x4f   : > { %4611 = vst [vmem:[#allocation3 + $0x8] sm:$0xff] %v951_v15 }
  0x50   : > { %13969 = vst [vmem:[#allocation30_spill] sm:$0xff] %v10323_v34 }
  0x51   : > { %4615 = vst [vmem:[#allocation3 + $0x28] sm:$0xff] %v955_v19 }
  0x52   : > { %4612 = vst [vmem:[#allocation3 + $0x10] sm:$0xff] %v952_v32 }
  0x53   : > { %4616 = vst [vmem:[#allocation3 + $0x30] sm:$0xff] %v956_v33 }
  0x54   : > { %4613 = vst [vmem:[#allocation3 + $0x18] sm:$0xff] %v953_v37 }
  0x55   : > { %4617 = vst [vmem:[#allocation3 + $0x38] sm:$0xff] %v957_v38 }
  0x5a   : > { %8667 = vmatmul.msk.bf16.vlgmr.msrb.gmra.mxu0 %vm1015_vm0, %v9705_v41  ;;  %8668 = vmatmul.msk.bf16.vlgmr.msrb.gmra.mxu1 %vm1015_vm0, %v9705_v41 }
  0x5b   : > { %8669 = vmatmul.msk.bf16.vlgmr.msrb.gmra.mxu2 %vm1015_vm0, %v9705_v41  ;;  %8670 = vmatmul.msk.bf16.vlgmr.msrb.gmra.mxu3 %vm1015_vm0, %v9705_v41 }
  0xae   : > { %v10338_v54 = vpop.permute.xlu0 %962  ;;  %v10340_v55 = vpop.permute.xlu1 %1151 }
  0xb6   : > { %v10350_v0 = vpop.permute.xlu0 %967  ;;  %v10364_v17 = vpop.permute.xlu1 %1156 }
  0xc7   : > { %v1028_v56 = vpop.f32.mrf.mxu0  ;;  %v1042_v57 = vpop.f32.mrf.mxu1 }
  0xc8   : > { %v1029_v58 = vadd.f32 %v1028_v56, %v10338_v54  ;;  %v1043_v59 = vadd.f32 %v1042_v57, %v10338_v54 }
  0xca   : > { %vm1133_vm1 = vcmp.ge.f32.partialorder %v1029_v58, 0.0  ;;  %v1159_v60 = vmul.f32 %v10340_v55, %v1029_v58  ;;  %vm1134_vm2 = vcmp.ge.f32.partialorder %v1043_v59, 0.0  ;;  %v1160_v61 = vmul.f32 %v10340_v55, %v1043_v59 }
  0xcc   : > { %v10346_v62 = vsel %vm1133_vm1, %v1029_v58, %v1159_v60  ;;  %v10348_v63 = vsel %vm1134_vm2, %v1043_v59, %v1160_v61  ;;  %vm1962_vm2 = vcmask 785408  }
  0xcd   : > { %v1678_v1 = vpack.c.bf16 %v10348_v63, %v10346_v62  ;;  %1566 = vrot.lane.b32.xlu0 %v10346_v62, %s10078_s22  ;;  %1812 = vrot.lane.b32.xlu1 %v10346_v62, %s10079_s23 }
  0xce   : > { %v1056_v2 = vpop.f32.mrf.mxu2  ;;  %v1070_v3 = vpop.f32.mrf.mxu3  ;;  %1930 = vrot.lane.b32.xlu2 %v10346_v62, %s10080_s26 }
  0xcf   : > { %1686 = vst [vmem:[#allocation2 + $0x100] sm:$0xff] %v1678_v1  ;;  %v1057_v4 = vadd.f32 %v1056_v2, %v10338_v54  ;;  %v1071_v5 = vadd.f32 %v1070_v3, %v10338_v54  ;;  %v1030_v6 = vpop.f32.mrf.mxu0  ;;  %v1044_v9 = vpop.f32.mrf.mxu1 }
  0xd0   : > { %4618 = vst [vmem:[#allocation3 + $0x40] sm:$0xff] %v1678_v1  ;;  %v1031_v12 = vadd.f32 %v1030_v6, %v10350_v0  ;;  %v1045_v15 = vadd.f32 %v1044_v9, %v10350_v0 }
  0xd1   : > { %vm1135_vm3 = vcmp.ge.f32.partialorder %v1057_v4, 0.0  ;;  %v1161_v18 = vmul.f32 %v10340_v55, %v1057_v4  ;;  %vm1136_vm4 = vcmp.ge.f32.partialorder %v1071_v5, 0.0  ;;  %v1162_v19 = vmul.f32 %v10340_v55, %v1071_v5 }
  0xd2   : > { %vm1141_vm5 = vcmp.ge.f32.partialorder %v1031_v12, 0.0  ;;  %v1167_v23 = vmul.f32 %v10364_v17, %v1031_v12  ;;  %vm1142_vm6 = vcmp.ge.f32.partialorder %v1045_v15, 0.0  ;;  %v1168_v24 = vmul.f32 %v10364_v17, %v1045_v15 }
  0xd3   : > { %v10370_v25 = vsel %vm1135_vm3, %v1057_v4, %v1161_v18  ;;  %v10372_v26 = vsel %vm1136_vm4, %v1071_v5, %v1162_v19  ;;  %vm1844_vm3 = vcmask 793600   ;;  %vm1726_vm4 = vcmask 1039360  }
  0xd4   : > { %v1679_v30 = vpack.c.bf16 %v10372_v26, %v10370_v25  ;;  %v10376_v31 = vsel %vm1141_vm5, %v1031_v12, %v1167_v23  ;;  %v10378_v32 = vsel %vm1142_vm6, %v1045_v15, %v1168_v24  ;;  %vm1594_vm5 = vcmask 7168  }
  0xd5   : > { %v1682_v33 = vpack.c.bf16 %v10378_v32, %v10376_v31  ;;  %1448 = vrot.lane.b32.xlu0 %v10346_v62, %s10081_s28  ;;  %1694 = vrot.lane.b32.xlu1 %v10346_v62, %s10082_s1  ;;  %vm1358_vm6 = vcmask 261120  }
  0xd6   : > { %1687 = vst [vmem:[#allocation2 + $0x108] sm:$0xff] %v1679_v30  ;;  %v1058_v35 = vpop.f32.mrf.mxu2  ;;  %v1072_v36 = vpop.f32.mrf.mxu3  ;;  %1932 = vrot.lane.b32.xlu2 %v10348_v63, %s10080_s26 }
  0xd7   : > { %4619 = vst [vmem:[#allocation3 + $0x48] sm:$0xff] %v1679_v30  ;;  %v1059_v37 = vadd.f32 %v1058_v35, %v10350_v0  ;;  %v1073_v38 = vadd.f32 %v1072_v36, %v10350_v0  ;;  %v1084_v39 = vpop.f32.mrf.mxu0  ;;  %v1098_v40 = vpop.f32.mrf.mxu1 }
  0xd8   : > { %1690 = vst [vmem:[#allocation2 + $0x120] sm:$0xff] %v1682_v33  ;;  %v1085_v41 = vadd.f32 %v1084_v39, %v10338_v54  ;;  %v1099_v42 = vadd.f32 %v1098_v40, %v10338_v54 }
  0xd9   : > { %4622 = vst [vmem:[#allocation3 + $0x60] sm:$0xff] %v1682_v33  ;;  %vm1143_vm7 = vcmp.ge.f32.partialorder %v1059_v37, 0.0  ;;  %v1169_v43 = vmul.f32 %v10364_v17, %v1059_v37  ;;  %vm1144_vm8 = vcmp.ge.f32.partialorder %v1073_v38, 0.0  ;;  %v1170_v44 = vmul.f32 %v10364_v17, %v1073_v38 }
  0xda   : > { %vm1137_vm9 = vcmp.ge.f32.partialorder %v1085_v41, 0.0  ;;  %v1163_v45 = vmul.f32 %v10340_v55, %v1085_v41  ;;  %vm1138_vm10 = vcmp.ge.f32.partialorder %v1099_v42, 0.0  ;;  %v1164_v46 = vmul.f32 %v10340_v55, %v1099_v42 }
  0xdb   : > { %v10396_v47 = vsel %vm1143_vm7, %v1059_v37, %v1169_v43  ;;  %v10398_v48 = vsel %vm1144_vm8, %v1073_v38, %v1170_v44  ;;  %vm1476_vm7 = vcmask 252928   ;;  %vm1241_vm8 = vcmask 269312  }
  0xdc   : > { %v1683_v49 = vpack.c.bf16 %v10398_v48, %v10396_v47  ;;  %v10402_v50 = vsel %vm1137_vm9, %v1085_v41, %v1163_v45  ;;  %v10404_v51 = vsel %vm1138_vm10, %v1099_v42, %v1164_v46  ;;  %vm2080_vm9 = vcmask 777216  }
  0xdd   : > { %v1680_v52 = vpack.c.bf16 %v10404_v51, %v10402_v50  ;;  %1215 = vrot.lane.b32.xlu0 %v10348_v63, %s10083_s2  ;;  %1568 = vrot.lane.b32.xlu1 %v10348_v63, %s10078_s22 }
  0xde   : > { %1691 = vst [vmem:[#allocation2 + $0x128] sm:$0xff] %v1683_v49  ;;  %v1112_v53 = vpop.f32.mrf.mxu2  ;;  %v1126_v56 = vpop.f32.mrf.mxu3  ;;  %1814 = vrot.lane.b32.xlu2 %v10348_v63, %s10079_s23 }
  0xdf   : > { %4623 = vst [vmem:[#allocation3 + $0x68] sm:$0xff] %v1683_v49  ;;  %v1113_v57 = vadd.f32 %v1112_v53, %v10338_v54  ;;  %v1127_v58 = vadd.f32 %v1126_v56, %v10338_v54  ;;  %v1086_v59 = vpop.f32.mrf.mxu0  ;;  %v1100_v60 = vpop.f32.mrf.mxu1 }
  0xe0   : > { %1688 = vst [vmem:[#allocation2 + $0x110] sm:$0xff] %v1680_v52  ;;  %v1087_v61 = vadd.f32 %v1086_v59, %v10350_v0  ;;  %v1101_v1 = vadd.f32 %v1100_v60, %v10350_v0 }
  0xe1   : > { %4620 = vst [vmem:[#allocation3 + $0x50] sm:$0xff] %v1680_v52  ;;  %vm1139_vm11 = vcmp.ge.f32.partialorder %v1113_v57, 0.0  ;;  %v1165_v2 = vmul.f32 %v10340_v55, %v1113_v57  ;;  %vm1140_vm12 = vcmp.ge.f32.partialorder %v1127_v58, 0.0  ;;  %v1166_v3 = vmul.f32 %v10340_v55, %v1127_v58  ;;  %v10547_v52 = vld [vmem:[%s10104_s9 + $0x38] sm:$0xff] }
  0xe2   : > { %vm1145_vm13 = vcmp.ge.f32.partialorder %v1087_v61, 0.0  ;;  %v1171_v4 = vmul.f32 %v10364_v17, %v1087_v61  ;;  %vm1146_vm14 = vcmp.ge.f32.partialorder %v1101_v1, 0.0  ;;  %v1172_v54 = vmul.f32 %v10364_v17, %v1101_v1 }
  0xe3   : > { %v10422_v5 = vsel %vm1139_vm11, %v1113_v57, %v1165_v2  ;;  %v10424_v6 = vsel %vm1140_vm12, %v1127_v58, %v1166_v3  ;;  %v13887_v53 = vperm.slane %v10547_v52, 0  ;;  %v13886_v56 = vperm.slane %v10547_v52, 1  ;;  %v10572_v3 = vld [vmem:[%s10104_s9 + $0x30] sm:$0xff] }
  0xe4   : > { %13970 = vst [vmem:[#allocation31_spill] sm:$0xff] %v10422_v5  ;;  %v1681_v9 = vpack.c.bf16 %v10424_v6, %v10422_v5  ;;  %v10428_v12 = vsel %vm1145_vm13, %v1087_v61, %v1171_v4  ;;  %v10430_v15 = vsel %vm1146_vm14, %v1101_v1, %v1172_v54  ;;  %v13885_v54 = vperm.slane %v10572_v3, 0 }
  0xe5   : > { %13971 = vst [vmem:[#allocation32_spill] sm:$0xff] %v10424_v6  ;;  %v1684_v55 = vpack.c.bf16 %v10430_v15, %v10428_v12  ;;  %1934 = vrot.lane.b32.xlu0 %v10370_v25, %s10080_s26  ;;  %1450 = vrot.lane.b32.xlu1 %v10348_v63, %s10081_s28  ;;  %v13980_v13 = vperm.slane %v10547_v52, 0 }
  0xe6   : > { %1689 = vst [vmem:[#allocation2 + $0x118] sm:$0xff] %v1681_v9  ;;  %v1114_v18 = vpop.f32.mrf.mxu2  ;;  %v1128_v19 = vpop.f32.mrf.mxu3  ;;  %1696 = vrot.lane.b32.xlu2 %v10348_v63, %s10082_s1 }
  0xe7   : > { %4621 = vst [vmem:[#allocation3 + $0x58] sm:$0xff] %v1681_v9  ;;  %v1115_v23 = vadd.f32 %v1114_v18, %v10350_v0  ;;  %v1129_v24 = vadd.f32 %v1128_v19, %v10350_v0  ;;  %v13882_v9 = vperm.slane %v10572_v3, 1 }
  0xe8   : > { %1692 = vst [vmem:[#allocation2 + $0x130] sm:$0xff] %v1684_v55 }
  0xe9   : > { %4624 = vst [vmem:[#allocation3 + $0x70] sm:$0xff] %v1684_v55  ;;  %vm1147_vm15 = vcmp.ge.f32.partialorder %v1115_v23, 0.0  ;;  %v1173_v30 = vmul.f32 %v10364_v17, %v1115_v23  ;;  %vm1148_vm1 = vcmp.ge.f32.partialorder %v1129_v24, 0.0  ;;  %v1174_v33 = vmul.f32 %v10364_v17, %v1129_v24 }
  0xeb   : > { %v10444_v35 = vsel %vm1147_vm15, %v1115_v23, %v1173_v30  ;;  %v10446_v36 = vsel %vm1148_vm1, %v1129_v24, %v1174_v33 }
  0xec   : > { %13972 = vst [vmem:[#allocation33_spill] sm:$0xff] %v10444_v35  ;;  %v1685_v37 = vpack.c.bf16 %v10446_v36, %v10444_v35 }
  0xed   : > { %1816 = vrot.lane.b32.xlu0 %v10370_v25, %s10079_s23  ;;  %1330 = vrot.lane.b32.xlu1 %v10346_v62, %s10084_s7 }
  0xee   : > { %1693 = vst [vmem:[#allocation2 + $0x138] sm:$0xff] %v1685_v37  ;;  %1332 = vrot.lane.b32.xlu2 %v10348_v63, %s10084_s7 }
  0xef   : > { %4625 = vst [vmem:[#allocation3 + $0x78] sm:$0xff] %v1685_v37  ;;  %v10595_v37 = vld [vmem:[%s10104_s9 + $0x28] sm:$0xff] }
  0xf5   : > { %1698 = vrot.lane.b32.xlu0 %v10370_v25, %s10082_s1  ;;  %1936 = vrot.lane.b32.xlu1 %v10372_v26, %s10080_s26 }
  0xf6   : > { %1213 = vrot.lane.b32.xlu2 %v10346_v62, %s10083_s2 }
  0xfd   : > { %1700 = vrot.lane.b32.xlu0 %v10372_v26, %s10082_s1  ;;  %1946 = vrot.lane.b32.xlu1 %v10376_v31, %s10080_s26 }
  0xfe   : > { %1818 = vrot.lane.b32.xlu2 %v10372_v26, %s10079_s23 }
 0x105   : > { %1572 = vrot.lane.b32.xlu0 %v10372_v26, %s10078_s22  ;;  %1828 = vrot.lane.b32.xlu1 %v10376_v31, %s10079_s23 }
 0x106   : > { %1570 = vrot.lane.b32.xlu2 %v10370_v25, %s10078_s22 }
 0x10d   : > { %1582 = vrot.lane.b32.xlu0 %v10378_v32, %s10078_s22  ;;  %1710 = vrot.lane.b32.xlu1 %v10376_v31, %s10082_s1 }
 0x10e   : > { %1948 = vrot.lane.b32.xlu2 %v10378_v32, %s10080_s26 }
 0x115   : > { %1464 = vrot.lane.b32.xlu0 %v10378_v32, %s10081_s28  ;;  %1346 = vrot.lane.b32.xlu1 %v10378_v32, %s10084_s7 }
 0x116   : > { %1830 = vrot.lane.b32.xlu2 %v10378_v32, %s10079_s23 }
 0x11d   : > { %1344 = vrot.lane.b32.xlu0 %v10376_v31, %s10084_s7  ;;  %1227 = vrot.lane.b32.xlu1 %v10376_v31, %s10083_s2 }
 0x11e   : > { %1712 = vrot.lane.b32.xlu2 %v10378_v32, %s10082_s1 }
 0x125   : > { %1950 = vrot.lane.b32.xlu0 %v10396_v47, %s10080_s26  ;;  %1834 = vrot.lane.b32.xlu1 %v10398_v48, %s10079_s23 }
 0x126   : > { %1580 = vrot.lane.b32.xlu2 %v10376_v31, %s10078_s22 }
 0x128   : > { %v10498_v0 = vpop.permute.xlu2 %1930 }
 0x129   : > { %13973 = vst [vmem:[#allocation34_spill] sm:$0xff] %v10498_v0 }
 0x12d   : > { %1832 = vrot.lane.b32.xlu0 %v10396_v47, %s10079_s23  ;;  %1584 = vrot.lane.b32.xlu1 %v10396_v47, %s10078_s22 }
 0x12e   : > { %1462 = vrot.lane.b32.xlu2 %v10376_v31, %s10081_s28 }
 0x130   : > { %v1933_v17 = vpop.permute.xlu2 %1932 }
 0x131   : > { %v1963_v57 = vsel %vm1962_vm2, %v10498_v0, %v1933_v17  ;;  %v1766_v0 = vperm.slane %v10595_v37, 2 }
 0x132   : > { %v2016_v1 = vmul.f32 %v13887_v53, %v1963_v57  ;;  %v13884_v57 = vperm.slane %v10595_v37, 0 }
 0x135   : > { %1714 = vrot.lane.b32.xlu0 %v10396_v47, %s10082_s1  ;;  %1702 = vrot.lane.b32.xlu1 %v10402_v50, %s10082_s1 }
 0x136   : > { %1229 = vrot.lane.b32.xlu2 %v10378_v32, %s10083_s2 }
 0x138   : > { %v1815_v38 = vpop.permute.xlu2 %1814 }
 0x13d   : > { %1952 = vrot.lane.b32.xlu0 %v10398_v48, %s10080_s26  ;;  %1940 = vrot.lane.b32.xlu1 %v10404_v51, %s10080_s26 }
 0x13e   : > { %1716 = vrot.lane.b32.xlu2 %v10398_v48, %s10082_s1 }
 0x13f   : > { %v10518_v39 = vpop.permute.xlu0 %1566  ;;  %v10520_v40 = vpop.permute.xlu1 %1812 }
 0x140   : > { %13974 = vst [vmem:[#allocation35_spill] sm:$0xff] %v10520_v40  ;;  %v1697_v41 = vpop.permute.xlu2 %1696  ;;  %v1845_v55 = vsel %vm1844_vm3, %v10520_v40, %v1815_v38 }
 0x141   : > { %v1898_v30 = vmul.f32 %v13885_v54, %v1845_v55 }
 0x145   : > { %1820 = vrot.lane.b32.xlu0 %v10402_v50, %s10079_s23  ;;  %1560 = vrot.lane.b32.xlu1 %v10424_v6, %s10078_s22 }
 0x146   : > { %1586 = vrot.lane.b32.xlu2 %v10398_v48, %s10078_s22 }
 0x147   : > { %v10528_v42 = vpop.permute.xlu0 %1448  ;;  %v10530_v43 = vpop.permute.xlu1 %1694 }
 0x148   : > { %13975 = vst [vmem:[#allocation36_spill] sm:$0xff] %v10530_v43  ;;  %v10532_v44 = vpop.permute.xlu2 %1332 }
 0x14d   : > { %1822 = vrot.lane.b32.xlu0 %v10404_v51, %s10079_s23  ;;  %1442 = vrot.lane.b32.xlu1 %v10424_v6, %s10081_s28 }
 0x14e   : > { %1938 = vrot.lane.b32.xlu2 %v10402_v50, %s10080_s26 }
 0x14f   : > { %v10540_v45 = vpop.permute.xlu0 %1215  ;;  %v10542_v46 = vpop.permute.xlu1 %1568 }
 0x150   : > { %v10544_v49 = vpop.permute.xlu2 %1213 }
 0x155   : > { %1193 = vrot.lane.b32.xlu0 %v10424_v6, %s10083_s2  ;;  %1824 = vrot.lane.b32.xlu1 %v10422_v5, %s10079_s23 }
 0x156   : > { %1324 = vrot.lane.b32.xlu2 %v10424_v6, %s10084_s7 }
 0x157   : > { %v10559_v58 = vpop.permute.xlu0 %1934  ;;  %v10561_v59 = vpop.permute.xlu1 %1450 }
 0x158   : > { %v1964_v60 = vsel %vm1962_vm2, %v1933_v17, %v10559_v58  ;;  %v10565_v61 = vpop.permute.xlu2 %1818 }
 0x159   : > { %v2017_v2 = vmul.f32 %v13886_v56, %v1964_v60  ;;  %v1727_v60 = vsel %vm1726_vm4, %v10530_v43, %v1697_v41 }
 0x15b   : > { %v2032_v4 = vpack.c.bf16 %v2017_v2, %v2016_v1 }
 0x15d   : > { %2040 = vst [vmem:[#allocation2 + $0x1c0] sm:$0xff] %v2032_v4  ;;  %1718 = vrot.lane.b32.xlu0 %v10428_v12, %s10082_s1  ;;  %1954 = vrot.lane.b32.xlu1 %v10428_v12, %s10080_s26 }
 0x15e   : > { %1942 = vrot.lane.b32.xlu2 %v10422_v5, %s10080_s26 }
 0x15f   : > { %v10584_v18 = vpop.permute.xlu0 %1816  ;;  %v10586_v19 = vpop.permute.xlu1 %1330 }
 0x160   : > { %v1846_v23 = vsel %vm1844_vm3, %v1815_v38, %v10584_v18  ;;  %v1571_v24 = vpop.permute.xlu2 %1570  ;;  %v13883_v38 = vperm.slane %v10595_v37, 1 }
 0x161   : > { %v1899_v33 = vmul.f32 %v13882_v9, %v1846_v23  ;;  %v1780_v23 = vmul.f32 %v13884_v57, %v1727_v60  ;;  %v10628_v60 = vld [vmem:[%s10104_s9 + $0x18] sm:$0xff] }
 0x163   : > { %v1914_v17 = vpack.c.bf16 %v1899_v33, %v1898_v30 }
 0x165   : > { %1922 = vst [vmem:[#allocation2 + $0x180] sm:$0xff] %v1914_v17  ;;  %1956 = vrot.lane.b32.xlu0 %v10430_v15, %s10080_s26  ;;  %1195 = vrot.lane.b32.xlu1 %v10446_v36, %s10083_s2 }
 0x166   : > { %1836 = vrot.lane.b32.xlu2 %v10428_v12, %s10079_s23 }
 0x167   : > { %v10607_v1 = vpop.permute.xlu0 %1698  ;;  %v10609_v2 = vpop.permute.xlu1 %1936 }
 0x168   : > { %v1728_v4 = vsel %vm1726_vm4, %v1697_v41, %v10607_v1  ;;  %v1949_v55 = vpop.permute.xlu2 %1948 }
 0x169   : > { %v1781_v30 = vmul.f32 %v13883_v38, %v1728_v4  ;;  %v1632_v4 = vperm.slane %v10628_v60, 2 }
 0x16b   : > { %v1796_v33 = vpack.c.bf16 %v1781_v30, %v1780_v23  ;;  %v1633_v23 = vperm.slane %v10628_v60, 3  ;;  %v1596_v30 = vsel %vm1594_vm5, %v10542_v46, %v1571_v24 }
 0x16c   : > { %v1648_v56 = vmul.f32 %v1632_v4, %v1596_v30 }
 0x16d   : > { %1804 = vst [vmem:[#allocation2 + $0x140] sm:$0xff] %v1796_v33  ;;  %1326 = vrot.lane.b32.xlu0 %v10446_v36, %s10084_s7  ;;  %1958 = vrot.lane.b32.xlu1 %v10444_v35, %s10080_s26 }
 0x16e   : > { %1838 = vrot.lane.b32.xlu2 %v10430_v15, %s10079_s23 }
 0x16f   : > { %v10623_v17 = vpop.permute.xlu0 %1700  ;;  %v10625_v41 = vpop.permute.xlu1 %1946 }
 0x170   : > { %13976 = vst [vmem:[#allocation37_spill] sm:$0xff] %v10625_v41  ;;  %v1831_v9 = vpop.permute.xlu2 %1830  ;;  %v1970_v28 = vsel %vm1962_vm2, %v10625_v41, %v1949_v55 }
 0x171   : > { %v2024_v8 = vmul.f32 %v13980_v13, %v1970_v28 }
 0x175   : > { %1840 = vrot.lane.b32.xlu0 %v10444_v35, %s10079_s23  ;;  %1452 = vrot.lane.b32.xlu1 %v10370_v25, %s10081_s28 }
 0x176   : > { %1562 = vrot.lane.b32.xlu2 %v10446_v36, %s10078_s22 }
 0x177   : > { %v10640_v33 = vpop.permute.xlu0 %1572  ;;  %v10642_v38 = vpop.permute.xlu1 %1828 }
 0x178   : > { %13977 = vst [vmem:[#allocation38_spill] sm:$0xff] %v10640_v33  ;;  %v1597_v57 = vsel %vm1594_vm5, %v1571_v24, %v10640_v33  ;;  %v10646_v54 = vpop.permute.xlu2 %1712  ;;  %v1852_v10 = vsel %vm1844_vm3, %v10642_v38, %v1831_v9 }
 0x179   : > { %13978 = vst [vmem:[#allocation39_spill] sm:$0xff] %v10642_v38  ;;  %v1649_v53 = vmul.f32 %v1633_v23, %v1597_v57 }
 0x17b   : > { %v1663_v34 = vpack.c.bf16 %v1649_v53, %v1648_v56 }
 0x17d   : > { %1671 = vst [vmem:[#allocation2 + $0xc8] sm:$0xff] %v1663_v34  ;;  %1466 = vrot.lane.b32.xlu0 %v10396_v47, %s10081_s28  ;;  %1468 = vrot.lane.b32.xlu1 %v10398_v48, %s10081_s28 }
 0x17e   : > { %1444 = vrot.lane.b32.xlu2 %v10446_v36, %s10081_s28 }
 0x17f   : > { %v10654_v29 = vpop.permute.xlu0 %1582  ;;  %v10656_v22 = vpop.permute.xlu1 %1710 }
 0x180   : > { %v10658_v24 = vpop.permute.xlu2 %1580 }
 0x185   : > { %1706 = vrot.lane.b32.xlu0 %v10422_v5, %s10082_s1  ;;  %1720 = vrot.lane.b32.xlu1 %v10430_v15, %s10082_s1  ;;  %v1729_v5 = vsel %vm1726_vm4, %v10607_v1, %v10623_v17  ;;  %v13917_v1 = vperm.slane %v10547_v52, 3 }
 0x186   : > { %1454 = vrot.lane.b32.xlu2 %v10372_v26, %s10081_s28 }
 0x187   : > { %v10666_v34 = vpop.permute.xlu0 %1464  ;;  %v10668_v53 = vpop.permute.xlu1 %1346 }
 0x188   : > { %v10670_v56 = vpop.permute.xlu2 %1462 }
 0x18d   : > { %1334 = vrot.lane.b32.xlu0 %v10370_v25, %s10084_s7  ;;  %1336 = vrot.lane.b32.xlu1 %v10372_v26, %s10084_s7 }
 0x18e   : > { %1704 = vrot.lane.b32.xlu2 %v10404_v51, %s10082_s1 }
 0x18f   : > { %v10678_v57 = vpop.permute.xlu0 %1344  ;;  %v10680_v30 = vpop.permute.xlu1 %1227 }
 0x190   : > { %13979 = vst [vmem:[#allocation40_spill] sm:$0xff] %v10678_v57  ;;  %v10682_v21 = vpop.permute.xlu2 %1229  ;;  %v9764_v57 = vld [vmem:[#allocation2 + $0x1c4] sm:$0xf] }
 0x195   : > { %1350 = vrot.lane.b32.xlu0 %v10398_v48, %s10084_s7  ;;  %2048 = vrot.lane.b32.xlu1 %v10346_v62, %s10085_s10  ;;  %v13981_v62 = vperm.slane %v10547_v52, 1 }
 0x196   : > { %1722 = vrot.lane.b32.xlu2 %v10444_v35, %s10082_s1 }
 0x197   : > { %v10692_v27 = vpop.permute.xlu0 %1950  ;;  %v10694_v20 = vpop.permute.xlu1 %1834 }
 0x198   : > { %v1971_v16 = vsel %vm1962_vm2, %v1949_v55, %v10692_v27  ;;  %v10698_v14 = vpop.permute.xlu2 %1716 }
 0x199   : > { %v2025_v7 = vmul.f32 %v13981_v62, %v1971_v16  ;;  %v13983_v62 = vperm.slane %v10572_v3, 1 }
 0x19b   : > { %v2036_v11 = vpack.c.bf16 %v2025_v7, %v2024_v8 }
 0x19d   : > { %2044 = vst [vmem:[#allocation2 + $0x1e0] sm:$0xff] %v2036_v11  ;;  %2052 = vrot.lane.b32.xlu0 %v10370_v25, %s10085_s10  ;;  %2054 = vrot.lane.b32.xlu1 %v10372_v26, %s10085_s10  ;;  %v13982_v11 = vperm.slane %v10572_v3, 0 }
 0x19e   : > { %1348 = vrot.lane.b32.xlu2 %v10396_v47, %s10084_s7 }
 0x19f   : > { %v10712_v55 = vpop.permute.xlu0 %1832  ;;  %v1585_v13 = vpop.permute.xlu1 %1584  ;;  %v1906_v28 = vmul.f32 %v13982_v11, %v1852_v10 }
 0x1a0   : > { %v1853_v16 = vsel %vm1844_vm3, %v1831_v9, %v10712_v55  ;;  %v1603_v7 = vsel %vm1594_vm5, %v10654_v29, %v1585_v13  ;;  %v10718_v8 = vpop.permute.xlu2 %1586  ;;  %v8912_v9 = vld [vmem:[#allocation2 + $0x1c0] sm:$0xf] }
 0x1a1   : > { %v1907_v43 = vmul.f32 %v13983_v62, %v1853_v16  ;;  %v1656_v38 = vmul.f32 %v1632_v4, %v1603_v7  ;;  %v1604_v40 = vsel %vm1594_vm5, %v1585_v13, %v10718_v8  ;;  %v13985_v13 = vperm.slane %v10595_v37, 1 }
 0x1a2   : > { %v1657_v41 = vmul.f32 %v1633_v23, %v1604_v40  ;;  %v1767_v40 = vperm.slane %v10595_v37, 3  ;;  %v2002_v23 = vperm.slane %v10547_v52, 2 }
 0x1a3   : > { %v1918_v33 = vpack.c.bf16 %v1907_v43, %v1906_v28 }
 0x1a4   : > { %v1667_v35 = vpack.c.bf16 %v1657_v41, %v1656_v38  ;;  %v9768_v6 = vld [vmem:[#allocation2 + $0x1dc] sm:$0xf0]  ;;  %v8914_v10 = vld [vmem:[#allocation2 + $0x1e0] sm:$0xf0]  ;;  %v1734_v38 = vsel %vm1726_vm4, %v10656_v22, %v10646_v54  ;;  %v1782_v41 = vmul.f32 %v1766_v0, %v1729_v5 }
 0x1a5   : > { %1926 = vst [vmem:[#allocation2 + $0x1a0] sm:$0xff] %v1918_v33  ;;  %2064 = vrot.lane.b32.xlu0 %v10376_v31, %s10085_s10  ;;  %2066 = vrot.lane.b32.xlu1 %v10378_v32, %s10085_s10  ;;  %v8913_v4 = vor.u32 %v9768_v6, %v8912_v9  ;;  %v8917_v43 = vor.u32 %v9764_v57, %v8914_v10  ;;  %v8880_v9 = vld [vmem:[#allocation2 + $0x180] sm:$0xf] }
 0x1a6   : > { %1675 = vst [vmem:[#allocation2 + $0xe8] sm:$0xff] %v1667_v35  ;;  %2050 = vrot.lane.b32.xlu2 %v10348_v63, %s10085_s10  ;;  %v1965_v31 = vsel %vm1962_vm2, %v10559_v58, %v10609_v2  ;;  %v13984_v58 = vperm.slane %v10595_v37, 0 }
 0x1a7   : > { %v10745_v32 = vpop.permute.xlu0 %1714  ;;  %v10747_v6 = vpop.permute.xlu1 %1702  ;;  %2624 = vmatpush.bf16.msra.mxu0 %v8913_v4  ;;  %2652 = vmatpush.bf16.msra.mxu2 %v8917_v43  ;;  %v9756_v43 = vld [vmem:[#allocation2 + $0x184] sm:$0xf] }
 0x1a8   : > { %v1735_v63 = vsel %vm1726_vm4, %v10646_v54, %v10745_v32  ;;  %v1730_v35 = vsel %vm1726_vm4, %v10623_v17, %v10747_v6  ;;  %v1939_v33 = vpop.permute.xlu2 %1938  ;;  %v1788_v57 = vmul.f32 %v13984_v58, %v1734_v38  ;;  %v2018_v54 = vmul.f32 %v2002_v23, %v1965_v31  ;;  %v10770_v17 = vld [vmem:[%s10104_s9 + $0x8] sm:$0xff] }
 0x1a9   : > { %v1789_v16 = vmul.f32 %v13985_v13, %v1735_v63  ;;  %v1783_v7 = vmul.f32 %v1767_v40, %v1730_v35  ;;  %v1966_v5 = vsel %vm1962_vm2, %v10609_v2, %v1939_v33  ;;  %v13916_v63 = vperm.slane %v10770_v17, 1 }
 0x1aa   : > { %v2019_v11 = vmul.f32 %v13917_v1, %v1966_v5  ;;  %v1359_v35 = vsel %vm1358_vm6, %v10586_v19, %v10532_v44 }
 0x1ab   : > { %v1800_v28 = vpack.c.bf16 %v1789_v16, %v1788_v57  ;;  %v1797_v62 = vpack.c.bf16 %v1783_v7, %v1782_v41  ;;  %v13915_v41 = vperm.slane %v10770_v17, 0  ;;  %v1411_v7 = vmul.f32 %v13916_v63, %v1359_v35 }
 0x1ac   : > { %v2033_v10 = vpack.c.bf16 %v2019_v11, %v2018_v54  ;;  %v9760_v4 = vld [vmem:[#allocation2 + $0x19c] sm:$0xf0]  ;;  %v8882_v38 = vld [vmem:[#allocation2 + $0x1a0] sm:$0xf0]  ;;  %v1631_v54 = vperm.slane %v10628_v60, 1  ;;  %v1884_v11 = vperm.slane %v10572_v3, 2 }
 0x1ad   : > { %1808 = vst [vmem:[#allocation2 + $0x160] sm:$0xff] %v1800_v28  ;;  %2070 = vrot.lane.b32.xlu0 %v10398_v48, %s10085_s10  ;;  %2072 = vrot.lane.b32.xlu1 %v10428_v12, %s10085_s10  ;;  %v8881_v2 = vor.u32 %v9760_v4, %v8880_v9  ;;  %v8885_v31 = vor.u32 %v9756_v43, %v8882_v38  ;;  %v8848_v28 = vld [vmem:[#allocation2 + $0x140] sm:$0xf]  ;;  %v9748_v43 = vld [vmem:[#allocation2 + $0x144] sm:$0xf]  ;;  %v1885_v38 = vperm.slane %v10572_v3, 3 }
 0x1ae   : > { %1805 = vst [vmem:[#allocation2 + $0x148] sm:$0xff] %v1797_v62  ;;  %2056 = vrot.lane.b32.xlu2 %v10402_v50, %s10085_s10  ;;  %v9744_v62 = vld [vmem:[#allocation2 + $0x11c] sm:$0xf0]  ;;  %v1595_v9 = vsel %vm1594_vm5, %v10518_v39, %v10542_v46  ;;  %v1847_v46 = vsel %vm1844_vm3, %v10584_v18, %v10565_v61 }
 0x1af   : > { %2041 = vst [vmem:[#allocation2 + $0x1c8] sm:$0xff] %v2033_v10  ;;  %v10783_v58 = vpop.permute.xlu0 %1952  ;;  %v1941_v57 = vpop.permute.xlu1 %1940  ;;  %2625 = vmatpush.bf16.msra.mxu0 %v8881_v2  ;;  %2653 = vmatpush.bf16.msra.mxu2 %v8885_v31  ;;  %v1630_v2 = vperm.slane %v10628_v60, 0  ;;  %v1647_v18 = vmul.f32 %v1631_v54, %v1595_v9  ;;  %v1900_v1 = vmul.f32 %v1884_v11, %v1847_v46 }
 0x1b0   : > { %v10785_v13 = vpop.permute.xlu2 %1324  ;;  %v1484_v60 = vsel %vm1476_vm7, %v10670_v56, %v10666_v34 }
 0x1b1   : > { %v1389_v16 = vsel %vm1358_vm6, %v10785_v13, %v10586_v19 }
 0x1b2   : > { %v1410_v5 = vmul.f32 %v13915_v41, %v1389_v16  ;;  %v8818_v16 = vld [vmem:[#allocation2 + $0x120] sm:$0xf0]  ;;  %v1967_v41 = vsel %vm1962_vm2, %v1939_v33, %v1941_v57 }
 0x1b4   : > { %v1426_v10 = vpack.c.bf16 %v1411_v7, %v1410_v5  ;;  %v9752_v4 = vld [vmem:[#allocation2 + $0x15c] sm:$0xf0]  ;;  %v8850_v19 = vld [vmem:[#allocation2 + $0x160] sm:$0xf0]  ;;  %v2004_v7 = vperm.slane %v10547_v52, 4 }
 0x1b5   : > { %1219 = vrot.lane.b32.xlu0 %v10372_v26, %s10083_s2  ;;  %1231 = vrot.lane.b32.xlu1 %v10396_v47, %s10083_s2  ;;  %v8849_v31 = vor.u32 %v9752_v4, %v8848_v28  ;;  %v8853_v35 = vor.u32 %v9748_v43, %v8850_v19  ;;  %v2005_v26 = vperm.slane %v10547_v52, 5  ;;  %v8816_v5 = vld [vmem:[#allocation2 + $0x100] sm:$0xf]  ;;  %v9740_v43 = vld [vmem:[#allocation2 + $0x104] sm:$0xf] }
 0x1b6   : > { %1434 = vst [vmem:[#allocation2 + $0x40] sm:$0xff] %v1426_v10  ;;  %2068 = vrot.lane.b32.xlu2 %v10396_v47, %s10085_s10  ;;  %v8817_v4 = vor.u32 %v9744_v62, %v8816_v5  ;;  %v8821_v33 = vor.u32 %v9740_v43, %v8818_v16 }
 0x1b7   : > { %v1821_v63 = vpop.permute.xlu0 %1820  ;;  %v10813_v28 = vpop.permute.xlu1 %1560  ;;  %2626 = vmatpush.bf16.msra.mxu0 %v8849_v31  ;;  %2654 = vmatpush.bf16.msra.mxu2 %v8853_v35  ;;  %v10831_v35 = vld [vmem:[%s10104_s9 + $0x10] sm:$0xff] }
 0x1b8   : > { %v1848_v10 = vsel %vm1844_vm3, %v10565_v61, %v1821_v63  ;;  %v1625_v47 = vsel %vm1594_vm5, %v10813_v28, %v10518_v39  ;;  %v10822_v19 = vpop.permute.xlu2 %1942  ;;  %v2020_v61 = vmul.f32 %v2004_v7, %v1967_v41  ;;  %v1513_v43 = vperm.slane %v10831_v35, 1 }
 0x1b9   : > { %v1901_v31 = vmul.f32 %v1885_v38, %v1848_v10  ;;  %v1646_v62 = vmul.f32 %v1630_v2, %v1625_v47  ;;  %v1968_v9 = vsel %vm1962_vm2, %v1941_v57, %v10822_v19  ;;  %v1512_v41 = vperm.slane %v10831_v35, 0 }
 0x1ba   : > { %v2021_v39 = vmul.f32 %v2005_v26, %v1968_v9  ;;  %v1854_v57 = vsel %vm1844_vm3, %v10712_v55, %v10694_v20 }
 0x1bb   : > { %v1915_v16 = vpack.c.bf16 %v1901_v31, %v1900_v1  ;;  %v1662_v5 = vpack.c.bf16 %v1647_v18, %v1646_v62  ;;  %2627 = vmatpush.bf16.msra.mxu0 %v8817_v4  ;;  %2655 = vmatpush.bf16.msra.mxu2 %v8821_v33  ;;  %v1477_v1 = vsel %vm1476_vm7, %v10528_v42, %v10561_v59  ;;  %v10866_v31 = vld [vmem:[%s10104_s9] sm:$0xff] }
 0x1bc   : > { %v2034_v46 = vpack.c.bf16 %v2021_v39, %v2020_v61  ;;  %v1529_v33 = vmul.f32 %v1513_v43, %v1477_v1  ;;  %v1908_v62 = vmul.f32 %v1884_v11, %v1854_v57  ;;  %v1277_v39 = vperm.slane %v10866_v31, 1 }
 0x1bd   : > { %1923 = vst [vmem:[#allocation2 + $0x188] sm:$0xff] %v1915_v16  ;;  %1574 = vrot.lane.b32.xlu0 %v10402_v50, %s10078_s22  ;;  %1576 = vrot.lane.b32.xlu1 %v10404_v51, %s10078_s22  ;;  %v1886_v16 = vperm.slane %v10572_v3, 4  ;;  %v1242_v11 = vsel %vm1241_vm8, %v10544_v49, %v10540_v45 }
 0x1be   : > { %1670 = vst [vmem:[#allocation2 + $0xc0] sm:$0xff] %v1662_v5  ;;  %1217 = vrot.lane.b32.xlu2 %v10370_v25, %s10083_s2  ;;  %v1887_v5 = vperm.slane %v10572_v3, 5 }
 0x1bf   : > { %2042 = vst [vmem:[#allocation2 + $0x1d0] sm:$0xff] %v2034_v46  ;;  %v1823_v4 = vpop.permute.xlu0 %1822  ;;  %v10851_v18 = vpop.permute.xlu1 %1442 }
 0x1c0   : > { %v1507_v10 = vsel %vm1476_vm7, %v10851_v18, %v10528_v42  ;;  %v10856_v47 = vpop.permute.xlu2 %1836 }
 0x1c1   : > { %v1528_v25 = vmul.f32 %v1512_v41, %v1507_v10  ;;  %v1855_v55 = vsel %vm1844_vm3, %v10694_v20, %v10856_v47  ;;  %v1276_v20 = vperm.slane %v10866_v31, 0 }
 0x1c2   : > { %v1909_v9 = vmul.f32 %v1885_v38, %v1855_v55  ;;  %v1849_v38 = vsel %vm1844_vm3, %v1821_v63, %v1823_v4 }
 0x1c3   : > { %v1544_v42 = vpack.c.bf16 %v1529_v33, %v1528_v25  ;;  %v1293_v25 = vmul.f32 %v1277_v39, %v1242_v11  ;;  %v1902_v63 = vmul.f32 %v1886_v16, %v1849_v38 }
 0x1c4   : > { %v1919_v61 = vpack.c.bf16 %v1909_v9, %v1908_v62 }
 0x1c5   : > { %1552 = vst [vmem:[#allocation2 + $0x80] sm:$0xff] %v1544_v42  ;;  %1590 = vrot.lane.b32.xlu0 %v10430_v15, %s10078_s22  ;;  %1456 = vrot.lane.b32.xlu1 %v10402_v50, %s10081_s28  ;;  %v1736_v42 = vsel %vm1726_vm4, %v10745_v32, %v10698_v14 }
 0x1c6   : > { %1927 = vst [vmem:[#allocation2 + $0x1a8] sm:$0xff] %v1919_v61  ;;  %1233 = vrot.lane.b32.xlu2 %v10398_v48, %s10083_s2  ;;  %v1790_v11 = vmul.f32 %v1766_v0, %v1736_v42 }
 0x1c7   : > { %v10884_v46 = vpop.permute.xlu0 %1193  ;;  %v10886_v1 = vpop.permute.xlu1 %1824 }
 0x1c8   : > { %v1272_v57 = vsel %vm1241_vm8, %v10884_v46, %v10544_v49  ;;  %v1850_v10 = vsel %vm1844_vm3, %v1823_v4, %v10886_v1  ;;  %v10893_v33 = vpop.permute.xlu2 %1838  ;;  %v1972_v49 = vsel %vm1962_vm2, %v10692_v27, %v10783_v58  ;;  %v1602_v4 = vsel %vm1594_vm5, %v10658_v24, %v10654_v29 }
 0x1c9   : > { %v1292_v55 = vmul.f32 %v1276_v20, %v1272_v57  ;;  %v1903_v48 = vmul.f32 %v1887_v5, %v1850_v10  ;;  %v2026_v10 = vmul.f32 %v2002_v23, %v1972_v49 }
 0x1cb   : > { %v1308_v62 = vpack.c.bf16 %v1293_v25, %v1292_v55  ;;  %v1916_v9 = vpack.c.bf16 %v1903_v48, %v1902_v63  ;;  %v13986_v25 = vperm.slane %v10547_v52, 3 }
 0x1cd   : > { %1316 = vst [vmem:[#allocation2] sm:$0xff] %v1308_v62  ;;  %1470 = vrot.lane.b32.xlu0 %v10428_v12, %s10081_s28  ;;  %1472 = vrot.lane.b32.xlu1 %v10430_v15, %s10081_s28 }
 0x1ce   : > { %1924 = vst [vmem:[#allocation2 + $0x190] sm:$0xff] %v1916_v9  ;;  %1588 = vrot.lane.b32.xlu2 %v10428_v12, %s10078_s22 }
 0x1cf   : > { %v10914_v32 = vpop.permute.xlu0 %1718  ;;  %v1955_v61 = vpop.permute.xlu1 %1954 }
 0x1d0   : > { %v1737_v38 = vsel %vm1726_vm4, %v10698_v14, %v10914_v32  ;;  %v1973_v27 = vsel %vm1962_vm2, %v10783_v58, %v1955_v61  ;;  %v10923_v57 = vpop.permute.xlu2 %1562  ;;  %v1655_v14 = vmul.f32 %v1631_v54, %v1602_v4  ;;  %v1537_v4 = vmul.f32 %v1513_v43, %v1484_v60 }
 0x1d1   : > { %v1791_v29 = vmul.f32 %v1767_v40, %v1737_v38  ;;  %v2027_v63 = vmul.f32 %v13986_v25, %v1973_v27  ;;  %v1626_v0 = vsel %vm1594_vm5, %v10923_v57, %v10658_v24  ;;  %v1249_v24 = vsel %vm1241_vm8, %v10680_v30, %v10682_v21 }
 0x1d2   : > { %v1654_v58 = vmul.f32 %v1630_v2, %v1626_v0  ;;  %v1301_v9 = vmul.f32 %v1277_v39, %v1249_v24  ;;  %v9732_v39 = vld [vmem:[#allocation2 + $0xc4] sm:$0xf]  ;;  %v13990_v60 = vperm.slane %v10770_v17, 0 }
 0x1d3   : > { %v1801_v55 = vpack.c.bf16 %v1791_v29, %v1790_v11  ;;  %v2037_v48 = vpack.c.bf16 %v2027_v63, %v2026_v10  ;;  %v13987_v10 = vld [vmem:[#allocation40_spill] sm:$0xff] }
 0x1d4   : > { %v1666_v62 = vpack.c.bf16 %v1655_v14, %v1654_v58  ;;  %v13989_v58 = vperm.slane %v10770_v17, 1 }
 0x1d5   : > { %1809 = vst [vmem:[#allocation2 + $0x168] sm:$0xff] %v1801_v55  ;;  %1960 = vrot.lane.b32.xlu0 %v10446_v36, %s10080_s26  ;;  %1338 = vrot.lane.b32.xlu1 %v10402_v50, %s10084_s7 }
 0x1d6   : > { %2045 = vst [vmem:[#allocation2 + $0x1e8] sm:$0xff] %v2037_v48  ;;  %1458 = vrot.lane.b32.xlu2 %v10404_v51, %s10081_s28 }
 0x1d7   : > { %1674 = vst [vmem:[#allocation2 + $0xe0] sm:$0xff] %v1666_v62  ;;  %v1957_v40 = vpop.permute.xlu0 %1956  ;;  %v10950_v23 = vpop.permute.xlu1 %1195 }
 0x1d8   : > { %v1273_v54 = vsel %vm1241_vm8, %v10950_v23, %v10680_v30  ;;  %v10955_v2 = vpop.permute.xlu2 %1444  ;;  %v1366_v30 = vsel %vm1358_vm6, %v13987_v10, %v10668_v53  ;;  %v1974_v43 = vsel %vm1962_vm2, %v1955_v61, %v1957_v40 }
 0x1d9   : > { %v1300_v42 = vmul.f32 %v1276_v20, %v1273_v54  ;;  %v1508_v49 = vsel %vm1476_vm7, %v10955_v2, %v10670_v56  ;;  %v8784_v56 = vld [vmem:[#allocation2 + $0xc0] sm:$0xf]  ;;  %v1419_v55 = vmul.f32 %v13989_v58, %v1366_v30  ;;  %v2028_v24 = vmul.f32 %v2004_v7, %v1974_v43 }
 0x1da   : > { %v1536_v11 = vmul.f32 %v1512_v41, %v1508_v49  ;;  %v13988_v41 = vld [vmem:[#allocation32_spill] sm:$0xff]  ;;  %v1515_v7 = vperm.slane %v10831_v35, 3 }
 0x1db   : > { %v1312_v38 = vpack.c.bf16 %v1301_v9, %v1300_v42 }
 0x1dc   : > { %v1548_v27 = vpack.c.bf16 %v1537_v4, %v1536_v11  ;;  %v1514_v4 = vperm.slane %v10831_v35, 2  ;;  %v8752_v11 = vld [vmem:[#allocation2 + $0x80] sm:$0xf] }
 0x1dd   : > { %1320 = vst [vmem:[#allocation2 + $0x20] sm:$0xff] %v1312_v38  ;;  %1352 = vrot.lane.b32.xlu0 %v10428_v12, %s10084_s7  ;;  %1354 = vrot.lane.b32.xlu1 %v10430_v15, %s10084_s7  ;;  %v9724_v38 = vld [vmem:[#allocation2 + $0x84] sm:$0xf] }
 0x1de   : > { %1556 = vst [vmem:[#allocation2 + $0xa0] sm:$0xff] %v1548_v27  ;;  %1944 = vrot.lane.b32.xlu2 %v13988_v41, %s10080_s26  ;;  %v9736_v20 = vld [vmem:[#allocation2 + $0xdc] sm:$0xf0]  ;;  %v8786_v29 = vld [vmem:[#allocation2 + $0xe0] sm:$0xf0] }
 0x1df   : > { %v10974_v25 = vpop.permute.xlu0 %1326  ;;  %v10976_v63 = vpop.permute.xlu1 %1958  ;;  %v8785_v0 = vor.u32 %v9736_v20, %v8784_v56  ;;  %v8789_v14 = vor.u32 %v9732_v39, %v8786_v29 }
 0x1e0   : > { %v1390_v48 = vsel %vm1358_vm6, %v10974_v25, %v13987_v10  ;;  %v1975_v61 = vsel %vm1962_vm2, %v1957_v40, %v10976_v63  ;;  %v10985_v62 = vpop.permute.xlu2 %1454 }
 0x1e1   : > { %v1418_v54 = vmul.f32 %v13990_v60, %v1390_v48  ;;  %v2029_v9 = vmul.f32 %v2005_v26, %v1975_v61  ;;  %2628 = vmatpush.bf16.msra.mxu0 %v8785_v0  ;;  %2656 = vmatpush.bf16.msra.mxu2 %v8789_v14  ;;  %v1856_v26 = vsel %vm1844_vm3, %v10856_v47, %v10893_v33  ;;  %v9716_v61 = vld [vmem:[#allocation2 + $0x44] sm:$0xf] }
 0x1e2   : > { %v1910_v20 = vmul.f32 %v1886_v16, %v1856_v26 }
 0x1e3   : > { %v1430_v42 = vpack.c.bf16 %v1419_v55, %v1418_v54  ;;  %v2038_v49 = vpack.c.bf16 %v2029_v9, %v2028_v24  ;;  %v8922_v9 = vld [vmem:[#allocation2 + $0x1e8] sm:$0xf0] }
 0x1e4   : > { %v8690_v24 = vld [vmem:[#allocation2 + $0x20] sm:$0xf0] }
 0x1e5   : > { %1438 = vst [vmem:[#allocation2 + $0x60] sm:$0xff] %v1430_v42  ;;  %1842 = vrot.lane.b32.xlu0 %v10446_v36, %s10079_s23  ;;  %1221 = vrot.lane.b32.xlu1 %v10402_v50, %s10083_s2  ;;  %v9728_v40 = vld [vmem:[#allocation2 + $0x9c] sm:$0xf0]  ;;  %v8754_v52 = vld [vmem:[#allocation2 + $0xa0] sm:$0xf0] }
 0x1e6   : > { %2046 = vst [vmem:[#allocation2 + $0x1f0] sm:$0xff] %v2038_v49  ;;  %1340 = vrot.lane.b32.xlu2 %v10404_v51, %s10084_s7  ;;  %v8753_v27 = vor.u32 %v9728_v40, %v8752_v11  ;;  %v8757_v10 = vor.u32 %v9724_v38, %v8754_v52  ;;  %v8680_v42 = vld [vmem:[%s10129_s29] sm:$0xf]  ;;  %v9707_v49 = vld [vmem:[%s10129_s29 + $0x4] sm:$0xf0] }
 0x1e7   : > { %v11004_v30 = vpop.permute.xlu0 %1840  ;;  %v1453_v56 = vpop.permute.xlu1 %1452  ;;  %v8688_v40 = vld [vmem:[#allocation2] sm:$0xf]  ;;  %v9708_v52 = vld [vmem:[#allocation2 + $0x4] sm:$0xf] }
 0x1e8   : > { %v1857_v50 = vsel %vm1844_vm3, %v10893_v33, %v11004_v30  ;;  %v1478_v39 = vsel %vm1476_vm7, %v10561_v59, %v1453_v56  ;;  %v1479_v43 = vsel %vm1476_vm7, %v1453_v56, %v10985_v62  ;;  %v1705_v47 = vpop.permute.xlu2 %1704  ;;  %2629 = vmatpush.bf16.msra.mxu0 %v8753_v27  ;;  %2657 = vmatpush.bf16.msra.mxu2 %v8757_v10  ;;  %v8720_v33 = vld [vmem:[#allocation2 + $0x40] sm:$0xf] }
 0x1e9   : > { %v1911_v29 = vmul.f32 %v1887_v5, %v1857_v50  ;;  %v1530_v0 = vmul.f32 %v1514_v4, %v1478_v39  ;;  %v1531_v14 = vmul.f32 %v1515_v7, %v1479_v43  ;;  %v9712_v5 = vld [vmem:[#allocation2 + $0x1c] sm:$0xf0]  ;;  %v8693_v56 = vor.u32 %v9708_v52, %v8690_v24  ;;  %v9765_v50 = vld [vmem:[#allocation2 + $0x1cc] sm:$0xf] }
 0x1ea   : > { %v8689_v10 = vor.u32 %v9712_v5, %v8688_v40  ;;  %v8925_v39 = vor.u32 %v9765_v50, %v8922_v9  ;;  %v11033_v43 = vor.u32 %v9707_v49, %v8680_v42  ;;  %v9749_v5 = vld [vmem:[#allocation2 + $0x14c] sm:$0xf] }
 0x1eb   : > { %v1920_v58 = vpack.c.bf16 %v1911_v29, %v1910_v20  ;;  %v1545_v55 = vpack.c.bf16 %v1531_v14, %v1530_v0  ;;  %v8890_v29 = vld [vmem:[#allocation2 + $0x1a8] sm:$0xf0]  ;;  %v1731_v0 = vsel %vm1726_vm4, %v10747_v6, %v1705_v47 }
 0x1ec   : > { %v9720_v48 = vld [vmem:[#allocation2 + $0x5c] sm:$0xf0]  ;;  %v8722_v59 = vld [vmem:[#allocation2 + $0x60] sm:$0xf0]  ;;  %v8826_v42 = vld [vmem:[#allocation2 + $0x128] sm:$0xf0] }
 0x1ed   : > { %1928 = vst [vmem:[#allocation2 + $0x1b0] sm:$0xff] %v1920_v58  ;;  %1235 = vrot.lane.b32.xlu0 %v10428_v12, %s10083_s2  ;;  %1237 = vrot.lane.b32.xlu1 %v10430_v15, %s10083_s2  ;;  %v8721_v16 = vor.u32 %v9720_v48, %v8720_v33  ;;  %v8725_v3 = vor.u32 %v9716_v61, %v8722_v59  ;;  %v8858_v33 = vld [vmem:[#allocation2 + $0x168] sm:$0xf0] }
 0x1ee   : > { %1553 = vst [vmem:[#allocation2 + $0x88] sm:$0xff] %v1545_v55  ;;  %1826 = vrot.lane.b32.xlu2 %v13988_v41, %s10079_s23  ;;  %v8861_v24 = vor.u32 %v9749_v5, %v8858_v33  ;;  %v9741_v49 = vld [vmem:[#allocation2 + $0x10c] sm:$0xf] }
 0x1ef   : > { %v1467_v60 = vpop.permute.xlu0 %1466  ;;  %v11023_v54 = vpop.permute.xlu1 %1468  ;;  %2630 = vmatpush.bf16.msra.mxu0 %v8721_v16  ;;  %2658 = vmatpush.bf16.msra.mxu2 %v8725_v3 }
 0x1f0   : > { %v1485_v12 = vsel %vm1476_vm7, %v10666_v34, %v1467_v60  ;;  %v1486_v11 = vsel %vm1476_vm7, %v1467_v60, %v11023_v54  ;;  %v11031_v38 = vpop.permute.xlu2 %1722  ;;  %v1768_v34 = vperm.slane %v10595_v37, 4 }
 0x1f1   : > { %v1538_v26 = vmul.f32 %v1514_v4, %v1485_v12  ;;  %v1539_v27 = vmul.f32 %v1515_v7, %v1486_v11  ;;  %v1769_v4 = vperm.slane %v10595_v37, 5  ;;  %v9757_v7 = vld [vmem:[#allocation2 + $0x18c] sm:$0xf]  ;;  %v8829_v12 = vor.u32 %v9741_v49, %v8826_v42 }
 0x1f2   : > { %v8893_v14 = vor.u32 %v9757_v7, %v8890_v29  ;;  %v1396_v11 = vperm.slane %v10770_v17, 2 }
 0x1f3   : > { %v1549_v20 = vpack.c.bf16 %v1539_v27, %v1538_v26  ;;  %2631 = vmatpush.bf16.msra.mxu0 %v8689_v10  ;;  %2659 = vmatpush.bf16.msra.mxu2 %v8693_v56  ;;  %v8794_v26 = vld [vmem:[#allocation2 + $0xe8] sm:$0xf0] }
 0x1f5   : > { %1557 = vst [vmem:[#allocation2 + $0xa8] sm:$0xff] %v1549_v20  ;;  %1724 = vrot.lane.b32.xlu0 %v10446_v36, %s10082_s1  ;;  %2058 = vrot.lane.b32.xlu1 %v10404_v51, %s10085_s10 }
 0x1f6   : > { %1223 = vrot.lane.b32.xlu2 %v10404_v51, %s10083_s2  ;;  %2660 = vmatmul.bf16.vlgmr.msra.gmra.mxu2 %v11033_v43  ;;  %v1784_v51 = vmul.f32 %v1768_v34, %v1731_v0 }
 0x1f7   : > { %2708 = vmatpush.bf16.msrb.mxu0 %v8925_v39  ;;  %v11046_v58 = vpop.permute.xlu0 %1706  ;;  %v1721_v55 = vpop.permute.xlu1 %1720  ;;  %v9733_v39 = vld [vmem:[#allocation2 + $0xcc] sm:$0xf] }
 0x1f8   : > { %2632 = vmatmul.bf16.vlgmr.msra.gmra.mxu0 %v11033_v43  ;;  %v1732_v48 = vsel %vm1726_vm4, %v1705_v47, %v11046_v58  ;;  %v1738_v37 = vsel %vm1726_vm4, %v10914_v32, %v1721_v55  ;;  %v1739_v6 = vsel %vm1726_vm4, %v1721_v55, %v11031_v38  ;;  %v1349_v61 = vpop.permute.xlu2 %1348  ;;  %v13991_v32 = vld [vmem:[#allocation33_spill] sm:$0xff]  ;;  %v1397_v47 = vperm.slane %v10770_v17, 3  ;;  %v13992_v17 = vld [vmem:[#allocation31_spill] sm:$0xff] }
 0x1f9   : > { %v1785_v59 = vmul.f32 %v1769_v4, %v1732_v48  ;;  %v1792_v16 = vmul.f32 %v1768_v34, %v1738_v37  ;;  %v1793_v3 = vmul.f32 %v1769_v4, %v1739_v6  ;;  %v8797_v20 = vor.u32 %v9733_v39, %v8794_v26  ;;  %v11086_v6 = vld [vmem:[%s10104_s9 + $0x40] sm:$0xff] }
 0x1fa   : > { %v1367_v4 = vsel %vm1358_vm6, %v10668_v53, %v1349_v61  ;;  %v2118_v53 = vperm.slane %v11086_v6, 0 }
 0x1fb   : > { %2709 = vmatpush.bf16.msrb.mxu0 %v8893_v14  ;;  %v1798_v60 = vpack.c.bf16 %v1785_v59, %v1784_v51  ;;  %v1802_v9 = vpack.c.bf16 %v1793_v3, %v1792_v16  ;;  %v1420_v48 = vmul.f32 %v1396_v11, %v1367_v4  ;;  %v2120_v59 = vperm.slane %v11086_v6, 2  ;;  %v2240_v4 = vld [vmem:[%s10134_s3] sm:$0xff] }
 0x1fc   : > { %v8762_v34 = vld [vmem:[#allocation2 + $0xa8] sm:$0xf0]  ;;  %v2121_v16 = vperm.slane %v11086_v6, 3 }
 0x1fd   : > { %1806 = vst [vmem:[#allocation2 + $0x150] sm:$0xff] %v1798_v60  ;;  %2074 = vrot.lane.b32.xlu0 %v10430_v15, %s10085_s10  ;;  %2076 = vrot.lane.b32.xlu1 %v13991_v32, %s10085_s10 }
 0x1fe   : > { %1810 = vst [vmem:[#allocation2 + $0x170] sm:$0xff] %v1802_v9  ;;  %1708 = vrot.lane.b32.xlu2 %v13988_v41, %s10082_s1 }
 0x1ff   : > { %2710 = vmatpush.bf16.msrb.mxu0 %v8861_v24  ;;  %v1335_v40 = vpop.permute.xlu0 %1334  ;;  %v11063_v52 = vpop.permute.xlu1 %1336 }
 0x200   : > { %v1360_v15 = vsel %vm1358_vm6, %v10532_v44, %v1335_v40  ;;  %v1361_v27 = vsel %vm1358_vm6, %v1335_v40, %v11063_v52  ;;  %v2051_v10 = vpop.permute.xlu2 %2050  ;;  %v9725_v44 = vld [vmem:[#allocation2 + $0x8c] sm:$0xf] }
 0x201   : > { %v1412_v56 = vmul.f32 %v1396_v11, %v1360_v15  ;;  %v1413_v50 = vmul.f32 %v1397_v47, %v1361_v27  ;;  %v8765_v7 = vor.u32 %v9725_v44, %v8762_v34 }
 0x203   : > { %2711 = vmatpush.bf16.msrb.mxu0 %v8829_v12  ;;  %v1427_v29 = vpack.c.bf16 %v1413_v50, %v1412_v56 }
 0x205   : > { %1435 = vst [vmem:[#allocation2 + $0x48] sm:$0xff] %v1427_v29  ;;  %1592 = vrot.lane.b32.xlu0 %v13991_v32, %s10078_s22  ;;  %1460 = vrot.lane.b32.xlu1 %v13992_v17, %s10081_s28 }
 0x206   : > { %2060 = vrot.lane.b32.xlu2 %v13992_v17, %s10085_s10 }
 0x207   : > { %2712 = vmatpush.bf16.msrb.mxu0 %v8797_v20  ;;  %v11077_v0 = vpop.permute.xlu0 %1350  ;;  %v11079_v14 = vpop.permute.xlu1 %2048 }
 0x208   : > { %v1368_v55 = vsel %vm1358_vm6, %v1349_v61, %v11077_v0  ;;  %v11083_v33 = vpop.permute.xlu2 %2056  ;;  %v2119_v61 = vperm.slane %v11086_v6, 1  ;;  %v2081_v3 = vsel %vm2080_vm9, %v11079_v14, %v2051_v10 }
 0x209   : > { %v1421_v37 = vmul.f32 %v1397_v47, %v1368_v55  ;;  %v2134_v49 = vmul.f32 %v2118_v53, %v2081_v3 }
 0x20b   : > { %2713 = vmatpush.bf16.msrb.mxu0 %v8765_v7  ;;  %v1431_v51 = vpack.c.bf16 %v1421_v37, %v1420_v48 }
 0x20c   : > { %v9717_v27 = vld [vmem:[#allocation2 + $0x4c] sm:$0xf] }
 0x20d   : > { %1439 = vst [vmem:[#allocation2 + $0x68] sm:$0xff] %v1431_v51  ;;  %1342 = vrot.lane.b32.xlu0 %v13992_v17, %s10084_s7  ;;  %1356 = vrot.lane.b32.xlu1 %v13991_v32, %s10084_s7 }
 0x20e   : > { %1578 = vrot.lane.b32.xlu2 %v13992_v17, %s10078_s22 }
 0x20f   : > { %v2053_v5 = vpop.permute.xlu0 %2052  ;;  %v2055_v24 = vpop.permute.xlu1 %2054 }
 0x210   : > { %v2082_v60 = vsel %vm2080_vm9, %v2051_v10, %v2053_v5  ;;  %v2083_v9 = vsel %vm2080_vm9, %v2053_v5, %v2055_v24  ;;  %v2084_v42 = vsel %vm2080_vm9, %v2055_v24, %v11083_v33  ;;  %v2069_v47 = vpop.permute.xlu2 %2068  ;;  %v2849_v5 = vld [vmem:[%s10139_s8 + $0x8] sm:$0xff] }
 0x211   : > { %v2135_v12 = vmul.f32 %v2119_v61, %v2082_v60  ;;  %v2136_v11 = vmul.f32 %v2120_v59, %v2083_v9  ;;  %v2137_v40 = vmul.f32 %v2121_v16, %v2084_v42  ;;  %v9769_v24 = vld [vmem:[#allocation2 + $0x1e4] sm:$0xf0]  ;;  %v9706_v42 = vld [vmem:[%s10129_s29 + $0x4] sm:$0xf] }
 0x213   : > { %v2150_v26 = vpack.c.bf16 %v2135_v12, %v2134_v49  ;;  %v2151_v15 = vpack.c.bf16 %v2137_v40, %v2136_v11  ;;  %v8682_v49 = vld [vmem:[%s10129_s29 + $0x8] sm:$0xf0]  ;;  %v1278_v40 = vperm.slane %v10866_v31, 2 }
 0x214   : > { %v8730_v56 = vld [vmem:[#allocation2 + $0x68] sm:$0xf0] }
 0x215   : > { %2158 = vst [vmem:[#allocation2 + $0x200] sm:$0xff] %v2150_v26  ;;  %2078 = vrot.lane.b32.xlu0 %v10446_v36, %s10085_s10  ;;  %1225 = vrot.lane.b32.xlu1 %v13992_v17, %s10083_s2  ;;  %v8733_v10 = vor.u32 %v9717_v27, %v8730_v56  ;;  %v2241_v17 = vld [vmem:[%s10134_s3 + $0x8] sm:$0xff]  ;;  %v11135_v56 = vor.u32 %v9706_v42, %v8682_v49  ;;  %v11152_v42 = vld [vmem:[%s10104_s9 + $0x18] sm:$0xff] }
 0x216   : > { %2159 = vst [vmem:[#allocation2 + $0x208] sm:$0xff] %v2151_v15  ;;  %1474 = vrot.lane.b32.xlu2 %v13991_v32, %s10081_s28  ;;  %v8920_v27 = vld [vmem:[#allocation2 + $0x1c8] sm:$0xf]  ;;  %v1635_v49 = vperm.slane %v11152_v42, 5 }
 0x217   : > { %v11110_v50 = vpop.permute.xlu0 %2064  ;;  %v2067_v39 = vpop.permute.xlu1 %2066  ;;  %2714 = vmatpush.bf16.msrb.mxu0 %v8733_v10 }
 0x218   : > { %v2088_v20 = vsel %vm2080_vm9, %v11110_v50, %v2067_v39  ;;  %v2089_v29 = vsel %vm2080_vm9, %v2067_v39, %v2069_v47  ;;  %v1218_v34 = vpop.permute.xlu2 %1217 }
 0x219   : > { %v2142_v44 = vmul.f32 %v2118_v53, %v2088_v20  ;;  %v2143_v36 = vmul.f32 %v2119_v61, %v2089_v29  ;;  %v9761_v20 = vld [vmem:[#allocation2 + $0x1a4] sm:$0xf0] }
 0x21b   : > { %v2154_v7 = vpack.c.bf16 %v2143_v36, %v2142_v44 }
 0x21c   : > { %v8944_v9 = vld [vmem:[#allocation2 + $0x200] sm:$0xf] }
 0x21d   : > { %2162 = vst [vmem:[#allocation2 + $0x220] sm:$0xff] %v2154_v7  ;;  %2244 = vperm.xlu0 %9956, %v2240_v4   ;;  %2249 = vperm.xlu1 %9957, %v2241_v17  }
 0x21e   : > { %2062 = vrot.lane.b32.xlu2 %v13988_v41, %s10085_s10  ;;  %v9772_v41 = vld [vmem:[#allocation2 + $0x204] sm:$0xf] }
 0x21f   : > { %v2071_v55 = vpop.permute.xlu0 %2070  ;;  %v11119_v48 = vpop.permute.xlu1 %2072 }
 0x220   : > { %v2090_v37 = vsel %vm2080_vm9, %v2069_v47, %v2071_v55  ;;  %v2091_v51 = vsel %vm2080_vm9, %v2071_v55, %v11119_v48  ;;  %v11124_v53 = vpop.permute.xlu2 %1233  ;;  %v1279_v47 = vperm.slane %v10866_v31, 3  ;;  %v8888_v55 = vld [vmem:[#allocation2 + $0x188] sm:$0xf] }
 0x221   : > { %v2144_v61 = vmul.f32 %v2120_v59, %v2090_v37  ;;  %v2145_v3 = vmul.f32 %v2121_v16, %v2091_v51  ;;  %v1243_v59 = vsel %vm1241_vm8, %v10540_v45, %v1218_v34  ;;  %v8921_v16 = vor.u32 %v9769_v24, %v8920_v27 }
 0x222   : > { %v1634_v27 = vperm.slane %v11152_v42, 4 }
 0x223   : > { %v2155_v60 = vpack.c.bf16 %v2145_v3, %v2144_v61  ;;  %v8952_v61 = vld [vmem:[#allocation2 + $0x208] sm:$0xf]  ;;  %v9770_v3 = vld [vmem:[#allocation2 + $0x1ec] sm:$0xf0] }
 0x224   : > { %v9776_v12 = vld [vmem:[#allocation2 + $0x21c] sm:$0xf0]  ;;  %v8946_v11 = vld [vmem:[#allocation2 + $0x220] sm:$0xf0] }
 0x225   : > { %2163 = vst [vmem:[#allocation2 + $0x228] sm:$0xff] %v2155_v60  ;;  %2873 = vperm.xlu0 %9956, %v2849_v5   ;;  %v8945_v26 = vor.u32 %v9776_v12, %v8944_v9  ;;  %v8949_v15 = vor.u32 %v9772_v41, %v8946_v11  ;;  %v8930_v5 = vld [vmem:[#allocation2 + $0x1f0] sm:$0xf0]  ;;  %v9773_v60 = vld [vmem:[#allocation2 + $0x20c] sm:$0xf] }
 0x226   : > { %1239 = vrot.lane.b32.xlu2 %v13991_v32, %s10083_s2  ;;  %v1294_v32 = vmul.f32 %v1278_v40, %v1243_v59  ;;  %v8856_v11 = vld [vmem:[#allocation2 + $0x148] sm:$0xf] }
 0x227   : > { %v11137_v10 = vpop.permute.xlu0 %1219  ;;  %v1232_v39 = vpop.permute.xlu1 %1231  ;;  %2645 = vmatpush.bf16.msra.mxu1 %v8945_v26  ;;  %2673 = vmatpush.bf16.msra.mxu3 %v8949_v15  ;;  %v9766_v15 = vld [vmem:[#allocation2 + $0x1d4] sm:$0xf] }
 0x228   : > { %v1244_v29 = vsel %vm1241_vm8, %v1218_v34, %v11137_v10  ;;  %v1250_v44 = vsel %vm1241_vm8, %v10682_v21, %v1232_v39  ;;  %v1251_v45 = vsel %vm1241_vm8, %v1232_v39, %v11124_v53  ;;  %v11145_v36 = vpop.permute.xlu2 %1588  ;;  %v8889_v34 = vor.u32 %v9761_v20, %v8888_v55  ;;  %v9753_v21 = vld [vmem:[#allocation2 + $0x164] sm:$0xf0] }
 0x229   : > { %v1295_v4 = vmul.f32 %v1279_v47, %v1244_v29  ;;  %v1302_v17 = vmul.f32 %v1278_v40, %v1250_v44  ;;  %v1303_v7 = vmul.f32 %v1279_v47, %v1251_v45  ;;  %v8928_v40 = vld [vmem:[#allocation2 + $0x1d0] sm:$0xf]  ;;  %v8857_v47 = vor.u32 %v9753_v21, %v8856_v11  ;;  %v9745_v20 = vld [vmem:[#allocation2 + $0x124] sm:$0xf0] }
 0x22a   : > { %8974 = vmatmul.msk.bf16.vlgmr.msra.gmra.mxu1 %vm1015_vm0, %v11135_v56  ;;  %8975 = vmatmul.msk.bf16.vlgmr.msra.gmra.mxu3 %vm1015_vm0, %v11135_v56  ;;  %v8929_v26 = vor.u32 %v9770_v3, %v8928_v40  ;;  %v8933_v39 = vor.u32 %v9766_v15, %v8930_v5  ;;  %v9762_v29 = vld [vmem:[#allocation2 + $0x1ac] sm:$0xf0]  ;;  %v13993_v44 = vld [vmem:[#allocation38_spill] sm:$0xff]  ;;  %v9758_v3 = vld [vmem:[#allocation2 + $0x194] sm:$0xf]  ;;  %v1605_v11 = vsel %vm1594_vm5, %v10718_v8, %v11145_v36  ;;  %v1516_v15 = vperm.slane %v10831_v35, 4 }
 0x22b   : > { %2680 = vmatpush.bf16.msrb.mxu1 %v8921_v16  ;;  %v1309_v37 = vpack.c.bf16 %v1295_v4, %v1294_v32  ;;  %v1313_v51 = vpack.c.bf16 %v1303_v7, %v1302_v17  ;;  %v8898_v17 = vld [vmem:[#allocation2 + $0x1b0] sm:$0xf0]  ;;  %v2848_v7 = vld [vmem:[%s10139_s8] sm:$0xff]  ;;  %v8824_v21 = vld [vmem:[#allocation2 + $0x108] sm:$0xf] }
 0x22c   : > { %v9777_v24 = vld [vmem:[#allocation2 + $0x224] sm:$0xf0]  ;;  %v8954_v9 = vld [vmem:[#allocation2 + $0x228] sm:$0xf0] }
 0x22d   : > { %1317 = vst [vmem:[#allocation2 + $0x8] sm:$0xff] %v1309_v37  ;;  %v8953_v12 = vor.u32 %v9777_v24, %v8952_v61  ;;  %v8957_v41 = vor.u32 %v9773_v60, %v8954_v9  ;;  %v8896_v37 = vld [vmem:[#allocation2 + $0x190] sm:$0xf]  ;;  %v8901_v24 = vor.u32 %v9758_v3, %v8898_v17  ;;  %v8792_v60 = vld [vmem:[#allocation2 + $0xc8] sm:$0xf] }
 0x22e   : > { %1321 = vst [vmem:[#allocation2 + $0x28] sm:$0xff] %v1313_v51  ;;  %2868 = vperm.xlu2 %9958, %v2848_v7   ;;  %v8825_v51 = vor.u32 %v9745_v20, %v8824_v21  ;;  %v8897_v61 = vor.u32 %v9762_v29, %v8896_v37  ;;  %v9737_v9 = vld [vmem:[#allocation2 + $0xe4] sm:$0xf0]  ;;  %v11175_v20 = vld [vmem:[%s10104_s9 + $0x38] sm:$0xff] }
 0x22f   : > { %2681 = vmatpush.bf16.msrb.mxu1 %v8889_v34  ;;  %v1575_v59 = vpop.permute.xlu0 %1574  ;;  %v11156_v16 = vpop.permute.xlu1 %1576  ;;  %2701 = vmatpush.bf16.msrb.mxu3 %v8953_v12  ;;  %v8864_v12 = vld [vmem:[#allocation2 + $0x150] sm:$0xf]  ;;  %v2006_v29 = vperm.slane %v11175_v20, 6  ;;  %v2007_v7 = vperm.slane %v11175_v20, 7  ;;  %v9729_v21 = vld [vmem:[#allocation2 + $0xa4] sm:$0xf0] }
 0x230   : > { %2729 = vmatpush.bf16.msrb.mxu2 %v8957_v41  ;;  %v1598_v45 = vsel %vm1594_vm5, %v13993_v44, %v1575_v59  ;;  %v1599_v32 = vsel %vm1594_vm5, %v1575_v59, %v11156_v16  ;;  %v11162_v4 = vpop.permute.xlu2 %1458  ;;  %v9750_v41 = vld [vmem:[#allocation2 + $0x154] sm:$0xf]  ;;  %v1517_v59 = vperm.slane %v10831_v35, 5 }
 0x231   : > { %v1650_v55 = vmul.f32 %v1634_v27, %v1598_v45  ;;  %v1651_v34 = vmul.f32 %v1635_v49, %v1599_v32  ;;  %v8793_v45 = vor.u32 %v9737_v9, %v8792_v60  ;;  %v1658_v32 = vmul.f32 %v1634_v27, %v1605_v11  ;;  %v9746_v27 = vld [vmem:[#allocation2 + $0x12c] sm:$0xf0]  ;;  %v8834_v9 = vld [vmem:[#allocation2 + $0x130] sm:$0xf0] }
 0x233   : > { %2682 = vmatpush.bf16.msrb.mxu1 %v8857_v47  ;;  %2736 = vmatpush.bf16.msra.mxu3 %v8929_v26  ;;  %v1664_v5 = vpack.c.bf16 %v1651_v34, %v1650_v55  ;;  %v9754_v47 = vld [vmem:[#allocation2 + $0x16c] sm:$0xf0]  ;;  %v8866_v26 = vld [vmem:[#allocation2 + $0x170] sm:$0xf0] }
 0x234   : > { %2764 = vmatpush.bf16.msra.mxu2 %v8933_v39  ;;  %v9709_v40 = vld [vmem:[#allocation2 + $0xc] sm:$0xf]  ;;  %v8865_v55 = vor.u32 %v9754_v47, %v8864_v12  ;;  %v8869_v34 = vor.u32 %v9750_v41, %v8866_v26 }
 0x235   : > { %8977 = vmatmul.msk.bf16.vlgmr.msrb.gmra.mxu2 %vm1015_vm0, %v11135_v56  ;;  %1672 = vst [vmem:[#allocation2 + $0xd0] sm:$0xff] %v1664_v5  ;;  %v8698_v39 = vld [vmem:[#allocation2 + $0x28] sm:$0xf0] }
 0x236   : > { %v8701_v44 = vor.u32 %v9709_v40, %v8698_v39  ;;  %v13994_v12 = vld [vmem:[#allocation34_spill] sm:$0xff]  ;;  %v8832_v40 = vld [vmem:[#allocation2 + $0x110] sm:$0xf]  ;;  %v9742_v39 = vld [vmem:[#allocation2 + $0x114] sm:$0xf] }
 0x237   : > { %2683 = vmatpush.bf16.msrb.mxu1 %v8825_v51  ;;  %2737 = vmatpush.bf16.msra.mxu3 %v8897_v61  ;;  %v11178_v8 = vpop.permute.xlu0 %1590  ;;  %v1457_v17 = vpop.permute.xlu1 %1456  ;;  %v8833_v26 = vor.u32 %v9746_v27, %v8832_v40 }
 0x238   : > { %2765 = vmatpush.bf16.msra.mxu2 %v8901_v24  ;;  %v1606_v35 = vsel %vm1594_vm5, %v11145_v36, %v11178_v8  ;;  %v1480_v37 = vsel %vm1476_vm7, %v10985_v62, %v1457_v17  ;;  %v1481_v51 = vsel %vm1476_vm7, %v1457_v17, %v11162_v4  ;;  %v1945_v61 = vpop.permute.xlu2 %1944  ;;  %2715 = vmatpush.bf16.msrb.mxu0 %v8701_v44  ;;  %v8760_v36 = vld [vmem:[#allocation2 + $0x88] sm:$0xf] }
 0x239   : > { %v1659_v3 = vmul.f32 %v1635_v49, %v1606_v35  ;;  %v1532_v5 = vmul.f32 %v1516_v15, %v1480_v37  ;;  %v1533_v24 = vmul.f32 %v1517_v59, %v1481_v51  ;;  %v1969_v60 = vsel %vm1962_vm2, %v10822_v19, %v1945_v61  ;;  %v9721_v44 = vld [vmem:[#allocation2 + $0x64] sm:$0xf0] }
 0x23a   : > { %v1995_v62 = vsel %vm1962_vm2, %v1945_v61, %v13994_v12  ;;  %v2022_v41 = vmul.f32 %v2006_v29, %v1969_v60  ;;  %v8761_v11 = vor.u32 %v9729_v21, %v8760_v36  ;;  %8976 = vmatmul.msk.bf16.vlgmr.msrb.gmra.mxu3 %vm1015_vm0, %v11135_v56  ;;  %v8696_v35 = vld [vmem:[#allocation2 + $0x8] sm:$0xf] }
 0x23b   : > { %2684 = vmatpush.bf16.msrb.mxu1 %v8793_v45  ;;  %2738 = vmatpush.bf16.msra.mxu3 %v8865_v55  ;;  %v1668_v49 = vpack.c.bf16 %v1659_v3, %v1658_v32  ;;  %v1546_v47 = vpack.c.bf16 %v1533_v24, %v1532_v5  ;;  %v2023_v19 = vmul.f32 %v2007_v7, %v1995_v62  ;;  %v8728_v55 = vld [vmem:[#allocation2 + $0x48] sm:$0xf] }
 0x23c   : > { %2766 = vmatpush.bf16.msra.mxu2 %v8869_v34  ;;  %2716 = vmatmul.bf16.vlgmr.msrb.gmra.mxu0 %v11033_v43  ;;  %v8837_v45 = vor.u32 %v9742_v39, %v8834_v9  ;;  %v8729_v34 = vor.u32 %v9721_v44, %v8728_v55  ;;  %v9713_v37 = vld [vmem:[#allocation2 + $0x24] sm:$0xf0]  ;;  %v8800_v36 = vld [vmem:[#allocation2 + $0xd0] sm:$0xf]  ;;  %v9734_v12 = vld [vmem:[#allocation2 + $0xd4] sm:$0xf] }
 0x23d   : > { %1676 = vst [vmem:[#allocation2 + $0xf0] sm:$0xff] %v1668_v49  ;;  %v2035_v17 = vpack.c.bf16 %v2023_v19, %v2022_v41  ;;  %v8697_v24 = vor.u32 %v9713_v37, %v8696_v35  ;;  %v11210_v41 = vld [vmem:[%s10104_s9 + $0x8] sm:$0xff]  ;;  %v13995_v44 = vld [vmem:[#allocation37_spill] sm:$0xff] }
 0x23e   : > { %1554 = vst [vmem:[#allocation2 + $0x90] sm:$0xff] %v1546_v47 }
 0x23f   : > { %2685 = vmatpush.bf16.msrb.mxu1 %v8761_v11  ;;  %2739 = vmatpush.bf16.msra.mxu3 %v8833_v26  ;;  %2043 = vst [vmem:[#allocation2 + $0x1d8] sm:$0xff] %v2035_v17  ;;  %v1471_v32 = vpop.permute.xlu0 %1470  ;;  %v11201_v21 = vpop.permute.xlu1 %1472  ;;  %v1399_v11 = vperm.slane %v11210_v41, 5 }
 0x240   : > { %2767 = vmatpush.bf16.msra.mxu2 %v8837_v45  ;;  %v1487_v51 = vsel %vm1476_vm7, %v11023_v54, %v1471_v32  ;;  %v1488_v61 = vsel %vm1476_vm7, %v1471_v32, %v11201_v21  ;;  %v11207_v27 = vpop.permute.xlu2 %1340  ;;  %v1398_v54 = vperm.slane %v11210_v41, 4 }
 0x241   : > { %v1540_v3 = vmul.f32 %v1516_v15, %v1487_v51  ;;  %v1541_v5 = vmul.f32 %v1517_v59, %v1488_v61  ;;  %v10026_v59 = vld [vmem:[%s10104_s9 + $0x30] sm:$0xff] }
 0x242   : > { %v1888_v19 = vperm.slane %v10026_v59, 6  ;;  %v1889_v26 = vperm.slane %v10026_v59, 7  ;;  %v13996_v61 = vld [vmem:[#allocation35_spill] sm:$0xff] }
 0x243   : > { %2686 = vmatpush.bf16.msrb.mxu1 %v8729_v34  ;;  %v1550_v60 = vpack.c.bf16 %v1541_v5, %v1540_v3 }
 0x244   : > { %v9738_v9 = vld [vmem:[#allocation2 + $0xec] sm:$0xf0]  ;;  %v8802_v62 = vld [vmem:[#allocation2 + $0xf0] sm:$0xf0] }
 0x245   : > { %1558 = vst [vmem:[#allocation2 + $0xb0] sm:$0xff] %v1550_v60  ;;  %v8801_v40 = vor.u32 %v9738_v9, %v8800_v36  ;;  %v8805_v49 = vor.u32 %v9734_v12, %v8802_v62  ;;  %v8768_v36 = vld [vmem:[#allocation2 + $0x90] sm:$0xf]  ;;  %v9726_v12 = vld [vmem:[#allocation2 + $0x94] sm:$0xf] }
 0x247   : > { %2687 = vmatpush.bf16.msrb.mxu1 %v8697_v24  ;;  %v1961_v47 = vpop.permute.xlu0 %1960  ;;  %v1339_v15 = vpop.permute.xlu1 %1338  ;;  %2740 = vmatpush.bf16.msra.mxu3 %v8801_v40 }
 0x248   : > { %v1976_v39 = vsel %vm1962_vm2, %v10976_v63, %v1961_v47  ;;  %v1996_v45 = vsel %vm1962_vm2, %v1961_v47, %v13995_v44  ;;  %v1362_v17 = vsel %vm1358_vm6, %v11063_v52, %v1339_v15  ;;  %v1363_v55 = vsel %vm1358_vm6, %v1339_v15, %v11207_v27  ;;  %v1827_v34 = vpop.permute.xlu2 %1826  ;;  %2768 = vmatpush.bf16.msra.mxu2 %v8805_v49 }
 0x249   : > { %v2030_v32 = vmul.f32 %v2006_v29, %v1976_v39  ;;  %v2031_v35 = vmul.f32 %v2007_v7, %v1996_v45  ;;  %v1414_v37 = vmul.f32 %v1398_v54, %v1362_v17  ;;  %v1415_v51 = vmul.f32 %v1399_v11, %v1363_v55 }
 0x24a   : > { %2688 = vmatmul.bf16.vlgmr.msrb.gmra.mxu1 %v11033_v43  ;;  %v1851_v63 = vsel %vm1844_vm3, %v10886_v1, %v1827_v34  ;;  %v1877_v3 = vsel %vm1844_vm3, %v1827_v34, %v13996_v61  ;;  %v1280_v45 = vperm.slane %v10866_v31, 4  ;;  %v1281_v17 = vperm.slane %v10866_v31, 5 }
 0x24b   : > { %v2039_v52 = vpack.c.bf16 %v2031_v35, %v2030_v32  ;;  %v1428_v5 = vpack.c.bf16 %v1415_v51, %v1414_v37  ;;  %v1904_v24 = vmul.f32 %v1888_v19, %v1851_v63  ;;  %v1905_v60 = vmul.f32 %v1889_v26, %v1877_v3  ;;  %v10027_v32 = vld [vmem:[%s10104_s9 + $0x28] sm:$0xff]  ;;  %v13997_v51 = vld [vmem:[#allocation39_spill] sm:$0xff] }
 0x24c   : > { %v9730_v9 = vld [vmem:[#allocation2 + $0xac] sm:$0xf0]  ;;  %v8770_v62 = vld [vmem:[#allocation2 + $0xb0] sm:$0xf0]  ;;  %v1770_v35 = vperm.slane %v10027_v32, 6  ;;  %v1771_v37 = vperm.slane %v10027_v32, 7 }
 0x24d   : > { %2047 = vst [vmem:[#allocation2 + $0x1f8] sm:$0xff] %v2039_v52  ;;  %v1917_v29 = vpack.c.bf16 %v1905_v60, %v1904_v24  ;;  %v8769_v20 = vor.u32 %v9730_v9, %v8768_v36  ;;  %v8773_v7 = vor.u32 %v9726_v12, %v8770_v62  ;;  %v13998_v60 = vld [vmem:[#allocation36_spill] sm:$0xff]  ;;  %v2122_v32 = vperm.slane %v11086_v6, 4 }
 0x24e   : > { %1436 = vst [vmem:[#allocation2 + $0x50] sm:$0xff] %v1428_v5 }
 0x24f   : > { %1925 = vst [vmem:[#allocation2 + $0x198] sm:$0xff] %v1917_v29  ;;  %v1353_v40 = vpop.permute.xlu0 %1352  ;;  %v11232_v1 = vpop.permute.xlu1 %1354  ;;  %2741 = vmatpush.bf16.msra.mxu3 %v8769_v20  ;;  %2769 = vmatpush.bf16.msra.mxu2 %v8773_v7 }
 0x250   : > { %v1369_v49 = vsel %vm1358_vm6, %v11077_v0, %v1353_v40  ;;  %v1370_v47 = vsel %vm1358_vm6, %v1353_v40, %v11232_v1  ;;  %v11238_v15 = vpop.permute.xlu2 %1223 }
 0x251   : > { %v1422_v59 = vmul.f32 %v1398_v54, %v1369_v49  ;;  %v1423_v39 = vmul.f32 %v1399_v11, %v1370_v47 }
 0x253   : > { %v1432_v44 = vpack.c.bf16 %v1423_v39, %v1422_v59 }
 0x255   : > { %1440 = vst [vmem:[#allocation2 + $0x70] sm:$0xff] %v1432_v44  ;;  %v8736_v29 = vld [vmem:[#allocation2 + $0x50] sm:$0xf]  ;;  %v9718_v20 = vld [vmem:[#allocation2 + $0x54] sm:$0xf] }
 0x257   : > { %v1843_v55 = vpop.permute.xlu0 %1842  ;;  %v1222_v34 = vpop.permute.xlu1 %1221 }
 0x258   : > { %v1858_v0 = vsel %vm1844_vm3, %v11004_v30, %v1843_v55  ;;  %v1878_v63 = vsel %vm1844_vm3, %v1843_v55, %v13997_v51  ;;  %v1245_v54 = vsel %vm1241_vm8, %v11137_v10, %v1222_v34  ;;  %v1246_v11 = vsel %vm1241_vm8, %v1222_v34, %v11238_v15  ;;  %v1709_v61 = vpop.permute.xlu2 %1708 }
 0x259   : > { %v1912_v3 = vmul.f32 %v1888_v19, %v1858_v0  ;;  %v1913_v31 = vmul.f32 %v1889_v26, %v1878_v63  ;;  %v1296_v52 = vmul.f32 %v1280_v45, %v1245_v54  ;;  %v1297_v5 = vmul.f32 %v1281_v17, %v1246_v11 }
 0x25a   : > { %v1733_v24 = vsel %vm1726_vm4, %v11046_v58, %v1709_v61  ;;  %v1759_v30 = vsel %vm1726_vm4, %v1709_v61, %v13998_v60  ;;  %v2123_v0 = vperm.slane %v11086_v6, 5  ;;  %v1636_v54 = vperm.slane %v11152_v42, 6 }
 0x25b   : > { %v1921_v36 = vpack.c.bf16 %v1913_v31, %v1912_v3  ;;  %v1310_v9 = vpack.c.bf16 %v1297_v5, %v1296_v52  ;;  %v1786_v12 = vmul.f32 %v1770_v35, %v1733_v24  ;;  %v1787_v62 = vmul.f32 %v1771_v37, %v1759_v30 }
 0x25c   : > { %v9722_v10 = vld [vmem:[#allocation2 + $0x6c] sm:$0xf0]  ;;  %v8738_v7 = vld [vmem:[#allocation2 + $0x70] sm:$0xf0]  ;;  %v1637_v11 = vperm.slane %v11152_v42, 7 }
 0x25d   : > { %1929 = vst [vmem:[#allocation2 + $0x1b8] sm:$0xff] %v1921_v36  ;;  %v1799_v40 = vpack.c.bf16 %v1787_v62, %v1786_v12  ;;  %v8737_v19 = vor.u32 %v9722_v10, %v8736_v29  ;;  %v8741_v26 = vor.u32 %v9718_v20, %v8738_v7  ;;  %v10028_v10 = vld [vmem:[%s10104_s9 + $0x10] sm:$0xff] }
 0x25e   : > { %1318 = vst [vmem:[#allocation2 + $0x10] sm:$0xff] %v1310_v9  ;;  %v1518_v20 = vperm.slane %v10028_v10, 6  ;;  %v1519_v7 = vperm.slane %v10028_v10, 7 }
 0x25f   : > { %1807 = vst [vmem:[#allocation2 + $0x158] sm:$0xff] %v1799_v40  ;;  %v1236_v49 = vpop.permute.xlu0 %1235  ;;  %v11255_v47 = vpop.permute.xlu1 %1237  ;;  %2742 = vmatpush.bf16.msra.mxu3 %v8737_v19  ;;  %2770 = vmatpush.bf16.msra.mxu2 %v8741_v26 }
 0x260   : > { %v1252_v58 = vsel %vm1241_vm8, %v11124_v53, %v1236_v49  ;;  %v1253_v59 = vsel %vm1241_vm8, %v1236_v49, %v11255_v47  ;;  %v11261_v39 = vpop.permute.xlu2 %2060 }
 0x261   : > { %v1304_v44 = vmul.f32 %v1280_v45, %v1252_v58  ;;  %v1305_v55 = vmul.f32 %v1281_v17, %v1253_v59 }
 0x263   : > { %v1314_v34 = vpack.c.bf16 %v1305_v55, %v1304_v44 }
 0x265   : > { %1322 = vst [vmem:[#allocation2 + $0x30] sm:$0xff] %v1314_v34  ;;  %v9710_v12 = vld [vmem:[#allocation2 + $0x14] sm:$0xf] }
 0x267   : > { %v1725_v51 = vpop.permute.xlu0 %1724  ;;  %v2059_v63 = vpop.permute.xlu1 %2058 }
 0x268   : > { %v1740_v53 = vsel %vm1726_vm4, %v11031_v38, %v1725_v51  ;;  %v1760_v61 = vsel %vm1726_vm4, %v1725_v51, %v10656_v22  ;;  %v2085_v45 = vsel %vm2080_vm9, %v11083_v33, %v2059_v63  ;;  %v2086_v17 = vsel %vm2080_vm9, %v2059_v63, %v11261_v39  ;;  %v1579_v3 = vpop.permute.xlu2 %1578  ;;  %v8704_v33 = vld [vmem:[#allocation2 + $0x10] sm:$0xf] }
 0x269   : > { %v1794_v31 = vmul.f32 %v1770_v35, %v1740_v53  ;;  %v1795_v52 = vmul.f32 %v1771_v37, %v1760_v61  ;;  %v2138_v5 = vmul.f32 %v2122_v32, %v2085_v45  ;;  %v2139_v24 = vmul.f32 %v2123_v0, %v2086_v17 }
 0x26a   : > { %v1600_v42 = vsel %vm1594_vm5, %v11156_v16, %v1579_v3  ;;  %v1601_v38 = vsel %vm1594_vm5, %v1579_v3, %v10813_v28 }
 0x26b   : > { %v1803_v60 = vpack.c.bf16 %v1795_v52, %v1794_v31  ;;  %v2152_v22 = vpack.c.bf16 %v2139_v24, %v2138_v5  ;;  %v1652_v30 = vmul.f32 %v1636_v54, %v1600_v42  ;;  %v1653_v36 = vmul.f32 %v1637_v11, %v1601_v38 }
 0x26c   : > { %v9714_v9 = vld [vmem:[#allocation2 + $0x2c] sm:$0xf0]  ;;  %v8706_v62 = vld [vmem:[#allocation2 + $0x30] sm:$0xf0]  ;;  %v1400_v42 = vperm.slane %v11210_v41, 6 }
 0x26d   : > { %1811 = vst [vmem:[#allocation2 + $0x178] sm:$0xff] %v1803_v60  ;;  %v1665_v35 = vpack.c.bf16 %v1653_v36, %v1652_v30  ;;  %v8705_v37 = vor.u32 %v9714_v9, %v8704_v33  ;;  %v8709_v29 = vor.u32 %v9710_v12, %v8706_v62  ;;  %v1401_v33 = vperm.slane %v11210_v41, 7  ;;  %v8936_v62 = vld [vmem:[#allocation2 + $0x1d8] sm:$0xf] }
 0x26e   : > { %2160 = vst [vmem:[#allocation2 + $0x210] sm:$0xff] %v2152_v22  ;;  %v9763_v22 = vld [vmem:[#allocation2 + $0x1b4] sm:$0xf0] }
 0x26f   : > { %1673 = vst [vmem:[#allocation2 + $0xd8] sm:$0xff] %v1665_v35  ;;  %v2075_v16 = vpop.permute.xlu0 %2074  ;;  %v11280_v40 = vpop.permute.xlu1 %2076  ;;  %2743 = vmatpush.bf16.msra.mxu3 %v8705_v37  ;;  %2771 = vmatpush.bf16.msra.mxu2 %v8709_v29  ;;  %v9767_v37 = vld [vmem:[#allocation2 + $0x1dc] sm:$0xf]  ;;  %v8904_v29 = vld [vmem:[#allocation2 + $0x198] sm:$0xf] }
 0x270   : > { %v2092_v28 = vsel %vm2080_vm9, %v11119_v48, %v2075_v16  ;;  %v2093_v19 = vsel %vm2080_vm9, %v2075_v16, %v11280_v40  ;;  %v1475_v26 = vpop.permute.xlu2 %1474 }
 0x271   : > { %v2146_v49 = vmul.f32 %v2122_v32, %v2092_v28  ;;  %v2147_v58 = vmul.f32 %v2123_v0, %v2093_v19  ;;  %v1489_v59 = vsel %vm1476_vm7, %v11201_v21, %v1475_v26  ;;  %v1490_v44 = vsel %vm1476_vm7, %v1475_v26, %v10955_v2 }
 0x272   : > { %v1542_v55 = vmul.f32 %v1518_v20, %v1489_v59  ;;  %v1543_v34 = vmul.f32 %v1519_v7, %v1490_v44  ;;  %2744 = vmatmul.bf16.vlgmr.msra.gmra.mxu3 %v11033_v43  ;;  %2772 = vmatmul.bf16.vlgmr.msra.gmra.mxu2 %v11033_v43  ;;  %v2124_v32 = vperm.slane %v11086_v6, 6  ;;  %v2125_v0 = vperm.slane %v11086_v6, 7 }
 0x273   : > { %v2156_v51 = vpack.c.bf16 %v2147_v58, %v2146_v49  ;;  %v8905_v26 = vor.u32 %v9763_v22, %v8904_v29  ;;  %v8906_v49 = vld [vmem:[#allocation2 + $0x1b8] sm:$0xf0] }
 0x274   : > { %v1551_v48 = vpack.c.bf16 %v1543_v34, %v1542_v55 }
 0x275   : > { %2164 = vst [vmem:[#allocation2 + $0x230] sm:$0xff] %v2156_v51  ;;  %v9774_v36 = vld [vmem:[#allocation2 + $0x214] sm:$0xf] }
 0x276   : > { %1559 = vst [vmem:[#allocation2 + $0xb8] sm:$0xff] %v1551_v48 }
 0x277   : > { %v1593_v63 = vpop.permute.xlu0 %1592  ;;  %v1461_v53 = vpop.permute.xlu1 %1460 }
 0x278   : > { %v1607_v21 = vsel %vm1594_vm5, %v11178_v8, %v1593_v63  ;;  %v1608_v2 = vsel %vm1594_vm5, %v1593_v63, %v10923_v57  ;;  %v1482_v61 = vsel %vm1476_vm7, %v11162_v4, %v1461_v53  ;;  %v1483_v45 = vsel %vm1476_vm7, %v1461_v53, %v10851_v18  ;;  %v2063_v17 = vpop.permute.xlu2 %2062  ;;  %v9771_v57 = vld [vmem:[#allocation2 + $0x1f4] sm:$0xf0]  ;;  %v9759_v53 = vld [vmem:[#allocation2 + $0x19c] sm:$0xf] }
 0x279   : > { %v1660_v3 = vmul.f32 %v1636_v54, %v1607_v21  ;;  %v1661_v31 = vmul.f32 %v1637_v11, %v1608_v2  ;;  %v1534_v52 = vmul.f32 %v1518_v20, %v1482_v61  ;;  %v1535_v5 = vmul.f32 %v1519_v7, %v1483_v45  ;;  %v8960_v54 = vld [vmem:[#allocation2 + $0x210] sm:$0xf]  ;;  %v8938_v11 = vld [vmem:[#allocation2 + $0x1f8] sm:$0xf0]  ;;  %v10029_v7 = vld [vmem:[%s10104_s9] sm:$0xff] }
 0x27a   : > { %v2087_v24 = vsel %vm2080_vm9, %v11261_v39, %v2063_v17  ;;  %v2113_v8 = vsel %vm2080_vm9, %v2063_v17, %v11079_v14  ;;  %v8937_v35 = vor.u32 %v9771_v57, %v8936_v62  ;;  %v1282_v16 = vperm.slane %v10029_v7, 6  ;;  %v9755_v45 = vld [vmem:[#allocation2 + $0x174] sm:$0xf0]  ;;  %v8874_v17 = vld [vmem:[#allocation2 + $0x178] sm:$0xf0] }
 0x27b   : > { %v1669_v38 = vpack.c.bf16 %v1661_v31, %v1660_v3  ;;  %v1547_v60 = vpack.c.bf16 %v1535_v5, %v1534_v52  ;;  %v2140_v4 = vmul.f32 %v2124_v32, %v2087_v24  ;;  %v2141_v18 = vmul.f32 %v2125_v0, %v2113_v8  ;;  %v9751_v31 = vld [vmem:[#allocation2 + $0x15c] sm:$0xf]  ;;  %v9747_v8 = vld [vmem:[#allocation2 + $0x134] sm:$0xf0] }
 0x27c   : > { %v9778_v30 = vld [vmem:[#allocation2 + $0x22c] sm:$0xf0]  ;;  %v8962_v39 = vld [vmem:[#allocation2 + $0x230] sm:$0xf0]  ;;  %v1283_v28 = vperm.slane %v10029_v7, 7  ;;  %v8941_v19 = vor.u32 %v9767_v37, %v8938_v11  ;;  %v8877_v24 = vor.u32 %v9751_v31, %v8874_v17 }
 0x27d   : > { %1677 = vst [vmem:[#allocation2 + $0xf8] sm:$0xff] %v1669_v38  ;;  %v2153_v14 = vpack.c.bf16 %v2141_v18, %v2140_v4  ;;  %v8961_v9 = vor.u32 %v9778_v30, %v8960_v54  ;;  %v8965_v12 = vor.u32 %v9774_v36, %v8962_v39  ;;  %v8842_v4 = vld [vmem:[#allocation2 + $0x138] sm:$0xf0]  ;;  %v9731_v62 = vld [vmem:[#allocation2 + $0xb4] sm:$0xf0] }
 0x27e   : > { %1555 = vst [vmem:[#allocation2 + $0x98] sm:$0xff] %v1547_v60  ;;  %v8778_v37 = vld [vmem:[#allocation2 + $0xb8] sm:$0xf0] }
 0x27f   : > { %2161 = vst [vmem:[#allocation2 + $0x218] sm:$0xff] %v2153_v14  ;;  %v1343_v10 = vpop.permute.xlu0 %1342  ;;  %v1357_v20 = vpop.permute.xlu1 %1356  ;;  %2757 = vmatpush.bf16.msra.mxu1 %v8961_v9  ;;  %2785 = vmatpush.bf16.msra.mxu0 %v8965_v12  ;;  %v9735_v9 = vld [vmem:[#allocation2 + $0xdc] sm:$0xf] }
 0x280   : > { %v1364_v41 = vsel %vm1358_vm6, %v11207_v27, %v1343_v10  ;;  %v1365_v58 = vsel %vm1358_vm6, %v1343_v10, %v10785_v13  ;;  %v1371_v59 = vsel %vm1358_vm6, %v11232_v1, %v1357_v20  ;;  %v1372_v44 = vsel %vm1358_vm6, %v1357_v20, %v10974_v25  ;;  %v1240_v55 = vpop.permute.xlu2 %1239 }
 0x281   : > { %v1416_v34 = vmul.f32 %v1400_v42, %v1364_v41  ;;  %v1417_v51 = vmul.f32 %v1401_v33, %v1365_v58  ;;  %v1424_v48 = vmul.f32 %v1400_v42, %v1371_v59  ;;  %v1425_v63 = vmul.f32 %v1401_v33, %v1372_v44  ;;  %v8808_v33 = vld [vmem:[#allocation2 + $0xd8] sm:$0xf] }
 0x282   : > { %v1254_v27 = vsel %vm1241_vm8, %v11255_v47, %v1240_v55  ;;  %v1255_v13 = vsel %vm1241_vm8, %v1240_v55, %v10950_v23  ;;  %8978 = vmatmul.msk.bf16.vlgmr.msra.gmra.mxu1 %vm1015_vm0, %v11135_v56  ;;  %8979 = vmatmul.msk.bf16.vlgmr.msra.gmra.mxu0 %vm1015_vm0, %v11135_v56  ;;  %v8909_v25 = vor.u32 %v9759_v53, %v8906_v49  ;;  %v8872_v47 = vld [vmem:[#allocation2 + $0x158] sm:$0xf] }
 0x283   : > { %2792 = vmatpush.bf16.msrb.mxu1 %v8937_v35  ;;  %2820 = vmatpush.bf16.msrb.mxu0 %v8941_v19  ;;  %v1429_v1 = vpack.c.bf16 %v1417_v51, %v1416_v34  ;;  %v1433_v21 = vpack.c.bf16 %v1425_v63, %v1424_v48  ;;  %v1306_v2 = vmul.f32 %v1282_v16, %v1254_v27  ;;  %v2633_v27 = vpop.f32.mrf.mxu0 }
 0x284   : > { %v1307_v61 = vmul.f32 %v1283_v28, %v1255_v13  ;;  %v8873_v23 = vor.u32 %v9755_v45, %v8872_v47  ;;  %v9739_v14 = vld [vmem:[#allocation2 + $0xf4] sm:$0xf0] }
 0x285   : > { %1437 = vst [vmem:[#allocation2 + $0x58] sm:$0xff] %v1429_v1  ;;  %v9727_v12 = vld [vmem:[#allocation2 + $0x9c] sm:$0xf] }
 0x286   : > { %v1315_v3 = vpack.c.bf16 %v1307_v61, %v1306_v2  ;;  %1441 = vst [vmem:[#allocation2 + $0x78] sm:$0xff] %v1433_v21  ;;  %v8968_v29 = vld [vmem:[#allocation2 + $0x218] sm:$0xf]  ;;  %v9775_v10 = vld [vmem:[#allocation2 + $0x21c] sm:$0xf]  ;;  %v8781_v20 = vor.u32 %v9727_v12, %v8778_v37 }
 0x287   : > { %2793 = vmatpush.bf16.msrb.mxu1 %v8905_v26  ;;  %2821 = vmatpush.bf16.msrb.mxu0 %v8909_v25  ;;  %v2079_v52 = vpop.permute.xlu0 %2078  ;;  %v1226_v5 = vpop.permute.xlu1 %1225 }
 0x288   : > { %1323 = vst [vmem:[#allocation2 + $0x38] sm:$0xff] %v1315_v3  ;;  %v2094_v42 = vsel %vm2080_vm9, %v11280_v40, %v2079_v52  ;;  %v2114_v57 = vsel %vm2080_vm9, %v2079_v52, %v11110_v50  ;;  %v1247_v38 = vsel %vm1241_vm8, %v11238_v15, %v1226_v5  ;;  %v1248_v60 = vsel %vm1241_vm8, %v1226_v5, %v10884_v46  ;;  %v8840_v40 = vld [vmem:[#allocation2 + $0x118] sm:$0xf]  ;;  %v9743_v50 = vld [vmem:[#allocation2 + $0x11c] sm:$0xf]  ;;  %v2661_v25 = vpop.f32.mrf.mxu2  ;;  %v11350_v2 = vpop.permute.xlu2 %2868 }
 0x289   : > { %v2148_v18 = vmul.f32 %v2124_v32, %v2094_v42  ;;  %v2149_v54 = vmul.f32 %v2125_v0, %v2114_v57  ;;  %v1298_v11 = vmul.f32 %v1282_v16, %v1247_v38  ;;  %v1299_v22 = vmul.f32 %v1283_v28, %v1248_v60  ;;  %v8810_v46 = vld [vmem:[#allocation2 + $0xf8] sm:$0xf0]  ;;  %v8776_v0 = vld [vmem:[#allocation2 + $0x98] sm:$0xf] }
 0x28a   : > { %v8841_v30 = vor.u32 %v9747_v8, %v8840_v40  ;;  %v8845_v15 = vor.u32 %v9743_v50, %v8842_v4  ;;  %v8809_v32 = vor.u32 %v9739_v14, %v8808_v33  ;;  %v8813_v6 = vor.u32 %v9735_v9, %v8810_v46 }
 0x28b   : > { %2794 = vmatpush.bf16.msrb.mxu1 %v8873_v23  ;;  %2822 = vmatpush.bf16.msrb.mxu0 %v8877_v24  ;;  %v2157_v36 = vpack.c.bf16 %v2149_v54, %v2148_v18  ;;  %v1311_v39 = vpack.c.bf16 %v1299_v22, %v1298_v11  ;;  %v8777_v35 = vor.u32 %v9731_v62, %v8776_v0  ;;  %v2635_v45 = vpop.f32.mrf.mxu0 }
 0x28c   : > { %v8744_v7 = vld [vmem:[#allocation2 + $0x58] sm:$0xf]  ;;  %v9719_v28 = vld [vmem:[#allocation2 + $0x5c] sm:$0xf] }
 0x28d   : > { %2165 = vst [vmem:[#allocation2 + $0x238] sm:$0xff] %v2157_v36  ;;  %v9723_v16 = vld [vmem:[#allocation2 + $0x74] sm:$0xf0]  ;;  %v8746_v49 = vld [vmem:[#allocation2 + $0x78] sm:$0xf0] }
 0x28e   : > { %1319 = vst [vmem:[#allocation2 + $0x18] sm:$0xff] %v1311_v39  ;;  %v8745_v59 = vor.u32 %v9723_v16, %v8744_v7  ;;  %v8749_v44 = vor.u32 %v9719_v28, %v8746_v49 }
 0x28f   : > { %2795 = vmatpush.bf16.msrb.mxu1 %v8841_v30  ;;  %2823 = vmatpush.bf16.msrb.mxu0 %v8845_v15  ;;  %v9715_v51 = vld [vmem:[#allocation2 + $0x34] sm:$0xf0]  ;;  %v8714_v63 = vld [vmem:[#allocation2 + $0x38] sm:$0xf0]  ;;  %v11347_v13 = vpop.permute.xlu0 %2244  ;;  %v11356_v47 = vpop.permute.xlu1 %2249 }
 0x290   : > { %v2634_v1 = vadd.f32 %v2633_v27, %v11347_v13  ;;  %v2662_v17 = vadd.f32 %v2661_v25, %v11347_v13  ;;  %v2636_v52 = vadd.f32 %v2635_v45, %v11356_v47  ;;  %v2663_v24 = vpop.f32.mrf.mxu2 }
 0x291   : > { %v2664_v38 = vadd.f32 %v2663_v24, %v11356_v47 }
 0x293   : > { %2796 = vmatpush.bf16.msrb.mxu1 %v8809_v32  ;;  %2824 = vmatpush.bf16.msrb.mxu0 %v8813_v6 }
 0x294   : > { %v9779_v19 = vld [vmem:[#allocation2 + $0x234] sm:$0xf0]  ;;  %v8970_v26 = vld [vmem:[#allocation2 + $0x238] sm:$0xf0] }
 0x295   : > { %v8969_v41 = vor.u32 %v9779_v19, %v8968_v29  ;;  %v8973_v58 = vor.u32 %v9775_v10, %v8970_v26  ;;  %v8712_v55 = vld [vmem:[#allocation2 + $0x18] sm:$0xf]  ;;  %v9711_v34 = vld [vmem:[#allocation2 + $0x1c] sm:$0xf] }
 0x296   : > { %v8713_v48 = vor.u32 %v9715_v51, %v8712_v55  ;;  %v8717_v53 = vor.u32 %v9711_v34, %v8714_v63 }
 0x297   : > { %2797 = vmatpush.bf16.msrb.mxu1 %v8777_v35  ;;  %2825 = vmatpush.bf16.msrb.mxu0 %v8781_v20  ;;  %v11371_v60 = vpop.permute.xlu0 %2873 }
 0x298   : > { %2813 = vmatpush.bf16.msrb.mxu3 %v8969_v41  ;;  %2841 = vmatpush.bf16.msrb.mxu2 %v8973_v58 }
 0x29b   : > { %2798 = vmatpush.bf16.msrb.mxu1 %v8745_v59  ;;  %2826 = vmatpush.bf16.msrb.mxu0 %v8749_v44 }
 0x29c   : > { %8980 = vmatmul.msk.bf16.vlgmr.msrb.gmra.mxu3 %vm1015_vm0, %v11135_v56  ;;  %8981 = vmatmul.msk.bf16.vlgmr.msrb.gmra.mxu2 %vm1015_vm0, %v11135_v56 }
 0x29f   : > { %2799 = vmatpush.bf16.msrb.mxu1 %v8713_v48  ;;  %2827 = vmatpush.bf16.msrb.mxu0 %v8717_v53 }
 0x2a2   : > { %2800 = vmatmul.bf16.vlgmr.msrb.gmra.mxu1 %v11033_v43  ;;  %2828 = vmatmul.bf16.vlgmr.msrb.gmra.mxu0 %v11033_v43 }
 0x2a7   : > { %v2647_v21 = vpop.f32.mrf.mxu1 }
 0x2a8   : > { %v2648_v61 = vadd.f32 %v2647_v21, %v2634_v1 }
 0x2aa   : > { %vm2850_vm10 = vcmp.ge.f32.partialorder %v2648_v61, 0.0  ;;  %v2876_v56 = vmul.f32 %v11350_v2, %v2648_v61 }
 0x2ac   : > { %v11354_v3 = vsel %vm2850_vm10, %v2648_v61, %v2876_v56 }
 0x2ad   : > { %v2675_v43 = vpop.f32.mrf.mxu3  ;;  %2930 = vrot.lane.b32.xlu2 %v11354_v3, %s10083_s2  ;;  %3278 = vrot.lane.b32.xlu0 %v11354_v3, %s10078_s22 }
 0x2ae   : > { %v2676_v23 = vadd.f32 %v2675_v43, %v2662_v17  ;;  %3636 = vrot.lane.b32.xlu1 %v11354_v3, %s10080_s26 }
 0x2af   : > { %v2649_v31 = vpop.f32.mrf.mxu1 }
 0x2b0   : > { %vm2851_vm11 = vcmp.ge.f32.partialorder %v2676_v23, 0.0  ;;  %v2877_v5 = vmul.f32 %v11350_v2, %v2676_v23  ;;  %v2650_v42 = vadd.f32 %v2649_v31, %v2636_v52 }
 0x2b2   : > { %v11366_v8 = vsel %vm2851_vm11, %v2676_v23, %v2877_v5  ;;  %v2884_v18 = vmul.f32 %v11371_v60, %v2650_v42  ;;  %vm2858_vm12 = vcmp.ge.f32.partialorder %v2650_v42, 0.0 }
 0x2b3   : > { %v3388_v57 = vpack.c.bf16 %v11366_v8, %v11354_v3 }
 0x2b4   : > { %v11381_v22 = vsel %vm2858_vm12, %v2650_v42, %v2884_v18 }
 0x2b5   : > { %3396 = vst [vmem:[#allocation2 + $0x100] sm:$0xff] %v3388_v57  ;;  %v2677_v4 = vpop.f32.mrf.mxu3  ;;  %3162 = vrot.lane.b32.xlu0 %v11354_v3, %s10081_s28  ;;  %3638 = vrot.lane.b32.xlu2 %v11366_v8, %s10080_s26 }
 0x2b6   : > { %4626 = vst [vmem:[#allocation3 + $0x80] sm:$0xff] %v3388_v57  ;;  %v2678_v54 = vadd.f32 %v2677_v4, %v2664_v38  ;;  %3520 = vrot.lane.b32.xlu1 %v11354_v3, %s10079_s23 }
 0x2b8   : > { %vm2859_vm13 = vcmp.ge.f32.partialorder %v2678_v54, 0.0  ;;  %v2885_v11 = vmul.f32 %v11371_v60, %v2678_v54  ;;  %v2731_v36 = vpop.f32.mrf.mxu2 }
 0x2b9   : > { %v2717_v30 = vpop.f32.mrf.mxu0 }
 0x2ba   : > { %v11383_v40 = vsel %vm2859_vm13, %v2678_v54, %v2885_v11  ;;  %v2718_v39 = vadd.f32 %v2717_v30, %v11347_v13 }
 0x2bb   : > { %v3392_v50 = vpack.c.bf16 %v11383_v40, %v11381_v22 }
 0x2bc   : > { %v2732_v14 = vadd.f32 %v2731_v36, %v2718_v39 }
 0x2bd   : > { %3400 = vst [vmem:[#allocation2 + $0x120] sm:$0xff] %v3392_v50  ;;  %2932 = vrot.lane.b32.xlu0 %v11366_v8, %s10083_s2  ;;  %3522 = vrot.lane.b32.xlu2 %v11366_v8, %s10079_s23  ;;  %v2703_v15 = vpop.f32.mrf.mxu3 }
 0x2be   : > { %4630 = vst [vmem:[#allocation3 + $0xa0] sm:$0xff] %v3392_v50  ;;  %3404 = vrot.lane.b32.xlu1 %v11354_v3, %s10082_s1  ;;  %v2879_v9 = vmul.f32 %v11350_v2, %v2732_v14  ;;  %vm2853_vm14 = vcmp.ge.f32.partialorder %v2732_v14, 0.0 }
 0x2c0   : > { %v2733_v12 = vpop.f32.mrf.mxu2  ;;  %v11404_v35 = vsel %vm2853_vm14, %v2732_v14, %v2879_v9 }
 0x2c1   : > { %v2719_v46 = vpop.f32.mrf.mxu0 }
 0x2c2   : > { %v2720_v6 = vadd.f32 %v2719_v46, %v11356_v47 }
 0x2c4   : > { %v2734_v37 = vadd.f32 %v2733_v12, %v2720_v6 }
 0x2c5   : > { %3060 = vrot.lane.b32.xlu0 %v11381_v22, %s10084_s7  ;;  %3406 = vrot.lane.b32.xlu2 %v11366_v8, %s10082_s1  ;;  %v2705_v7 = vpop.f32.mrf.mxu3 }
 0x2c6   : > { %3046 = vrot.lane.b32.xlu1 %v11354_v3, %s10084_s7  ;;  %v2887_v28 = vmul.f32 %v11371_v60, %v2734_v37  ;;  %vm2861_vm1 = vcmp.ge.f32.partialorder %v2734_v37, 0.0 }
 0x2c7   : > { %v2689_v33 = vpop.f32.mrf.mxu1 }
 0x2c8   : > { %v2690_v32 = vadd.f32 %v2689_v33, %v11347_v13  ;;  %v11419_v49 = vsel %vm2861_vm1, %v2734_v37, %v2887_v28 }
 0x2ca   : > { %v2704_v0 = vadd.f32 %v2703_v15, %v2690_v32 }
 0x2cc   : > { %vm2852_vm15 = vcmp.ge.f32.partialorder %v2704_v0, 0.0  ;;  %v2878_v62 = vmul.f32 %v11350_v2, %v2704_v0 }
 0x2cd   : > { %3048 = vrot.lane.b32.xlu2 %v11366_v8, %s10084_s7 }
 0x2ce   : > { %v11406_v29 = vsel %vm2852_vm15, %v2704_v0, %v2878_v62  ;;  %3280 = vrot.lane.b32.xlu1 %v11366_v8, %s10078_s22 }
 0x2cf   : > { %v3389_v10 = vpack.c.bf16 %v11404_v35, %v11406_v29  ;;  %v2691_v20 = vpop.f32.mrf.mxu1  ;;  %3640 = vrot.lane.b32.xlu0 %v11406_v29, %s10080_s26 }
 0x2d0   : > { %v2692_v16 = vadd.f32 %v2691_v20, %v11356_v47 }
 0x2d1   : > { %3397 = vst [vmem:[#allocation2 + $0x108] sm:$0xff] %v3389_v10 }
 0x2d2   : > { %4627 = vst [vmem:[#allocation3 + $0x88] sm:$0xff] %v3389_v10  ;;  %v2706_v19 = vadd.f32 %v2705_v7, %v2692_v16 }
 0x2d4   : > { %vm2860_vm10 = vcmp.ge.f32.partialorder %v2706_v19, 0.0  ;;  %v2886_v26 = vmul.f32 %v11371_v60, %v2706_v19 }
 0x2d5   : > { %3292 = vrot.lane.b32.xlu2 %v11381_v22, %s10078_s22 }
 0x2d6   : > { %v11421_v41 = vsel %vm2860_vm10, %v2706_v19, %v2886_v26  ;;  %3164 = vrot.lane.b32.xlu1 %v11366_v8, %s10081_s28 }
 0x2d7   : > { %v3393_v58 = vpack.c.bf16 %v11419_v49, %v11421_v41  ;;  %3524 = vrot.lane.b32.xlu0 %v11406_v29, %s10079_s23 }
 0x2d9   : > { %3401 = vst [vmem:[#allocation2 + $0x128] sm:$0xff] %v3393_v58 }
 0x2da   : > { %4631 = vst [vmem:[#allocation3 + $0xa8] sm:$0xff] %v3393_v58 }
 0x2dd   : > { %3176 = vrot.lane.b32.xlu2 %v11381_v22, %s10081_s28 }
 0x2de   : > { %3652 = vrot.lane.b32.xlu1 %v11381_v22, %s10080_s26 }
 0x2df   : > { %3408 = vrot.lane.b32.xlu0 %v11406_v29, %s10082_s1 }
 0x2e5   : > { %3654 = vrot.lane.b32.xlu2 %v11383_v40, %s10080_s26 }
 0x2e6   : > { %3536 = vrot.lane.b32.xlu1 %v11381_v22, %s10079_s23 }
 0x2e7   : > { %3294 = vrot.lane.b32.xlu0 %v11383_v40, %s10078_s22 }
 0x2ed   : > { %3538 = vrot.lane.b32.xlu2 %v11383_v40, %s10079_s23 }
 0x2ee   : > { %3420 = vrot.lane.b32.xlu1 %v11381_v22, %s10082_s1 }
 0x2ef   : > { %3178 = vrot.lane.b32.xlu0 %v11383_v40, %s10081_s28 }
 0x2f5   : > { %3422 = vrot.lane.b32.xlu2 %v11383_v40, %s10082_s1  ;;  %v2745_v59 = vpop.f32.mrf.mxu3  ;;  %v2773_v44 = vpop.f32.mrf.mxu2 }
 0x2f6   : > { %2944 = vrot.lane.b32.xlu1 %v11381_v22, %s10083_s2  ;;  %v2746_v55 = vadd.f32 %v2745_v59, %v11347_v13  ;;  %v2774_v34 = vadd.f32 %v2773_v44, %v11347_v13 }
 0x2f7   : > { %3656 = vrot.lane.b32.xlu0 %v11421_v41, %s10080_s26 }
 0x2fd   : > { %2946 = vrot.lane.b32.xlu2 %v11383_v40, %s10083_s2  ;;  %v2747_v1 = vpop.f32.mrf.mxu3  ;;  %v2775_v21 = vpop.f32.mrf.mxu2 }
 0x2fe   : > { %3062 = vrot.lane.b32.xlu1 %v11383_v40, %s10084_s7  ;;  %v2748_v17 = vadd.f32 %v2747_v1, %v11356_v47  ;;  %v2776_v43 = vadd.f32 %v2775_v21, %v11356_v47  ;;  %v11574_v1 = vld [vmem:[%s10104_s9 + $0x38] sm:$0xff] }
 0x2ff   : > { %3540 = vrot.lane.b32.xlu0 %v11421_v41, %s10079_s23  ;;  %v2759_v51 = vpop.f32.mrf.mxu1  ;;  %v2787_v48 = vpop.f32.mrf.mxu0  ;;  %v3704_v21 = vperm.slane %v11574_v1, 0 }
 0x300   : > { %v2760_v63 = vadd.f32 %v2759_v51, %v2746_v55  ;;  %v2788_v53 = vadd.f32 %v2787_v48, %v2774_v34 }
 0x302   : > { %vm2854_vm11 = vcmp.ge.f32.partialorder %v2760_v63, 0.0  ;;  %v2880_v27 = vmul.f32 %v11350_v2, %v2760_v63  ;;  %vm2855_vm12 = vcmp.ge.f32.partialorder %v2788_v53, 0.0  ;;  %v2881_v25 = vmul.f32 %v11350_v2, %v2788_v53 }
 0x304   : > { %v11465_v61 = vsel %vm2854_vm11, %v2760_v63, %v2880_v27  ;;  %v11467_v56 = vsel %vm2855_vm12, %v2788_v53, %v2881_v25 }
 0x305   : > { %v3390_v45 = vpack.c.bf16 %v11467_v56, %v11465_v61  ;;  %3526 = vrot.lane.b32.xlu2 %v11404_v35, %s10079_s23 }
 0x306   : > { %3642 = vrot.lane.b32.xlu1 %v11404_v35, %s10080_s26 }
 0x307   : > { %3424 = vrot.lane.b32.xlu0 %v11421_v41, %s10082_s1  ;;  %3398 = vst [vmem:[#allocation2 + $0x110] sm:$0xff] %v3390_v45  ;;  %v2761_v23 = vpop.f32.mrf.mxu1  ;;  %v2789_v31 = vpop.f32.mrf.mxu0 }
 0x308   : > { %4628 = vst [vmem:[#allocation3 + $0x90] sm:$0xff] %v3390_v45  ;;  %v2762_v52 = vadd.f32 %v2761_v23, %v2748_v17  ;;  %v2790_v5 = vadd.f32 %v2789_v31, %v2776_v43  ;;  %v11479_v24 = vpop.permute.xlu2 %2930  ;;  %v3705_v45 = vperm.slane %v11574_v1, 1 }
 0x30a   : > { %vm2862_vm13 = vcmp.ge.f32.partialorder %v2762_v52, 0.0  ;;  %v2888_v42 = vmul.f32 %v11371_v60, %v2762_v52  ;;  %vm2863_vm14 = vcmp.ge.f32.partialorder %v2790_v5, 0.0  ;;  %v2889_v57 = vmul.f32 %v11371_v60, %v2790_v5 }
 0x30c   : > { %v11483_v38 = vsel %vm2862_vm13, %v2762_v52, %v2888_v42  ;;  %v11485_v4 = vsel %vm2863_vm14, %v2790_v5, %v2889_v57  ;;  %v11597_v57 = vld [vmem:[%s10104_s9 + $0x30] sm:$0xff] }
 0x30d   : > { %v3394_v18 = vpack.c.bf16 %v11485_v4, %v11483_v38  ;;  %3644 = vrot.lane.b32.xlu2 %v11465_v61, %s10080_s26 }
 0x30e   : > { %3412 = vrot.lane.b32.xlu1 %v11465_v61, %s10082_s1 }
 0x30f   : > { %3410 = vrot.lane.b32.xlu0 %v11404_v35, %s10082_s1  ;;  %3402 = vst [vmem:[#allocation2 + $0x130] sm:$0xff] %v3394_v18 }
 0x310   : > { %4632 = vst [vmem:[#allocation3 + $0xb0] sm:$0xff] %v3394_v18  ;;  %v11495_v54 = vpop.permute.xlu2 %3638 }
 0x315   : > { %3426 = vrot.lane.b32.xlu2 %v11419_v49, %s10082_s1 }
 0x316   : > { %3542 = vrot.lane.b32.xlu1 %v11419_v49, %s10079_s23 }
 0x317   : > { %3528 = vrot.lane.b32.xlu0 %v11465_v61, %s10079_s23 }
 0x318   : > { %v11503_v11 = vpop.permute.xlu2 %3522 }
 0x31d   : > { %3544 = vrot.lane.b32.xlu2 %v11483_v38, %s10079_s23 }
 0x31e   : > { %3660 = vrot.lane.b32.xlu1 %v11483_v38, %s10080_s26 }
 0x31f   : > { %v2801_v30 = vpop.f32.mrf.mxu1  ;;  %v2829_v36 = vpop.f32.mrf.mxu0  ;;  %3658 = vrot.lane.b32.xlu0 %v11419_v49, %s10080_s26 }
 0x320   : > { %v2802_v50 = vadd.f32 %v2801_v30, %v11347_v13  ;;  %v2815_v39 = vpop.f32.mrf.mxu3  ;;  %v2830_v15 = vadd.f32 %v2829_v36, %v11347_v13  ;;  %v2843_v14 = vpop.f32.mrf.mxu2  ;;  %v3588_v30 = vperm.slane %v11597_v57, 0 }
 0x321   : > { %v11513_v33 = vpop.permute.xlu0 %3278  ;;  %v11515_v9 = vpop.permute.xlu1 %3636 }
 0x322   : > { %v2816_v46 = vadd.f32 %v2815_v39, %v2802_v50  ;;  %v2844_v32 = vadd.f32 %v2843_v14, %v2830_v15  ;;  %v11517_v6 = vpop.permute.xlu2 %3406  ;;  %v3668_v17 = vsel %vm1962_vm2, %v11515_v9, %v11495_v54 }
 0x323   : > { %v3720_v5 = vmul.f32 %v3704_v21, %v3668_v17 }
 0x324   : > { %vm2856_vm15 = vcmp.ge.f32.partialorder %v2816_v46, 0.0  ;;  %v2882_v0 = vmul.f32 %v11350_v2, %v2816_v46  ;;  %vm2857_vm1 = vcmp.ge.f32.partialorder %v2844_v32, 0.0  ;;  %v2883_v12 = vmul.f32 %v11350_v2, %v2844_v32 }
 0x325   : > { %3752 = vrot.lane.b32.xlu2 %v11354_v3, %s10085_s10 }
 0x326   : > { %v11521_v62 = vsel %vm2856_vm15, %v2816_v46, %v2882_v0  ;;  %v11523_v13 = vsel %vm2857_vm1, %v2844_v32, %v2883_v12  ;;  %3646 = vrot.lane.b32.xlu1 %v11467_v56, %s10080_s26  ;;  %v11618_v32 = vld [vmem:[%s10104_s9 + $0x28] sm:$0xff] }
 0x327   : > { %v2803_v37 = vpop.f32.mrf.mxu1  ;;  %v3391_v10 = vpack.c.bf16 %v11523_v13, %v11521_v62  ;;  %v2831_v7 = vpop.f32.mrf.mxu0  ;;  %3428 = vrot.lane.b32.xlu0 %v11483_v38, %s10082_s1  ;;  %v3472_v12 = vperm.slane %v11618_v32, 0 }
 0x328   : > { %v2804_v20 = vadd.f32 %v2803_v37, %v11356_v47  ;;  %v2817_v16 = vpop.f32.mrf.mxu3  ;;  %v2832_v2 = vadd.f32 %v2831_v7, %v11356_v47  ;;  %v2845_v28 = vpop.f32.mrf.mxu2  ;;  %v3473_v37 = vperm.slane %v11618_v32, 1 }
 0x329   : > { %3399 = vst [vmem:[#allocation2 + $0x118] sm:$0xff] %v3391_v10  ;;  %v11535_v26 = vpop.permute.xlu0 %3162  ;;  %v11537_v59 = vpop.permute.xlu1 %3520 }
 0x32a   : > { %v2818_v19 = vadd.f32 %v2817_v16, %v2804_v20  ;;  %4629 = vst [vmem:[#allocation3 + $0x98] sm:$0xff] %v3391_v10  ;;  %v2846_v58 = vadd.f32 %v2845_v28, %v2832_v2  ;;  %v11539_v44 = vpop.permute.xlu2 %3048  ;;  %v3552_v50 = vsel %vm1844_vm3, %v11537_v59, %v11503_v11 }
 0x32b   : > { %v3604_v14 = vmul.f32 %v3588_v30, %v3552_v50 }
 0x32c   : > { %vm2864_vm10 = vcmp.ge.f32.partialorder %v2818_v19, 0.0  ;;  %v2890_v55 = vmul.f32 %v11371_v60, %v2818_v19  ;;  %vm2865_vm11 = vcmp.ge.f32.partialorder %v2846_v58, 0.0  ;;  %v2891_v3 = vmul.f32 %v11371_v60, %v2846_v58 }
 0x32d   : > { %3648 = vrot.lane.b32.xlu2 %v11521_v62, %s10080_s26 }
 0x32e   : > { %v11543_v47 = vsel %vm2864_vm10, %v2818_v19, %v2890_v55  ;;  %v11545_v34 = vsel %vm2865_vm11, %v2846_v58, %v2891_v3 }
 0x32f   : > { %v3395_v51 = vpack.c.bf16 %v11545_v34, %v11543_v47  ;;  %3662 = vrot.lane.b32.xlu0 %v11485_v4, %s10080_s26  ;;  %3664 = vrot.lane.b32.xlu1 %v11543_v47, %s10080_s26 }
 0x331   : > { %3403 = vst [vmem:[#allocation2 + $0x138] sm:$0xff] %v3395_v51  ;;  %v11555_v48 = vpop.permute.xlu0 %2932  ;;  %v11557_v60 = vpop.permute.xlu1 %3404 }
 0x332   : > { %4633 = vst [vmem:[#allocation3 + $0xb8] sm:$0xff] %v3395_v51  ;;  %v11559_v63 = vpop.permute.xlu2 %3292 }
 0x333   : > { %13999 = vst [vmem:[#allocation40_spill] sm:$0xff] %v11557_v60 }
 0x335   : > { %3040 = vrot.lane.b32.xlu2 %v11523_v13, %s10084_s7 }
 0x337   : > { %2910 = vrot.lane.b32.xlu0 %v11523_v13, %s10083_s2  ;;  %3272 = vrot.lane.b32.xlu1 %v11523_v13, %s10078_s22 }
 0x339   : > { %v11567_v53 = vpop.permute.xlu0 %3060  ;;  %v11569_v27 = vpop.permute.xlu1 %3046 }
 0x33a   : > { %v11571_v25 = vpop.permute.xlu2 %3176 }
 0x33d   : > { %3274 = vrot.lane.b32.xlu2 %v11545_v34, %s10078_s22 }
 0x33f   : > { %3042 = vrot.lane.b32.xlu0 %v11545_v34, %s10084_s7  ;;  %3156 = vrot.lane.b32.xlu1 %v11523_v13, %s10081_s28 }
 0x341   : > { %v11587_v43 = vpop.permute.xlu0 %3640  ;;  %v11592_v31 = vpop.permute.xlu1 %3280 }
 0x342   : > { %v3669_v23 = vsel %vm1962_vm2, %v11495_v54, %v11587_v43  ;;  %v3655_v52 = vpop.permute.xlu2 %3654  ;;  %v3589_v54 = vperm.slane %v11597_v57, 1 }
 0x343   : > { %v3721_v42 = vmul.f32 %v3705_v45, %v3669_v23 }
 0x345   : > { %v3736_v18 = vpack.c.bf16 %v3721_v42, %v3720_v5  ;;  %3158 = vrot.lane.b32.xlu2 %v11545_v34, %s10081_s28 }
 0x347   : > { %3744 = vst [vmem:[#allocation2 + $0x1c0] sm:$0xff] %v3736_v18  ;;  %3754 = vrot.lane.b32.xlu0 %v11366_v8, %s10085_s10  ;;  %2912 = vrot.lane.b32.xlu1 %v11545_v34, %s10083_s2 }
 0x349   : > { %v11610_v36 = vpop.permute.xlu0 %3524  ;;  %v11615_v15 = vpop.permute.xlu1 %3164 }
 0x34a   : > { %v3553_v39 = vsel %vm1844_vm3, %v11503_v11, %v11610_v36  ;;  %v3539_v8 = vpop.permute.xlu2 %3538  ;;  %v3436_v11 = vsel %vm1726_vm4, %v11557_v60, %v11517_v6 }
 0x34b   : > { %v3605_v46 = vmul.f32 %v3589_v54, %v3553_v39 }
 0x34d   : > { %v3620_v0 = vpack.c.bf16 %v3605_v46, %v3604_v14  ;;  %3768 = vrot.lane.b32.xlu2 %v11381_v22, %s10085_s10  ;;  %v3488_v22 = vmul.f32 %v3472_v12, %v3436_v11 }
 0x34f   : > { %3628 = vst [vmem:[#allocation2 + $0x180] sm:$0xff] %v3620_v0  ;;  %3770 = vrot.lane.b32.xlu0 %v11383_v40, %s10085_s10  ;;  %3756 = vrot.lane.b32.xlu1 %v11406_v29, %s10085_s10 }
 0x351   : > { %v11631_v10 = vpop.permute.xlu0 %3408  ;;  %v11636_v7 = vpop.permute.xlu1 %3652 }
 0x352   : > { %v3437_v20 = vsel %vm1726_vm4, %v11517_v6, %v11631_v10  ;;  %v3423_v40 = vpop.permute.xlu2 %3422  ;;  %v3675_v51 = vsel %vm1962_vm2, %v11636_v7, %v3655_v52 }
 0x353   : > { %v3489_v16 = vmul.f32 %v3473_v37, %v3437_v20  ;;  %v3728_v18 = vmul.f32 %v3704_v21, %v3675_v51 }
 0x355   : > { %v3504_v2 = vpack.c.bf16 %v3489_v16, %v3488_v22  ;;  %3282 = vrot.lane.b32.xlu2 %v11406_v29, %s10078_s22  ;;  %v9223_v22 = vld [vmem:[#allocation2 + $0x1c0] sm:$0xf] }
 0x357   : > { %3512 = vst [vmem:[#allocation2 + $0x140] sm:$0xff] %v3504_v2  ;;  %3284 = vrot.lane.b32.xlu0 %v11404_v35, %s10078_s22  ;;  %3772 = vrot.lane.b32.xlu1 %v11421_v41, %s10085_s10  ;;  %v9838_v2 = vld [vmem:[#allocation2 + $0x1c4] sm:$0xf] }
 0x359   : > { %v11648_v6 = vpop.permute.xlu0 %3294  ;;  %v11650_v28 = vpop.permute.xlu1 %3536 }
 0x35a   : > { %14000 = vst [vmem:[#allocation32_spill] sm:$0xff] %v11650_v28  ;;  %v11652_v19 = vpop.permute.xlu2 %2946  ;;  %v3559_v14 = vsel %vm1844_vm3, %v11650_v28, %v3539_v8  ;;  %v11771_v28 = vld [vmem:[%s10104_s9 + $0x8] sm:$0xff] }
 0x35b   : > { %v3612_v0 = vmul.f32 %v3588_v30, %v3559_v14  ;;  %v13921_v30 = vperm.slane %v11574_v1, 2 }
 0x35d   : > { %3298 = vrot.lane.b32.xlu2 %v11419_v49, %s10078_s22 }
 0x35f   : > { %3530 = vrot.lane.b32.xlu0 %v11467_v56, %s10079_s23  ;;  %3296 = vrot.lane.b32.xlu1 %v11421_v41, %s10078_s22 }
 0x361   : > { %v11660_v58 = vpop.permute.xlu0 %3178  ;;  %v11662_v55 = vpop.permute.xlu1 %3420 }
 0x362   : > { %14001 = vst [vmem:[#allocation33_spill] sm:$0xff] %v11662_v55  ;;  %v11664_v3 = vpop.permute.xlu2 %3526 }
 0x365   : > { %3546 = vrot.lane.b32.xlu2 %v11485_v4, %s10079_s23 }
 0x367   : > { %3548 = vrot.lane.b32.xlu0 %v11543_v47, %s10079_s23  ;;  %3532 = vrot.lane.b32.xlu1 %v11521_v62, %s10079_s23 }
 0x369   : > { %v11674_v17 = vpop.permute.xlu0 %3656  ;;  %v11678_v5 = vpop.permute.xlu1 %2944 }
 0x36a   : > { %v3676_v23 = vsel %vm1962_vm2, %v3655_v52, %v11674_v17  ;;  %v11680_v42 = vpop.permute.xlu2 %3644 }
 0x36b   : > { %v3729_v50 = vmul.f32 %v3705_v45, %v3676_v23 }
 0x36d   : > { %v3740_v39 = vpack.c.bf16 %v3729_v50, %v3728_v18  ;;  %3168 = vrot.lane.b32.xlu2 %v11404_v35, %s10081_s28  ;;  %v3443_v18 = vsel %vm1726_vm4, %v11662_v55, %v3423_v40 }
 0x36f   : > { %3748 = vst [vmem:[#allocation2 + $0x1e0] sm:$0xff] %v3740_v39  ;;  %3180 = vrot.lane.b32.xlu0 %v11421_v41, %s10081_s28  ;;  %3166 = vrot.lane.b32.xlu1 %v11406_v29, %s10081_s28 }
 0x371   : > { %v11692_v52 = vpop.permute.xlu0 %3540  ;;  %v11696_v45 = vpop.permute.xlu1 %3062 }
 0x372   : > { %v3560_v21 = vsel %vm1844_vm3, %v3539_v8, %v11692_v52  ;;  %v11698_v46 = vpop.permute.xlu2 %3426 }
 0x373   : > { %v3613_v11 = vmul.f32 %v3589_v54, %v3560_v21  ;;  %v13920_v54 = vperm.slane %v11574_v1, 3 }
 0x375   : > { %v3624_v20 = vpack.c.bf16 %v3613_v11, %v3612_v0  ;;  %3414 = vrot.lane.b32.xlu2 %v11467_v56, %s10082_s1  ;;  %v3496_v0 = vmul.f32 %v3472_v12, %v3443_v18  ;;  %v9830_v12 = vld [vmem:[#allocation2 + $0x184] sm:$0xf] }
 0x376   : > { %v9842_v16 = vld [vmem:[#allocation2 + $0x1dc] sm:$0xf0]  ;;  %v9225_v51 = vld [vmem:[#allocation2 + $0x1e0] sm:$0xf0] }
 0x377   : > { %3632 = vst [vmem:[#allocation2 + $0x1a0] sm:$0xff] %v3624_v20  ;;  %3416 = vrot.lane.b32.xlu0 %v11521_v62, %s10082_s1  ;;  %v9224_v23 = vor.u32 %v9842_v16, %v9223_v22  ;;  %v9228_v8 = vor.u32 %v9838_v2, %v9225_v51  ;;  %3182 = vrot.lane.b32.xlu1 %v11419_v49, %s10081_s28  ;;  %v9191_v51 = vld [vmem:[#allocation2 + $0x180] sm:$0xf] }
 0x379   : > { %v11710_v50 = vpop.permute.xlu0 %3424  ;;  %4326 = vmatpush.bf16.msra.mxu3 %v9224_v23  ;;  %4354 = vmatpush.bf16.msra.mxu2 %v9228_v8  ;;  %v3643_v14 = vpop.permute.xlu1 %3642 }
 0x37a   : > { %v3444_v39 = vsel %vm1726_vm4, %v3423_v40, %v11710_v50  ;;  %v11714_v21 = vpop.permute.xlu2 %3544  ;;  %v3670_v20 = vsel %vm1962_vm2, %v11587_v43, %v3643_v14  ;;  %v3671_v22 = vsel %vm1962_vm2, %v3643_v14, %v11680_v42  ;;  %v13918_v14 = vperm.slane %v11618_v32, 2 }
 0x37b   : > { %v3497_v11 = vmul.f32 %v3473_v37, %v3444_v39  ;;  %v3722_v16 = vmul.f32 %v13921_v30, %v3670_v20  ;;  %v3723_v40 = vmul.f32 %v13920_v54, %v3671_v22  ;;  %v13919_v39 = vperm.slane %v11618_v32, 3 }
 0x37d   : > { %v3508_v2 = vpack.c.bf16 %v3497_v11, %v3496_v0  ;;  %v3737_v23 = vpack.c.bf16 %v3723_v40, %v3722_v16  ;;  %3432 = vrot.lane.b32.xlu2 %v11543_v47, %s10082_s1 }
 0x37e   : > { %v9834_v8 = vld [vmem:[#allocation2 + $0x19c] sm:$0xf0]  ;;  %v9193_v18 = vld [vmem:[#allocation2 + $0x1a0] sm:$0xf0] }
 0x37f   : > { %3516 = vst [vmem:[#allocation2 + $0x160] sm:$0xff] %v3508_v2  ;;  %3050 = vrot.lane.b32.xlu0 %v11406_v29, %s10084_s7  ;;  %v9192_v43 = vor.u32 %v9834_v8, %v9191_v51  ;;  %v9196_v37 = vor.u32 %v9830_v12, %v9193_v18  ;;  %3430 = vrot.lane.b32.xlu1 %v11485_v4, %s10082_s1  ;;  %v9159_v51 = vld [vmem:[#allocation2 + $0x140] sm:$0xf]  ;;  %v9822_v12 = vld [vmem:[#allocation2 + $0x144] sm:$0xf] }
 0x380   : > { %3745 = vst [vmem:[#allocation2 + $0x1c8] sm:$0xff] %v3737_v23 }
 0x381   : > { %v3411_v0 = vpop.permute.xlu0 %3410  ;;  %4327 = vmatpush.bf16.msra.mxu3 %v9192_v43  ;;  %4355 = vmatpush.bf16.msra.mxu2 %v9196_v37  ;;  %v11738_v20 = vpop.permute.xlu1 %3412  ;;  %v3591_v43 = vperm.slane %v11597_v57, 3 }
 0x382   : > { %v3438_v11 = vsel %vm1726_vm4, %v11631_v10, %v3411_v0  ;;  %v11740_v22 = vpop.permute.xlu2 %3752  ;;  %v3439_v40 = vsel %vm1726_vm4, %v3411_v0, %v11738_v20  ;;  %v3590_v10 = vperm.slane %v11597_v57, 2 }
 0x383   : > { %v3490_v16 = vmul.f32 %v13918_v14, %v3438_v11  ;;  %v3491_v2 = vmul.f32 %v13919_v39, %v3439_v40  ;;  %v9818_v11 = vld [vmem:[#allocation2 + $0x11c] sm:$0xf0]  ;;  %v9129_v14 = vld [vmem:[#allocation2 + $0x120] sm:$0xf0] }
 0x384   : > { %v9814_v39 = vld [vmem:[#allocation2 + $0x104] sm:$0xf] }
 0x385   : > { %v3505_v23 = vpack.c.bf16 %v3491_v2, %v3490_v16  ;;  %3064 = vrot.lane.b32.xlu2 %v11421_v41, %s10084_s7  ;;  %v3554_v16 = vsel %vm1844_vm3, %v11610_v36, %v11664_v3  ;;  %v9127_v2 = vld [vmem:[#allocation2 + $0x100] sm:$0xf]  ;;  %v9132_v36 = vor.u32 %v9814_v39, %v9129_v14 }
 0x386   : > { %v9826_v8 = vld [vmem:[#allocation2 + $0x15c] sm:$0xf0]  ;;  %v9161_v18 = vld [vmem:[#allocation2 + $0x160] sm:$0xf0] }
 0x387   : > { %3066 = vrot.lane.b32.xlu0 %v11419_v49, %s10084_s7  ;;  %v9160_v37 = vor.u32 %v9826_v8, %v9159_v51  ;;  %v9164_v0 = vor.u32 %v9822_v12, %v9161_v18  ;;  %3513 = vst [vmem:[#allocation2 + $0x148] sm:$0xff] %v3505_v23  ;;  %3052 = vrot.lane.b32.xlu1 %v11404_v35, %s10084_s7 }
 0x388   : > { %v9128_v18 = vor.u32 %v9818_v11, %v9127_v2  ;;  %v3606_v23 = vmul.f32 %v3590_v10, %v3554_v16 }
 0x389   : > { %v11759_v40 = vpop.permute.xlu0 %3528  ;;  %4328 = vmatpush.bf16.msra.mxu3 %v9160_v37  ;;  %4356 = vmatpush.bf16.msra.mxu2 %v9164_v0  ;;  %v3543_v8 = vpop.permute.xlu1 %3542 }
 0x38a   : > { %v3555_v51 = vsel %vm1844_vm3, %v11664_v3, %v11759_v40  ;;  %v11764_v12 = vpop.permute.xlu2 %3648  ;;  %v3561_v30 = vsel %vm1844_vm3, %v11692_v52, %v3543_v8  ;;  %v3562_v37 = vsel %vm1844_vm3, %v3543_v8, %v11714_v21  ;;  %v3109_v52 = vperm.slane %v11771_v28, 1 }
 0x38b   : > { %v3607_v54 = vmul.f32 %v3591_v43, %v3555_v51  ;;  %v3614_v0 = vmul.f32 %v3590_v10, %v3561_v30  ;;  %v3615_v55 = vmul.f32 %v3591_v43, %v3562_v37  ;;  %v13925_v30 = vperm.slane %v11771_v28, 0 }
 0x38c   : > { %v14003_v10 = vperm.slane %v11574_v1, 2  ;;  %v14004_v51 = vperm.slane %v11574_v1, 3  ;;  %v3445_v37 = vsel %vm1726_vm4, %v11710_v50, %v11698_v46  ;;  %v3313_v50 = vsel %vm1594_vm5, %v11559_v63, %v11648_v6 }
 0x38d   : > { %v3621_v60 = vpack.c.bf16 %v3607_v54, %v3606_v23  ;;  %4329 = vmatpush.bf16.msra.mxu3 %v9128_v18  ;;  %4357 = vmatpush.bf16.msra.mxu2 %v9132_v36  ;;  %v3625_v3 = vpack.c.bf16 %v3615_v55, %v3614_v0  ;;  %v3074_v55 = vsel %vm1358_vm6, %v11569_v27, %v11539_v44  ;;  %v11801_v23 = vld [vmem:[%s10104_s9 + $0x18] sm:$0xff]  ;;  %v3709_v0 = vperm.slane %v11574_v1, 5 }
 0x38e   : > { %3760 = vrot.lane.b32.xlu2 %v11465_v61, %s10085_s10  ;;  %v3125_v2 = vmul.f32 %v3109_v52, %v3074_v55 }
 0x38f   : > { %3629 = vst [vmem:[#allocation2 + $0x188] sm:$0xff] %v3621_v60  ;;  %3774 = vrot.lane.b32.xlu0 %v11419_v49, %s10085_s10  ;;  %3758 = vrot.lane.b32.xlu1 %v11404_v35, %s10085_s10 }
 0x390   : > { %3633 = vst [vmem:[#allocation2 + $0x1a8] sm:$0xff] %v3625_v3  ;;  %v3340_v3 = vperm.slane %v11801_v23, 0 }
 0x391   : > { %v3659_v60 = vpop.permute.xlu0 %3658  ;;  %v3661_v39 = vpop.permute.xlu1 %3660 }
 0x392   : > { %v3677_v54 = vsel %vm1962_vm2, %v11674_v17, %v3659_v60  ;;  %v11786_v14 = vpop.permute.xlu2 %3040  ;;  %v3678_v11 = vsel %vm1962_vm2, %v3659_v60, %v3661_v39 }
 0x393   : > { %14002 = vst [vmem:[#allocation31_spill] sm:$0xff] %v11786_v14  ;;  %v3730_v43 = vmul.f32 %v14003_v10, %v3677_v54  ;;  %v3104_v16 = vsel %vm1358_vm6, %v11786_v14, %v11569_v27  ;;  %v3731_v8 = vmul.f32 %v14004_v51, %v3678_v11  ;;  %v3708_v27 = vperm.slane %v11574_v1, 4 }
 0x394   : > { %v3124_v17 = vmul.f32 %v13925_v30, %v3104_v16  ;;  %v11838_v30 = vld [vmem:[%s10104_s9 + $0x10] sm:$0xff] }
 0x395   : > { %v3741_v18 = vpack.c.bf16 %v3731_v8, %v3730_v43  ;;  %v14006_v43 = vperm.slane %v11618_v32, 3 }
 0x396   : > { %v3140_v36 = vpack.c.bf16 %v3125_v2, %v3124_v17  ;;  %2934 = vrot.lane.b32.xlu2 %v11406_v29, %s10083_s2  ;;  %v14005_v29 = vperm.slane %v11618_v32, 2 }
 0x397   : > { %2936 = vrot.lane.b32.xlu0 %v11404_v35, %s10083_s2  ;;  %3749 = vst [vmem:[#allocation2 + $0x1e8] sm:$0xff] %v3741_v18  ;;  %3776 = vrot.lane.b32.xlu1 %v11483_v38, %s10085_s10  ;;  %v3341_v35 = vperm.slane %v11801_v23, 1 }
 0x398   : > { %3148 = vst [vmem:[#allocation2 + $0x40] sm:$0xff] %v3140_v36  ;;  %v3498_v60 = vmul.f32 %v14005_v29, %v3445_v37 }
 0x399   : > { %v11818_v55 = vpop.permute.xlu0 %3428  ;;  %v3647_v1 = vpop.permute.xlu1 %3646  ;;  %v3365_v8 = vmul.f32 %v3341_v35, %v3313_v50 }
 0x39a   : > { %v3446_v54 = vsel %vm1726_vm4, %v11698_v46, %v11818_v55  ;;  %v11826_v10 = vpop.permute.xlu2 %3274  ;;  %v3672_v16 = vsel %vm1962_vm2, %v11680_v42, %v3647_v1  ;;  %v3673_v2 = vsel %vm1962_vm2, %v3647_v1, %v11764_v12  ;;  %v3197_v42 = vsel %vm1476_vm7, %v11571_v25, %v11660_v58 }
 0x39b   : > { %v3499_v11 = vmul.f32 %v14006_v43, %v3446_v54  ;;  %v3337_v51 = vsel %vm1594_vm5, %v11826_v10, %v11559_v63  ;;  %v3724_v17 = vmul.f32 %v3708_v27, %v3672_v16  ;;  %v3725_v18 = vmul.f32 %v3709_v0, %v3673_v2  ;;  %v11862_v16 = vld [vmem:[%s10104_s9] sm:$0xff] }
 0x39c   : > { %v3364_v46 = vmul.f32 %v3340_v3, %v3337_v51  ;;  %v3224_v63 = vperm.slane %v11838_v30, 0 }
 0x39d   : > { %v3509_v36 = vpack.c.bf16 %v3499_v11, %v3498_v60  ;;  %v3738_v37 = vpack.c.bf16 %v3725_v18, %v3724_v17  ;;  %v3225_v60 = vperm.slane %v11838_v30, 1 }
 0x39e   : > { %v3376_v29 = vpack.c.bf16 %v3365_v8, %v3364_v46  ;;  %2950 = vrot.lane.b32.xlu2 %v11419_v49, %s10083_s2 }
 0x39f   : > { %3517 = vst [vmem:[#allocation2 + $0x168] sm:$0xff] %v3509_v36  ;;  %3286 = vrot.lane.b32.xlu0 %v11465_v61, %s10078_s22  ;;  %2948 = vrot.lane.b32.xlu1 %v11421_v41, %s10083_s2  ;;  %v3249_v2 = vmul.f32 %v3225_v60, %v3197_v42 }
 0x3a0   : > { %3746 = vst [vmem:[#allocation2 + $0x1d0] sm:$0xff] %v3738_v37 }
 0x3a1   : > { %3384 = vst [vmem:[#allocation2 + $0xe0] sm:$0xff] %v3376_v29  ;;  %v3663_v50 = vpop.permute.xlu0 %3662  ;;  %v11852_v1 = vpop.permute.xlu1 %3664 }
 0x3a2   : > { %v3679_v54 = vsel %vm1962_vm2, %v3661_v39, %v3663_v50  ;;  %v11854_v43 = vpop.permute.xlu2 %3158  ;;  %v3680_v41 = vsel %vm1962_vm2, %v3663_v50, %v11852_v1  ;;  %v2993_v39 = vperm.slane %v11862_v16, 1 }
 0x3a3   : > { %v3732_v49 = vmul.f32 %v3708_v27, %v3679_v54  ;;  %v3221_v11 = vsel %vm1476_vm7, %v11854_v43, %v11571_v25  ;;  %v3733_v51 = vmul.f32 %v3709_v0, %v3680_v41  ;;  %v2992_v27 = vperm.slane %v11862_v16, 0 }
 0x3a4   : > { %v3248_v8 = vmul.f32 %v3224_v63, %v3221_v11  ;;  %v2958_v25 = vsel %vm1241_vm8, %v11479_v24, %v11555_v48  ;;  %v3306_v0 = vsel %vm1594_vm5, %v11513_v33, %v11592_v31 }
 0x3a5   : > { %v3742_v17 = vpack.c.bf16 %v3733_v51, %v3732_v49  ;;  %v3009_v42 = vmul.f32 %v2993_v39, %v2958_v25  ;;  %v3357_v49 = vmul.f32 %v3341_v35, %v3306_v0 }
 0x3a6   : > { %v3260_v18 = vpack.c.bf16 %v3249_v2, %v3248_v8  ;;  %3300 = vrot.lane.b32.xlu2 %v11483_v38, %s10078_s22 }
 0x3a7   : > { %3302 = vrot.lane.b32.xlu0 %v11485_v4, %s10078_s22  ;;  %3750 = vst [vmem:[#allocation2 + $0x1f0] sm:$0xff] %v3742_v17  ;;  %3288 = vrot.lane.b32.xlu1 %v11467_v56, %s10078_s22 }
 0x3a8   : > { %3268 = vst [vmem:[#allocation2 + $0xa0] sm:$0xff] %v3260_v18  ;;  %v14011_v18 = vperm.slane %v11771_v28, 0 }
 0x3a9   : > { %v11878_v46 = vpop.permute.xlu0 %2910  ;;  %v11883_v37 = vpop.permute.xlu1 %3272 }
 0x3aa   : > { %14007 = vst [vmem:[#allocation38_spill] sm:$0xff] %v11878_v46  ;;  %v2988_v36 = vsel %vm1241_vm8, %v11878_v46, %v11479_v24  ;;  %v11885_v29 = vpop.permute.xlu2 %3768  ;;  %v3336_v54 = vsel %vm1594_vm5, %v11883_v37, %v11513_v33  ;;  %v3081_v24 = vsel %vm1358_vm6, %v11567_v53, %v11696_v45  ;;  %v3190_v33 = vsel %vm1476_vm7, %v11535_v26, %v11615_v15 }
 0x3ab   : > { %14008 = vst [vmem:[#allocation34_spill] sm:$0xff] %v11885_v29  ;;  %v3008_v50 = vmul.f32 %v2992_v27, %v2988_v36  ;;  %v3356_v41 = vmul.f32 %v3340_v3, %v3336_v54  ;;  %v3133_v17 = vmul.f32 %v3109_v52, %v3081_v24  ;;  %v3241_v36 = vmul.f32 %v3225_v60, %v3190_v33 }
 0x3ac   : > { %v2965_v60 = vsel %vm1241_vm8, %v11678_v5, %v11652_v19  ;;  %v3343_v46 = vperm.slane %v11801_v23, 3 }
 0x3ad   : > { %v3024_v11 = vpack.c.bf16 %v3009_v42, %v3008_v50  ;;  %v3372_v2 = vpack.c.bf16 %v3357_v49, %v3356_v41  ;;  %v9810_v49 = vld [vmem:[#allocation2 + $0xdc] sm:$0xf0] }
 0x3ae   : > { %3172 = vrot.lane.b32.xlu2 %v11467_v56, %s10081_s28 }
 0x3af   : > { %3032 = vst [vmem:[#allocation2] sm:$0xff] %v3024_v11  ;;  %3184 = vrot.lane.b32.xlu0 %v11483_v38, %s10081_s28  ;;  %3170 = vrot.lane.b32.xlu1 %v11465_v61, %s10081_s28 }
 0x3b0   : > { %3380 = vst [vmem:[#allocation2 + $0xc0] sm:$0xff] %v3372_v2 }
 0x3b1   : > { %v11902_v3 = vpop.permute.xlu0 %3042  ;;  %v11907_v51 = vpop.permute.xlu1 %3156 }
 0x3b2   : > { %14009 = vst [vmem:[#allocation37_spill] sm:$0xff] %v11902_v3  ;;  %v3105_v35 = vsel %vm1358_vm6, %v11902_v3, %v11567_v53  ;;  %v11909_v8 = vpop.permute.xlu2 %3282  ;;  %v3220_v0 = vsel %vm1476_vm7, %v11907_v51, %v11535_v26  ;;  %v9097_v53 = vld [vmem:[#allocation2 + $0xe0] sm:$0xf0] }
 0x3b3   : > { %14010 = vst [vmem:[#allocation35_spill] sm:$0xff] %v11907_v51  ;;  %v3132_v25 = vmul.f32 %v14011_v18, %v3105_v35  ;;  %v3240_v42 = vmul.f32 %v3224_v63, %v3220_v0  ;;  %v3017_v35 = vmul.f32 %v2993_v39, %v2965_v60  ;;  %v11935_v18 = vld [vmem:[%s10104_s9 + $0x40] sm:$0xff] }
 0x3b4   : > { %v9802_v0 = vld [vmem:[#allocation2 + $0x9c] sm:$0xf0] }
 0x3b5   : > { %v3144_v50 = vpack.c.bf16 %v3133_v17, %v3132_v25  ;;  %v3256_v54 = vpack.c.bf16 %v3241_v36, %v3240_v42 }
 0x3b6   : > { %3650 = vrot.lane.b32.xlu2 %v11523_v13, %s10080_s26  ;;  %v8999_v3 = vld [vmem:[#allocation2] sm:$0xf] }
 0x3b7   : > { %3152 = vst [vmem:[#allocation2 + $0x60] sm:$0xff] %v3144_v50  ;;  %3666 = vrot.lane.b32.xlu0 %v11545_v34, %s10080_s26  ;;  %v9095_v52 = vld [vmem:[#allocation2 + $0xc0] sm:$0xf]  ;;  %v9806_v41 = vld [vmem:[#allocation2 + $0xc4] sm:$0xf]  ;;  %3186 = vrot.lane.b32.xlu1 %v11485_v4, %s10081_s28 }
 0x3b8   : > { %3264 = vst [vmem:[#allocation2 + $0x80] sm:$0xff] %v3256_v54  ;;  %v9096_v26 = vor.u32 %v9810_v49, %v9095_v52  ;;  %v9100_v63 = vor.u32 %v9806_v41, %v9097_v53  ;;  %v9065_v50 = vld [vmem:[#allocation2 + $0xa0] sm:$0xf0]  ;;  %v3820_v54 = vperm.slane %v11935_v18, 0 }
 0x3b9   : > { %v3755_v11 = vpop.permute.xlu0 %3754  ;;  %v11927_v2 = vpop.permute.xlu1 %2912 }
 0x3ba   : > { %v11929_v24 = vpop.permute.xlu2 %3298  ;;  %4330 = vmatpush.bf16.msra.mxu3 %v9096_v26  ;;  %4358 = vmatpush.bf16.msra.mxu2 %v9100_v63  ;;  %v2989_v33 = vsel %vm1241_vm8, %v11927_v2, %v11678_v5  ;;  %v3821_v5 = vperm.slane %v11935_v18, 1  ;;  %v3784_v49 = vsel %vm2080_vm9, %v11740_v22, %v3755_v11 }
 0x3bb   : > { %v3016_v17 = vmul.f32 %v2992_v27, %v2989_v33  ;;  %v9031_v33 = vld [vmem:[#allocation2 + $0x40] sm:$0xf] }
 0x3bd   : > { %v3028_v25 = vpack.c.bf16 %v3017_v35, %v3016_v17  ;;  %v9790_v35 = vld [vmem:[#allocation2 + $0x44] sm:$0xf]  ;;  %v3836_v17 = vmul.f32 %v3820_v54, %v3784_v49  ;;  %v3307_v49 = vsel %vm1594_vm5, %v11592_v31, %v11909_v8 }
 0x3be   : > { %3056 = vrot.lane.b32.xlu2 %v11467_v56, %s10084_s7  ;;  %v9794_v52 = vld [vmem:[#allocation2 + $0x5c] sm:$0xf0]  ;;  %v9033_v41 = vld [vmem:[#allocation2 + $0x60] sm:$0xf0] }
 0x3bf   : > { %3068 = vrot.lane.b32.xlu0 %v11483_v38, %s10084_s7  ;;  %v9063_v36 = vld [vmem:[#allocation2 + $0x80] sm:$0xf]  ;;  %v9798_v42 = vld [vmem:[#allocation2 + $0x84] sm:$0xf]  ;;  %3036 = vst [vmem:[#allocation2 + $0x20] sm:$0xff] %v3028_v25  ;;  %3054 = vrot.lane.b32.xlu1 %v11465_v61, %s10084_s7 }
 0x3c0   : > { %v9064_v39 = vor.u32 %v9802_v0, %v9063_v36  ;;  %v9068_v27 = vor.u32 %v9798_v42, %v9065_v50  ;;  %v9032_v0 = vor.u32 %v9794_v52, %v9031_v33  ;;  %v9036_v36 = vor.u32 %v9790_v35, %v9033_v41 }
 0x3c1   : > { %v3771_v53 = vpop.permute.xlu0 %3770  ;;  %v11947_v26 = vpop.permute.xlu1 %3756  ;;  %v3342_v42 = vperm.slane %v11801_v23, 2 }
 0x3c2   : > { %v11949_v63 = vpop.permute.xlu2 %3546  ;;  %4331 = vmatpush.bf16.msra.mxu3 %v9064_v39  ;;  %4359 = vmatpush.bf16.msra.mxu2 %v9068_v27  ;;  %v3785_v60 = vsel %vm2080_vm9, %v3755_v11, %v11947_v26  ;;  %v9782_v39 = vld [vmem:[#allocation2 + $0x4] sm:$0xf] }
 0x3c3   : > { %v3837_v25 = vmul.f32 %v3821_v5, %v3785_v60  ;;  %v3791_v60 = vsel %vm2080_vm9, %v11885_v29, %v3771_v53 }
 0x3c5   : > { %v3852_v50 = vpack.c.bf16 %v3837_v25, %v3836_v17  ;;  %v3358_v25 = vmul.f32 %v3342_v42, %v3307_v49 }
 0x3c6   : > { %4332 = vmatpush.bf16.msra.mxu3 %v9032_v0  ;;  %4360 = vmatpush.bf16.msra.mxu2 %v9036_v36  ;;  %v9786_v11 = vld [vmem:[#allocation2 + $0x1c] sm:$0xf0]  ;;  %v9001_v27 = vld [vmem:[#allocation2 + $0x20] sm:$0xf0]  ;;  %v3844_v36 = vmul.f32 %v3820_v54, %v3791_v60  ;;  %v9233_v60 = vld [vmem:[#allocation2 + $0x1e8] sm:$0xf0] }
 0x3c7   : > { %3550 = vrot.lane.b32.xlu0 %v11545_v34, %s10079_s23  ;;  %3534 = vrot.lane.b32.xlu2 %v11523_v13, %s10079_s23  ;;  %3860 = vst [vmem:[#allocation2 + $0x200] sm:$0xff] %v3852_v50  ;;  %v9000_v52 = vor.u32 %v9786_v11, %v8999_v3  ;;  %v9004_v41 = vor.u32 %v9782_v39, %v9001_v27  ;;  %v8991_v39 = vld [vmem:[%s10144_s14] sm:$0xf]  ;;  %v9781_v27 = vld [vmem:[%s10144_s14 + $0x4] sm:$0xf0]  ;;  %s14033_s23 = sld [smem:[#allocation6_spill]] }
 0x3c8   : > { %3070 = vrot.lane.b32.xlu1 %v11485_v4, %s10084_s7  ;;  %v11979_v51 = vor.u32 %v9781_v27, %v8991_v39  ;;  %v9839_v39 = vld [vmem:[#allocation2 + $0x1cc] sm:$0xf] }
 0x3c9   : > { %v11966_v33 = vpop.permute.xlu0 %3284  ;;  %v11971_v17 = vpop.permute.xlu1 %3772 }
 0x3ca   : > { %v3308_v35 = vsel %vm1594_vm5, %v11909_v8, %v11966_v33  ;;  %v11973_v31 = vpop.permute.xlu2 %3168  ;;  %4333 = vmatpush.bf16.msra.mxu3 %v9000_v52  ;;  %4361 = vmatpush.bf16.msra.mxu2 %v9004_v41  ;;  %v3792_v3 = vsel %vm2080_vm9, %v3771_v53, %v11971_v17  ;;  %v3593_v52 = vperm.slane %v11597_v57, 5  ;;  %v9843_v41 = vld [vmem:[#allocation2 + $0x1e4] sm:$0xf0] }
 0x3cb   : > { %v3359_v0 = vmul.f32 %v3343_v46, %v3308_v35  ;;  %v3845_v50 = vmul.f32 %v3821_v5, %v3792_v3  ;;  %v8993_v3 = vld [vmem:[%s10144_s14 + $0x8] sm:$0xf0] }
 0x3cd   : > { %v3373_v11 = vpack.c.bf16 %v3359_v0, %v3358_v25  ;;  %v3856_v29 = vpack.c.bf16 %v3845_v50, %v3844_v36  ;;  %4334 = vmatmul.bf16.vlgmr.msra.gmra.mxu3 %v11979_v51  ;;  %4362 = vmatmul.bf16.vlgmr.msra.gmra.mxu2 %v11979_v51  ;;  %v9780_v0 = vld [vmem:[%s10144_s14 + $0x4] sm:$0xf] }
 0x3ce   : > { %v9255_v25 = vld [vmem:[#allocation2 + $0x200] sm:$0xf]  ;;  %v9846_v36 = vld [vmem:[#allocation2 + $0x204] sm:$0xf] }
 0x3cf   : > { %3381 = vst [vmem:[#allocation2 + $0xc8] sm:$0xff] %v3373_v11  ;;  %2952 = vrot.lane.b32.xlu0 %v11483_v38, %s10083_s2  ;;  %2940 = vrot.lane.b32.xlu2 %v11467_v56, %s10083_s2  ;;  %v9231_v11 = vld [vmem:[#allocation2 + $0x1c8] sm:$0xf] }
 0x3d0   : > { %3864 = vst [vmem:[#allocation2 + $0x220] sm:$0xff] %v3856_v29  ;;  %2938 = vrot.lane.b32.xlu1 %v11465_v61, %s10083_s2  ;;  %v3592_v61 = vperm.slane %v11597_v57, 4 }
 0x3d1   : > { %v3531_v8 = vpop.permute.xlu0 %3530  ;;  %v3297_v54 = vpop.permute.xlu1 %3296 }
 0x3d2   : > { %v11989_v5 = vpop.permute.xlu2 %3414  ;;  %v3314_v38 = vsel %vm1594_vm5, %v11648_v6, %v3297_v54  ;;  %v3315_v53 = vsel %vm1594_vm5, %v3297_v54, %v11929_v24  ;;  %v3556_v27 = vsel %vm1844_vm3, %v11759_v40, %v3531_v8  ;;  %v9201_v40 = vld [vmem:[#allocation2 + $0x1a8] sm:$0xf0] }
 0x3d3   : > { %v3366_v29 = vmul.f32 %v3342_v42, %v3314_v38  ;;  %v3367_v49 = vmul.f32 %v3343_v46, %v3315_v53  ;;  %v3563_v46 = vsel %vm1844_vm3, %v11714_v21, %v11949_v63  ;;  %v9232_v38 = vor.u32 %v9843_v41, %v9231_v11 }
 0x3d4   : > { %v9236_v53 = vor.u32 %v9839_v39, %v9233_v60  ;;  %v3608_v60 = vmul.f32 %v3592_v61, %v3556_v27  ;;  %v9823_v27 = vld [vmem:[#allocation2 + $0x14c] sm:$0xf] }
 0x3d5   : > { %v3377_v35 = vpack.c.bf16 %v3367_v49, %v3366_v29  ;;  %v9199_v29 = vld [vmem:[#allocation2 + $0x188] sm:$0xf]  ;;  %v12012_v49 = vor.u32 %v9780_v0, %v8993_v3 }
 0x3d7   : > { %3434 = vrot.lane.b32.xlu0 %v11545_v34, %s10082_s1  ;;  %3418 = vrot.lane.b32.xlu2 %v11523_v13, %s10082_s1  ;;  %v9850_v6 = vld [vmem:[#allocation2 + $0x21c] sm:$0xf0]  ;;  %v9257_v42 = vld [vmem:[#allocation2 + $0x220] sm:$0xf0]  ;;  %3385 = vst [vmem:[#allocation2 + $0xe8] sm:$0xff] %v3377_v35 }
 0x3d8   : > { %2954 = vrot.lane.b32.xlu1 %v11485_v4, %s10083_s2  ;;  %v9256_v57 = vor.u32 %v9850_v6, %v9255_v25  ;;  %v9260_v50 = vor.u32 %v9846_v36, %v9257_v42  ;;  %v9835_v6 = vld [vmem:[#allocation2 + $0x1a4] sm:$0xf0]  ;;  %v9831_v36 = vld [vmem:[#allocation2 + $0x18c] sm:$0xf]  ;;  %v3616_v42 = vmul.f32 %v3592_v61, %v3563_v46 }
 0x3d9   : > { %v12010_v54 = vpop.permute.xlu0 %3548  ;;  %v12017_v35 = vpop.permute.xlu1 %3532  ;;  %v9204_v11 = vor.u32 %v9831_v36, %v9201_v40  ;;  %v9169_v46 = vld [vmem:[#allocation2 + $0x168] sm:$0xf0]  ;;  %v9167_v61 = vld [vmem:[#allocation2 + $0x148] sm:$0xf] }
 0x3da   : > { %v3564_v21 = vsel %vm1844_vm3, %v11949_v63, %v12010_v54  ;;  %4347 = vmatpush.bf16.msra.mxu1 %v9256_v57  ;;  %4375 = vmatpush.bf16.msra.mxu0 %v9260_v50  ;;  %v12019_v25 = vpop.permute.xlu2 %3432  ;;  %v3557_v41 = vsel %vm1844_vm3, %v3531_v8, %v12017_v35  ;;  %v9200_v63 = vor.u32 %v9835_v6, %v9199_v29  ;;  %v9827_v50 = vld [vmem:[#allocation2 + $0x164] sm:$0xf0]  ;;  %v3227_v8 = vperm.slane %v11838_v30, 3  ;;  %v9137_v6 = vld [vmem:[#allocation2 + $0x128] sm:$0xf0] }
 0x3db   : > { %v3617_v14 = vmul.f32 %v3593_v52, %v3564_v21  ;;  %v3609_v0 = vmul.f32 %v3593_v52, %v3557_v41  ;;  %v9168_v39 = vor.u32 %v9827_v50, %v9167_v61  ;;  %v9172_v29 = vor.u32 %v9823_v27, %v9169_v46  ;;  %v9819_v21 = vld [vmem:[#allocation2 + $0x124] sm:$0xf0]  ;;  %v9807_v27 = vld [vmem:[#allocation2 + $0xcc] sm:$0xf] }
 0x3dc   : > { %v3440_v50 = vsel %vm1726_vm4, %v11738_v20, %v11989_v5  ;;  %v9103_v46 = vld [vmem:[#allocation2 + $0xc8] sm:$0xf] }
 0x3dd   : > { %v3626_v3 = vpack.c.bf16 %v3617_v14, %v3616_v42  ;;  %9285 = vmatmul.msk.bf16.vlgmr.msra.gmra.mxu1 %vm1015_vm0, %v12012_v49  ;;  %9286 = vmatmul.msk.bf16.vlgmr.msra.gmra.mxu0 %vm1015_vm0, %v12012_v49  ;;  %v3622_v57 = vpack.c.bf16 %v3609_v0, %v3608_v60  ;;  %v3226_v14 = vperm.slane %v11838_v30, 2  ;;  %v9135_v42 = vld [vmem:[#allocation2 + $0x108] sm:$0xf]  ;;  %v9815_v60 = vld [vmem:[#allocation2 + $0x10c] sm:$0xf] }
 0x3de   : > { %4382 = vmatpush.bf16.msrb.mxu1 %v9232_v38  ;;  %4410 = vmatpush.bf16.msrb.mxu0 %v9236_v53  ;;  %v9136_v41 = vor.u32 %v9819_v21, %v9135_v42 }
 0x3df   : > { %3634 = vst [vmem:[#allocation2 + $0x1b0] sm:$0xff] %v3626_v3  ;;  %3778 = vrot.lane.b32.xlu0 %v11485_v4, %s10085_s10  ;;  %3764 = vrot.lane.b32.xlu2 %v11521_v62, %s10085_s10  ;;  %v9140_v3 = vor.u32 %v9815_v60, %v9137_v6 }
 0x3e0   : > { %3630 = vst [vmem:[#allocation2 + $0x190] sm:$0xff] %v3622_v57  ;;  %3762 = vrot.lane.b32.xlu1 %v11467_v56, %s10085_s10  ;;  %v3477_v57 = vperm.slane %v11618_v32, 5 }
 0x3e1   : > { %v3181_v52 = vpop.permute.xlu0 %3180  ;;  %v3167_v38 = vpop.permute.xlu1 %3166 }
 0x3e2   : > { %4383 = vmatpush.bf16.msrb.mxu1 %v9200_v63  ;;  %4411 = vmatpush.bf16.msrb.mxu0 %v9204_v11  ;;  %v12035_v53 = vpop.permute.xlu2 %3064  ;;  %v3191_v4 = vsel %vm1476_vm7, %v11615_v15, %v3167_v38  ;;  %v3192_v56 = vsel %vm1476_vm7, %v3167_v38, %v11973_v31  ;;  %v9811_v63 = vld [vmem:[#allocation2 + $0xe4] sm:$0xf0]  ;;  %v3476_v11 = vperm.slane %v11618_v32, 4  ;;  %v9105_v15 = vld [vmem:[#allocation2 + $0xe8] sm:$0xf0]  ;;  %v3198_v61 = vsel %vm1476_vm7, %v11660_v58, %v3181_v52 }
 0x3e3   : > { %v3242_v36 = vmul.f32 %v3226_v14, %v3191_v4  ;;  %v3243_v40 = vmul.f32 %v3227_v8, %v3192_v56  ;;  %v9108_v21 = vor.u32 %v9807_v27, %v9105_v15  ;;  %v3250_v6 = vmul.f32 %v3226_v14, %v3198_v61 }
 0x3e4   : > { %v3492_v58 = vmul.f32 %v3476_v11, %v3440_v50  ;;  %v3111_v15 = vperm.slane %v11771_v28, 3  ;;  %v3082_v27 = vsel %vm1358_vm6, %v11696_v45, %v12035_v53 }
 0x3e5   : > { %v3257_v0 = vpack.c.bf16 %v3243_v40, %v3242_v36 }
 0x3e6   : > { %4384 = vmatpush.bf16.msrb.mxu1 %v9168_v39  ;;  %4412 = vmatpush.bf16.msrb.mxu0 %v9172_v29  ;;  %v9104_v39 = vor.u32 %v9811_v63, %v9103_v46 }
 0x3e7   : > { %3265 = vst [vmem:[#allocation2 + $0x88] sm:$0xff] %v3257_v0  ;;  %3304 = vrot.lane.b32.xlu0 %v11543_v47, %s10078_s22  ;;  %3290 = vrot.lane.b32.xlu2 %v11521_v62, %s10078_s22  ;;  %s10086_s22 = smov 126  }
 0x3e8   : > { %3780 = vrot.lane.b32.xlu1 %v11543_v47, %s10085_s10 }
 0x3e9   : > { %v12054_v32 = vpop.permute.xlu0 %3416  ;;  %v12059_v38 = vpop.permute.xlu1 %3182 }
 0x3ea   : > { %4385 = vmatpush.bf16.msrb.mxu1 %v9136_v41  ;;  %4413 = vmatpush.bf16.msrb.mxu0 %v9140_v3  ;;  %v3441_v20 = vsel %vm1726_vm4, %v11989_v5, %v12054_v32  ;;  %v12061_v29 = vpop.permute.xlu2 %3760  ;;  %v3199_v56 = vsel %vm1476_vm7, %v3181_v52, %v12059_v38  ;;  %v3110_v3 = vperm.slane %v11771_v28, 2 }
 0x3eb   : > { %v3493_v4 = vmul.f32 %v3477_v57, %v3441_v20  ;;  %v3251_v36 = vmul.f32 %v3227_v8, %v3199_v56 }
 0x3ed   : > { %v3506_v40 = vpack.c.bf16 %v3493_v4, %v3492_v58  ;;  %v3261_v42 = vpack.c.bf16 %v3251_v36, %v3250_v6  ;;  %v3942_v6 = vld [vmem:[%s10149_s19] sm:$0xff] }
 0x3ee   : > { %4386 = vmatpush.bf16.msrb.mxu1 %v9104_v39  ;;  %4414 = vmatpush.bf16.msrb.mxu0 %v9108_v21  ;;  %v9071_v50 = vld [vmem:[#allocation2 + $0x88] sm:$0xf]  ;;  %v9799_v61 = vld [vmem:[#allocation2 + $0x8c] sm:$0xf]  ;;  %v3134_v21 = vmul.f32 %v3110_v3, %v3082_v27 }
 0x3ef   : > { %3514 = vst [vmem:[#allocation2 + $0x150] sm:$0xff] %v3506_v40  ;;  %3058 = vrot.lane.b32.xlu0 %v11521_v62, %s10084_s7  ;;  %3188 = vrot.lane.b32.xlu2 %v11543_v47, %s10081_s28  ;;  %v3823_v40 = vperm.slane %v11935_v18, 3 }
 0x3f0   : > { %3269 = vst [vmem:[#allocation2 + $0xa8] sm:$0xff] %v3261_v42  ;;  %3174 = vrot.lane.b32.xlu1 %v11521_v62, %s10081_s28  ;;  %s14034_s28 = sld [smem:[#allocation8_spill]] }
 0x3f1   : > { %v3051_v5 = vpop.permute.xlu0 %3050  ;;  %v3431_v41 = vpop.permute.xlu1 %3430 }
 0x3f2   : > { %v12071_v52 = vpop.permute.xlu2 %2934  ;;  %v3447_v14 = vsel %vm1726_vm4, %v11818_v55, %v3431_v41  ;;  %v3448_v8 = vsel %vm1726_vm4, %v3431_v41, %v12019_v25 }
 0x3f3   : > { %v3500_v60 = vmul.f32 %v3476_v11, %v3447_v14  ;;  %v3501_v0 = vmul.f32 %v3477_v57, %v3448_v8  ;;  %v3075_v57 = vsel %vm1358_vm6, %v11539_v44, %v3051_v5 }
 0x3f4   : > { %v3126_v4 = vmul.f32 %v3110_v3, %v3075_v57  ;;  %v4551_v3 = vld [vmem:[%s10154_s24 + $0x8] sm:$0xff] }
 0x3f5   : > { %v3510_v63 = vpack.c.bf16 %v3501_v0, %v3500_v60 }
 0x3f7   : > { %v9803_v46 = vld [vmem:[#allocation2 + $0xa4] sm:$0xf0]  ;;  %v9073_v39 = vld [vmem:[#allocation2 + $0xa8] sm:$0xf0]  ;;  %3518 = vst [vmem:[#allocation2 + $0x170] sm:$0xff] %v3510_v63  ;;  %3782 = vrot.lane.b32.xlu0 %v11545_v34, %s10085_s10  ;;  %3766 = vrot.lane.b32.xlu2 %v11523_v13, %s10085_s10 }
 0x3f8   : > { %v9072_v55 = vor.u32 %v9803_v46, %v9071_v50  ;;  %v9076_v11 = vor.u32 %v9799_v61, %v9073_v39  ;;  %3072 = vrot.lane.b32.xlu1 %v11543_v47, %s10084_s7  ;;  %v3943_v63 = vld [vmem:[%s10149_s19 + $0x8] sm:$0xff]  ;;  %v4550_v50 = vld [vmem:[%s10154_s24] sm:$0xff]  ;;  %v2995_v61 = vperm.slane %v11862_v16, 3  ;;  %s10089_s7 = smov 63  }
 0x3f9   : > { %v12090_v28 = vpop.permute.xlu0 %3066  ;;  %v12095_v20 = vpop.permute.xlu1 %3052 }
 0x3fa   : > { %v3083_v45 = vsel %vm1358_vm6, %v12035_v53, %v12090_v28  ;;  %4387 = vmatpush.bf16.msrb.mxu1 %v9072_v55  ;;  %4415 = vmatpush.bf16.msrb.mxu0 %v9076_v11  ;;  %v12097_v34 = vpop.permute.xlu2 %2950  ;;  %v3076_v58 = vsel %vm1358_vm6, %v3051_v5, %v12095_v20  ;;  %v3822_v53 = vperm.slane %v11935_v18, 2 }
 0x3fb   : > { %v3135_v44 = vmul.f32 %v3111_v15, %v3083_v45  ;;  %v3127_v56 = vmul.f32 %v3111_v15, %v3076_v58 }
 0x3fd   : > { %v3145_v13 = vpack.c.bf16 %v3135_v44, %v3134_v21  ;;  %v3141_v36 = vpack.c.bf16 %v3127_v56, %v3126_v4 }
 0x3ff   : > { %3153 = vst [vmem:[#allocation2 + $0x68] sm:$0xff] %v3145_v13  ;;  %3946 = vperm.xlu0 %9956, %v3942_v6   ;;  %2956 = vrot.lane.b32.xlu2 %v11543_v47, %s10083_s2  ;;  %v2994_v47 = vperm.slane %v11862_v16, 2 }
 0x400   : > { %3149 = vst [vmem:[#allocation2 + $0x48] sm:$0xff] %v3141_v36  ;;  %2942 = vrot.lane.b32.xlu1 %v11521_v62, %s10083_s2  ;;  %v4986_v36 = vld [vmem:[%s10174_s20] sm:$0xf]  ;;  %s10088_s2 = smov 64  }
 0x401   : > { %v3775_v42 = vpop.permute.xlu0 %3774  ;;  %v3759_v5 = vpop.permute.xlu1 %3758 }
 0x402   : > { %v12108_v41 = vpop.permute.xlu2 %3300  ;;  %v3786_v14 = vsel %vm2080_vm9, %v11947_v26, %v3759_v5  ;;  %v3787_v8 = vsel %vm2080_vm9, %v3759_v5, %v12061_v29  ;;  %v2959_v26 = vsel %vm1241_vm8, %v11555_v48, %v12071_v52  ;;  %v3793_v57 = vsel %vm2080_vm9, %v11971_v17, %v3775_v42 }
 0x403   : > { %v3838_v60 = vmul.f32 %v3822_v53, %v3786_v14  ;;  %v3839_v0 = vmul.f32 %v3823_v40, %v3787_v8  ;;  %v3010_v58 = vmul.f32 %v2994_v47, %v2959_v26  ;;  %v3846_v56 = vmul.f32 %v3822_v53, %v3793_v57  ;;  %v4684_v14 = vld [vmem:[%s10164_s6] sm:$0xff]  ;;  %v4685_v8 = vld [vmem:[%s10164_s6 + $0x8] sm:$0xff]  ;;  %v9844_v26 = vld [vmem:[#allocation2 + $0x1ec] sm:$0xf0] }
 0x405   : > { %v3853_v15 = vpack.c.bf16 %v3839_v0, %v3838_v60 }
 0x406   : > { %v9795_v62 = vld [vmem:[#allocation2 + $0x64] sm:$0xf0]  ;;  %v9041_v46 = vld [vmem:[#allocation2 + $0x68] sm:$0xf0] }
 0x407   : > { %v9039_v39 = vld [vmem:[#allocation2 + $0x48] sm:$0xf]  ;;  %v9791_v27 = vld [vmem:[#allocation2 + $0x4c] sm:$0xf]  ;;  %3861 = vst [vmem:[#allocation2 + $0x208] sm:$0xff] %v3853_v15  ;;  %4575 = vperm.xlu0 %9956, %v4551_v3   ;;  %4570 = vperm.xlu2 %9958, %v4550_v50  }
 0x408   : > { %v9040_v55 = vor.u32 %v9795_v62, %v9039_v39  ;;  %v9044_v11 = vor.u32 %v9791_v27, %v9041_v46  ;;  %3951 = vperm.xlu1 %9957, %v3943_v63  }
 0x409   : > { %v12124_v45 = vpop.permute.xlu0 %2936  ;;  %v12129_v44 = vpop.permute.xlu1 %3776 }
 0x40a   : > { %v2960_v21 = vsel %vm1241_vm8, %v12071_v52, %v12124_v45  ;;  %4388 = vmatpush.bf16.msrb.mxu1 %v9040_v55  ;;  %4416 = vmatpush.bf16.msrb.mxu0 %v9044_v11  ;;  %v12131_v48 = vpop.permute.xlu2 %3172  ;;  %v3794_v17 = vsel %vm2080_vm9, %v3775_v42, %v12129_v44  ;;  %v12139_v52 = vld [vmem:[%s10104_s9 + $0x38] sm:$0xff]  ;;  %v3345_v11 = vperm.slane %v11801_v23, 5 }
 0x40b   : > { %v3011_v4 = vmul.f32 %v2995_v61, %v2960_v21  ;;  %v3847_v13 = vmul.f32 %v3823_v40, %v3794_v17  ;;  %v3710_v60 = vperm.slane %v12139_v52, 6  ;;  %v3711_v3 = vperm.slane %v12139_v52, 7  ;;  %v9241_v21 = vld [vmem:[#allocation2 + $0x1f0] sm:$0xf0] }
 0x40d   : > { %v3025_v6 = vpack.c.bf16 %v3011_v4, %v3010_v58  ;;  %v3857_v5 = vpack.c.bf16 %v3847_v13, %v3846_v56  ;;  %v9239_v56 = vld [vmem:[#allocation2 + $0x1d0] sm:$0xf]  ;;  %v9840_v13 = vld [vmem:[#allocation2 + $0x1d4] sm:$0xf] }
 0x40e   : > { %v9263_v57 = vld [vmem:[#allocation2 + $0x208] sm:$0xf] }
 0x40f   : > { %3033 = vst [vmem:[#allocation2 + $0x8] sm:$0xff] %v3025_v6  ;;  %4989 = vperm.xlu0 %9956, %v4986_v36   ;;  %4693 = vperm.xlu2 %9958, %v4685_v8   ;;  %v9240_v36 = vor.u32 %v9844_v26, %v9239_v56  ;;  %v9828_v26 = vld [vmem:[#allocation2 + $0x16c] sm:$0xf0] }
 0x410   : > { %3865 = vst [vmem:[#allocation2 + $0x228] sm:$0xff] %v3857_v5  ;;  %4688 = vperm.xlu1 %9957, %v4684_v14   ;;  %v9244_v5 = vor.u32 %v9840_v13, %v9241_v21  ;;  %v9836_v14 = vld [vmem:[#allocation2 + $0x1ac] sm:$0xf0] }
 0x411   : > { %v3287_v0 = vpop.permute.xlu0 %3286  ;;  %v2949_v42 = vpop.permute.xlu1 %2948 }
 0x412   : > { %v3651_v53 = vpop.permute.xlu2 %3650  ;;  %v2966_v40 = vsel %vm1241_vm8, %v11652_v19, %v2949_v42  ;;  %v2967_v63 = vsel %vm1241_vm8, %v2949_v42, %v12097_v34  ;;  %v3344_v19 = vperm.slane %v11801_v23, 4  ;;  %v3309_v6 = vsel %vm1594_vm5, %v11966_v33, %v3287_v0 }
 0x413   : > { %v3674_v15 = vsel %vm1962_vm2, %v11764_v12, %v3651_v53  ;;  %v3018_v50 = vmul.f32 %v2994_v47, %v2966_v40  ;;  %v3019_v62 = vmul.f32 %v2995_v61, %v2967_v63  ;;  %v3700_v46 = vsel %vm1962_vm2, %v3651_v53, %v11515_v9  ;;  %v9847_v61 = vld [vmem:[#allocation2 + $0x20c] sm:$0xf]  ;;  %v9207_v53 = vld [vmem:[#allocation2 + $0x190] sm:$0xf]  ;;  %v9832_v40 = vld [vmem:[#allocation2 + $0x194] sm:$0xf] }
 0x414   : > { %v3726_v39 = vmul.f32 %v3710_v60, %v3674_v15  ;;  %v3727_v27 = vmul.f32 %v3711_v3, %v3700_v46  ;;  %v3316_v9 = vsel %vm1594_vm5, %v11929_v24, %v12108_v41  ;;  %v9209_v63 = vld [vmem:[#allocation2 + $0x1b0] sm:$0xf0] }
 0x415   : > { %v3029_v55 = vpack.c.bf16 %v3019_v62, %v3018_v50  ;;  %v3368_v33 = vmul.f32 %v3344_v19, %v3316_v9  ;;  %v3360_v62 = vmul.f32 %v3344_v19, %v3309_v6  ;;  %v12180_v9 = vld [vmem:[%s10104_s9 + $0x30] sm:$0xff] }
 0x416   : > { %v3739_v12 = vpack.c.bf16 %v3727_v27, %v3726_v39  ;;  %v9212_v27 = vor.u32 %v9832_v40, %v9209_v63  ;;  %v9783_v21 = vld [vmem:[#allocation2 + $0xc] sm:$0xf]  ;;  %v3595_v13 = vperm.slane %v12180_v9, 7 }
 0x417   : > { %v9851_v47 = vld [vmem:[#allocation2 + $0x224] sm:$0xf0]  ;;  %v9265_v58 = vld [vmem:[#allocation2 + $0x228] sm:$0xf0]  ;;  %3037 = vst [vmem:[#allocation2 + $0x28] sm:$0xff] %v3029_v55 }
 0x418   : > { %v9264_v4 = vor.u32 %v9851_v47, %v9263_v57  ;;  %v9268_v17 = vor.u32 %v9847_v61, %v9265_v58  ;;  %3747 = vst [vmem:[#allocation2 + $0x1d8] sm:$0xff] %v3739_v12  ;;  %v9007_v57 = vld [vmem:[#allocation2 + $0x8] sm:$0xf]  ;;  %v9177_v12 = vld [vmem:[#allocation2 + $0x170] sm:$0xf0]  ;;  %v3229_v47 = vperm.slane %v11838_v30, 5 }
 0x419   : > { %v12162_v23 = vpop.permute.xlu0 %3302  ;;  %v12167_v42 = vpop.permute.xlu1 %3288 }
 0x41a   : > { %v3317_v8 = vsel %vm1594_vm5, %v12108_v41, %v12162_v23  ;;  %v12169_v24 = vpop.permute.xlu2 %3056  ;;  %4403 = vmatpush.bf16.msrb.mxu3 %v9264_v4  ;;  %4431 = vmatpush.bf16.msrb.mxu2 %v9268_v17  ;;  %v3310_v50 = vsel %vm1594_vm5, %v3287_v0, %v12167_v42  ;;  %v9208_v41 = vor.u32 %v9836_v14, %v9207_v53  ;;  %v3228_v0 = vperm.slane %v11838_v30, 4  ;;  %v9175_v17 = vld [vmem:[#allocation2 + $0x150] sm:$0xf] }
 0x41b   : > { %v3369_v15 = vmul.f32 %v3345_v11, %v3317_v8  ;;  %v3361_v46 = vmul.f32 %v3345_v11, %v3310_v50  ;;  %v3594_v4 = vperm.slane %v12180_v9, 6  ;;  %v9176_v6 = vor.u32 %v9828_v26, %v9175_v17  ;;  %v9820_v53 = vld [vmem:[#allocation2 + $0x12c] sm:$0xf0]  ;;  %v12258_v9 = vld [vmem:[%s10104_s9 + $0x18] sm:$0xff] }
 0x41d   : > { %v3378_v39 = vpack.c.bf16 %v3369_v15, %v3368_v33  ;;  %9287 = vmatmul.msk.bf16.vlgmr.msrb.gmra.mxu3 %vm1015_vm0, %v12012_v49  ;;  %9288 = vmatmul.msk.bf16.vlgmr.msrb.gmra.mxu2 %vm1015_vm0, %v12012_v49  ;;  %v3374_v55 = vpack.c.bf16 %v3361_v46, %v3360_v62  ;;  %v9145_v33 = vld [vmem:[#allocation2 + $0x130] sm:$0xf0] }
 0x41e   : > { %4438 = vmatpush.bf16.msra.mxu3 %v9240_v36  ;;  %4466 = vmatpush.bf16.msra.mxu2 %v9244_v5  ;;  %v9787_v19 = vld [vmem:[#allocation2 + $0x24] sm:$0xf0]  ;;  %v9009_v11 = vld [vmem:[#allocation2 + $0x28] sm:$0xf0]  ;;  %v9824_v36 = vld [vmem:[#allocation2 + $0x154] sm:$0xf] }
 0x41f   : > { %3386 = vst [vmem:[#allocation2 + $0xf0] sm:$0xff] %v3378_v39  ;;  %v9008_v61 = vor.u32 %v9787_v19, %v9007_v57  ;;  %v9012_v58 = vor.u32 %v9783_v21, %v9009_v11  ;;  %v9180_v8 = vor.u32 %v9824_v36, %v9177_v12  ;;  %v9143_v39 = vld [vmem:[#allocation2 + $0x110] sm:$0xf] }
 0x420   : > { %3382 = vst [vmem:[#allocation2 + $0xd0] sm:$0xff] %v3374_v55 }
 0x421   : > { %v3185_v56 = vpop.permute.xlu0 %3184  ;;  %v3171_v5 = vpop.permute.xlu1 %3170  ;;  %4389 = vmatpush.bf16.msrb.mxu1 %v9008_v61  ;;  %4417 = vmatpush.bf16.msrb.mxu0 %v9012_v58 }
 0x422   : > { %4439 = vmatpush.bf16.msra.mxu3 %v9208_v41  ;;  %4467 = vmatpush.bf16.msra.mxu2 %v9212_v27  ;;  %v3535_v14 = vpop.permute.xlu2 %3534  ;;  %v3193_v30 = vsel %vm1476_vm7, %v11973_v31, %v3171_v5  ;;  %v3194_v40 = vsel %vm1476_vm7, %v3171_v5, %v12131_v48  ;;  %v9816_v41 = vld [vmem:[#allocation2 + $0x114] sm:$0xf]  ;;  %v3200_v61 = vsel %vm1476_vm7, %v12059_v38, %v3185_v56 }
 0x423   : > { %v3558_v63 = vsel %vm1844_vm3, %v12017_v35, %v3535_v14  ;;  %v3244_v15 = vmul.f32 %v3228_v0, %v3193_v30  ;;  %v3245_v50 = vmul.f32 %v3229_v47, %v3194_v40  ;;  %v3584_v62 = vsel %vm1844_vm3, %v3535_v14, %v11537_v59  ;;  %v12215_v40 = vld [vmem:[%s10104_s9 + $0x8] sm:$0xff] }
 0x424   : > { %v3610_v46 = vmul.f32 %v3594_v4, %v3558_v63  ;;  %v3611_v31 = vmul.f32 %v3595_v13, %v3584_v62  ;;  %4390 = vmatmul.bf16.vlgmr.msrb.gmra.mxu1 %v11979_v51  ;;  %4418 = vmatmul.bf16.vlgmr.msrb.gmra.mxu0 %v11979_v51  ;;  %v9144_v35 = vor.u32 %v9820_v53, %v9143_v39  ;;  %v3112_v63 = vperm.slane %v12215_v40, 4 }
 0x425   : > { %v3258_v27 = vpack.c.bf16 %v3245_v50, %v3244_v15  ;;  %v9148_v26 = vor.u32 %v9816_v41, %v9145_v33  ;;  %v3252_v53 = vmul.f32 %v3228_v0, %v3200_v61  ;;  %v12220_v33 = vld [vmem:[%s10104_s9 + $0x28] sm:$0xff] }
 0x426   : > { %4440 = vmatpush.bf16.msra.mxu3 %v9176_v6  ;;  %4468 = vmatpush.bf16.msra.mxu2 %v9180_v8  ;;  %v9812_v55 = vld [vmem:[#allocation2 + $0xec] sm:$0xf0]  ;;  %v9113_v57 = vld [vmem:[#allocation2 + $0xf0] sm:$0xf0]  ;;  %v3623_v21 = vpack.c.bf16 %v3611_v31, %v3610_v46  ;;  %v3478_v52 = vperm.slane %v12220_v33, 6  ;;  %v14012_v31 = vld [vmem:[#allocation40_spill] sm:$0xff] }
 0x427   : > { %v9111_v59 = vld [vmem:[#allocation2 + $0xd0] sm:$0xf]  ;;  %v9808_v12 = vld [vmem:[#allocation2 + $0xd4] sm:$0xf]  ;;  %3266 = vst [vmem:[#allocation2 + $0x90] sm:$0xff] %v3258_v27 }
 0x428   : > { %v9112_v19 = vor.u32 %v9812_v55, %v9111_v59  ;;  %v9116_v11 = vor.u32 %v9808_v12, %v9113_v57  ;;  %3631 = vst [vmem:[#allocation2 + $0x198] sm:$0xff] %v3623_v21 }
 0x429   : > { %v3667_v58 = vpop.permute.xlu0 %3666  ;;  %v12204_v36 = vpop.permute.xlu1 %3186 }
 0x42a   : > { %4441 = vmatpush.bf16.msra.mxu3 %v9144_v35  ;;  %4469 = vmatpush.bf16.msra.mxu2 %v9148_v26  ;;  %v3681_v17 = vsel %vm1962_vm2, %v11852_v1, %v3667_v58  ;;  %v3701_v6 = vsel %vm1962_vm2, %v3667_v58, %v11636_v7  ;;  %v12206_v5 = vpop.permute.xlu2 %2940  ;;  %v3201_v8 = vsel %vm1476_vm7, %v3185_v56, %v12204_v36  ;;  %v3479_v56 = vperm.slane %v12220_v33, 7  ;;  %v14013_v58 = vld [vmem:[#allocation32_spill] sm:$0xff] }
 0x42b   : > { %v3734_v14 = vmul.f32 %v3710_v60, %v3681_v17  ;;  %v3735_v38 = vmul.f32 %v3711_v3, %v3701_v6  ;;  %v3253_v1 = vmul.f32 %v3229_v47, %v3201_v8  ;;  %v3113_v60 = vperm.slane %v12215_v40, 5 }
 0x42d   : > { %v3743_v30 = vpack.c.bf16 %v3735_v38, %v3734_v14  ;;  %v3262_v7 = vpack.c.bf16 %v3253_v1, %v3252_v53 }
 0x42e   : > { %4442 = vmatpush.bf16.msra.mxu3 %v9112_v19  ;;  %4470 = vmatpush.bf16.msra.mxu2 %v9116_v11  ;;  %v9079_v55 = vld [vmem:[#allocation2 + $0x90] sm:$0xf]  ;;  %v9800_v21 = vld [vmem:[#allocation2 + $0x94] sm:$0xf] }
 0x42f   : > { %3751 = vst [vmem:[#allocation2 + $0x1f8] sm:$0xff] %v3743_v30 }
 0x430   : > { %3270 = vst [vmem:[#allocation2 + $0xb0] sm:$0xff] %v3262_v7  ;;  %v2996_v7 = vperm.slane %v11862_v16, 4 }
 0x431   : > { %v3069_v3 = vpop.permute.xlu0 %3068  ;;  %v3055_v0 = vpop.permute.xlu1 %3054 }
 0x432   : > { %v3419_v47 = vpop.permute.xlu2 %3418  ;;  %v3077_v15 = vsel %vm1358_vm6, %v12095_v20, %v3055_v0  ;;  %v3078_v50 = vsel %vm1358_vm6, %v3055_v0, %v12169_v24  ;;  %v3084_v19 = vsel %vm1358_vm6, %v12090_v28, %v3069_v3  ;;  %v12254_v0 = vld [vmem:[%s10104_s9] sm:$0xff] }
 0x433   : > { %v3442_v62 = vsel %vm1726_vm4, %v12054_v32, %v3419_v47  ;;  %v3128_v46 = vmul.f32 %v3112_v63, %v3077_v15  ;;  %v3129_v39 = vmul.f32 %v3113_v60, %v3078_v50  ;;  %v3468_v35 = vsel %vm1726_vm4, %v3419_v47, %v14012_v31 }
 0x434   : > { %v3494_v41 = vmul.f32 %v3478_v52, %v3442_v62  ;;  %v3495_v27 = vmul.f32 %v3479_v56, %v3468_v35 }
 0x435   : > { %v3142_v26 = vpack.c.bf16 %v3129_v39, %v3128_v46 }
 0x436   : > { %v3507_v20 = vpack.c.bf16 %v3495_v27, %v3494_v41 }
 0x437   : > { %v9804_v57 = vld [vmem:[#allocation2 + $0xac] sm:$0xf0]  ;;  %v9081_v59 = vld [vmem:[#allocation2 + $0xb0] sm:$0xf0]  ;;  %3150 = vst [vmem:[#allocation2 + $0x50] sm:$0xff] %v3142_v26 }
 0x438   : > { %v9080_v12 = vor.u32 %v9804_v57, %v9079_v55  ;;  %v9084_v32 = vor.u32 %v9800_v21, %v9081_v59  ;;  %3515 = vst [vmem:[#allocation2 + $0x158] sm:$0xff] %v3507_v20  ;;  %v12277_v59 = vld [vmem:[%s10104_s9 + $0x10] sm:$0xff] }
 0x439   : > { %v3551_v11 = vpop.permute.xlu0 %3550 }
 0x43a   : > { %v3565_v61 = vsel %vm1844_vm3, %v12010_v54, %v3551_v11  ;;  %v3585_v17 = vsel %vm1844_vm3, %v3551_v11, %v14013_v58  ;;  %v12242_v6 = vpop.permute.xlu1 %3070  ;;  %4443 = vmatpush.bf16.msra.mxu3 %v9080_v12  ;;  %4471 = vmatpush.bf16.msra.mxu2 %v9084_v32  ;;  %v12250_v8 = vpop.permute.xlu2 %3764  ;;  %v3136_v54 = vmul.f32 %v3112_v63, %v3084_v19  ;;  %v3230_v12 = vperm.slane %v12277_v59, 6  ;;  %v14014_v11 = vld [vmem:[#allocation33_spill] sm:$0xff] }
 0x43b   : > { %v3618_v14 = vmul.f32 %v3594_v4, %v3565_v61  ;;  %v3619_v28 = vmul.f32 %v3595_v13, %v3585_v17  ;;  %v3085_v38 = vsel %vm1358_vm6, %v3069_v3, %v12242_v6  ;;  %v2997_v4 = vperm.slane %v12254_v0, 5 }
 0x43c   : > { %v3137_v53 = vmul.f32 %v3113_v60, %v3085_v38  ;;  %v3346_v13 = vperm.slane %v12258_v9, 6  ;;  %v3347_v3 = vperm.slane %v12258_v9, 7  ;;  %v3231_v32 = vperm.slane %v12277_v59, 7  ;;  %v14017_v59 = vld [vmem:[#allocation34_spill] sm:$0xff] }
 0x43d   : > { %v3627_v1 = vpack.c.bf16 %v3619_v28, %v3618_v14 }
 0x43e   : > { %v3146_v30 = vpack.c.bf16 %v3137_v53, %v3136_v54  ;;  %v9047_v41 = vld [vmem:[#allocation2 + $0x50] sm:$0xf]  ;;  %v9792_v55 = vld [vmem:[#allocation2 + $0x54] sm:$0xf] }
 0x43f   : > { %3635 = vst [vmem:[#allocation2 + $0x1b8] sm:$0xff] %v3627_v1 }
 0x440   : > { %3154 = vst [vmem:[#allocation2 + $0x70] sm:$0xff] %v3146_v30 }
 0x441   : > { %v2953_v47 = vpop.permute.xlu0 %2952 }
 0x442   : > { %v2939_v15 = vpop.permute.xlu1 %2938  ;;  %v3291_v50 = vpop.permute.xlu2 %3290 }
 0x443   : > { %v2961_v63 = vsel %vm1241_vm8, %v12124_v45, %v2939_v15  ;;  %v2962_v60 = vsel %vm1241_vm8, %v2939_v15, %v12206_v5  ;;  %v3311_v46 = vsel %vm1594_vm5, %v12167_v42, %v3291_v50  ;;  %v3312_v39 = vsel %vm1594_vm5, %v3291_v50, %v11883_v37 }
 0x444   : > { %v3012_v16 = vmul.f32 %v2996_v7, %v2961_v63  ;;  %v3013_v62 = vmul.f32 %v2997_v4, %v2962_v60  ;;  %v3362_v31 = vmul.f32 %v3346_v13, %v3311_v46  ;;  %v3363_v35 = vmul.f32 %v3347_v3, %v3312_v39 }
 0x445   : > { %v2968_v42 = vsel %vm1241_vm8, %v12097_v34, %v2953_v47  ;;  %v3827_v15 = vperm.slane %v11935_v18, 7 }
 0x446   : > { %v3026_v45 = vpack.c.bf16 %v3013_v62, %v3012_v16  ;;  %v3375_v27 = vpack.c.bf16 %v3363_v35, %v3362_v31  ;;  %v3020_v38 = vmul.f32 %v2996_v7, %v2968_v42  ;;  %v3824_v7 = vperm.slane %v11935_v18, 4 }
 0x447   : > { %v9796_v26 = vld [vmem:[#allocation2 + $0x6c] sm:$0xf0]  ;;  %v9049_v20 = vld [vmem:[#allocation2 + $0x70] sm:$0xf0]  ;;  %v2999_v42 = vperm.slane %v12254_v0, 7 }
 0x448   : > { %3034 = vst [vmem:[#allocation2 + $0x10] sm:$0xff] %v3026_v45  ;;  %v9048_v57 = vor.u32 %v9796_v26, %v9047_v41  ;;  %v9052_v21 = vor.u32 %v9792_v55, %v9049_v20 }
 0x449   : > { %3383 = vst [vmem:[#allocation2 + $0xd8] sm:$0xff] %v3375_v27  ;;  %v3435_v37 = vpop.permute.xlu0 %3434 }
 0x44a   : > { %v3449_v19 = vsel %vm1726_vm4, %v12019_v25, %v3435_v37  ;;  %v3469_v61 = vsel %vm1726_vm4, %v3435_v37, %v14014_v11  ;;  %v2955_v58 = vpop.permute.xlu1 %2954  ;;  %4444 = vmatpush.bf16.msra.mxu3 %v9048_v57  ;;  %4472 = vmatpush.bf16.msra.mxu2 %v9052_v21  ;;  %v3189_v28 = vpop.permute.xlu2 %3188 }
 0x44b   : > { %v3502_v34 = vmul.f32 %v3478_v52, %v3449_v19  ;;  %v3503_v17 = vmul.f32 %v3479_v56, %v3469_v61  ;;  %v2969_v14 = vsel %vm1241_vm8, %v2953_v47, %v2955_v58  ;;  %v3202_v25 = vsel %vm1476_vm7, %v12204_v36, %v3189_v28 }
 0x44c   : > { %v3021_v54 = vmul.f32 %v2997_v4, %v2969_v14  ;;  %v3203_v53 = vsel %vm1476_vm7, %v3189_v28, %v11854_v43  ;;  %v3254_v30 = vmul.f32 %v3230_v12, %v3202_v25  ;;  %v3825_v4 = vperm.slane %v11935_v18, 5 }
 0x44d   : > { %v3511_v1 = vpack.c.bf16 %v3503_v17, %v3502_v34  ;;  %v3255_v52 = vmul.f32 %v3231_v32, %v3203_v53  ;;  %v3826_v36 = vperm.slane %v11935_v18, 6  ;;  %v3115_v25 = vperm.slane %v12215_v40, 7 }
 0x44e   : > { %v3030_v33 = vpack.c.bf16 %v3021_v54, %v3020_v38 }
 0x44f   : > { %3519 = vst [vmem:[#allocation2 + $0x178] sm:$0xff] %v3511_v1  ;;  %v3263_v56 = vpack.c.bf16 %v3255_v52, %v3254_v30  ;;  %v9784_v27 = vld [vmem:[#allocation2 + $0x14] sm:$0xf] }
 0x450   : > { %3038 = vst [vmem:[#allocation2 + $0x30] sm:$0xff] %v3030_v33  ;;  %v14015_v1 = vld [vmem:[#allocation31_spill] sm:$0xff] }
 0x451   : > { %3271 = vst [vmem:[#allocation2 + $0xb8] sm:$0xff] %v3263_v56  ;;  %v3779_v47 = vpop.permute.xlu0 %3778 }
 0x452   : > { %v3763_v43 = vpop.permute.xlu1 %3762  ;;  %v3767_v50 = vpop.permute.xlu2 %3766  ;;  %v3795_v55 = vsel %vm2080_vm9, %v12129_v44, %v3779_v47 }
 0x453   : > { %v3788_v63 = vsel %vm2080_vm9, %v12061_v29, %v3763_v43  ;;  %v3789_v60 = vsel %vm2080_vm9, %v3763_v43, %v12250_v8  ;;  %v3790_v46 = vsel %vm2080_vm9, %v12250_v8, %v3767_v50  ;;  %v3816_v39 = vsel %vm2080_vm9, %v3767_v50, %v11740_v22  ;;  %v9015_v29 = vld [vmem:[#allocation2 + $0x10] sm:$0xf] }
 0x454   : > { %v3840_v16 = vmul.f32 %v3824_v7, %v3788_v63  ;;  %v3841_v62 = vmul.f32 %v3825_v4, %v3789_v60  ;;  %v3842_v31 = vmul.f32 %v3826_v36, %v3790_v46  ;;  %v3843_v45 = vmul.f32 %v3827_v15, %v3816_v39 }
 0x455   : > { %v2998_v22 = vperm.slane %v12254_v0, 6  ;;  %v3848_v37 = vmul.f32 %v3824_v7, %v3795_v55  ;;  %v9837_v55 = vld [vmem:[#allocation2 + $0x1b4] sm:$0xf0] }
 0x456   : > { %v3854_v35 = vpack.c.bf16 %v3841_v62, %v3840_v16  ;;  %v3855_v20 = vpack.c.bf16 %v3843_v45, %v3842_v31  ;;  %v9249_v62 = vld [vmem:[#allocation2 + $0x1f8] sm:$0xf0] }
 0x457   : > { %v9788_v41 = vld [vmem:[#allocation2 + $0x2c] sm:$0xf0]  ;;  %v9017_v26 = vld [vmem:[#allocation2 + $0x30] sm:$0xf0] }
 0x458   : > { %3862 = vst [vmem:[#allocation2 + $0x210] sm:$0xff] %v3854_v35  ;;  %v9016_v8 = vor.u32 %v9788_v41, %v9015_v29  ;;  %v9020_v57 = vor.u32 %v9784_v27, %v9017_v26  ;;  %v9247_v35 = vld [vmem:[#allocation2 + $0x1d8] sm:$0xf]  ;;  %v9841_v41 = vld [vmem:[#allocation2 + $0x1dc] sm:$0xf] }
 0x459   : > { %3863 = vst [vmem:[#allocation2 + $0x218] sm:$0xff] %v3855_v20  ;;  %v3305_v21 = vpop.permute.xlu0 %3304  ;;  %v9252_v26 = vor.u32 %v9841_v41, %v9249_v62 }
 0x45a   : > { %4445 = vmatpush.bf16.msra.mxu3 %v9016_v8  ;;  %4473 = vmatpush.bf16.msra.mxu2 %v9020_v57  ;;  %v3318_v19 = vsel %vm1594_vm5, %v12162_v23, %v3305_v21  ;;  %v3319_v11 = vsel %vm1594_vm5, %v3305_v21, %v11826_v10  ;;  %v3781_v44 = vpop.permute.xlu1 %3780  ;;  %v2957_v61 = vpop.permute.xlu2 %2956  ;;  %v14018_v21 = vld [vmem:[#allocation37_spill] sm:$0xff] }
 0x45b   : > { %v3370_v34 = vmul.f32 %v3346_v13, %v3318_v19  ;;  %v3371_v17 = vmul.f32 %v3347_v3, %v3319_v11  ;;  %v3796_v14 = vsel %vm2080_vm9, %v3779_v47, %v3781_v44  ;;  %v2970_v28 = vsel %vm1241_vm8, %v2955_v58, %v2957_v61  ;;  %v9217_v19 = vld [vmem:[#allocation2 + $0x1b8] sm:$0xf0] }
 0x45c   : > { %v3849_v38 = vmul.f32 %v3825_v4, %v3796_v14  ;;  %v2971_v54 = vsel %vm1241_vm8, %v2957_v61, %v11927_v2  ;;  %v3022_v23 = vmul.f32 %v2998_v22, %v2970_v28  ;;  %v3114_v58 = vperm.slane %v12215_v40, 6  ;;  %v14016_v4 = vld [vmem:[#allocation35_spill] sm:$0xff]  ;;  %v9215_v61 = vld [vmem:[#allocation2 + $0x198] sm:$0xf]  ;;  %v4363_v14 = vpop.f32.mrf.mxu2 }
 0x45d   : > { %4446 = vmatmul.bf16.vlgmr.msra.gmra.mxu3 %v11979_v51  ;;  %4474 = vmatmul.bf16.vlgmr.msra.gmra.mxu2 %v11979_v51  ;;  %v3379_v10 = vpack.c.bf16 %v3371_v17, %v3370_v34  ;;  %v3023_v9 = vmul.f32 %v2999_v42, %v2971_v54  ;;  %v9216_v18 = vor.u32 %v9837_v55, %v9215_v61  ;;  %v4335_v17 = vpop.f32.mrf.mxu3  ;;  %v9829_v28 = vld [vmem:[#allocation2 + $0x174] sm:$0xf0]  ;;  %v4349_v54 = vpop.f32.mrf.mxu1 }
 0x45e   : > { %v3858_v13 = vpack.c.bf16 %v3849_v38, %v3848_v37  ;;  %v9185_v38 = vld [vmem:[#allocation2 + $0x178] sm:$0xf0] }
 0x45f   : > { %3387 = vst [vmem:[#allocation2 + $0xf8] sm:$0xff] %v3379_v10  ;;  %v3031_v3 = vpack.c.bf16 %v3023_v9, %v3022_v23  ;;  %v9271_v50 = vld [vmem:[#allocation2 + $0x210] sm:$0xf]  ;;  %v9848_v16 = vld [vmem:[#allocation2 + $0x214] sm:$0xf]  ;;  %v4377_v10 = vpop.f32.mrf.mxu0 }
 0x460   : > { %3866 = vst [vmem:[#allocation2 + $0x230] sm:$0xff] %v3858_v13  ;;  %v9183_v23 = vld [vmem:[#allocation2 + $0x158] sm:$0xf] }
 0x461   : > { %3039 = vst [vmem:[#allocation2 + $0x38] sm:$0xff] %v3031_v3  ;;  %v3059_v2 = vpop.permute.xlu0 %3058  ;;  %v9184_v13 = vor.u32 %v9829_v28, %v9183_v23  ;;  %v9825_v3 = vld [vmem:[#allocation2 + $0x15c] sm:$0xf] }
 0x462   : > { %v3079_v53 = vsel %vm1358_vm6, %v12169_v24, %v3059_v2  ;;  %v3080_v30 = vsel %vm1358_vm6, %v3059_v2, %v14015_v1  ;;  %v3175_v52 = vpop.permute.xlu1 %3174  ;;  %v9845_v24 = vld [vmem:[#allocation2 + $0x1f4] sm:$0xf0] }
 0x463   : > { %v3130_v33 = vmul.f32 %v3114_v58, %v3079_v53  ;;  %v3131_v56 = vmul.f32 %v3115_v25, %v3080_v30  ;;  %v3195_v7 = vsel %vm1476_vm7, %v12131_v48, %v3175_v52  ;;  %v3196_v47 = vsel %vm1476_vm7, %v3175_v52, %v14016_v4  ;;  %v9821_v1 = vld [vmem:[#allocation2 + $0x134] sm:$0xf0]  ;;  %v9153_v30 = vld [vmem:[#allocation2 + $0x138] sm:$0xf0] }
 0x464   : > { %v3246_v40 = vmul.f32 %v3230_v12, %v3195_v7  ;;  %v3247_v43 = vmul.f32 %v3231_v32, %v3196_v47  ;;  %v9248_v29 = vor.u32 %v9845_v24, %v9247_v35  ;;  %v9188_v53 = vor.u32 %v9825_v3, %v9185_v38  ;;  %v12377_v24 = vpop.permute.xlu2 %4570  ;;  %v4365_v41 = vpop.f32.mrf.mxu2 }
 0x465   : > { %v3143_v63 = vpack.c.bf16 %v3131_v56, %v3130_v33  ;;  %v14019_v33 = vld [vmem:[#allocation38_spill] sm:$0xff] }
 0x466   : > { %v3259_v60 = vpack.c.bf16 %v3247_v43, %v3246_v40  ;;  %v9151_v43 = vld [vmem:[#allocation2 + $0x118] sm:$0xf]  ;;  %v9121_v35 = vld [vmem:[#allocation2 + $0xf8] sm:$0xf0] }
 0x467   : > { %3151 = vst [vmem:[#allocation2 + $0x58] sm:$0xff] %v3143_v63  ;;  %v9852_v46 = vld [vmem:[#allocation2 + $0x22c] sm:$0xf0]  ;;  %v9273_v39 = vld [vmem:[#allocation2 + $0x230] sm:$0xf0] }
 0x468   : > { %3267 = vst [vmem:[#allocation2 + $0x98] sm:$0xff] %v3259_v60  ;;  %v9272_v48 = vor.u32 %v9852_v46, %v9271_v50  ;;  %v9276_v31 = vor.u32 %v9848_v16, %v9273_v39  ;;  %v9817_v63 = vld [vmem:[#allocation2 + $0x11c] sm:$0xf]  ;;  %v9152_v60 = vor.u32 %v9821_v1, %v9151_v43  ;;  %v9813_v62 = vld [vmem:[#allocation2 + $0xf4] sm:$0xf0] }
 0x469   : > { %v3783_v45 = vpop.permute.xlu0 %3782  ;;  %v9156_v50 = vor.u32 %v9817_v63, %v9153_v30  ;;  %v9849_v16 = vld [vmem:[#allocation2 + $0x21c] sm:$0xf]  ;;  %v9875_v43 = vld [vmem:[#allocation3 + $0x9c] sm:$0xf0]  ;;  %v9365_v63 = vld [vmem:[#allocation3 + $0xa0] sm:$0xf0] }
 0x46a   : > { %v3797_v12 = vsel %vm2080_vm9, %v3781_v44, %v3783_v45  ;;  %v3817_v32 = vsel %vm2080_vm9, %v3783_v45, %v14017_v59  ;;  %v3073_v27 = vpop.permute.xlu1 %3072  ;;  %4459 = vmatpush.bf16.msra.mxu1 %v9272_v48  ;;  %4487 = vmatpush.bf16.msra.mxu0 %v9276_v31  ;;  %v9025_v30 = vld [vmem:[#allocation2 + $0x38] sm:$0xf0] }
 0x46b   : > { %v3850_v20 = vmul.f32 %v3826_v36, %v3797_v12  ;;  %v3851_v8 = vmul.f32 %v3827_v15, %v3817_v32  ;;  %v3086_v57 = vsel %vm1358_vm6, %v12242_v6, %v3073_v27  ;;  %v3087_v37 = vsel %vm1358_vm6, %v3073_v27, %v14018_v21  ;;  %v9833_v36 = vld [vmem:[#allocation2 + $0x19c] sm:$0xf]  ;;  %v9119_v12 = vld [vmem:[#allocation2 + $0xd8] sm:$0xf] }
 0x46c   : > { %v3138_v11 = vmul.f32 %v3114_v58, %v3086_v57  ;;  %v3139_v44 = vmul.f32 %v3115_v25, %v3087_v37  ;;  %v9220_v6 = vor.u32 %v9833_v36, %v9217_v19  ;;  %v9120_v32 = vor.u32 %v9813_v62, %v9119_v12  ;;  %v9809_v27 = vld [vmem:[#allocation2 + $0xdc] sm:$0xf]  ;;  %v4379_v57 = vpop.f32.mrf.mxu0  ;;  %v9867_v62 = vld [vmem:[#allocation3 + $0x5c] sm:$0xf0] }
 0x46d   : > { %v3859_v34 = vpack.c.bf16 %v3851_v8, %v3850_v20  ;;  %9289 = vmatmul.msk.bf16.vlgmr.msra.gmra.mxu1 %vm1015_vm0, %v12012_v49  ;;  %9290 = vmatmul.msk.bf16.vlgmr.msra.gmra.mxu0 %vm1015_vm0, %v12012_v49  ;;  %v9124_v8 = vor.u32 %v9809_v27, %v9121_v35  ;;  %v9089_v36 = vld [vmem:[#allocation2 + $0xb8] sm:$0xf0] }
 0x46e   : > { %4494 = vmatpush.bf16.msrb.mxu1 %v9248_v29  ;;  %4522 = vmatpush.bf16.msrb.mxu0 %v9252_v26  ;;  %v3147_v15 = vpack.c.bf16 %v3139_v44, %v3138_v11  ;;  %v4337_v29 = vpop.f32.mrf.mxu3  ;;  %v4351_v26 = vpop.f32.mrf.mxu1  ;;  %v9805_v44 = vld [vmem:[#allocation2 + $0xb4] sm:$0xf0] }
 0x46f   : > { %3867 = vst [vmem:[#allocation2 + $0x238] sm:$0xff] %v3859_v34  ;;  %v9087_v21 = vld [vmem:[#allocation2 + $0x98] sm:$0xf]  ;;  %v9801_v11 = vld [vmem:[#allocation2 + $0x9c] sm:$0xf] }
 0x470   : > { %3155 = vst [vmem:[#allocation2 + $0x78] sm:$0xff] %v3147_v15 }
 0x471   : > { %v12365_v9 = vpop.permute.xlu0 %3946 }
 0x472   : > { %4495 = vmatpush.bf16.msrb.mxu1 %v9216_v18  ;;  %4523 = vmatpush.bf16.msrb.mxu0 %v9220_v6  ;;  %v2943_v58 = vpop.permute.xlu1 %2942  ;;  %v4336_v25 = vadd.f32 %v4335_v17, %v12365_v9  ;;  %v4364_v2 = vadd.f32 %v4363_v14, %v12365_v9  ;;  %v9088_v18 = vor.u32 %v9805_v44, %v9087_v21 }
 0x473   : > { %v2963_v52 = vsel %vm1241_vm8, %v12206_v5, %v2943_v58  ;;  %v2964_v56 = vsel %vm1241_vm8, %v2943_v58, %v14019_v33  ;;  %v9279_v5 = vld [vmem:[#allocation2 + $0x218] sm:$0xf]  ;;  %v9092_v6 = vor.u32 %v9801_v11, %v9089_v36  ;;  %vm4861_vm8 = vcmask 523264  }
 0x474   : > { %v3014_v7 = vmul.f32 %v2998_v22, %v2963_v52  ;;  %v3015_v4 = vmul.f32 %v2999_v42, %v2964_v56  ;;  %v4350_v47 = vadd.f32 %v4349_v54, %v4336_v25  ;;  %v4378_v40 = vadd.f32 %v4377_v10, %v4364_v2  ;;  %v9055_v54 = vld [vmem:[#allocation2 + $0x58] sm:$0xf] }
 0x476   : > { %4496 = vmatpush.bf16.msrb.mxu1 %v9184_v13  ;;  %4524 = vmatpush.bf16.msrb.mxu0 %v9188_v53  ;;  %v3027_v46 = vpack.c.bf16 %v3015_v4, %v3014_v7  ;;  %vm4552_vm3 = vcmp.ge.f32.partialorder %v4350_v47, 0.0  ;;  %v4578_v39 = vmul.f32 %v12377_v24, %v4350_v47  ;;  %vm4553_vm5 = vcmp.ge.f32.partialorder %v4378_v40, 0.0  ;;  %v9853_v22 = vld [vmem:[#allocation2 + $0x234] sm:$0xf0]  ;;  %v9281_v0 = vld [vmem:[#allocation2 + $0x238] sm:$0xf0] }
 0x477   : > { %v4579_v42 = vmul.f32 %v12377_v24, %v4378_v40  ;;  %v9280_v48 = vor.u32 %v9853_v22, %v9279_v5  ;;  %v9284_v31 = vor.u32 %v9849_v16, %v9281_v0  ;;  %v9797_v17 = vld [vmem:[#allocation2 + $0x74] sm:$0xf0]  ;;  %v9057_v38 = vld [vmem:[#allocation2 + $0x78] sm:$0xf0]  ;;  %v9299_v22 = vld [vmem:[#allocation3] sm:$0xf] }
 0x478   : > { %3035 = vst [vmem:[#allocation2 + $0x18] sm:$0xff] %v3027_v46  ;;  %v4594_v45 = vsel %vm4552_vm3, %v4350_v47, %v4578_v39  ;;  %v9056_v13 = vor.u32 %v9797_v17, %v9055_v54  ;;  %v9789_v53 = vld [vmem:[#allocation2 + $0x34] sm:$0xf0]  ;;  %v9333_v46 = vld [vmem:[#allocation3 + $0x60] sm:$0xf0] }
 0x479   : > { %v4595_v59 = vsel %vm4553_vm5, %v4378_v40, %v4579_v42  ;;  %4515 = vmatpush.bf16.msrb.mxu3 %v9280_v48  ;;  %4543 = vmatpush.bf16.msrb.mxu2 %v9284_v31  ;;  %v12389_v15 = vpop.permute.xlu0 %4575  ;;  %v9331_v39 = vld [vmem:[#allocation3 + $0x40] sm:$0xf]  ;;  %v9855_v42 = vld [vmem:[#allocation3 + $0x4] sm:$0xf] }
 0x47a   : > { %4497 = vmatpush.bf16.msrb.mxu1 %v9152_v60  ;;  %4525 = vmatpush.bf16.msrb.mxu0 %v9156_v50  ;;  %v4634_v55 = vpack.c.bf16 %v4595_v59, %v4594_v45  ;;  %v12381_v20 = vpop.permute.xlu1 %3951  ;;  %v9363_v60 = vld [vmem:[#allocation3 + $0x80] sm:$0xf]  ;;  %v9871_v50 = vld [vmem:[#allocation3 + $0x84] sm:$0xf]  ;;  %v9332_v31 = vor.u32 %v9867_v62, %v9331_v39 }
 0x47b   : > { %v4338_v37 = vadd.f32 %v4337_v29, %v12381_v20  ;;  %v4366_v19 = vadd.f32 %v4365_v41, %v12381_v20  ;;  %v9364_v5 = vor.u32 %v9875_v43, %v9363_v60  ;;  %v9368_v16 = vor.u32 %v9871_v50, %v9365_v63  ;;  %v9859_v0 = vld [vmem:[#allocation3 + $0x1c] sm:$0xf0]  ;;  %v9301_v48 = vld [vmem:[#allocation3 + $0x20] sm:$0xf0]  ;;  %v9864_v43 = vld [vmem:[#allocation3 + $0x4c] sm:$0xf] }
 0x47c   : > { %4642 = vst [vmem:[#allocation3 + $0xc0] sm:$0xff] %v4634_v55  ;;  %9291 = vmatmul.msk.bf16.vlgmr.msrb.gmra.mxu3 %vm1015_vm0, %v12012_v49  ;;  %9292 = vmatmul.msk.bf16.vlgmr.msrb.gmra.mxu2 %vm1015_vm0, %v12012_v49  ;;  %v9793_v49 = vld [vmem:[#allocation2 + $0x5c] sm:$0xf]  ;;  %v9300_v45 = vor.u32 %v9859_v0, %v9299_v22  ;;  %v9304_v29 = vor.u32 %v9855_v42, %v9301_v48  ;;  %v12396_v41 = vld [vmem:[%s10159_s30] sm:$0xff]  ;;  %v9307_v63 = vld [vmem:[#allocation3 + $0x8] sm:$0xf] }
 0x47d   : > { %v4352_v61 = vadd.f32 %v4351_v26, %v4338_v37  ;;  %v4380_v34 = vadd.f32 %v4379_v57, %v4366_v19  ;;  %v9060_v58 = vor.u32 %v9793_v49, %v9057_v38  ;;  %v9860_v60 = vld [vmem:[#allocation3 + $0x24] sm:$0xf0]  ;;  %v9856_v50 = vld [vmem:[#allocation3 + $0xc] sm:$0xf] }
 0x47e   : > { %4498 = vmatpush.bf16.msrb.mxu1 %v9120_v32  ;;  %4526 = vmatpush.bf16.msrb.mxu0 %v9124_v8 }
 0x47f   : > { %vm4560_vm6 = vcmp.ge.f32.partialorder %v4352_v61, 0.0  ;;  %v4586_v14 = vmul.f32 %v12389_v15, %v4352_v61  ;;  %vm4561_vm7 = vcmp.ge.f32.partialorder %v4380_v34, 0.0  ;;  %v4587_v28 = vmul.f32 %v12389_v15, %v4380_v34  ;;  %v9023_v25 = vld [vmem:[#allocation2 + $0x18] sm:$0xf]  ;;  %v9785_v2 = vld [vmem:[#allocation2 + $0x1c] sm:$0xf] }
 0x480   : > { %v9024_v1 = vor.u32 %v9789_v53, %v9023_v25  ;;  %v9028_v52 = vor.u32 %v9785_v2, %v9025_v30  ;;  %v9373_v30 = vld [vmem:[#allocation3 + $0xa8] sm:$0xf0] }
 0x481   : > { %v4602_v23 = vsel %vm4560_vm6, %v4352_v61, %v4586_v14  ;;  %v4603_v10 = vsel %vm4561_vm7, %v4380_v34, %v4587_v28 }
 0x482   : > { %4499 = vmatpush.bf16.msrb.mxu1 %v9088_v18  ;;  %4527 = vmatpush.bf16.msrb.mxu0 %v9092_v6  ;;  %v4638_v3 = vpack.c.bf16 %v4603_v10, %v4602_v23 }
 0x483   : > { %v9395_v33 = vld [vmem:[#allocation3 + $0xc0] sm:$0xf]  ;;  %v9879_v7 = vld [vmem:[#allocation3 + $0xc4] sm:$0xf] }
 0x484   : > { %4646 = vst [vmem:[#allocation3 + $0xe0] sm:$0xff] %v4638_v3 }
 0x486   : > { %4500 = vmatpush.bf16.msrb.mxu1 %v9056_v13  ;;  %4528 = vmatpush.bf16.msrb.mxu0 %v9060_v58 }
 0x48a   : > { %4501 = vmatpush.bf16.msrb.mxu1 %v9024_v1  ;;  %4529 = vmatpush.bf16.msrb.mxu0 %v9028_v52  ;;  %v9876_v1 = vld [vmem:[#allocation3 + $0xa4] sm:$0xf0] }
 0x48b   : > { %v9883_v56 = vld [vmem:[#allocation3 + $0xdc] sm:$0xf0]  ;;  %v9397_v4 = vld [vmem:[#allocation3 + $0xe0] sm:$0xf0]  ;;  %v9371_v52 = vld [vmem:[#allocation3 + $0x88] sm:$0xf] }
 0x48c   : > { %v9396_v47 = vor.u32 %v9883_v56, %v9395_v33  ;;  %v9400_v40 = vor.u32 %v9879_v7, %v9397_v4  ;;  %v9872_v33 = vld [vmem:[#allocation3 + $0x8c] sm:$0xf]  ;;  %v9372_v56 = vor.u32 %v9876_v1, %v9371_v52  ;;  %v9868_v4 = vld [vmem:[#allocation3 + $0x64] sm:$0xf0]  ;;  %v9349_v1 = vld [vmem:[#allocation3 + $0x70] sm:$0xf0] }
 0x48d   : > { %4502 = vmatmul.bf16.vlgmr.msrb.gmra.mxu1 %v11979_v51  ;;  %4530 = vmatmul.bf16.vlgmr.msrb.gmra.mxu0 %v11979_v51  ;;  %v9863_v51 = vld [vmem:[#allocation3 + $0x44] sm:$0xf]  ;;  %v9376_v7 = vor.u32 %v9872_v33, %v9373_v30 }
 0x48e   : > { %4869 = vmatpush.bf16.msra.mxu3 %v9396_v47  ;;  %4883 = vmatpush.bf16.msra.mxu1 %v9400_v40  ;;  %v9336_v35 = vor.u32 %v9863_v51, %v9333_v46  ;;  %v9341_v47 = vld [vmem:[#allocation3 + $0x68] sm:$0xf0]  ;;  %v9339_v40 = vld [vmem:[#allocation3 + $0x48] sm:$0xf]  ;;  %v9308_v46 = vor.u32 %v9860_v60, %v9307_v63  ;;  %v9317_v63 = vld [vmem:[#allocation3 + $0x30] sm:$0xf0] }
 0x48f   : > { %v9344_v62 = vor.u32 %v9864_v43, %v9341_v47  ;;  %v9857_v43 = vld [vmem:[#allocation3 + $0x14] sm:$0xf] }
 0x492   : > { %4870 = vmatpush.bf16.msra.mxu3 %v9364_v5  ;;  %4884 = vmatpush.bf16.msra.mxu1 %v9368_v16  ;;  %v9309_v5 = vld [vmem:[#allocation3 + $0x28] sm:$0xf0]  ;;  %v9340_v16 = vor.u32 %v9868_v4, %v9339_v40  ;;  %v9315_v4 = vld [vmem:[#allocation3 + $0x10] sm:$0xf] }
 0x493   : > { %v9312_v39 = vor.u32 %v9856_v50, %v9309_v5  ;;  %v9861_v40 = vld [vmem:[#allocation3 + $0x2c] sm:$0xf0] }
 0x496   : > { %4871 = vmatpush.bf16.msra.mxu3 %v9332_v31  ;;  %4885 = vmatpush.bf16.msra.mxu1 %v9336_v35 }
 0x49a   : > { %4872 = vmatpush.bf16.msra.mxu3 %v9300_v45  ;;  %4886 = vmatpush.bf16.msra.mxu1 %v9304_v29 }
 0x49d   : > { %9425 = vmatmul.msk.bf16.vlgmr.msra.gmra.mxu3 %vm4861_vm8, %v12396_v41  ;;  %9426 = vmatmul.msk.bf16.vlgmr.msra.gmra.mxu1 %vm4861_vm8, %v12396_v41 }
 0x4a0   : > { %v4405_v12 = vpop.f32.mrf.mxu3  ;;  %v4433_v59 = vpop.f32.mrf.mxu2 }
 0x4a1   : > { %v4391_v32 = vpop.f32.mrf.mxu1  ;;  %v4419_v27 = vpop.f32.mrf.mxu0 }
 0x4a2   : > { %v4392_v26 = vadd.f32 %v4391_v32, %v12365_v9  ;;  %v4420_v55 = vadd.f32 %v4419_v27, %v12365_v9 }
 0x4a4   : > { %v4406_v8 = vadd.f32 %v4405_v12, %v4392_v26  ;;  %v4434_v57 = vadd.f32 %v4433_v59, %v4420_v55 }
 0x4a6   : > { %vm4554_vm12 = vcmp.ge.f32.partialorder %v4406_v8, 0.0  ;;  %v4580_v21 = vmul.f32 %v12377_v24, %v4406_v8  ;;  %vm4555_vm13 = vcmp.ge.f32.partialorder %v4434_v57, 0.0  ;;  %v4581_v37 = vmul.f32 %v12377_v24, %v4434_v57 }
 0x4a8   : > { %v4596_v19 = vsel %vm4554_vm12, %v4406_v8, %v4580_v21  ;;  %v4597_v11 = vsel %vm4555_vm13, %v4434_v57, %v4581_v37  ;;  %v4407_v44 = vpop.f32.mrf.mxu3  ;;  %v4435_v61 = vpop.f32.mrf.mxu2  ;;  %vm5118_vm13 = vcmask 1041408  }
 0x4a9   : > { %v4635_v34 = vpack.c.bf16 %v4597_v11, %v4596_v19  ;;  %v4393_v18 = vpop.f32.mrf.mxu1  ;;  %v4421_v36 = vpop.f32.mrf.mxu0 }
 0x4aa   : > { %v4394_v6 = vadd.f32 %v4393_v18, %v12381_v20  ;;  %v4422_v17 = vadd.f32 %v4421_v36, %v12381_v20 }
 0x4ab   : > { %4643 = vst [vmem:[#allocation3 + $0xc8] sm:$0xff] %v4635_v34 }
 0x4ac   : > { %v4408_v14 = vadd.f32 %v4407_v44, %v4394_v6  ;;  %v4436_v28 = vadd.f32 %v4435_v61, %v4422_v17 }
 0x4ae   : > { %vm4562_vm14 = vcmp.ge.f32.partialorder %v4408_v14, 0.0  ;;  %v4588_v38 = vmul.f32 %v12389_v15, %v4408_v14  ;;  %vm4563_vm15 = vcmp.ge.f32.partialorder %v4436_v28, 0.0  ;;  %v4589_v54 = vmul.f32 %v12389_v15, %v4436_v28 }
 0x4b0   : > { %v4604_v23 = vsel %vm4562_vm14, %v4408_v14, %v4588_v38  ;;  %v4605_v10 = vsel %vm4563_vm15, %v4436_v28, %v4589_v54  ;;  %vm5287_vm14 = vcmask 1043456   ;;  %vm5662_vm15 = vcmask 1031168  }
 0x4b1   : > { %v4639_v13 = vpack.c.bf16 %v4605_v10, %v4604_v23  ;;  %v9877_v23 = vld [vmem:[#allocation3 + $0xac] sm:$0xf0]  ;;  %v9381_v10 = vld [vmem:[#allocation3 + $0xb0] sm:$0xf0] }
 0x4b2   : > { %v9403_v49 = vld [vmem:[#allocation3 + $0xc8] sm:$0xf]  ;;  %v9880_v58 = vld [vmem:[#allocation3 + $0xcc] sm:$0xf] }
 0x4b3   : > { %4647 = vst [vmem:[#allocation3 + $0xe8] sm:$0xff] %v4639_v13  ;;  %v9379_v13 = vld [vmem:[#allocation3 + $0x90] sm:$0xf] }
 0x4ba   : > { %v9884_v3 = vld [vmem:[#allocation3 + $0xe4] sm:$0xf0]  ;;  %v9405_v25 = vld [vmem:[#allocation3 + $0xe8] sm:$0xf0] }
 0x4bb   : > { %v9404_v2 = vor.u32 %v9884_v3, %v9403_v49  ;;  %v9408_v53 = vor.u32 %v9880_v58, %v9405_v25  ;;  %v9873_v49 = vld [vmem:[#allocation3 + $0x94] sm:$0xf]  ;;  %v9380_v3 = vor.u32 %v9877_v23, %v9379_v13  ;;  %v9870_v13 = vld [vmem:[#allocation3 + $0x74] sm:$0xf0] }
 0x4bc   : > { %v9384_v58 = vor.u32 %v9873_v49, %v9381_v10  ;;  %v12447_v10 = vld [vmem:[%s14020_s11] sm:$0x3]  ;;  %v9357_v49 = vld [vmem:[#allocation3 + $0x78] sm:$0xf0]  ;;  %s14036_s11 = sld [smem:[#allocation4_spill]] }
 0x4bd   : > { %4897 = vmatpush.bf16.msra.mxu2 %v9404_v2  ;;  %4911 = vmatpush.bf16.msrb.mxu3 %v9408_v53  ;;  %v9869_v53 = vld [vmem:[#allocation3 + $0x6c] sm:$0xf0] }
 0x4c1   : > { %4898 = vmatpush.bf16.msra.mxu2 %v9372_v56  ;;  %4912 = vmatpush.bf16.msrb.mxu3 %v9376_v7  ;;  %v9347_v56 = vld [vmem:[#allocation3 + $0x50] sm:$0xf]  ;;  %v9865_v7 = vld [vmem:[#allocation3 + $0x54] sm:$0xf] }
 0x4c2   : > { %v9348_v50 = vor.u32 %v9869_v53, %v9347_v56  ;;  %v9352_v5 = vor.u32 %v9865_v7, %v9349_v1 }
 0x4c5   : > { %4899 = vmatpush.bf16.msra.mxu2 %v9340_v16  ;;  %4913 = vmatpush.bf16.msrb.mxu3 %v9344_v62 }
 0x4c9   : > { %4900 = vmatpush.bf16.msra.mxu2 %v9308_v46  ;;  %4914 = vmatpush.bf16.msrb.mxu3 %v9312_v39  ;;  %v9316_v46 = vor.u32 %v9861_v40, %v9315_v4  ;;  %v9320_v39 = vor.u32 %v9857_v43, %v9317_v63 }
 0x4cc   : > { %9427 = vmatmul.msk.bf16.vlgmr.msra.gmra.mxu2 %vm4861_vm8, %v12396_v41  ;;  %9428 = vmatmul.msk.bf16.vlgmr.msrb.gmra.mxu3 %vm4861_vm8, %v12396_v41 }
 0x4e0   : > { %v4447_v51 = vpop.f32.mrf.mxu3  ;;  %v4475_v22 = vpop.f32.mrf.mxu2 }
 0x4e1   : > { %v4448_v0 = vadd.f32 %v4447_v51, %v12365_v9  ;;  %v4476_v42 = vadd.f32 %v4475_v22, %v12365_v9 }
 0x4e8   : > { %v4449_v59 = vpop.f32.mrf.mxu3  ;;  %v4477_v32 = vpop.f32.mrf.mxu2 }
 0x4e9   : > { %v4450_v8 = vadd.f32 %v4449_v59, %v12381_v20  ;;  %v4478_v57 = vadd.f32 %v4477_v32, %v12381_v20 }
 0x4ea   : > { %v4461_v48 = vpop.f32.mrf.mxu1  ;;  %v4489_v31 = vpop.f32.mrf.mxu0 }
 0x4eb   : > { %v4462_v35 = vadd.f32 %v4461_v48, %v4448_v0  ;;  %v4490_v45 = vadd.f32 %v4489_v31, %v4476_v42 }
 0x4ed   : > { %vm4556_vm1 = vcmp.ge.f32.partialorder %v4462_v35, 0.0  ;;  %v4582_v29 = vmul.f32 %v12377_v24, %v4462_v35  ;;  %vm4557_vm10 = vcmp.ge.f32.partialorder %v4490_v45, 0.0  ;;  %v4583_v12 = vmul.f32 %v12377_v24, %v4490_v45 }
 0x4ef   : > { %v4598_v27 = vsel %vm4556_vm1, %v4462_v35, %v4582_v29  ;;  %v4599_v26 = vsel %vm4557_vm10, %v4490_v45, %v4583_v12  ;;  %vm7683_vm1 = vcmask 293888  }
 0x4f0   : > { %v4636_v55 = vpack.c.bf16 %v4599_v26, %v4598_v27 }
 0x4f2   : > { %4644 = vst [vmem:[#allocation3 + $0xd0] sm:$0xff] %v4636_v55  ;;  %v4463_v21 = vpop.f32.mrf.mxu1  ;;  %v4491_v37 = vpop.f32.mrf.mxu0 }
 0x4f3   : > { %v4464_v19 = vadd.f32 %v4463_v21, %v4450_v8  ;;  %v4492_v11 = vadd.f32 %v4491_v37, %v4478_v57  ;;  %v12434_v21 = vpop.permute.xlu2 %4693 }
 0x4f5   : > { %vm4564_vm11 = vcmp.ge.f32.partialorder %v4464_v19, 0.0  ;;  %v4590_v44 = vmul.f32 %v12389_v15, %v4464_v19  ;;  %vm4565_vm3 = vcmp.ge.f32.partialorder %v4492_v11, 0.0  ;;  %v4591_v61 = vmul.f32 %v12389_v15, %v4492_v11 }
 0x4f7   : > { %v4606_v34 = vsel %vm4564_vm11, %v4464_v19, %v4590_v44  ;;  %v4607_v18 = vsel %vm4565_vm3, %v4492_v11, %v4591_v61  ;;  %v12436_v44 = vpop.permute.xlu1 %4688 }
 0x4f8   : > { %v4640_v36 = vpack.c.bf16 %v4607_v18, %v4606_v34 }
 0x4f9   : > { %v9411_v6 = vld [vmem:[#allocation3 + $0xd0] sm:$0xf]  ;;  %v9881_v14 = vld [vmem:[#allocation3 + $0xd4] sm:$0xf] }
 0x4fa   : > { %4648 = vst [vmem:[#allocation3 + $0xf0] sm:$0xff] %v4640_v36 }
 0x4ff   : > { %v4517_v25 = vpop.f32.mrf.mxu3  ;;  %v4545_v30 = vpop.f32.mrf.mxu2 }
 0x501   : > { %v9885_v17 = vld [vmem:[#allocation3 + $0xec] sm:$0xf0]  ;;  %v9413_v28 = vld [vmem:[#allocation3 + $0xf0] sm:$0xf0] }
 0x502   : > { %v9412_v38 = vor.u32 %v9885_v17, %v9411_v6  ;;  %v9416_v54 = vor.u32 %v9881_v14, %v9413_v28  ;;  %v9878_v6 = vld [vmem:[#allocation3 + $0xb4] sm:$0xf0]  ;;  %v9389_v17 = vld [vmem:[#allocation3 + $0xb8] sm:$0xf0] }
 0x503   : > { %v9387_v28 = vld [vmem:[#allocation3 + $0x98] sm:$0xf] }
 0x504   : > { %4925 = vmatpush.bf16.msra.mxu0 %v9412_v38  ;;  %4939 = vmatpush.bf16.msrb.mxu1 %v9416_v54  ;;  %v9874_v38 = vld [vmem:[#allocation3 + $0x9c] sm:$0xf]  ;;  %v9388_v54 = vor.u32 %v9878_v6, %v9387_v28 }
 0x505   : > { %v9392_v23 = vor.u32 %v9874_v38, %v9389_v17 }
 0x507   : > { %v4519_v35 = vpop.f32.mrf.mxu3  ;;  %v4547_v29 = vpop.f32.mrf.mxu2 }
 0x508   : > { %4926 = vmatpush.bf16.msra.mxu0 %v9380_v3  ;;  %4940 = vmatpush.bf16.msrb.mxu1 %v9384_v58  ;;  %v9355_v58 = vld [vmem:[#allocation3 + $0x58] sm:$0xf] }
 0x509   : > { %v9356_v56 = vor.u32 %v9870_v13, %v9355_v58 }
 0x50a   : > { %v4503_v2 = vpop.f32.mrf.mxu1  ;;  %v4531_v33 = vpop.f32.mrf.mxu0 }
 0x50b   : > { %v4504_v52 = vadd.f32 %v4503_v2, %v12365_v9  ;;  %v4532_v47 = vadd.f32 %v4531_v33, %v12365_v9  ;;  %v9323_v2 = vld [vmem:[#allocation3 + $0x18] sm:$0xf]  ;;  %v9325_v33 = vld [vmem:[#allocation3 + $0x38] sm:$0xf0] }
 0x50c   : > { %4927 = vmatpush.bf16.msra.mxu0 %v9348_v50  ;;  %4941 = vmatpush.bf16.msrb.mxu1 %v9352_v5 }
 0x50d   : > { %v4518_v60 = vadd.f32 %v4517_v25, %v4504_v52  ;;  %v4546_v16 = vadd.f32 %v4545_v30, %v4532_v47  ;;  %v9866_v25 = vld [vmem:[#allocation3 + $0x5c] sm:$0xf]  ;;  %v9862_v30 = vld [vmem:[#allocation3 + $0x34] sm:$0xf0] }
 0x50e   : > { %v9858_v52 = vld [vmem:[#allocation3 + $0x1c] sm:$0xf]  ;;  %v9360_v7 = vor.u32 %v9866_v25, %v9357_v49  ;;  %v9324_v47 = vor.u32 %v9862_v30, %v9323_v2  ;;  %v5099_v2 = vld [vmem:[%s14033_s23] sm:$0x3]  ;;  %s14073_s23 = sld [smem:[#allocation11_spill]] }
 0x50f   : > { %vm4558_vm5 = vcmp.ge.f32.partialorder %v4518_v60, 0.0  ;;  %v4584_v62 = vmul.f32 %v12377_v24, %v4518_v60  ;;  %vm4559_vm6 = vcmp.ge.f32.partialorder %v4546_v16, 0.0  ;;  %v4585_v51 = vmul.f32 %v12377_v24, %v4546_v16 }
 0x510   : > { %4928 = vmatpush.bf16.msra.mxu0 %v9316_v46  ;;  %4942 = vmatpush.bf16.msrb.mxu1 %v9320_v39  ;;  %v9328_v40 = vor.u32 %v9858_v52, %v9325_v33 }
 0x511   : > { %v4600_v22 = vsel %vm4558_vm5, %v4518_v60, %v4584_v62  ;;  %v4601_v0 = vsel %vm4559_vm6, %v4546_v16, %v4585_v51 }
 0x512   : > { %v4505_v9 = vpop.f32.mrf.mxu1  ;;  %v4637_v42 = vpack.c.bf16 %v4601_v0, %v4600_v22  ;;  %v4533_v31 = vpop.f32.mrf.mxu0 }
 0x513   : > { %v4506_v48 = vadd.f32 %v4505_v9, %v12381_v20  ;;  %v4534_v45 = vadd.f32 %v4533_v31, %v12381_v20  ;;  %9429 = vmatmul.msk.bf16.vlgmr.msra.gmra.mxu0 %vm4861_vm8, %v12396_v41  ;;  %9430 = vmatmul.msk.bf16.vlgmr.msrb.gmra.mxu1 %vm4861_vm8, %v12396_v41 }
 0x514   : > { %4645 = vst [vmem:[#allocation3 + $0xd8] sm:$0xff] %v4637_v42 }
 0x515   : > { %v4520_v12 = vadd.f32 %v4519_v35, %v4506_v48  ;;  %v4548_v59 = vadd.f32 %v4547_v29, %v4534_v45 }
 0x517   : > { %vm4566_vm7 = vcmp.ge.f32.partialorder %v4520_v12, 0.0  ;;  %v4592_v24 = vmul.f32 %v12389_v15, %v4520_v12  ;;  %vm4567_vm12 = vcmp.ge.f32.partialorder %v4548_v59, 0.0  ;;  %v4593_v32 = vmul.f32 %v12389_v15, %v4548_v59 }
 0x519   : > { %v4608_v27 = vsel %vm4566_vm7, %v4520_v12, %v4592_v24  ;;  %v4609_v26 = vsel %vm4567_vm12, %v4548_v59, %v4593_v32  ;;  %v12505_v12 = vpop.permute.xlu0 %4989 }
 0x51a   : > { %v4641_v55 = vpack.c.bf16 %v4609_v26, %v4608_v27  ;;  %v4888_v20 = vpop.f32.mrf.mxu1 }
 0x51b   : > { %v9419_v57 = vld [vmem:[#allocation3 + $0xd8] sm:$0xf]  ;;  %v9882_v19 = vld [vmem:[#allocation3 + $0xdc] sm:$0xf]  ;;  %v12439_v15 = vadd.f32 %v4888_v20, %v12436_v44 }
 0x51c   : > { %4649 = vst [vmem:[#allocation3 + $0xf8] sm:$0xff] %v4641_v55 }
 0x520   : > { %v4874_v8 = vpop.f32.mrf.mxu3 }
 0x521   : > { %v12450_v53 = vadd.f32 %v4874_v8, %v12436_v44 }
 0x522   : > { %v4890_v61 = vpop.f32.mrf.mxu1 }
 0x523   : > { %v9886_v37 = vld [vmem:[#allocation3 + $0xf4] sm:$0xf0]  ;;  %v9421_v11 = vld [vmem:[#allocation3 + $0xf8] sm:$0xf0]  ;;  %v12442_v36 = vadd.f32 %v4890_v61, %v12434_v21 }
 0x524   : > { %v9420_v34 = vor.u32 %v9886_v37, %v9419_v57  ;;  %v9424_v18 = vor.u32 %v9882_v19, %v9421_v11 }
 0x525   : > { %14021 = vst [vmem:[#allocation39_spill] sm:$0xff] %v12442_v36  ;;  %v4979_v14 = vpack.c.bf16 %v12442_v36, %v12439_v15 }
 0x526   : > { %4953 = vmatpush.bf16.msrb.mxu2 %v9420_v34  ;;  %4967 = vmatpush.bf16.msra.mxu3 %v9424_v18 }
 0x527   : > { %5015 = vmatpush.bf16.msra.mxu1 %v4979_v14 }
 0x528   : > { %v4876_v3 = vpop.f32.mrf.mxu3 }
 0x529   : > { %v12453_v1 = vadd.f32 %v4876_v3, %v12434_v21 }
 0x52a   : > { %4954 = vmatpush.bf16.msrb.mxu2 %v9388_v54  ;;  %4968 = vmatpush.bf16.msra.mxu3 %v9392_v23 }
 0x52b   : > { %14022 = vst [vmem:[#allocation36_spill] sm:$0xff] %v12453_v1  ;;  %9434 = vmatmul.msk.bf16.vlgmr.msra.gmra.mxu1 %vm1015_vm0, %v12447_v10  ;;  %v4978_v4 = vpack.c.bf16 %v12453_v1, %v12450_v53 }
 0x52d   : > { %5002 = vmatpush.bf16.msrb.mxu0 %v4978_v4 }
 0x52e   : > { %4955 = vmatpush.bf16.msrb.mxu2 %v9356_v56  ;;  %4969 = vmatpush.bf16.msra.mxu3 %v9360_v7 }
 0x530   : > { %9433 = vmatmul.msk.bf16.vlgmr.msrb.gmra.mxu0 %vm1015_vm0, %v12447_v10 }
 0x532   : > { %4956 = vmatpush.bf16.msrb.mxu2 %v9324_v47  ;;  %4970 = vmatpush.bf16.msra.mxu3 %v9328_v40 }
 0x535   : > { %9431 = vmatmul.msk.bf16.vlgmr.msrb.gmra.mxu2 %vm4861_vm8, %v12396_v41  ;;  %9432 = vmatmul.msk.bf16.vlgmr.msra.gmra.mxu3 %vm4861_vm8, %v12396_v41 }
 0x54f   : > { %v4902_v43 = vpop.f32.mrf.mxu2  ;;  %v4916_v63 = vpop.f32.mrf.mxu3 }
 0x550   : > { %v12466_v5 = vadd.f32 %v4902_v43, %v12436_v44  ;;  %v12469_v16 = vadd.f32 %v4916_v63, %v12436_v44 }
 0x557   : > { %v4904_v60 = vpop.f32.mrf.mxu2  ;;  %v4918_v50 = vpop.f32.mrf.mxu3 }
 0x558   : > { %v12472_v62 = vadd.f32 %v4904_v60, %v12434_v21  ;;  %v12475_v46 = vadd.f32 %v4918_v50, %v12434_v21 }
 0x55a   : > { %14023 = vst [vmem:[#allocation40_spill] sm:$0xff] %v12472_v62  ;;  %v4980_v39 = vpack.c.bf16 %v12472_v62, %v12466_v5  ;;  %v4981_v41 = vpack.c.bf16 %v12475_v46, %v12469_v16 }
 0x55b   : > { %14024 = vst [vmem:[#allocation32_spill] sm:$0xff] %v12475_v46 }
 0x55c   : > { %5028 = vmatpush.bf16.msra.mxu2 %v4980_v39  ;;  %5041 = vmatpush.bf16.msrb.mxu3 %v4981_v41 }
 0x55f   : > { %9435 = vmatmul.msk.bf16.vlgmr.msra.gmra.mxu2 %vm1015_vm0, %v12447_v10  ;;  %9436 = vmatmul.msk.bf16.vlgmr.msrb.gmra.mxu3 %vm1015_vm0, %v12447_v10 }
 0x590   : > { %v4930_v51 = vpop.f32.mrf.mxu0  ;;  %v4944_v22 = vpop.f32.mrf.mxu1 }
 0x591   : > { %v12486_v42 = vadd.f32 %v4930_v51, %v12436_v44  ;;  %v12489_v48 = vadd.f32 %v4944_v22, %v12436_v44 }
 0x593   : > { %14025 = vst [vmem:[#allocation33_spill] sm:$0xff] %v12486_v42 }
 0x594   : > { %14026 = vst [vmem:[#allocation31_spill] sm:$0xff] %v12489_v48 }
 0x598   : > { %v4932_v0 = vpop.f32.mrf.mxu0  ;;  %v4946_v9 = vpop.f32.mrf.mxu1 }
 0x599   : > { %v12492_v31 = vadd.f32 %v4932_v0, %v12434_v21  ;;  %v12495_v35 = vadd.f32 %v4946_v9, %v12434_v21 }
 0x59b   : > { %14027 = vst [vmem:[#allocation35_spill] sm:$0xff] %v12492_v31  ;;  %v4982_v45 = vpack.c.bf16 %v12492_v31, %v12486_v42  ;;  %v4983_v29 = vpack.c.bf16 %v12495_v35, %v12489_v48 }
 0x59c   : > { %14028 = vst [vmem:[#allocation34_spill] sm:$0xff] %v12495_v35 }
 0x59d   : > { %5054 = vmatpush.bf16.msra.mxu0 %v4982_v45  ;;  %5067 = vmatpush.bf16.msrb.mxu1 %v4983_v29 }
 0x5a0   : > { %9437 = vmatmul.msk.bf16.vlgmr.msra.gmra.mxu0 %vm1015_vm0, %v12447_v10  ;;  %9438 = vmatmul.msk.bf16.vlgmr.msrb.gmra.mxu1 %vm1015_vm0, %v12447_v10 }
 0x5a8   : > { %v5017_v59 = vpop.f32.mrf.mxu1 }
 0x5a9   : > { %v12508_v24 = vadd.f32 %v5017_v59, %v12505_v12 }
 0x5ab   : > { %5648 = vrot.lane.b32.xlu1 %v12508_v24, %s10086_s22  ;;  %5260 = vrot.lane.b32.xlu2 %v12508_v24, %s10082_s1  ;;  %v5101_v32 = vpack.c.bf16 %v12508_v24, %v12508_v24 }
 0x5ad   : > { %v5123_v27 = vsel %vm5118_vm13, %v5101_v32, 0  ;;  %v5004_v26 = vpop.f32.mrf.mxu0 }
 0x5ae   : > { %5163 = vmatpush.bf16.msra.mxu1 %v5123_v27  ;;  %v12518_v55 = vadd.f32 %v5004_v26, %v12505_v12 }
 0x5b0   : > { %v5019_v20 = vpop.f32.mrf.mxu1  ;;  %5646 = vrot.lane.b32.xlu0 %v12518_v55, %s10086_s22  ;;  %v5100_v8 = vpack.c.bf16 %v12518_v55, %v12518_v55 }
 0x5b2   : > { %v5120_v57 = vsel %vm5118_vm13, %v5100_v8, 0 }
 0x5b3   : > { %5258 = vrot.lane.b32.xlu1 %v12518_v55, %s10082_s1  ;;  %5150 = vmatpush.bf16.msrb.mxu0 %v5120_v57 }
 0x5b5   : > { %v5006_v11 = vpop.f32.mrf.mxu0 }
 0x5b8   : > { %v4958_v37 = vpop.f32.mrf.mxu2  ;;  %v4972_v19 = vpop.f32.mrf.mxu3 }
 0x5b9   : > { %v12528_v18 = vadd.f32 %v4958_v37, %v12436_v44  ;;  %v12531_v6 = vadd.f32 %v4972_v19, %v12436_v44  ;;  %v12654_v37 = vld [vmem:[%s14034_s28 + $0x4] sm:$0xf] }
 0x5bb   : > { %14029 = vst [vmem:[#allocation37_spill] sm:$0xff] %v12528_v18 }
 0x5bc   : > { %14030 = vst [vmem:[#allocation38_spill] sm:$0xff] %v12531_v6 }
 0x5c0   : > { %v4960_v61 = vpop.f32.mrf.mxu2  ;;  %v4974_v34 = vpop.f32.mrf.mxu3 }
 0x5c1   : > { %v12534_v17 = vadd.f32 %v4960_v61, %v12434_v21  ;;  %v12537_v14 = vadd.f32 %v4974_v34, %v12434_v21 }
 0x5c3   : > { %14031 = vst [vmem:[#allocation41_spill] sm:$0xff] %v12534_v17  ;;  %v4984_v28 = vpack.c.bf16 %v12534_v17, %v12528_v18  ;;  %v4985_v38 = vpack.c.bf16 %v12537_v14, %v12531_v6  ;;  %v13103_v6 = vld [vmem:[%s14036_s11] sm:$0xff] }
 0x5c4   : > { %14032 = vst [vmem:[#allocation42_spill] sm:$0xff] %v12537_v14 }
 0x5c5   : > { %5080 = vmatpush.bf16.msrb.mxu2 %v4984_v28  ;;  %5093 = vmatpush.bf16.msra.mxu3 %v4985_v38 }
 0x5c8   : > { %9439 = vmatmul.msk.bf16.vlgmr.msrb.gmra.mxu2 %vm1015_vm0, %v12447_v10  ;;  %9440 = vmatmul.msk.bf16.vlgmr.msra.gmra.mxu3 %vm1015_vm0, %v12447_v10  ;;  %vm5114_vm0 = vcmask 31744  }
 0x5c9   : > { %9441 = vmatmul.msk.bf16.vlgmr.msrb.gmra.mxu0 %vm5114_vm0, %v5099_v2  ;;  %9442 = vmatmul.msk.bf16.vlgmr.msra.gmra.mxu1 %vm5114_vm0, %v5099_v2 }
 0x5e2   : > { %v5030_v44 = vpop.f32.mrf.mxu2  ;;  %v5043_v54 = vpop.f32.mrf.mxu3 }
 0x5e3   : > { %v12548_v21 = vadd.f32 %v5030_v44, %v12505_v12  ;;  %v12551_v23 = vadd.f32 %v5043_v54, %v12505_v12 }
 0x5e5   : > { %5650 = vrot.lane.b32.xlu0 %v12548_v21, %s10086_s22  ;;  %5262 = vrot.lane.b32.xlu1 %v12548_v21, %s10082_s1  ;;  %v5102_v13 = vpack.c.bf16 %v12548_v21, %v12548_v21  ;;  %v5103_v10 = vpack.c.bf16 %v12551_v23, %v12551_v23 }
 0x5e6   : > { %5264 = vrot.lane.b32.xlu2 %v12551_v23, %s10082_s1 }
 0x5e7   : > { %v5126_v49 = vsel %vm5118_vm13, %v5102_v13, 0  ;;  %v5129_v3 = vsel %vm5118_vm13, %v5103_v10, 0  ;;  %v12715_v13 = vld [vmem:[%s14034_s28] sm:$0xf] }
 0x5e8   : > { %5176 = vmatpush.bf16.msra.mxu2 %v5126_v49  ;;  %5189 = vmatpush.bf16.msrb.mxu3 %v5129_v3  ;;  %v12740_v3 = vld [vmem:[%s14034_s28 + $0x8] sm:$0xf] }
 0x5ea   : > { %v5032_v58 = vpop.f32.mrf.mxu2  ;;  %v5045_v25 = vpop.f32.mrf.mxu3 }
 0x5eb   : > { %9443 = vmatmul.msk.bf16.vlgmr.msra.gmra.mxu2 %vm5114_vm0, %v5099_v2  ;;  %9444 = vmatmul.msk.bf16.vlgmr.msrb.gmra.mxu3 %vm5114_vm0, %v5099_v2 }
 0x5ed   : > { %5652 = vrot.lane.b32.xlu1 %v12551_v23, %s10086_s22 }
 0x605   : > { %v5261_v63 = vpop.permute.xlu2 %5260 }
 0x61d   : > { %v12572_v30 = vpop.permute.xlu1 %5648  ;;  %v5056_v52 = vpop.f32.mrf.mxu0 }
 0x61e   : > { %v5069_v33 = vpop.f32.mrf.mxu1  ;;  %v12575_v56 = vadd.f32 %v5056_v52, %v12505_v12 }
 0x61f   : > { %v12578_v7 = vadd.f32 %v5069_v33, %v12505_v12 }
 0x620   : > { %5266 = vrot.lane.b32.xlu0 %v12575_v56, %s10082_s1  ;;  %v5104_v4 = vpack.c.bf16 %v12575_v56, %v12575_v56 }
 0x621   : > { %5268 = vrot.lane.b32.xlu2 %v12578_v7, %s10082_s1  ;;  %v5105_v47 = vpack.c.bf16 %v12578_v7, %v12578_v7 }
 0x622   : > { %v5132_v40 = vsel %vm5118_vm13, %v5104_v4, 0  ;;  %v12676_v19 = vpop.permute.xlu0 %5646 }
 0x623   : > { %v5135_v43 = vsel %vm5118_vm13, %v5105_v47, 0  ;;  %5202 = vmatpush.bf16.msra.mxu0 %v5132_v40  ;;  %v5663_v10 = vsel %vm5662_vm15, %v12676_v19, %v12572_v30 }
 0x624   : > { %5215 = vmatpush.bf16.msrb.mxu1 %v5135_v43 }
 0x625   : > { %v12590_v60 = vpop.permute.xlu1 %5258  ;;  %v5058_v39 = vpop.f32.mrf.mxu0 }
 0x626   : > { %v5274_v50 = vsel %vm1726_vm4, %v12590_v60, %v5261_v63  ;;  %v5071_v41 = vpop.f32.mrf.mxu1  ;;  %9445 = vmatmul.msk.bf16.vlgmr.msra.gmra.mxu0 %vm5114_vm0, %v5099_v2 }
 0x627   : > { %9450 = vmatpush.msk.msrb.mxu0 %vm5287_vm14, %v5274_v50  ;;  %9446 = vmatmul.msk.bf16.vlgmr.msrb.gmra.mxu1 %vm5114_vm0, %v5099_v2 }
 0x629   : > { %5654 = vrot.lane.b32.xlu2 %v12575_v56, %s10086_s22 }
 0x631   : > { %5867 = vrot.lane.b32.xlu2 %v12548_v21, %s10080_s26 }
 0x636   : > { %9451 = vmatmul.msk.f32.vlgmr.msrb.gmra.mxu0 %vm5114_vm0, %v12654_v37 }
 0x639   : > { %5863 = vrot.lane.b32.xlu2 %v12518_v55, %s10080_s26 }
 0x640   : > { %v5265_v26 = vpop.permute.xlu2 %5264 }
 0x641   : > { %6085 = vrot.lane.b32.xlu2 %v12551_v23, %s10085_s10 }
 0x649   : > { %6081 = vrot.lane.b32.xlu2 %v12508_v24, %s10085_s10 }
 0x64b   : > { %v5082_v51 = vpop.f32.mrf.mxu2  ;;  %v5095_v22 = vpop.f32.mrf.mxu3 }
 0x64c   : > { %v12608_v0 = vadd.f32 %v5082_v51, %v12505_v12  ;;  %v12611_v9 = vadd.f32 %v5095_v22, %v12505_v12  ;;  %v12824_v22 = vld [vmem:[%s14034_s28 + $0xc] sm:$0xf] }
 0x64e   : > { %5270 = vrot.lane.b32.xlu0 %v12608_v0, %s10082_s1  ;;  %5272 = vrot.lane.b32.xlu1 %v12611_v9, %s10082_s1  ;;  %v5106_v45 = vpack.c.bf16 %v12608_v0, %v12608_v0  ;;  %v5107_v29 = vpack.c.bf16 %v12611_v9, %v12611_v9  ;;  %s10087_s1 = smov 94  }
 0x650   : > { %v5138_v59 = vsel %vm5118_vm13, %v5106_v45, 0  ;;  %v5141_v32 = vsel %vm5118_vm13, %v5107_v29, 0 }
 0x651   : > { %5228 = vmatpush.bf16.msrb.mxu2 %v5138_v59  ;;  %5241 = vmatpush.bf16.msra.mxu3 %v5141_v32 }
 0x652   : > { %5658 = vrot.lane.b32.xlu2 %v12608_v0, %s10086_s22 }
 0x653   : > { %v5084_v12 = vpop.f32.mrf.mxu2  ;;  %v5097_v27 = vpop.f32.mrf.mxu3 }
 0x654   : > { %9447 = vmatmul.msk.bf16.vlgmr.msrb.gmra.mxu2 %vm5114_vm0, %v5099_v2  ;;  %9448 = vmatmul.msk.bf16.vlgmr.msra.gmra.mxu3 %vm5114_vm0, %v5099_v2  ;;  %v12862_v27 = vld [vmem:[%s14034_s28 + $0x10] sm:$0xf] }
 0x656   : > { %5869 = vrot.lane.b32.xlu0 %v12551_v23, %s10080_s26  ;;  %5656 = vrot.lane.b32.xlu1 %v12578_v7, %s10086_s22 }
 0x657   : > { %v5263_v20 = vpop.permute.xlu1 %5262  ;;  %v12684_v61 = vpop.permute.xlu0 %5650 }
 0x658   : > { %v5275_v8 = vsel %vm1726_vm4, %v5261_v63, %v5263_v20  ;;  %v5276_v57 = vsel %vm1726_vm4, %v5263_v20, %v5265_v26  ;;  %v5664_v50 = vsel %vm5662_vm15, %v12572_v30, %v12684_v61 }
 0x659   : > { %9452 = vmatpush.msk.msra.mxu1 %vm5287_vm14, %v5275_v8  ;;  %9454 = vmatpush.msk.msra.mxu2 %vm5287_vm14, %v5276_v57 }
 0x65a   : > { %6089 = vrot.lane.b32.xlu2 %v12578_v7, %s10085_s10  ;;  %9453 = vmatmul.msk.f32.vlgmr.msra.gmra.mxu1 %vm5114_vm0, %v12654_v37 }
 0x65e   : > { %5865 = vrot.lane.b32.xlu0 %v12508_v24, %s10080_s26  ;;  %5871 = vrot.lane.b32.xlu1 %v12575_v56, %s10080_s26 }
 0x65f   : > { %v5653_v2 = vpop.permute.xlu1 %5652 }
 0x662   : > { %5877 = vrot.lane.b32.xlu2 %v12611_v9, %s10080_s26 }
 0x664   : > { %9455 = vmatmul.msk.f32.vlgmr.msra.gmra.mxu2 %vm5114_vm0, %v12654_v37 }
 0x666   : > { %5873 = vrot.lane.b32.xlu0 %v12578_v7, %s10080_s26  ;;  %6083 = vrot.lane.b32.xlu1 %v12548_v21, %s10085_s10 }
 0x66a   : > { %6303 = vrot.lane.b32.xlu2 %v12575_v56, %s10087_s1 }
 0x66e   : > { %6087 = vrot.lane.b32.xlu0 %v12575_v56, %s10085_s10  ;;  %6079 = vrot.lane.b32.xlu1 %v12518_v55, %s10085_s10 }
 0x672   : > { %6516 = vrot.lane.b32.xlu2 %v12548_v21, %s10088_s2 }
 0x676   : > { %5660 = vrot.lane.b32.xlu0 %v12611_v9, %s10086_s22  ;;  %6301 = vrot.lane.b32.xlu1 %v12551_v23, %s10087_s1  ;;  %s14072_s22 = sld [smem:[#allocation10_spill]] }
 0x67a   : > { %6512 = vrot.lane.b32.xlu2 %v12518_v55, %s10088_s2 }
 0x67b   : > { %v5269_v11 = vpop.permute.xlu2 %5268 }
 0x67e   : > { %6299 = vrot.lane.b32.xlu0 %v12548_v21, %s10087_s1  ;;  %5875 = vrot.lane.b32.xlu1 %v12608_v0, %s10080_s26  ;;  %s14035_s26 = sld [smem:[#allocation9_spill]] }
 0x682   : > { %6307 = vrot.lane.b32.xlu2 %v12608_v0, %s10087_s1 }
 0x683   : > { %v12690_v34 = vpop.permute.xlu2 %5654 }
 0x684   : > { %v7160_v25 = vld [vmem:[%s14035_s26] sm:$0xf]  ;;  %v5666_v39 = vsel %vm5662_vm15, %v5653_v2, %v12690_v34  ;;  %s14077_s26 = sld [smem:[#allocation14_spill]] }
 0x686   : > { %6295 = vrot.lane.b32.xlu0 %v12518_v55, %s10087_s1  ;;  %6297 = vrot.lane.b32.xlu1 %v12508_v24, %s10087_s1 }
 0x68a   : > { %6734 = vrot.lane.b32.xlu2 %v12551_v23, %s10089_s7 }
 0x68b   : > { %v12712_v54 = vpop.permute.xlu2 %5867 }
 0x68e   : > { %6091 = vrot.lane.b32.xlu0 %v12608_v0, %s10085_s10  ;;  %6093 = vrot.lane.b32.xlu1 %v12611_v9, %s10085_s10  ;;  %s10090_s10 = smov 62  }
 0x692   : > { %6526 = vrot.lane.b32.xlu2 %v12611_v9, %s10088_s2  ;;  %v5267_v28 = vpop.permute.xlu0 %5266 }
 0x693   : > { %v5277_v38 = vsel %vm1726_vm4, %v5265_v26, %v5267_v28  ;;  %v5278_v44 = vsel %vm1726_vm4, %v5267_v28, %v5269_v11  ;;  %v12729_v49 = vpop.permute.xlu2 %5863 }
 0x694   : > { %9456 = vmatpush.msk.msrb.mxu3 %vm5287_vm14, %v5277_v38  ;;  %9458 = vmatpush.msk.msra.mxu0 %vm5287_vm14, %v5278_v44 }
 0x695   : > { %9459 = vmatmul.msk.f32.vlgmr.msra.gmra.mxu0 %vm5114_vm0, %v12654_v37  ;;  %9457 = vmatmul.msk.f32.vlgmr.msrb.gmra.mxu3 %vm5114_vm0, %v12654_v37 }
 0x696   : > { %6518 = vrot.lane.b32.xlu0 %v12551_v23, %s10088_s2  ;;  %6305 = vrot.lane.b32.xlu1 %v12578_v7, %s10087_s1 }
 0x697   : > { %9466 = vmatpush.msk.msrb.mxu0 %vm5287_vm14, %v12518_v55 }
 0x699   : > { %9474 = vmatpush.msk.msra.mxu0 %vm5287_vm14, %v12575_v56 }
 0x69a   : > { %6730 = vrot.lane.b32.xlu2 %v12508_v24, %s10089_s7 }
 0x69b   : > { %v12746_v58 = vpop.permute.xlu2 %6085 }
 0x69d   : > { %9467 = vmatmul.msk.f32.vlgmr.msrb.gmra.mxu0 %vm5114_vm0, %v12715_v13 }
 0x69e   : > { %6514 = vrot.lane.b32.xlu0 %v12508_v24, %s10088_s2  ;;  %6520 = vrot.lane.b32.xlu1 %v12575_v56, %s10088_s2 }
 0x69f   : > { %9483 = vmatpush.msk.msrb.mxu0 %vm5287_vm14, %v5663_v10 }
 0x6a2   : > { %6738 = vrot.lane.b32.xlu2 %v12578_v7, %s10089_s7 }
 0x6a3   : > { %v12757_v52 = vpop.permute.xlu2 %6081 }
 0x6a5   : > { %9475 = vmatmul.msk.f32.vlgmr.msra.gmra.mxu0 %vm5114_vm0, %v12715_v13 }
 0x6a6   : > { %6309 = vrot.lane.b32.xlu0 %v12611_v9, %s10087_s1  ;;  %6732 = vrot.lane.b32.xlu1 %v12548_v21, %s10089_s7  ;;  %s14074_s1 = sld [smem:[#allocation12_spill]] }
 0x6aa   : > { %6953 = vrot.lane.b32.xlu2 %v12575_v56, %s10090_s10 }
 0x6ac   : > { %v12769_v43 = vpop.permute.xlu2 %5658 }
 0x6ad   : > { %9484 = vmatmul.msk.f32.vlgmr.msrb.gmra.mxu0 %vm5114_vm0, %v12740_v3 }
 0x6ae   : > { %6522 = vrot.lane.b32.xlu0 %v12578_v7, %s10088_s2  ;;  %6524 = vrot.lane.b32.xlu1 %v12608_v0, %s10088_s2  ;;  %s14075_s2 = sld [smem:[#allocation7_spill]] }
 0x6b2   : > { %6957 = vrot.lane.b32.xlu2 %v12608_v0, %s10090_s10 }
 0x6b4   : > { %v12814_v41 = vpop.permute.xlu2 %6089 }
 0x6b6   : > { %6736 = vrot.lane.b32.xlu0 %v12575_v56, %s10089_s7  ;;  %6728 = vrot.lane.b32.xlu1 %v12518_v55, %s10089_s7 }
 0x6ba   : > { %7163 = vperm.xlu2 %9958, %v7160_v25  }
 0x6be   : > { %6949 = vrot.lane.b32.xlu0 %v12548_v21, %s10090_s10  ;;  %6742 = vrot.lane.b32.xlu1 %v12611_v9, %s10089_s7 }
 0x6c0   : > { %v5271_v33 = vpop.permute.xlu0 %5270  ;;  %v5273_v4 = vpop.permute.xlu1 %5272 }
 0x6c1   : > { %v5279_v47 = vsel %vm1726_vm4, %v5269_v11, %v5271_v33  ;;  %v5280_v56 = vsel %vm1726_vm4, %v5271_v33, %v5273_v4  ;;  %v5283_v40 = vsel %vm1726_vm4, %v5273_v4, %v12590_v60  ;;  %vm6744_vm4 = vcmask 515072  }
 0x6c2   : > { %9460 = vmatpush.msk.msrb.mxu1 %vm5287_vm14, %v5279_v47  ;;  %9462 = vmatpush.msk.msrb.mxu2 %vm5287_vm14, %v5280_v56 }
 0x6c3   : > { %9464 = vmatpush.msk.msra.mxu3 %vm5287_vm14, %v5283_v40  ;;  %9461 = vmatmul.msk.f32.vlgmr.msrb.gmra.mxu1 %vm5114_vm0, %v12654_v37 }
 0x6c4   : > { %9463 = vmatmul.msk.f32.vlgmr.msrb.gmra.mxu2 %vm5114_vm0, %v12654_v37  ;;  %9465 = vmatmul.msk.f32.vlgmr.msra.gmra.mxu3 %vm5114_vm0, %v12654_v37 }
 0x6c5   : > { %9468 = vmatpush.msk.msra.mxu1 %vm5287_vm14, %v12508_v24  ;;  %9470 = vmatpush.msk.msra.mxu2 %vm5287_vm14, %v12548_v21 }
 0x6c6   : > { %9472 = vmatpush.msk.msrb.mxu3 %vm5287_vm14, %v12551_v23  ;;  %6740 = vrot.lane.b32.xlu0 %v12608_v0, %s10089_s7  ;;  %s14076_s7 = sld [smem:[#allocation13_spill]] }
 0x6c7   : > { %9476 = vmatpush.msk.msrb.mxu1 %vm5287_vm14, %v12578_v7  ;;  %9478 = vmatpush.msk.msrb.mxu2 %vm5287_vm14, %v12608_v0 }
 0x6c8   : > { %9480 = vmatpush.msk.msra.mxu3 %vm5287_vm14, %v12611_v9  ;;  %6951 = vrot.lane.b32.xlu1 %v12551_v23, %s10090_s10  ;;  %v12794_v63 = vpop.permute.xlu0 %5869  ;;  %v5657_v21 = vpop.permute.xlu1 %5656  ;;  %v5665_v23 = vsel %vm5662_vm15, %v12684_v61, %v5653_v2 }
 0x6c9   : > { %v5667_v60 = vsel %vm5662_vm15, %v12690_v34, %v5657_v21  ;;  %v5881_v28 = vsel %vm1962_vm2, %v12712_v54, %v12794_v63 }
 0x6ca   : > { %9491 = vmatpush.msk.msra.mxu0 %vm5287_vm14, %v5667_v60 }
 0x6cb   : > { %9469 = vmatmul.msk.f32.vlgmr.msra.gmra.mxu1 %vm5114_vm0, %v12715_v13  ;;  %9492 = vmatmul.msk.f32.vlgmr.msra.gmra.mxu0 %vm5114_vm0, %v12740_v3 }
 0x6cc   : > { %9471 = vmatmul.msk.f32.vlgmr.msra.gmra.mxu2 %vm5114_vm0, %v12715_v13  ;;  %9473 = vmatmul.msk.f32.vlgmr.msrb.gmra.mxu3 %vm5114_vm0, %v12715_v13 }
 0x6cd   : > { %9485 = vmatpush.msk.msra.mxu1 %vm5287_vm14, %v5664_v50  ;;  %9487 = vmatpush.msk.msra.mxu2 %vm5287_vm14, %v5665_v23 }
 0x6ce   : > { %9489 = vmatpush.msk.msrb.mxu3 %vm5287_vm14, %v5666_v39  ;;  %6945 = vrot.lane.b32.xlu0 %v12518_v55, %s10090_s10  ;;  %v5668_v55 = vsel %vm5662_vm15, %v5657_v21, %v12769_v43  ;;  %v12948_v21 = vpop.f32.mrf.mxu3 }
 0x6d0   : > { %6947 = vrot.lane.b32.xlu1 %v12508_v24, %s10090_s10  ;;  %v5866_v30 = vpop.permute.xlu0 %5865  ;;  %v5872_v51 = vpop.permute.xlu1 %5871 }
 0x6d1   : > { %v5879_v0 = vsel %vm1962_vm2, %v12729_v49, %v5866_v30  ;;  %v5878_v24 = vpop.permute.xlu2 %5877  ;;  %v5880_v32 = vsel %vm1962_vm2, %v5866_v30, %v12712_v54  ;;  %v5882_v44 = vsel %vm1962_vm2, %v12794_v63, %v5872_v51  ;;  %v12946_v63 = vpop.f32.mrf.mxu2 }
 0x6d2   : > { %9500 = vmatpush.msk.msrb.mxu0 %vm5287_vm14, %v5879_v0  ;;  %v5888_v54 = vsel %vm1962_vm2, %v5878_v24, %v12729_v49 }
 0x6d3   : > { %9477 = vmatmul.msk.f32.vlgmr.msrb.gmra.mxu1 %vm5114_vm0, %v12715_v13  ;;  %9501 = vmatmul.msk.f32.vlgmr.msrb.gmra.mxu0 %vm5114_vm0, %v12824_v22 }
 0x6d4   : > { %9479 = vmatmul.msk.f32.vlgmr.msrb.gmra.mxu2 %vm5114_vm0, %v12715_v13  ;;  %9481 = vmatmul.msk.f32.vlgmr.msra.gmra.mxu3 %vm5114_vm0, %v12715_v13 }
 0x6d5   : > { %9493 = vmatpush.msk.msrb.mxu1 %vm5287_vm14, %v5668_v55 }
 0x6d6   : > { %6959 = vrot.lane.b32.xlu0 %v12611_v9, %s10090_s10 }
 0x6d8   : > { %6955 = vrot.lane.b32.xlu1 %v12578_v7, %s10090_s10  ;;  %v5874_v45 = vpop.permute.xlu0 %5873  ;;  %v6084_v29 = vpop.permute.xlu1 %6083  ;;  %s14078_s10 = sld [smem:[#allocation15_spill]] }
 0x6d9   : > { %v5883_v59 = vsel %vm1962_vm2, %v5872_v51, %v5874_v45  ;;  %v12856_v7 = vpop.f32.mrf.mxu0  ;;  %v12864_v26 = vpop.permute.xlu2 %6303  ;;  %v6097_v49 = vsel %vm2080_vm9, %v6084_v29, %v12746_v58  ;;  %v6096_v2 = vsel %vm2080_vm9, %v12757_v52, %v6084_v29 }
 0x6da   : > { %9508 = vmatpush.msk.msra.mxu0 %vm5287_vm14, %v5883_v59 }
 0x6db   : > { %9486 = vmatmul.msk.f32.vlgmr.msra.gmra.mxu1 %vm5114_vm0, %v12740_v3  ;;  %9509 = vmatmul.msk.f32.vlgmr.msra.gmra.mxu0 %vm5114_vm0, %v12824_v22 }
 0x6dc   : > { %9488 = vmatmul.msk.f32.vlgmr.msra.gmra.mxu2 %vm5114_vm0, %v12740_v3  ;;  %9490 = vmatmul.msk.f32.vlgmr.msrb.gmra.mxu3 %vm5114_vm0, %v12740_v3 }
 0x6dd   : > { %9502 = vmatpush.msk.msra.mxu1 %vm5287_vm14, %v5880_v32 }
 0x6e0   : > { %v6088_v9 = vpop.permute.xlu0 %6087  ;;  %v12859_v12 = vpop.permute.xlu1 %6079 }
 0x6e1   : > { %v6099_v20 = vsel %vm2080_vm9, %v6088_v9, %v12814_v41  ;;  %v6095_v8 = vsel %vm2080_vm9, %v12859_v12, %v12757_v52  ;;  %v5154_v57 = vpop.f32.mrf.mxu0  ;;  %v12888_v38 = vpop.permute.xlu2 %6516  ;;  %v6098_v33 = vsel %vm2080_vm9, %v12746_v58, %v6088_v9  ;;  %v12933_v58 = vld [vmem:[%s14034_s28 + $0x14] sm:$0xf] }
 0x6e2   : > { %9517 = vmatpush.msk.msrb.mxu0 %vm5287_vm14, %v6095_v8 }
 0x6e3   : > { %9494 = vmatmul.msk.f32.vlgmr.msrb.gmra.mxu1 %vm5114_vm0, %v12740_v3  ;;  %9518 = vmatmul.msk.f32.vlgmr.msrb.gmra.mxu0 %vm5114_vm0, %v12862_v27 }
 0x6e4   : > { %9525 = vmatpush.msk.msra.mxu0 %vm5287_vm14, %v6099_v20 }
 0x6e8   : > { %v5661_v37 = vpop.permute.xlu0 %5660  ;;  %v12877_v11 = vpop.permute.xlu1 %6301 }
 0x6e9   : > { %v5669_v61 = vsel %vm5662_vm15, %v12769_v43, %v5661_v37  ;;  %v5672_v34 = vsel %vm5662_vm15, %v5661_v37, %v12676_v19  ;;  %v12899_v19 = vpop.f32.mrf.mxu0  ;;  %v12924_v47 = vpop.permute.xlu2 %6512 }
 0x6ea   : > { %9495 = vmatpush.msk.msrb.mxu2 %vm5287_vm14, %v5669_v61  ;;  %9497 = vmatpush.msk.msra.mxu3 %vm5287_vm14, %v5672_v34  ;;  %v12935_v43 = vpop.f32.mrf.mxu1  ;;  %v9550_v61 = vld [vmem:[%s14034_s28 + $0x18] sm:$0xf] }
 0x6eb   : > { %9496 = vmatmul.msk.f32.vlgmr.msrb.gmra.mxu2 %vm5114_vm0, %v12740_v3  ;;  %9498 = vmatmul.msk.f32.vlgmr.msra.gmra.mxu3 %vm5114_vm0, %v12740_v3 }
 0x6ec   : > { %9503 = vmatmul.msk.f32.vlgmr.msra.gmra.mxu1 %vm5114_vm0, %v12824_v22  ;;  %9504 = vmatpush.msk.msra.mxu2 %vm5287_vm14, %v5881_v28 }
 0x6ed   : > { %9506 = vmatpush.msk.msrb.mxu3 %vm5287_vm14, %v5882_v44  ;;  %9526 = vmatmul.msk.f32.vlgmr.msra.gmra.mxu0 %vm5114_vm0, %v12862_v27 }
 0x6ef   : > { %9514 = vmatpush.msk.msra.mxu3 %vm5287_vm14, %v5888_v54 }
 0x6f0   : > { %v6300_v13 = vpop.permute.xlu0 %6299  ;;  %v5876_v10 = vpop.permute.xlu1 %5875 }
 0x6f1   : > { %v5884_v3 = vsel %vm1962_vm2, %v5874_v45, %v5876_v10  ;;  %v5885_v25 = vsel %vm1962_vm2, %v5876_v10, %v5878_v24  ;;  %v5206_v4 = vpop.f32.mrf.mxu0  ;;  %vm6311_vm2 = vcmask 769024   ;;  %v6308_v60 = vpop.permute.xlu2 %6307 }
 0x6f2   : > { %9510 = vmatpush.msk.msrb.mxu1 %vm5287_vm14, %v5884_v3  ;;  %9512 = vmatpush.msk.msrb.mxu2 %vm5287_vm14, %v5885_v25  ;;  %v6314_v0 = vsel %vm6311_vm2, %v6300_v13, %v12877_v11  ;;  %v6315_v55 = vsel %vm6311_vm2, %v12877_v11, %v12864_v26  ;;  %v5180_v24 = vpop.f32.mrf.mxu2  ;;  %v5193_v45 = vpop.f32.mrf.mxu3 }
 0x6f3   : > { %9505 = vmatmul.msk.f32.vlgmr.msra.gmra.mxu2 %vm5114_vm0, %v12824_v22  ;;  %9507 = vmatmul.msk.f32.vlgmr.msrb.gmra.mxu3 %vm5114_vm0, %v12824_v22 }
 0x6f4   : > { %9511 = vmatmul.msk.f32.vlgmr.msrb.gmra.mxu1 %vm5114_vm0, %v12824_v22  ;;  %9521 = vmatpush.msk.msra.mxu2 %vm5287_vm14, %v6097_v49 }
 0x6f5   : > { %9519 = vmatpush.msk.msra.mxu1 %vm5287_vm14, %v6096_v2  ;;  %9523 = vmatpush.msk.msrb.mxu3 %vm5287_vm14, %v6098_v33 }
 0x6f8   : > { %v12928_v56 = vpop.permute.xlu0 %6295  ;;  %v6298_v40 = vpop.permute.xlu1 %6297 }
 0x6f9   : > { %v6312_v52 = vsel %vm6311_vm2, %v12928_v56, %v6298_v40  ;;  %v12978_v20 = vpop.permute.xlu2 %6734  ;;  %v5322_v8 = vpop.f32.mrf.mxu0 }
 0x6fa   : > { %9534 = vmatpush.msk.msrb.mxu0 %vm5287_vm14, %v6312_v52  ;;  %v12992_v57 = vpop.f32.mrf.mxu3 }
 0x6fb   : > { %9513 = vmatmul.msk.f32.vlgmr.msrb.gmra.mxu2 %vm5114_vm0, %v12824_v22  ;;  %9515 = vmatmul.msk.f32.vlgmr.msra.gmra.mxu3 %vm5114_vm0, %v12824_v22  ;;  %v5167_v22 = vpop.f32.mrf.mxu1 }
 0x6fc   : > { %9520 = vmatmul.msk.f32.vlgmr.msra.gmra.mxu1 %vm5114_vm0, %v12862_v27  ;;  %9535 = vmatmul.msk.f32.vlgmr.msrb.gmra.mxu0 %vm5114_vm0, %v12933_v58 }
 0x700   : > { %v6092_v50 = vpop.permute.xlu0 %6091  ;;  %v6094_v23 = vpop.permute.xlu1 %6093 }
 0x701   : > { %v6100_v39 = vsel %vm2080_vm9, %v12814_v41, %v6092_v50  ;;  %v6101_v30 = vsel %vm2080_vm9, %v6092_v50, %v6094_v23  ;;  %v6104_v51 = vsel %vm2080_vm9, %v6094_v23, %v12859_v12  ;;  %v6313_v41 = vsel %vm6311_vm2, %v6298_v40, %v6300_v13 }
 0x702   : > { %9527 = vmatpush.msk.msrb.mxu1 %vm5287_vm14, %v6100_v39  ;;  %9529 = vmatpush.msk.msrb.mxu2 %vm5287_vm14, %v6101_v30  ;;  %v5245_v10 = vpop.f32.mrf.mxu3  ;;  %vm6961_vm9 = vcmask 506880  }
 0x703   : > { %9531 = vmatpush.msk.msra.mxu3 %vm5287_vm14, %v6104_v51  ;;  %9522 = vmatmul.msk.f32.vlgmr.msra.gmra.mxu2 %vm5114_vm0, %v12862_v27  ;;  %v12976_v12 = vpop.f32.mrf.mxu1 }
 0x704   : > { %9524 = vmatmul.msk.f32.vlgmr.msrb.gmra.mxu3 %vm5114_vm0, %v12862_v27  ;;  %9528 = vmatmul.msk.f32.vlgmr.msrb.gmra.mxu1 %vm5114_vm0, %v12862_v27 }
 0x705   : > { %9536 = vmatpush.msk.msra.mxu1 %vm5287_vm14, %v6313_v41  ;;  %9538 = vmatpush.msk.msra.mxu2 %vm5287_vm14, %v6314_v0  ;;  %v9567_v41 = vld [vmem:[%s14034_s28 + $0x1c] sm:$0xf] }
 0x706   : > { %9540 = vmatpush.msk.msrb.mxu3 %vm5287_vm14, %v6315_v55 }
 0x708   : > { %v6519_v29 = vpop.permute.xlu0 %6518  ;;  %v6306_v59 = vpop.permute.xlu1 %6305 }
 0x709   : > { %v6316_v32 = vsel %vm6311_vm2, %v12864_v26, %v6306_v59  ;;  %v6317_v9 = vsel %vm6311_vm2, %v6306_v59, %v6308_v60  ;;  %v12990_v26 = vpop.f32.mrf.mxu2  ;;  %v6530_v40 = vsel %vm4861_vm8, %v12888_v38, %v6519_v29 }
 0x70a   : > { %9542 = vmatpush.msk.msra.mxu0 %vm5287_vm14, %v6316_v32  ;;  %9544 = vmatpush.msk.msrb.mxu1 %vm5287_vm14, %v6317_v9 }
 0x70b   : > { %9530 = vmatmul.msk.f32.vlgmr.msrb.gmra.mxu2 %vm5114_vm0, %v12862_v27  ;;  %9543 = vmatmul.msk.f32.vlgmr.msra.gmra.mxu0 %vm5114_vm0, %v12933_v58  ;;  %v5219_v44 = vpop.f32.mrf.mxu1 }
 0x70c   : > { %9532 = vmatmul.msk.f32.vlgmr.msra.gmra.mxu3 %vm5114_vm0, %v12862_v27  ;;  %9537 = vmatmul.msk.f32.vlgmr.msra.gmra.mxu1 %vm5114_vm0, %v12933_v58  ;;  %v6527_v27 = vpop.permute.xlu2 %6526 }
 0x70d   : > { %v6537_v4 = vsel %vm4861_vm8, %v6527_v27, %v12924_v47 }
 0x710   : > { %v6515_v37 = vpop.permute.xlu0 %6514  ;;  %v6521_v11 = vpop.permute.xlu1 %6520 }
 0x711   : > { %v6528_v34 = vsel %vm4861_vm8, %v12924_v47, %v6515_v37  ;;  %v6529_v28 = vsel %vm4861_vm8, %v6515_v37, %v12888_v38  ;;  %v5232_v13 = vpop.f32.mrf.mxu2  ;;  %v6531_v33 = vsel %vm4861_vm8, %v6519_v29, %v6521_v11 }
 0x712   : > { %9551 = vmatpush.msk.msrb.mxu0 %vm5287_vm14, %v6528_v34  ;;  %9553 = vmatpush.msk.msra.mxu1 %vm5287_vm14, %v6529_v28  ;;  %v13008_v54 = vpop.f32.mrf.mxu0 }
 0x713   : > { %9539 = vmatmul.msk.f32.vlgmr.msra.gmra.mxu2 %vm5114_vm0, %v12933_v58  ;;  %9552 = vmatmul.msk.f32.vlgmr.msrb.gmra.mxu0 %vm5114_vm0, %v9550_v61  ;;  %v5342_v37 = vpop.f32.mrf.mxu1 }
 0x714   : > { %9541 = vmatmul.msk.f32.vlgmr.msrb.gmra.mxu3 %vm5114_vm0, %v12933_v58  ;;  %9545 = vmatmul.msk.f32.vlgmr.msrb.gmra.mxu1 %vm5114_vm0, %v12933_v58 }
 0x718   : > { %v6310_v3 = vpop.permute.xlu0 %6309  ;;  %v6733_v25 = vpop.permute.xlu1 %6732 }
 0x719   : > { %v6318_v49 = vsel %vm6311_vm2, %v6308_v60, %v6310_v3  ;;  %v6321_v2 = vsel %vm6311_vm2, %v6310_v3, %v12928_v56  ;;  %v6731_v60 = vpop.permute.xlu2 %6730  ;;  %v5362_v10 = vpop.f32.mrf.mxu2 }
 0x71a   : > { %9546 = vmatpush.msk.msrb.mxu2 %vm5287_vm14, %v6318_v49  ;;  %9548 = vmatpush.msk.msra.mxu3 %vm5287_vm14, %v6321_v2  ;;  %v5501_v56 = vpop.f32.mrf.mxu0  ;;  %v6746_v30 = vsel %vm6744_vm4, %v6731_v60, %v6733_v25  ;;  %v5382_v3 = vpop.f32.mrf.mxu3 }
 0x71b   : > { %9547 = vmatmul.msk.f32.vlgmr.msrb.gmra.mxu2 %vm5114_vm0, %v12933_v58  ;;  %v5502_v52 = vadd.f32 %v5501_v56, %v5322_v8 }
 0x71c   : > { %9557 = vmatpush.msk.msrb.mxu3 %vm5287_vm14, %v6531_v33  ;;  %9554 = vmatmul.msk.f32.vlgmr.msra.gmra.mxu1 %vm5114_vm0, %v9550_v61  ;;  %v9584_v33 = vld [vmem:[%s14034_s28 + $0x20] sm:$0xf] }
 0x71d   : > { %9549 = vmatmul.msk.f32.vlgmr.msra.gmra.mxu3 %vm5114_vm0, %v12933_v58  ;;  %9555 = vmatpush.msk.msra.mxu2 %vm5287_vm14, %v6530_v40  ;;  %v6747_v58 = vsel %vm6744_vm4, %v6733_v25, %v12978_v20 }
 0x71e   : > { %9565 = vmatpush.msk.msra.mxu3 %vm5287_vm14, %v6537_v4 }
 0x720   : > { %v6523_v50 = vpop.permute.xlu0 %6522  ;;  %v6525_v23 = vpop.permute.xlu1 %6524 }
 0x721   : > { %v6532_v47 = vsel %vm4861_vm8, %v6521_v11, %v6523_v50  ;;  %v6533_v39 = vsel %vm4861_vm8, %v6523_v50, %v6525_v23  ;;  %v6534_v38 = vsel %vm4861_vm8, %v6525_v23, %v6527_v27  ;;  %v6739_v55 = vpop.permute.xlu2 %6738  ;;  %vm7572_vm8 = vcmask 289792  }
 0x722   : > { %9559 = vmatpush.msk.msra.mxu0 %vm5287_vm14, %v6532_v47  ;;  %9561 = vmatpush.msk.msrb.mxu1 %vm5287_vm14, %v6533_v39  ;;  %v5581_v51 = vpop.f32.mrf.mxu0 }
 0x723   : > { %9563 = vmatpush.msk.msrb.mxu2 %vm5287_vm14, %v6534_v38  ;;  %9560 = vmatmul.msk.f32.vlgmr.msra.gmra.mxu0 %vm5114_vm0, %v9550_v61  ;;  %v5582_v56 = vadd.f32 %v5581_v51, %v13008_v54 }
 0x724   : > { %9556 = vmatmul.msk.f32.vlgmr.msra.gmra.mxu2 %vm5114_vm0, %v9550_v61  ;;  %9562 = vmatmul.msk.f32.vlgmr.msrb.gmra.mxu1 %vm5114_vm0, %v9550_v61 }
 0x725   : > { %9558 = vmatmul.msk.f32.vlgmr.msrb.gmra.mxu3 %vm5114_vm0, %v9550_v61  ;;  %9572 = vmatpush.msk.msra.mxu2 %vm5287_vm14, %v6747_v58 }
 0x726   : > { %9570 = vmatpush.msk.msra.mxu1 %vm5287_vm14, %v6746_v30 }
 0x728   : > { %v6737_v22 = vpop.permute.xlu0 %6736  ;;  %v6729_v0 = vpop.permute.xlu1 %6728 }
 0x729   : > { %v6748_v24 = vsel %vm6744_vm4, %v12978_v20, %v6737_v22  ;;  %v6745_v45 = vsel %vm6744_vm4, %v6729_v0, %v6731_v60  ;;  %v6749_v29 = vsel %vm6744_vm4, %v6737_v22, %v6739_v55  ;;  %v6954_v11 = vpop.permute.xlu2 %6953 }
 0x72a   : > { %9568 = vmatpush.msk.msrb.mxu0 %vm5287_vm14, %v6745_v45  ;;  %9574 = vmatpush.msk.msrb.mxu3 %vm5287_vm14, %v6748_v24  ;;  %v5710_v59 = vpop.f32.mrf.mxu0 }
 0x72b   : > { %9569 = vmatmul.msk.f32.vlgmr.msrb.gmra.mxu0 %vm5114_vm0, %v9567_v41  ;;  %v13055_v32 = vadd.f32 %v5710_v59, %v5502_v52 }
 0x72c   : > { %9564 = vmatmul.msk.f32.vlgmr.msrb.gmra.mxu2 %vm5114_vm0, %v9550_v61  ;;  %9571 = vmatmul.msk.f32.vlgmr.msra.gmra.mxu1 %vm5114_vm0, %v9567_v41 }
 0x72d   : > { %9566 = vmatmul.msk.f32.vlgmr.msra.gmra.mxu3 %vm5114_vm0, %v9550_v61  ;;  %9576 = vmatpush.msk.msra.mxu0 %vm5287_vm14, %v6749_v29 }
 0x730   : > { %v6950_v9 = vpop.permute.xlu0 %6949  ;;  %v6743_v20 = vpop.permute.xlu1 %6742 }
 0x731   : > { %v6754_v8 = vsel %vm6744_vm4, %v6743_v20, %v6729_v0  ;;  %v6958_v47 = vpop.permute.xlu2 %6957 }
 0x732   : > { %9582 = vmatpush.msk.msra.mxu3 %vm5287_vm14, %v6754_v8 }
 0x733   : > { %9577 = vmatmul.msk.f32.vlgmr.msra.gmra.mxu0 %vm5114_vm0, %v9567_v41 }
 0x734   : > { %9573 = vmatmul.msk.f32.vlgmr.msra.gmra.mxu2 %vm5114_vm0, %v9567_v41 }
 0x735   : > { %9575 = vmatmul.msk.f32.vlgmr.msrb.gmra.mxu3 %vm5114_vm0, %v9567_v41 }
 0x738   : > { %v6741_v61 = vpop.permute.xlu0 %6740 }
 0x739   : > { %v6750_v28 = vsel %vm6744_vm4, %v6739_v55, %v6741_v61  ;;  %v6751_v44 = vsel %vm6744_vm4, %v6741_v61, %v6743_v20 }
 0x73a   : > { %v6952_v34 = vpop.permute.xlu1 %6951  ;;  %9578 = vmatpush.msk.msrb.mxu1 %vm5287_vm14, %v6750_v28  ;;  %9580 = vmatpush.msk.msrb.mxu2 %vm5287_vm14, %v6751_v44 }
 0x73b   : > { %v6965_v27 = vsel %vm6961_vm9, %v6952_v34, %v6954_v11  ;;  %v6964_v13 = vsel %vm6961_vm9, %v6950_v9, %v6952_v34  ;;  %9579 = vmatmul.msk.f32.vlgmr.msrb.gmra.mxu1 %vm5114_vm0, %v9567_v41 }
 0x73c   : > { %9591 = vmatpush.msk.msrb.mxu3 %vm5287_vm14, %v6965_v27  ;;  %9581 = vmatmul.msk.f32.vlgmr.msrb.gmra.mxu2 %vm5114_vm0, %v9567_v41 }
 0x73d   : > { %9583 = vmatmul.msk.f32.vlgmr.msra.gmra.mxu3 %vm5114_vm0, %v9567_v41  ;;  %9589 = vmatpush.msk.msra.mxu2 %vm5287_vm14, %v6964_v13 }
 0x740   : > { %v5422_v25 = vpop.f32.mrf.mxu1  ;;  %v6946_v49 = vpop.permute.xlu0 %6945 }
 0x742   : > { %v6948_v2 = vpop.permute.xlu1 %6947 }
 0x743   : > { %v6962_v4 = vsel %vm6961_vm9, %v6946_v49, %v6948_v2  ;;  %v6963_v40 = vsel %vm6961_vm9, %v6948_v2, %v6950_v9 }
 0x744   : > { %9585 = vmatpush.msk.msrb.mxu0 %vm5287_vm14, %v6962_v4  ;;  %9587 = vmatpush.msk.msra.mxu1 %vm5287_vm14, %v6963_v40 }
 0x745   : > { %9586 = vmatmul.msk.f32.vlgmr.msrb.gmra.mxu0 %vm5114_vm0, %v9584_v33  ;;  %9588 = vmatmul.msk.f32.vlgmr.msra.gmra.mxu1 %vm5114_vm0, %v9584_v33 }
 0x746   : > { %9590 = vmatmul.msk.f32.vlgmr.msra.gmra.mxu2 %vm5114_vm0, %v9584_v33  ;;  %9592 = vmatmul.msk.f32.vlgmr.msrb.gmra.mxu3 %vm5114_vm0, %v9584_v33 }
 0x747   : > { %v5442_v52 = vpop.f32.mrf.mxu2  ;;  %v5462_v60 = vpop.f32.mrf.mxu3 }
 0x748   : > { %v5521_v50 = vpop.f32.mrf.mxu1  ;;  %v5790_v23 = vpop.f32.mrf.mxu0 }
 0x749   : > { %v5522_v39 = vadd.f32 %v5521_v50, %v5342_v37  ;;  %v5857_v38 = vadd.f32 %v5790_v23, %v5582_v56  ;;  %v6960_v58 = vpop.permute.xlu0 %6959 }
 0x74a   : > { %v6956_v30 = vpop.permute.xlu1 %6955  ;;  %v6968_v22 = vsel %vm6961_vm9, %v6958_v47, %v6960_v58  ;;  %v6971_v54 = vsel %vm6961_vm9, %v6960_v58, %v6946_v49 }
 0x74b   : > { %v6966_v51 = vsel %vm6961_vm9, %v6954_v11, %v6956_v30  ;;  %v6967_v0 = vsel %vm6961_vm9, %v6956_v30, %v6958_v47  ;;  %9597 = vmatpush.msk.msrb.mxu2 %vm5287_vm14, %v6968_v22  ;;  %9599 = vmatpush.msk.msra.mxu3 %vm5287_vm14, %v6971_v54 }
 0x74c   : > { %9593 = vmatpush.msk.msra.mxu0 %vm5287_vm14, %v6966_v51  ;;  %9595 = vmatpush.msk.msrb.mxu1 %vm5287_vm14, %v6967_v0 }
 0x74d   : > { %9594 = vmatmul.msk.f32.vlgmr.msra.gmra.mxu0 %vm5114_vm0, %v9584_v33  ;;  %9596 = vmatmul.msk.f32.vlgmr.msrb.gmra.mxu1 %vm5114_vm0, %v9584_v33 }
 0x74e   : > { %9598 = vmatmul.msk.f32.vlgmr.msrb.gmra.mxu2 %vm5114_vm0, %v9584_v33  ;;  %9600 = vmatmul.msk.f32.vlgmr.msra.gmra.mxu3 %vm5114_vm0, %v9584_v33 }
 0x74f   : > { %v5541_v41 = vpop.f32.mrf.mxu2  ;;  %v5561_v55 = vpop.f32.mrf.mxu3 }
 0x750   : > { %v5542_v24 = vadd.f32 %v5541_v41, %v5362_v10  ;;  %v5562_v45 = vadd.f32 %v5561_v55, %v5382_v3  ;;  %v5601_v29 = vpop.f32.mrf.mxu1  ;;  %v5926_v59 = vpop.f32.mrf.mxu0 }
 0x751   : > { %v6069_v9 = vadd.f32 %v5926_v59, %v13055_v32  ;;  %v5602_v28 = vadd.f32 %v5601_v29, %v5422_v25 }
 0x757   : > { %v5621_v20 = vpop.f32.mrf.mxu2  ;;  %v5641_v8 = vpop.f32.mrf.mxu3 }
 0x758   : > { %v5730_v37 = vpop.f32.mrf.mxu1  ;;  %v6006_v11 = vpop.f32.mrf.mxu0  ;;  %v5622_v56 = vadd.f32 %v5621_v20, %v5442_v52  ;;  %v5642_v50 = vadd.f32 %v5641_v8, %v5462_v60 }
 0x759   : > { %v5854_v61 = vadd.f32 %v5730_v37, %v5522_v39  ;;  %v6073_v34 = vadd.f32 %v6006_v11, %v5857_v38 }
 0x75f   : > { %v5750_v44 = vpop.f32.mrf.mxu2  ;;  %v5770_v27 = vpop.f32.mrf.mxu3 }
 0x760   : > { %v5855_v13 = vadd.f32 %v5750_v44, %v5542_v24  ;;  %v5856_v49 = vadd.f32 %v5770_v27, %v5562_v45  ;;  %v5810_v2 = vpop.f32.mrf.mxu1  ;;  %v6142_v33 = vpop.f32.mrf.mxu0 }
 0x761   : > { %v5858_v4 = vadd.f32 %v5810_v2, %v5602_v28  ;;  %v6285_v10 = vadd.f32 %v6142_v33, %v6069_v9 }
 0x769   : > { %v5946_v3 = vpop.f32.mrf.mxu1 }
 0x76a   : > { %v6070_v40 = vadd.f32 %v5946_v3, %v5854_v61  ;;  %v6222_v59 = vpop.f32.mrf.mxu0 }
 0x76e   : > { %v5830_v32 = vpop.f32.mrf.mxu2  ;;  %v5850_v23 = vpop.f32.mrf.mxu3 }
 0x76f   : > { %v5859_v47 = vadd.f32 %v5830_v32, %v5622_v56  ;;  %v5860_v58 = vadd.f32 %v5850_v23, %v5642_v50 }
 0x771   : > { %v6026_v30 = vpop.f32.mrf.mxu1 }
 0x772   : > { %v6074_v39 = vadd.f32 %v6026_v30, %v5858_v4 }
 0x776   : > { %v5966_v38 = vpop.f32.mrf.mxu2  ;;  %v5986_v25 = vpop.f32.mrf.mxu3 }
 0x777   : > { %v6071_v22 = vadd.f32 %v5966_v38, %v5855_v13  ;;  %v6072_v54 = vadd.f32 %v5986_v25, %v5856_v49 }
 0x779   : > { %v6162_v51 = vpop.f32.mrf.mxu1  ;;  %v6359_v37 = vpop.f32.mrf.mxu0 }
 0x77a   : > { %v6286_v0 = vadd.f32 %v6162_v51, %v6070_v40  ;;  %v6502_v25 = vadd.f32 %v6359_v37, %v6285_v10 }
 0x77e   : > { %v6046_v41 = vpop.f32.mrf.mxu2  ;;  %v6066_v55 = vpop.f32.mrf.mxu3 }
 0x77f   : > { %v6075_v24 = vadd.f32 %v6046_v41, %v5859_v47  ;;  %v6076_v45 = vadd.f32 %v6066_v55, %v5860_v58  ;;  %v6289_v58 = vadd.f32 %v6222_v59, %v6073_v34 }
 0x781   : > { %v6242_v29 = vpop.f32.mrf.mxu1 }
 0x782   : > { %v6290_v30 = vadd.f32 %v6242_v29, %v6074_v39 }
 0x786   : > { %v6182_v52 = vpop.f32.mrf.mxu2 }
 0x787   : > { %v6287_v60 = vadd.f32 %v6182_v52, %v6071_v22  ;;  %v6202_v9 = vpop.f32.mrf.mxu3  ;;  %v13097_v52 = vld [vmem:[%s14036_s11 + $0x10] sm:$0xff] }
 0x788   : > { %v6288_v20 = vadd.f32 %v6202_v9, %v6072_v54  ;;  %v6439_v28 = vpop.f32.mrf.mxu0  ;;  %v13100_v9 = vld [vmem:[%s14036_s11 + $0x8] sm:$0xff] }
 0x789   : > { %v6379_v8 = vpop.f32.mrf.mxu1  ;;  %v6506_v54 = vadd.f32 %v6439_v28, %v6289_v58  ;;  %v7221_v37 = vperm.slane %v13100_v9, 1  ;;  %v7176_v28 = vperm.slane %v13103_v6, 0  ;;  %v7178_v58 = vperm.slane %v13103_v6, 2 }
 0x78a   : > { %v6503_v22 = vadd.f32 %v6379_v8, %v6286_v0  ;;  %v7220_v8 = vperm.slane %v13100_v9, 0 }
 0x78e   : > { %v6262_v11 = vpop.f32.mrf.mxu2 }
 0x78f   : > { %v6282_v61 = vpop.f32.mrf.mxu3  ;;  %v6291_v51 = vadd.f32 %v6262_v11, %v6075_v24  ;;  %v7264_v24 = vperm.slane %v13097_v52, 0  ;;  %v13110_v11 = vld [vmem:[%s14036_s11 + $0x18] sm:$0xff] }
 0x790   : > { %v6575_v49 = vpop.f32.mrf.mxu0  ;;  %v6292_v41 = vadd.f32 %v6282_v61, %v6076_v45  ;;  %v7265_v45 = vperm.slane %v13097_v52, 1 }
 0x791   : > { %v6459_v44 = vpop.f32.mrf.mxu1  ;;  %v6718_v14 = vadd.f32 %v6575_v49, %v6502_v25  ;;  %v7177_v49 = vperm.slane %v13103_v6, 1 }
 0x792   : > { %v6507_v55 = vadd.f32 %v6459_v44, %v6290_v30  ;;  %v13163_v30 = vld [vmem:[%s14036_s11 + $0x30] sm:$0xff] }
 0x796   : > { %v6399_v27 = vpop.f32.mrf.mxu2 }
 0x797   : > { %v6419_v13 = vpop.f32.mrf.mxu3  ;;  %v6504_v17 = vadd.f32 %v6399_v27, %v6287_v60  ;;  %v7266_v27 = vperm.slane %v13097_v52, 2 }
 0x798   : > { %v6505_v35 = vadd.f32 %v6419_v13, %v6288_v20  ;;  %v7267_v13 = vperm.slane %v13097_v52, 3 }
 0x799   : > { %v6595_v2 = vpop.f32.mrf.mxu1 }
 0x79a   : > { %v6719_v31 = vadd.f32 %v6595_v2, %v6503_v22 }
 0x79e   : > { %v6479_v33 = vpop.f32.mrf.mxu2 }
 0x79f   : > { %v6508_v34 = vadd.f32 %v6479_v33, %v6291_v51 }
 0x7a0   : > { %v6499_v4 = vpop.f32.mrf.mxu3  ;;  %v6655_v3 = vpop.f32.mrf.mxu0 }
 0x7a1   : > { %v6675_v50 = vpop.f32.mrf.mxu1  ;;  %v6509_v39 = vadd.f32 %v6499_v4, %v6292_v41  ;;  %v6722_v29 = vadd.f32 %v6655_v3, %v6506_v54  ;;  %v7222_v4 = vperm.slane %v13100_v9, 2  ;;  %v7223_v3 = vperm.slane %v13100_v9, 3 }
 0x7a2   : > { %v6723_v10 = vadd.f32 %v6675_v50, %v6507_v55 }
 0x7a7   : > { %v6615_v40 = vpop.f32.mrf.mxu2 }
 0x7a8   : > { %v6635_v56 = vpop.f32.mrf.mxu3  ;;  %v6792_v47 = vpop.f32.mrf.mxu0  ;;  %v6720_v60 = vadd.f32 %v6615_v40, %v6504_v17  ;;  %v7308_v17 = vperm.slane %v13110_v11, 0 }
 0x7a9   : > { %v6812_v38 = vpop.f32.mrf.mxu1  ;;  %v6721_v20 = vadd.f32 %v6635_v56, %v6505_v35  ;;  %v6935_v61 = vadd.f32 %v6792_v47, %v6718_v14  ;;  %v7309_v35 = vperm.slane %v13110_v11, 1 }
 0x7aa   : > { %v6936_v44 = vadd.f32 %v6812_v38, %v6719_v31  ;;  %v13127_v38 = vld [vmem:[%s14036_s11 + $0x28] sm:$0xff] }
 0x7ab   : > { %v7396_v54 = vperm.slane %v13127_v38, 0  ;;  %v7397_v55 = vperm.slane %v13127_v38, 1 }
 0x7af   : > { %v6695_v32 = vpop.f32.mrf.mxu2 }
 0x7b0   : > { %v6715_v23 = vpop.f32.mrf.mxu3  ;;  %v6872_v2 = vpop.f32.mrf.mxu0  ;;  %v6724_v50 = vadd.f32 %v6695_v32, %v6508_v34  ;;  %v13139_v34 = vld [vmem:[%s14036_s11 + $0x20] sm:$0xff] }
 0x7b1   : > { %v6725_v47 = vadd.f32 %v6715_v23, %v6509_v39  ;;  %v13129_v25 = vadd.f32 %v6872_v2, %v6722_v29 }
 0x7b7   : > { %v6832_v0 = vpop.f32.mrf.mxu2 }
 0x7b8   : > { %v6852_v59 = vpop.f32.mrf.mxu3  ;;  %v6892_v33 = vpop.f32.mrf.mxu1  ;;  %v6937_v22 = vadd.f32 %v6832_v0, %v6720_v60 }
 0x7b9   : > { %v6938_v32 = vadd.f32 %v6852_v59, %v6721_v20  ;;  %v6940_v56 = vadd.f32 %v6892_v33, %v6723_v10  ;;  %v13156_v33 = vpop.permute.xlu2 %7163 }
 0x7bf   : > { %v6912_v23 = vpop.f32.mrf.mxu2 }
 0x7c0   : > { %v6932_v40 = vpop.f32.mrf.mxu3  ;;  %v6941_v60 = vadd.f32 %v6912_v23, %v6724_v50 }
 0x7c1   : > { %v6942_v41 = vadd.f32 %v6932_v40, %v6725_v47 }
 0x7c2   : > { %v7009_v29 = vpop.f32.mrf.mxu0  ;;  %v7029_v2 = vpop.f32.mrf.mxu1 }
 0x7c3   : > { %v7152_v51 = vadd.f32 %v7009_v29, %v6935_v61  ;;  %v7153_v59 = vadd.f32 %v7029_v2, %v6936_v44 }
 0x7c5   : > { %v13166_v61 = vadd.f32 %v13156_v33, %v7152_v51  ;;  %v13169_v44 = vadd.f32 %v13156_v33, %v7153_v59 }
 0x7c7   : > { %v7280_v0 = vadd.f32 %v7264_v24, %v13166_v61  ;;  %v7281_v40 = vadd.f32 %v7265_v45, %v13169_v44  ;;  %v7236_v50 = vadd.f32 %v7220_v8, %v13166_v61  ;;  %v7237_v47 = vadd.f32 %v7221_v37, %v13169_v44 }
 0x7c8   : > { %v7192_v51 = vadd.f32 %v7176_v28, %v13166_v61  ;;  %v7193_v24 = vadd.f32 %v7177_v49, %v13169_v44  ;;  %v7324_v45 = vadd.f32 %v7308_v17, %v13166_v61  ;;  %v7325_v8 = vadd.f32 %v7309_v35, %v13169_v44 }
 0x7c9   : > { %v7049_v23 = vpop.f32.mrf.mxu2  ;;  %v7069_v59 = vpop.f32.mrf.mxu3  ;;  %v7288_v37 = vsel %vm5287_vm14, %v7280_v0, -inf  ;;  %v7289_v14 = vsel %vm5287_vm14, %v7281_v40, -inf  ;;  %v13202_v28 = vsel %vm5287_vm14, %v7236_v50, -inf  ;;  %v7245_v31 = vsel %vm5287_vm14, %v7237_v47, -inf }
 0x7ca   : > { %v7154_v49 = vadd.f32 %v7049_v23, %v6937_v22  ;;  %v7155_v39 = vadd.f32 %v7069_v59, %v6938_v32  ;;  %v13206_v2 = vsel %vm5287_vm14, %v7192_v51, -inf  ;;  %v13209_v17 = vsel %vm5287_vm14, %v7193_v24, -inf  ;;  %v7089_v35 = vpop.f32.mrf.mxu0  ;;  %v7109_v29 = vpop.f32.mrf.mxu1 }
 0x7cb   : > { %v13212_v20 = vsel %vm5287_vm14, %v7324_v45, -inf  ;;  %v13215_v0 = vsel %vm5287_vm14, %v7325_v8, -inf  ;;  %v7412_v40 = vadd.f32 %v7396_v54, %v13166_v61  ;;  %v7413_v50 = vadd.f32 %v7397_v55, %v13169_v44 }
 0x7cc   : > { %v13220_v22 = vadd.f32 %v13156_v33, %v7154_v49  ;;  %v13223_v32 = vadd.f32 %v13156_v33, %v7155_v39  ;;  %v7156_v47 = vadd.f32 %v7089_v35, %v13129_v25  ;;  %v7157_v51 = vadd.f32 %v7109_v29, %v6940_v56 }
 0x7cd   : > { %v13227_v24 = vsel %vm5287_vm14, %v7412_v40, -inf  ;;  %v13230_v45 = vsel %vm5287_vm14, %v7413_v50, -inf  ;;  %v14037_v49 = vperm.slane %v13103_v6, 3  ;;  %v14038_v35 = vperm.slane %v13097_v52, 4 }
 0x7ce   : > { %v13235_v55 = vadd.f32 %v13156_v33, %v7156_v47  ;;  %v13238_v23 = vadd.f32 %v13156_v33, %v7157_v51  ;;  %v7282_v56 = vadd.f32 %v7266_v27, %v13220_v22  ;;  %v7283_v25 = vadd.f32 %v7267_v13, %v13223_v32 }
 0x7cf   : > { %v7238_v39 = vadd.f32 %v7222_v4, %v13220_v22  ;;  %v7239_v29 = vadd.f32 %v7223_v3, %v13223_v32  ;;  %v7194_v59 = vadd.f32 %v7178_v58, %v13220_v22  ;;  %v7195_v27 = vadd.f32 %v14037_v49, %v13223_v32 }
 0x7d0   : > { %v7284_v13 = vadd.f32 %v14038_v35, %v13235_v55  ;;  %v14039_v40 = vperm.slane %v13097_v52, 5  ;;  %v7290_v50 = vsel %vm5287_vm14, %v7282_v56, -inf  ;;  %v7291_v3 = vsel %vm5287_vm14, %v7283_v25, -inf }
 0x7d1   : > { %v14040_v47 = vperm.slane %v13100_v9, 4  ;;  %v14041_v51 = vperm.slane %v13100_v9, 5  ;;  %v7246_v54 = vsel %vm5287_vm14, %v7238_v39, -inf  ;;  %v7247_v35 = vsel %vm5287_vm14, %v7239_v29, -inf  ;;  %v7129_v8 = vpop.f32.mrf.mxu2  ;;  %v7149_v10 = vpop.f32.mrf.mxu3 }
 0x7d2   : > { %v7285_v4 = vadd.f32 %v14039_v40, %v13238_v23  ;;  %v7292_v40 = vsel %vm5287_vm14, %v7284_v13, -inf  ;;  %v14042_v25 = vperm.slane %v13103_v6, 4  ;;  %v7158_v42 = vadd.f32 %v7129_v8, %v6941_v60 }
 0x7d3   : > { %v7240_v58 = vadd.f32 %v14040_v47, %v13235_v55  ;;  %v7241_v49 = vadd.f32 %v14041_v51, %v13238_v23  ;;  %v14043_v47 = vperm.slane %v13103_v6, 5  ;;  %v7159_v51 = vadd.f32 %v7149_v10, %v6942_v41 }
 0x7d4   : > { %v7294_v56 = vsel %vm5287_vm14, %v7285_v4, -inf  ;;  %v7196_v18 = vadd.f32 %v14042_v25, %v13235_v55  ;;  %v7293_v46 = vmax.f32 %v7288_v37, %v7292_v40  ;;  %v7202_v13 = vsel %vm5287_vm14, %v7194_v59, -inf }
 0x7d5   : > { %v7197_v48 = vadd.f32 %v14043_v47, %v13238_v23  ;;  %v7295_v39 = vmax.f32 %v7289_v14, %v7294_v56  ;;  %v7248_v29 = vsel %vm5287_vm14, %v7240_v58, -inf  ;;  %v7250_v62 = vsel %vm5287_vm14, %v7241_v49, -inf }
 0x7d6   : > { %v7203_v4 = vsel %vm5287_vm14, %v7195_v27, -inf  ;;  %v13287_v36 = vadd.f32 %v13156_v33, %v7158_v42  ;;  %v13290_v25 = vadd.f32 %v13156_v33, %v7159_v51  ;;  %v7249_v60 = vmax.f32 %v13202_v28, %v7248_v29 }
 0x7d7   : > { %v7300_v1 = vmax.f32 %v7293_v46, %v7295_v39  ;;  %v7251_v41 = vmax.f32 %v7245_v31, %v7250_v62  ;;  %v7204_v14 = vsel %vm5287_vm14, %v7196_v18, -inf  ;;  %v7206_v10 = vsel %vm5287_vm14, %v7197_v48, -inf }
 0x7d8   : > { %v14044_v37 = vperm.slane %v13110_v11, 2  ;;  %v14045_v59 = vperm.slane %v13097_v52, 6  ;;  %v14046_v33 = vperm.slane %v13097_v52, 7  ;;  %v14047_v46 = vperm.slane %v13100_v9, 6 }
 0x7d9   : > { %v14048_v18 = vperm.slane %v13100_v9, 7  ;;  %v7256_v31 = vmax.f32 %v7249_v60, %v7251_v41  ;;  %v14049_v28 = vperm.slane %v13103_v6, 6  ;;  %v14050_v49 = vperm.slane %v13103_v6, 7 }
 0x7da   : > { %v7326_v8 = vadd.f32 %v14044_v37, %v13220_v22  ;;  %v7286_v42 = vadd.f32 %v14045_v59, %v13287_v36  ;;  %v7287_v27 = vadd.f32 %v14046_v33, %v13290_v25  ;;  %v7242_v62 = vadd.f32 %v14047_v46, %v13287_v36 }
 0x7db   : > { %v7243_v48 = vadd.f32 %v14048_v18, %v13290_v25  ;;  %v7198_v58 = vadd.f32 %v14049_v28, %v13287_v36  ;;  %v7199_v40 = vadd.f32 %v14050_v49, %v13290_v25  ;;  %v7205_v52 = vmax.f32 %v13206_v2, %v7204_v14 }
 0x7dc   : > { %v7296_v56 = vsel %vm5287_vm14, %v7286_v42, -inf  ;;  %v7298_v47 = vsel %vm5287_vm14, %v7287_v27, -inf  ;;  %v7252_v51 = vsel %vm5287_vm14, %v7242_v62, -inf  ;;  %v7207_v37 = vmax.f32 %v13209_v17, %v7206_v10 }
 0x7dd   : > { %v7254_v9 = vsel %vm5287_vm14, %v7243_v48, -inf  ;;  %v7297_v39 = vmax.f32 %v7290_v50, %v7296_v56  ;;  %v7299_v29 = vmax.f32 %v7291_v3, %v7298_v47  ;;  %v7253_v60 = vmax.f32 %v7246_v54, %v7252_v51 }
 0x7de   : > { %v7255_v41 = vmax.f32 %v7247_v35, %v7254_v9  ;;  %v7208_v59 = vsel %vm5287_vm14, %v7198_v58, -inf  ;;  %v7210_v6 = vsel %vm5287_vm14, %v7199_v40, -inf  ;;  %v14051_v2 = vperm.slane %v13110_v11, 3 }
 0x7df   : > { %v7301_v42 = vmax.f32 %v7297_v39, %v7299_v29  ;;  %v7209_v27 = vmax.f32 %v7202_v13, %v7208_v59  ;;  %v7211_v46 = vmax.f32 %v7203_v4, %v7210_v6  ;;  %v7212_v62 = vmax.f32 %v7205_v52, %v7207_v37 }
 0x7e0   : > { %v7327_v14 = vadd.f32 %v14051_v2, %v13223_v32  ;;  %v7257_v33 = vmax.f32 %v7253_v60, %v7255_v41  ;;  %v14052_v50 = vperm.slane %v13110_v11, 4  ;;  %v14053_v17 = vperm.slane %v13110_v11, 5 }
 0x7e1   : > { %v14054_v35 = vperm.slane %v13110_v11, 6  ;;  %v7302_v18 = vmax.f32 %v7300_v1, %v7301_v42  ;;  %v7213_v28 = vmax.f32 %v7209_v27, %v7211_v46  ;;  %v14055_v13 = vperm.slane %v13110_v11, 7 }
 0x7e2   : > { %v7328_v54 = vadd.f32 %v14052_v50, %v13235_v55  ;;  %v7329_v3 = vadd.f32 %v14053_v17, %v13238_v23  ;;  %v7258_v48 = vmax.f32 %v7256_v31, %v7257_v33  ;;  %v7334_v58 = vsel %vm5287_vm14, %v7326_v8, -inf }
 0x7e3   : > { %v7330_v10 = vadd.f32 %v14054_v35, %v13287_v36  ;;  %v7331_v4 = vadd.f32 %v14055_v13, %v13290_v25  ;;  %v7335_v49 = vsel %vm5287_vm14, %v7327_v14, -inf  ;;  %7303 = vmax.xlane.f32.xlu2 %v7302_v18  ;;  %v7214_v56 = vmax.f32 %v7212_v62, %v7213_v28 }
 0x7e4   : > { %v7336_v40 = vsel %vm5287_vm14, %v7328_v54, -inf  ;;  %v7338_v52 = vsel %vm5287_vm14, %v7329_v3, -inf  ;;  %7259 = vmax.xlane.f32.xlu1 %v7258_v48  ;;  %v14056_v8 = vperm.slane %v13127_v38, 2  ;;  %v14057_v39 = vperm.slane %v13127_v38, 3 }
 0x7e5   : > { %v7337_v47 = vmax.f32 %v13212_v20, %v7336_v40  ;;  %v7339_v1 = vmax.f32 %v13215_v0, %v7338_v52  ;;  %v7340_v31 = vsel %vm5287_vm14, %v7330_v10, -inf  ;;  %v7342_v11 = vsel %vm5287_vm14, %v7331_v4, -inf  ;;  %7215 = vmax.xlane.f32.xlu0 %v7214_v56 }
 0x7e6   : > { %v7341_v51 = vmax.f32 %v7334_v58, %v7340_v31  ;;  %v7414_v9 = vadd.f32 %v14056_v8, %v13220_v22  ;;  %v7415_v29 = vadd.f32 %v14057_v39, %v13223_v32  ;;  %v7343_v60 = vmax.f32 %v7335_v49, %v7342_v11 }
 0x7e7   : > { %v7344_v41 = vmax.f32 %v7337_v47, %v7339_v1  ;;  %v14058_v20 = vperm.slane %v13127_v38, 4  ;;  %v14059_v37 = vperm.slane %v13127_v38, 5  ;;  %v14060_v6 = vperm.slane %v13127_v38, 6 }
 0x7e8   : > { %v14061_v14 = vperm.slane %v13127_v38, 7  ;;  %v7422_v33 = vsel %vm5287_vm14, %v7414_v9, -inf  ;;  %v7423_v27 = vsel %vm5287_vm14, %v7415_v29, -inf  ;;  %v7345_v46 = vmax.f32 %v7341_v51, %v7343_v60 }
 0x7e9   : > { %v7416_v0 = vadd.f32 %v14058_v20, %v13235_v55  ;;  %v7417_v59 = vadd.f32 %v14059_v37, %v13238_v23  ;;  %v7418_v2 = vadd.f32 %v14060_v6, %v13287_v36  ;;  %v14062_v54 = vperm.slane %v13139_v34, 0 }
 0x7ea   : > { %v7419_v42 = vadd.f32 %v14061_v14, %v13290_v25  ;;  %v7346_v18 = vmax.f32 %v7344_v41, %v7345_v46  ;;  %v14063_v13 = vperm.slane %v13139_v34, 1  ;;  %v14064_v49 = vperm.slane %v13139_v34, 2 }
 0x7eb   : > { %v7424_v62 = vsel %vm5287_vm14, %v7416_v0, -inf  ;;  %v7426_v50 = vsel %vm5287_vm14, %v7417_v59, -inf  ;;  %v7368_v17 = vadd.f32 %v14062_v54, %v13166_v61  ;;  %v7428_v38 = vsel %vm5287_vm14, %v7418_v2, -inf }
 0x7ec   : > { %v7425_v3 = vmax.f32 %v13227_v24, %v7424_v62  ;;  %v7427_v35 = vmax.f32 %v13230_v45, %v7426_v50  ;;  %v7430_v10 = vsel %vm5287_vm14, %v7419_v42, -inf  ;;  %v7429_v48 = vmax.f32 %v7422_v33, %v7428_v38  ;;  %7347 = vmax.xlane.f32.xlu2 %v7346_v18 }
 0x7ed   : > { %v7431_v28 = vmax.f32 %v7423_v27, %v7430_v10  ;;  %v7369_v4 = vadd.f32 %v14063_v13, %v13169_v44  ;;  %v7370_v40 = vadd.f32 %v14064_v49, %v13220_v22  ;;  %v14065_v24 = vperm.slane %v13139_v34, 3 }
 0x7ee   : > { %v7432_v58 = vmax.f32 %v7425_v3, %v7427_v35  ;;  %v14066_v52 = vperm.slane %v13139_v34, 4  ;;  %v14067_v1 = vperm.slane %v13139_v34, 5  ;;  %v14068_v51 = vperm.slane %v13139_v34, 6 }
 0x7ef   : > { %v7371_v45 = vadd.f32 %v14065_v24, %v13223_v32  ;;  %v7433_v47 = vmax.f32 %v7429_v48, %v7431_v28  ;;  %v14069_v8 = vperm.slane %v13139_v34, 7  ;;  %v7376_v39 = vsel %vm5287_vm14, %v7368_v17, -inf }
 0x7f0   : > { %v7372_v56 = vadd.f32 %v14066_v52, %v13235_v55  ;;  %v7373_v31 = vadd.f32 %v14067_v1, %v13238_v23  ;;  %v7374_v11 = vadd.f32 %v14068_v51, %v13287_v36  ;;  %v7377_v29 = vsel %vm5287_vm14, %v7369_v4, -inf  ;;  %v9608_v52 = vld [vmem:[%s14036_s11 + $0x40] sm:$0xff] }
 0x7f1   : > { %v7375_v9 = vadd.f32 %v14069_v8, %v13290_v25  ;;  %v7378_v60 = vsel %vm5287_vm14, %v7370_v40, -inf  ;;  %v7379_v41 = vsel %vm5287_vm14, %v7371_v45, -inf  ;;  %v7434_v20 = vmax.f32 %v7432_v58, %v7433_v47 }
 0x7f2   : > { %v7380_v0 = vsel %vm5287_vm14, %v7372_v56, -inf  ;;  %v7382_v37 = vsel %vm5287_vm14, %v7373_v31, -inf  ;;  %v7384_v59 = vsel %vm5287_vm14, %v7374_v11, -inf  ;;  %v7442_v33 = vperm.slane %v13163_v30, 2 }
 0x7f3   : > { %v7381_v6 = vmax.f32 %v7376_v39, %v7380_v0  ;;  %v7383_v2 = vmax.f32 %v7377_v29, %v7382_v37  ;;  %v7385_v14 = vmax.f32 %v7378_v60, %v7384_v59  ;;  %v7386_v34 = vsel %vm5287_vm14, %v7375_v9, -inf  ;;  %7435 = vmax.xlane.f32.xlu1 %v7434_v20 }
 0x7f4   : > { %v7387_v42 = vmax.f32 %v7379_v41, %v7386_v34  ;;  %v7443_v27 = vperm.slane %v13163_v30, 3  ;;  %v7444_v46 = vperm.slane %v13163_v30, 4  ;;  %v7445_v50 = vperm.slane %v13163_v30, 5 }
 0x7f5   : > { %v7388_v62 = vmax.f32 %v7381_v6, %v7383_v2  ;;  %v7446_v54 = vperm.slane %v13163_v30, 6  ;;  %v7447_v17 = vperm.slane %v13163_v30, 7  ;;  %v14070_v35 = vperm.slane %v13163_v30, 0 }
 0x7f6   : > { %v7389_v3 = vmax.f32 %v7385_v14, %v7387_v42  ;;  %v14071_v10 = vperm.slane %v13163_v30, 1  ;;  %v7458_v48 = vadd.f32 %v7442_v33, %v13220_v22  ;;  %v7459_v28 = vadd.f32 %v7443_v27, %v13223_v32 }
 0x7f7   : > { %v7456_v38 = vadd.f32 %v14070_v35, %v13166_v61  ;;  %v7460_v13 = vadd.f32 %v7444_v46, %v13235_v55  ;;  %v7461_v4 = vadd.f32 %v7445_v50, %v13238_v23  ;;  %v7462_v58 = vadd.f32 %v7446_v54, %v13287_v36 }
 0x7f8   : > { %v7457_v18 = vadd.f32 %v14071_v10, %v13169_v44  ;;  %v7390_v49 = vmax.f32 %v7388_v62, %v7389_v3  ;;  %v7463_v40 = vadd.f32 %v7447_v17, %v13290_v25  ;;  %v7466_v30 = vsel %vm5287_vm14, %v7458_v48, -inf  ;;  %v9607_v10 = vld [vmem:[%s14036_s11 + $0x38] sm:$0xff] }
 0x7f9   : > { %v7464_v24 = vsel %vm5287_vm14, %v7456_v38, -inf  ;;  %v7467_v56 = vsel %vm5287_vm14, %v7459_v28, -inf  ;;  %v7468_v47 = vsel %vm5287_vm14, %v7460_v13, -inf  ;;  %v7470_v1 = vsel %vm5287_vm14, %v7461_v4, -inf }
 0x7fa   : > { %v7465_v45 = vsel %vm5287_vm14, %v7457_v18, -inf  ;;  %7391 = vmax.xlane.f32.xlu0 %v7390_v49  ;;  %v7469_v31 = vmax.f32 %v7464_v24, %v7468_v47  ;;  %v7472_v11 = vsel %vm5287_vm14, %v7462_v58, -inf  ;;  %v7474_v8 = vsel %vm5287_vm14, %v7463_v40, -inf }
 0x7fb   : > { %v7471_v51 = vmax.f32 %v7465_v45, %v7470_v1  ;;  %v7473_v9 = vmax.f32 %v7466_v30, %v7472_v11  ;;  %v7475_v39 = vmax.f32 %v7467_v56, %v7474_v8  ;;  %v7528_v29 = vperm.slane %v9608_v52, 0 }
 0x7fc   : > { %v7529_v60 = vperm.slane %v9608_v52, 1  ;;  %v7530_v20 = vperm.slane %v9608_v52, 2  ;;  %v7531_v0 = vperm.slane %v9608_v52, 3  ;;  %v7532_v37 = vperm.slane %v9608_v52, 4 }
 0x7fd   : > { %v7476_v41 = vmax.f32 %v7469_v31, %v7471_v51  ;;  %v7477_v59 = vmax.f32 %v7473_v9, %v7475_v39  ;;  %v7533_v6 = vperm.slane %v9608_v52, 5  ;;  %v7534_v2 = vperm.slane %v9608_v52, 6 }
 0x7fe   : > { %v7535_v14 = vperm.slane %v9608_v52, 7  ;;  %v7544_v34 = vadd.f32 %v7528_v29, %v13166_v61  ;;  %v7545_v42 = vadd.f32 %v7529_v60, %v13169_v44  ;;  %v7546_v33 = vadd.f32 %v7530_v20, %v13220_v22 }
 0x7ff   : > { %v7547_v27 = vadd.f32 %v7531_v0, %v13223_v32  ;;  %v7478_v46 = vmax.f32 %v7476_v41, %v7477_v59  ;;  %v7548_v62 = vadd.f32 %v7532_v37, %v13235_v55  ;;  %v7549_v50 = vadd.f32 %v7533_v6, %v13238_v23 }
 0x800   : > { %v7550_v54 = vadd.f32 %v7534_v2, %v13287_v36  ;;  %v7551_v17 = vadd.f32 %v7535_v14, %v13290_v25  ;;  %v7552_v3 = vsel %vm5287_vm14, %v7544_v34, -inf  ;;  %v7553_v35 = vsel %vm5287_vm14, %v7545_v42, -inf }
 0x801   : > { %v7554_v38 = vsel %vm5287_vm14, %v7546_v33, -inf  ;;  %7479 = vmax.xlane.f32.xlu2 %v7478_v46  ;;  %v7555_v18 = vsel %vm5287_vm14, %v7547_v27, -inf  ;;  %v7556_v48 = vsel %vm5287_vm14, %v7548_v62, -inf  ;;  %v7558_v28 = vsel %vm5287_vm14, %v7549_v50, -inf  ;;  %v7570_v62 = vld [vmem:[%s14072_s22] sm:$0xf] }
 0x802   : > { %v7560_v13 = vsel %vm5287_vm14, %v7550_v54, -inf  ;;  %v7557_v4 = vmax.f32 %v7552_v3, %v7556_v48  ;;  %v7559_v58 = vmax.f32 %v7553_v35, %v7558_v28  ;;  %v7562_v40 = vsel %vm5287_vm14, %v7551_v17, -inf  ;;  %v9609_v17 = vld [vmem:[%s14072_s22 + $0x4] sm:$0xf]  ;;  %v9611_v48 = vld [vmem:[%s14072_s22 + $0xc] sm:$0xf] }
 0x803   : > { %v7561_v49 = vmax.f32 %v7554_v38, %v7560_v13  ;;  %v7563_v24 = vmax.f32 %v7555_v18, %v7562_v40  ;;  %v7484_v45 = vperm.slane %v9607_v10, 0  ;;  %v7485_v52 = vperm.slane %v9607_v10, 1 }
 0x804   : > { %v7486_v30 = vperm.slane %v9607_v10, 2  ;;  %v7564_v56 = vmax.f32 %v7557_v4, %v7559_v58  ;;  %v7487_v47 = vperm.slane %v9607_v10, 3  ;;  %v7488_v1 = vperm.slane %v9607_v10, 4 }
 0x805   : > { %v7489_v31 = vperm.slane %v9607_v10, 5  ;;  %v7565_v51 = vmax.f32 %v7561_v49, %v7563_v24  ;;  %v7490_v11 = vperm.slane %v9607_v10, 6  ;;  %v7491_v8 = vperm.slane %v9607_v10, 7  ;;  %v9610_v10 = vld [vmem:[%s14072_s22 + $0x8] sm:$0xf] }
 0x806   : > { %v7500_v9 = vadd.f32 %v7484_v45, %v13166_v61  ;;  %v7501_v39 = vadd.f32 %v7485_v52, %v13169_v44  ;;  %v7502_v29 = vadd.f32 %v7486_v30, %v13220_v22  ;;  %v7503_v60 = vadd.f32 %v7487_v47, %v13223_v32  ;;  %v9612_v30 = vld [vmem:[%s14072_s22 + $0x10] sm:$0xf] }
 0x807   : > { %v7504_v41 = vadd.f32 %v7488_v1, %v13235_v55  ;;  %v7566_v20 = vmax.f32 %v7564_v56, %v7565_v51  ;;  %v7505_v0 = vadd.f32 %v7489_v31, %v13238_v23  ;;  %v7506_v37 = vadd.f32 %v7490_v11, %v13287_v36  ;;  %v9613_v56 = vld [vmem:[%s14072_s22 + $0x14] sm:$0xf] }
 0x808   : > { %v7507_v59 = vadd.f32 %v7491_v8, %v13290_v25  ;;  %v7508_v6 = vsel %vm5287_vm14, %v7500_v9, -inf  ;;  %v7509_v2 = vsel %vm5287_vm14, %v7501_v39, -inf  ;;  %v7510_v61 = vsel %vm5287_vm14, %v7502_v29, -inf }
 0x809   : > { %v7511_v44 = vsel %vm5287_vm14, %v7503_v60, -inf  ;;  %7567 = vmax.xlane.f32.xlu1 %v7566_v20  ;;  %v7512_v22 = vsel %vm5287_vm14, %v7504_v41, -inf  ;;  %v7514_v32 = vsel %vm5287_vm14, %v7505_v0, -inf  ;;  %v7516_v55 = vsel %vm5287_vm14, %v7506_v37, -inf  ;;  %v9614_v0 = vld [vmem:[%s14072_s22 + $0x18] sm:$0xf] }
 0x80a   : > { %v7518_v36 = vsel %vm5287_vm14, %v7507_v59, -inf  ;;  %v7513_v23 = vmax.f32 %v7508_v6, %v7512_v22  ;;  %v7515_v25 = vmax.f32 %v7509_v2, %v7514_v32  ;;  %v7517_v14 = vmax.f32 %v7510_v61, %v7516_v55 }
 0x80b   : > { %v7519_v34 = vmax.f32 %v7511_v44, %v7518_v36 }
 0x80c   : > { %v7520_v42 = vmax.f32 %v7513_v23, %v7515_v25 }
 0x80d   : > { %v7521_v33 = vmax.f32 %v7517_v14, %v7519_v34  ;;  %v7569_v14 = vld [vmem:[%s14073_s23] sm:$0x1]  ;;  %s14079_s23 = sld [smem:[#allocation16_spill]] }
 0x80f   : > { %v7522_v27 = vmax.f32 %v7520_v42, %v7521_v33 }
 0x811   : > { %7523 = vmax.xlane.f32.xlu0 %v7522_v27 }
 0x856   : > { %v7304_v46 = vpop.xlane.xlu2 %7303 }
 0x857   : > { %v7260_v3 = vpop.xlane.xlu1 %7259  ;;  %v7594_v13 = vmul.f32 %v9610_v10, %v7304_v46 }
 0x858   : > { %v7216_v50 = vpop.xlane.xlu0 %7215  ;;  %v7583_v38 = vmul.f32 %v9609_v17, %v7260_v3 }
 0x859   : > { %v7571_v54 = vmul.f32 %v7570_v62, %v7216_v50  ;;  %v7595_v24 = vsel %vm7572_vm8, %v7594_v13, 0.0  ;;  %v9616_v62 = vld [vmem:[%s14072_s22 + $0x20] sm:$0xf] }
 0x85a   : > { %v7584_v4 = vsel %vm7572_vm8, %v7583_v38, 0.0  ;;  %v7596_v1 = vrot.slane %v7595_v24, 4 }
 0x85b   : > { %v7573_v35 = vsel %vm7572_vm8, %v7571_v54, 0.0  ;;  %v7585_v40 = vrot.slane %v7584_v4, 4 }
 0x85c   : > { %v7574_v18 = vrot.slane %v7573_v35, 4  ;;  %v7597_v60 = vadd.f32 %v7596_v1, %v7595_v24 }
 0x85d   : > { %v7586_v31 = vadd.f32 %v7585_v40, %v7584_v4 }
 0x85e   : > { %v7575_v49 = vadd.f32 %v7574_v18, %v7573_v35  ;;  %v7598_v61 = vrot.slane %v7597_v60, 2 }
 0x85f   : > { %v7348_v28 = vpop.xlane.xlu2 %7347  ;;  %v7587_v41 = vrot.slane %v7586_v31, 2 }
 0x860   : > { %v7605_v58 = vmul.f32 %v9611_v48, %v7348_v28  ;;  %v7576_v52 = vrot.slane %v7575_v49, 2  ;;  %v7599_v42 = vadd.f32 %v7598_v61, %v7597_v60 }
 0x861   : > { %v7588_v44 = vadd.f32 %v7587_v41, %v7586_v31 }
 0x862   : > { %v7606_v45 = vsel %vm7572_vm8, %v7605_v58, 0.0  ;;  %v7577_v9 = vadd.f32 %v7576_v52, %v7575_v49  ;;  %v7600_v35 = vrot.slane %v7599_v42, 1 }
 0x863   : > { %v7607_v51 = vrot.slane %v7606_v45, 4  ;;  %v7589_v33 = vrot.slane %v7588_v44, 1 }
 0x864   : > { %v7578_v37 = vrot.slane %v7577_v9, 1  ;;  %v7601_v40 = vadd.f32 %v7600_v35, %v7599_v42  ;;  %v7672_v42 = vld [vmem:[%s14074_s1 + $0x10] sm:$0xff] }
 0x865   : > { %v7608_v20 = vadd.f32 %v7607_v51, %v7606_v45  ;;  %v7590_v38 = vadd.f32 %v7589_v33, %v7588_v44  ;;  %v9615_v45 = vld [vmem:[%s14072_s22 + $0x1c] sm:$0xf]  ;;  %v7671_v33 = vld [vmem:[%s14074_s1 + $0x8] sm:$0xff] }
 0x866   : > { %v7436_v47 = vpop.xlane.xlu1 %7435  ;;  %v7579_v36 = vadd.f32 %v7578_v37, %v7577_v9 }
 0x867   : > { %v7627_v39 = vmul.f32 %v9613_v56, %v7436_v47  ;;  %v7609_v22 = vrot.slane %v7608_v20, 2 }
 0x868   : > { %v7580_v50 = vadd.f32 %v7579_v36, %v7569_v14 }
 0x869   : > { %v7628_v59 = vsel %vm7572_vm8, %v7627_v39, 0.0  ;;  %v7610_v27 = vadd.f32 %v7609_v22, %v7608_v20 }
 0x86a   : > { %v7629_v55 = vrot.slane %v7628_v59, 4  ;;  %v7591_v28 = vadd.f32 %v7590_v38, %v7580_v50  ;;  %v7674_v38 = vld [vmem:[%s14074_s1 + $0x20] sm:$0xf] }
 0x86b   : > { %v7611_v10 = vrot.slane %v7610_v27, 1 }
 0x86c   : > { %v7630_v46 = vadd.f32 %v7629_v55, %v7628_v59 }
 0x86d   : > { %v7392_v11 = vpop.xlane.xlu0 %7391  ;;  %v7612_v24 = vadd.f32 %v7611_v10, %v7610_v27  ;;  %v7670_v27 = vld [vmem:[%s14074_s1] sm:$0xff]  ;;  %v7673_v10 = vld [vmem:[%s14074_s1 + $0x18] sm:$0xff] }
 0x86e   : > { %v7616_v8 = vmul.f32 %v9612_v30, %v7392_v11  ;;  %v7631_v48 = vrot.slane %v7630_v46, 2  ;;  %v7602_v30 = vadd.f32 %v7601_v40, %v7591_v28  ;;  %v7699_v40 = vld [vmem:[%s14076_s7] sm:$0xff] }
 0x870   : > { %v7617_v29 = vsel %vm7572_vm8, %v7616_v8, 0.0  ;;  %v7632_v52 = vadd.f32 %v7631_v48, %v7630_v46  ;;  %v7613_v11 = vadd.f32 %v7612_v24, %v7602_v30 }
 0x871   : > { %v7618_v6 = vrot.slane %v7617_v29, 4 }
 0x872   : > { %v7633_v8 = vrot.slane %v7632_v52, 1 }
 0x873   : > { %v7619_v23 = vadd.f32 %v7618_v6, %v7617_v29 }
 0x874   : > { %v7480_v2 = vpop.xlane.xlu2 %7479  ;;  %v7634_v37 = vadd.f32 %v7633_v8, %v7632_v52  ;;  %v7702_v8 = vld [vmem:[%s14076_s7 + $0x18] sm:$0xff] }
 0x875   : > { %v7638_v32 = vmul.f32 %v9614_v0, %v7480_v2  ;;  %v7620_v54 = vrot.slane %v7619_v23, 2 }
 0x877   : > { %v7639_v25 = vsel %vm7572_vm8, %v7638_v32, 0.0  ;;  %v7621_v13 = vadd.f32 %v7620_v54, %v7619_v23 }
 0x878   : > { %v7640_v34 = vrot.slane %v7639_v25, 4 }
 0x879   : > { %v7622_v56 = vrot.slane %v7621_v13, 1 }
 0x87a   : > { %v7641_v17 = vadd.f32 %v7640_v34, %v7639_v25 }
 0x87b   : > { %v7623_v39 = vadd.f32 %v7622_v56, %v7621_v13 }
 0x87c   : > { %v7568_v3 = vpop.xlane.xlu1 %7567  ;;  %v7642_v4 = vrot.slane %v7641_v17, 2 }
 0x87d   : > { %v7660_v18 = vmul.f32 %v9616_v62, %v7568_v3  ;;  %v7624_v20 = vadd.f32 %v7623_v39, %v7613_v11  ;;  %v7703_v11 = vld [vmem:[%s14076_s7 + $0x20] sm:$0xf] }
 0x87e   : > { %v7643_v47 = vadd.f32 %v7642_v4, %v7641_v17  ;;  %v5108_v4 = vld [vmem:[%s14075_s2] sm:$0xf]  ;;  %s13689_s2 = scalar_lea.vmem %s10249_s13, %s9703_s0 }
 0x87f   : > { %v7661_v58 = vsel %vm7572_vm8, %v7660_v18, 0.0  ;;  %v7635_v61 = vadd.f32 %v7634_v37, %v7624_v20  ;;  %v8186_v37 = vld [vmem:[%s10244_s4 + $0x8] sm:$0xff] }
 0x880   : > { %v7662_v49 = vrot.slane %v7661_v58, 4  ;;  %v7644_v29 = vrot.slane %v7643_v47, 1 }
 0x882   : > { %v7663_v1 = vadd.f32 %v7662_v49, %v7661_v58  ;;  %v7645_v59 = vadd.f32 %v7644_v29, %v7643_v47  ;;  %v7701_v58 = vld [vmem:[%s14076_s7 + $0x10] sm:$0xff]  ;;  %v7700_v49 = vld [vmem:[%s14076_s7 + $0x8] sm:$0xff] }
 0x884   : > { %v7524_v31 = vpop.xlane.xlu0 %7523  ;;  %v7664_v60 = vrot.slane %v7663_v1, 2  ;;  %v7646_v22 = vadd.f32 %v7645_v59, %v7635_v61 }
 0x885   : > { %v7649_v51 = vmul.f32 %v9615_v45, %v7524_v31 }
 0x886   : > { %v7665_v6 = vadd.f32 %v7664_v60, %v7663_v1 }
 0x887   : > { %v7650_v9 = vsel %vm7572_vm8, %v7649_v51, 0.0 }
 0x888   : > { %v7651_v41 = vrot.slane %v7650_v9, 4  ;;  %v7666_v32 = vrot.slane %v7665_v6, 1 }
 0x88a   : > { %v7652_v0 = vadd.f32 %v7651_v41, %v7650_v9  ;;  %v7667_v23 = vadd.f32 %v7666_v32, %v7665_v6  ;;  %v8185_v41 = vld [vmem:[%s10244_s4] sm:$0xff] }
 0x88c   : > { %v7653_v2 = vrot.slane %v7652_v0, 2 }
 0x88e   : > { %v7654_v44 = vadd.f32 %v7653_v2, %v7652_v0 }
 0x890   : > { %v7655_v55 = vrot.slane %v7654_v44, 1 }
 0x892   : > { %v7656_v36 = vadd.f32 %v7655_v55, %v7654_v44 }
 0x894   : > { %v7657_v25 = vadd.f32 %v7656_v36, %v7646_v22 }
 0x896   : > { %v7668_v14 = vadd.f32 %v7667_v23, %v7657_v25 }
 0x898   : > { %v7669_v34 = vmax.f32 %v7668_v14, 0.0 }
 0x89a   : > { %v7676_v46 = vperm.slane %v7669_v34, 0 }
 0x89c   : > { %v7680_v62 = vmul.f32 %v7676_v46, %v7672_v42  ;;  %v7679_v50 = vmul.f32 %v7676_v46, %v7671_v33  ;;  %v7678_v54 = vmul.f32 %v7676_v46, %v7670_v27  ;;  %v7682_v18 = vmul.f32 %v7676_v46, %v7674_v38  ;;  %v7716_v38 = vld [vmem:[%s14077_s26 + $0x10] sm:$0xff] }
 0x89d   : > { %v7681_v48 = vmul.f32 %v7676_v46, %v7673_v10 }
 0x89e   : > { %v7690_v17 = vsel %vm7683_vm1, %v7680_v62, 0.0  ;;  %v7687_v3 = vsel %vm7683_vm1, %v7679_v50, 0.0  ;;  %v7684_v35 = vsel %vm7683_vm1, %v7678_v54, 0.0  ;;  %v7696_v28 = vsel %vm7572_vm8, %v7682_v18, 0.0  ;;  %v9903_v62 = vld [vmem:[%s10239_s27] sm:$0xff] }
 0x89f   : > { %7691 = vadd.xlane.f32.xlu1 %v7690_v17  ;;  %7688 = vadd.xlane.f32.xlu0 %v7687_v3  ;;  %v7693_v13 = vsel %vm7683_vm1, %v7681_v48, 0.0  ;;  %v7714_v54 = vld [vmem:[%s14077_s26] sm:$0xff]  ;;  %v7715_v17 = vld [vmem:[%s14077_s26 + $0x8] sm:$0xff] }
 0x8a0   : > { %7685 = vadd.xlane.f32.xlu2 %v7684_v35 }
 0x8a7   : > { %7697 = vadd.xlane.f32.xlu0 %v7696_v28 }
 0x8a8   : > { %7694 = vadd.xlane.f32.xlu2 %v7693_v13  ;;  %v7788_v13 = vld [vmem:[%s10234_s12 + $0x80] sm:$0x33] }
 0x8b8   : > { %5111 = vperm.xlu1 %9957, %v5108_v4   ;;  %v7789_v4 = vld [vmem:[%s10234_s12 + $0x88] sm:$0x33] }
 0x912   : > { %v7692_v24 = vpop.xlane.xlu1 %7691  ;;  %v7689_v45 = vpop.xlane.xlu0 %7688 }
 0x913   : > { %v7706_v52 = vadd.f32 %v7701_v58, %v7692_v24  ;;  %v7705_v30 = vadd.f32 %v7700_v49, %v7689_v45  ;;  %v7686_v56 = vpop.xlane.xlu2 %7685  ;;  %v7718_v58 = vld [vmem:[%s14077_s26 + $0x20] sm:$0xf]  ;;  %v7998_v24 = vunpack.c.l.b16 %v7788_v13  ;;  %v7999_v45 = vunpack.c.h.b16 %v7788_v13 }
 0x914   : > { %v7704_v47 = vadd.f32 %v7699_v40, %v7686_v56  ;;  %v9899_v56 = vld [vmem:[%s10234_s12 + $0x5c] sm:$0xf0] }
 0x915   : > { %v7711_v1 = vmax.f32 %v7706_v52, 0.0  ;;  %v7710_v31 = vmax.f32 %v7705_v30, 0.0  ;;  %v8000_v52 = vunpack.c.l.b16 %v7789_v4  ;;  %v9663_v30 = vld [vmem:[%s10234_s12 + $0x40] sm:$0xf] }
 0x916   : > { %v7709_v51 = vmax.f32 %v7704_v47, 0.0 }
 0x917   : > { %7731 = vperm.xlu1 %9957, %v7711_v1   ;;  %7726 = vperm.xlu0 %9956, %v7710_v31   ;;  %v7717_v1 = vld [vmem:[%s14077_s26 + $0x18] sm:$0xff]  ;;  %v8001_v31 = vunpack.c.h.b16 %v7789_v4  ;;  %v9679_v4 = vld [vmem:[%s10234_s12 + $0x50] sm:$0xf] }
 0x918   : > { %7721 = vperm.xlu2 %9958, %v7709_v51   ;;  %v9895_v51 = vld [vmem:[%s10234_s12 + $0x44] sm:$0xf] }
 0x91a   : > { %v7698_v9 = vpop.xlane.xlu0 %7697 }
 0x91b   : > { %v7708_v39 = vadd.f32 %v7703_v11, %v7698_v9  ;;  %v7695_v29 = vpop.xlane.xlu2 %7694  ;;  %v9665_v11 = vld [vmem:[%s10234_s12 + $0x60] sm:$0xf0]  ;;  %v8022_v9 = vpack.c.b16 %v7998_v24, %v7998_v24  ;;  %v9681_v24 = vld [vmem:[%s10234_s12 + $0x70] sm:$0xf0] }
 0x91c   : > { %v7707_v60 = vadd.f32 %v7702_v8, %v7695_v29  ;;  %v9671_v8 = vld [vmem:[%s10234_s12 + $0x48] sm:$0xf]  ;;  %v8024_v29 = vpack.c.b16 %v8000_v52, %v8000_v52 }
 0x91d   : > { %v7713_v20 = vmax.f32 %v7708_v39, 0.0  ;;  %v8023_v39 = vpack.c.b16 %v7999_v45, %v7999_v45  ;;  %v9687_v45 = vld [vmem:[%s10234_s12 + $0x58] sm:$0xf] }
 0x91e   : > { %v7712_v0 = vmax.f32 %v7707_v60, 0.0  ;;  %v9900_v60 = vld [vmem:[%s10234_s12 + $0x64] sm:$0xf0] }
 0x91f   : > { %8189 = vperm.xlu1 %9957, %v8185_v41   ;;  %v9896_v41 = vld [vmem:[%s10234_s12 + $0x4c] sm:$0xf] }
 0x920   : > { %7741 = vperm.xlu2 %9958, %v7713_v20   ;;  %7736 = vperm.xlu0 %9956, %v7712_v0   ;;  %v9673_v20 = vld [vmem:[%s10234_s12 + $0x68] sm:$0xf0] }
 0x928   : > { %8194 = vperm.xlu0 %9956, %v8186_v37   ;;  %v8025_v37 = vpack.c.b16 %v8001_v31, %v8001_v31 }
 0x92a   : > { %v5112_v59 = vpop.permute.xlu1 %5111 }
 0x92b   : > { %v5153_v6 = vadd.f32 %v12856_v7, %v5112_v59  ;;  %v5166_v2 = vadd.f32 %v12935_v43, %v5112_v59  ;;  %v5179_v61 = vadd.f32 %v12946_v63, %v5112_v59  ;;  %v5192_v44 = vadd.f32 %v12948_v21, %v5112_v59 }
 0x92c   : > { %v5205_v22 = vadd.f32 %v12899_v19, %v5112_v59  ;;  %v5218_v32 = vadd.f32 %v12976_v12, %v5112_v59  ;;  %v5231_v55 = vadd.f32 %v12990_v26, %v5112_v59  ;;  %v5244_v36 = vadd.f32 %v12992_v57, %v5112_v59  ;;  %v9631_v59 = vld [vmem:[%s10234_s12] sm:$0xf] }
 0x92d   : > { %v7794_v23 = vpack.c.bf16 %v5153_v6, %v5153_v6  ;;  %v7795_v25 = vpack.c.bf16 %v5166_v2, %v5166_v2  ;;  %v7796_v14 = vpack.c.bf16 %v5179_v61, %v5179_v61  ;;  %v7797_v34 = vpack.c.bf16 %v5192_v44, %v5192_v44  ;;  %v9891_v6 = vld [vmem:[%s10234_s12 + $0x1c] sm:$0xf0]  ;;  %v9887_v2 = vld [vmem:[%s10234_s12 + $0x4] sm:$0xf] }
 0x92e   : > { %v7798_v42 = vpack.c.bf16 %v5205_v22, %v5205_v22  ;;  %v7799_v7 = vpack.c.bf16 %v5218_v32, %v5218_v32  ;;  %v7800_v33 = vpack.c.bf16 %v5231_v55, %v5231_v55  ;;  %v7801_v43 = vpack.c.bf16 %v5244_v36, %v5244_v36  ;;  %v9633_v55 = vld [vmem:[%s10234_s12 + $0x20] sm:$0xf0] }
 0x92f   : > { %v7811_v63 = vsel %vm5118_vm13, %v7794_v23, 0  ;;  %v7814_v21 = vsel %vm5118_vm13, %v7795_v25, 0  ;;  %v7817_v19 = vsel %vm5118_vm13, %v7796_v14, 0  ;;  %v7820_v12 = vsel %vm5118_vm13, %v7797_v34, 0 }
 0x930   : > { %7841 = vmatpush.bf16.msrb.mxu0 %v7811_v63  ;;  %7855 = vmatpush.bf16.msra.mxu1 %v7814_v21  ;;  %v7823_v26 = vsel %vm5118_vm13, %v7798_v42, 0  ;;  %v7826_v57 = vsel %vm5118_vm13, %v7799_v7, 0  ;;  %v7829_v27 = vsel %vm5118_vm13, %v7800_v33, 0  ;;  %v7832_v46 = vsel %vm5118_vm13, %v7801_v43, 0  ;;  %v9639_v42 = vld [vmem:[%s10234_s12 + $0x8] sm:$0xf] }
 0x931   : > { %7869 = vmatpush.bf16.msra.mxu2 %v7817_v19  ;;  %7883 = vmatpush.bf16.msrb.mxu3 %v7820_v12  ;;  %v8050_v44 = vsel %vm5118_vm13, %v8022_v9, 0  ;;  %v8053_v22 = vsel %vm5118_vm13, %v8023_v39, 0  ;;  %v8056_v32 = vsel %vm5118_vm13, %v8024_v29, 0  ;;  %v8059_v25 = vsel %vm5118_vm13, %v8025_v37, 0  ;;  %v9892_v7 = vld [vmem:[%s10234_s12 + $0x24] sm:$0xf0] }
 0x932   : > { %v9664_v14 = vor.u32 %v9899_v56, %v9663_v30  ;;  %v9668_v34 = vor.u32 %v9895_v51, %v9665_v11  ;;  %v9672_v43 = vor.u32 %v9900_v60, %v9671_v8  ;;  %v9676_v63 = vor.u32 %v9896_v41, %v9673_v20  ;;  %v7790_v21 = vld [vmem:[%s10234_s12 + $0x90] sm:$0x33]  ;;  %v7791_v19 = vld [vmem:[%s10234_s12 + $0x98] sm:$0x33] }
 0x933   : > { %9621 = vmatmul.msk.bf16.vlgmr.msrb.gmra.mxu0 %vm5114_vm0, %v9903_v62  ;;  %9622 = vmatmul.msk.bf16.vlgmr.msra.gmra.mxu1 %vm5114_vm0, %v9903_v62  ;;  %v9632_v12 = vor.u32 %v9891_v6, %v9631_v59  ;;  %v9902_v56 = vld [vmem:[%s10234_s12 + $0x74] sm:$0xf0]  ;;  %v9689_v11 = vld [vmem:[%s10234_s12 + $0x78] sm:$0xf0]  ;;  %v9647_v29 = vld [vmem:[%s10234_s12 + $0x10] sm:$0xf] }
 0x934   : > { %7897 = vmatpush.bf16.msra.mxu0 %v7823_v26  ;;  %7911 = vmatpush.bf16.msrb.mxu1 %v7826_v57  ;;  %v9888_v26 = vld [vmem:[%s10234_s12 + $0xc] sm:$0xf]  ;;  %v9893_v60 = vld [vmem:[%s10234_s12 + $0x2c] sm:$0xf0]  ;;  %v9889_v41 = vld [vmem:[%s10234_s12 + $0x14] sm:$0xf]  ;;  %v9688_v20 = vor.u32 %v9902_v56, %v9687_v45 }
 0x935   : > { %7925 = vmatpush.bf16.msrb.mxu2 %v7829_v27  ;;  %7939 = vmatpush.bf16.msra.mxu3 %v7832_v46  ;;  %v9641_v57 = vld [vmem:[%s10234_s12 + $0x28] sm:$0xf0]  ;;  %v8002_v27 = vunpack.c.l.b16 %v7790_v21  ;;  %v8003_v46 = vunpack.c.h.b16 %v7790_v21  ;;  %v9649_v37 = vld [vmem:[%s10234_s12 + $0x30] sm:$0xf0]  ;;  %v9655_v59 = vld [vmem:[%s10234_s12 + $0x18] sm:$0xf] }
 0x936   : > { %9623 = vmatmul.msk.bf16.vlgmr.msra.gmra.mxu2 %vm5114_vm0, %v9903_v62  ;;  %9624 = vmatmul.msk.bf16.vlgmr.msrb.gmra.mxu3 %vm5114_vm0, %v9903_v62  ;;  %v9894_v6 = vld [vmem:[%s10234_s12 + $0x34] sm:$0xf0] }
 0x938   : > { %8078 = vmatpush.bf16.msrb.mxu0 %v8050_v44  ;;  %8092 = vmatpush.bf16.msra.mxu1 %v8053_v22  ;;  %v9657_v44 = vld [vmem:[%s10234_s12 + $0x38] sm:$0xf0] }
 0x939   : > { %8106 = vmatpush.bf16.msra.mxu2 %v8056_v32  ;;  %8120 = vmatpush.bf16.msrb.mxu3 %v8059_v25  ;;  %v9648_v32 = vor.u32 %v9893_v60, %v9647_v29 }
 0x93c   : > { %8079 = vmatpush.bf16.msrb.mxu0 %v9664_v14  ;;  %8093 = vmatpush.bf16.msra.mxu1 %v9668_v34  ;;  %v7764_v14 = vld [vmem:[%s14078_s10] sm:$0x1] }
 0x93d   : > { %8107 = vmatpush.bf16.msra.mxu2 %v9672_v43  ;;  %8121 = vmatpush.bf16.msrb.mxu3 %v9676_v63 }
 0x940   : > { %8080 = vmatpush.bf16.msrb.mxu0 %v9632_v12 }
 0x943   : > { %9625 = vmatmul.msk.bf16.vlgmr.msra.gmra.mxu0 %vm5114_vm0, %v9903_v62  ;;  %9626 = vmatmul.msk.bf16.vlgmr.msrb.gmra.mxu1 %vm5114_vm0, %v9903_v62 }
 0x946   : > { %9627 = vmatmul.msk.bf16.vlgmr.msrb.gmra.mxu2 %vm5114_vm0, %v9903_v62  ;;  %9628 = vmatmul.msk.bf16.vlgmr.msra.gmra.mxu3 %vm5114_vm0, %v9903_v62  ;;  %v8004_v62 = vunpack.c.l.b16 %v7791_v19 }
 0x972   : > { %v7722_v50 = vpop.permute.xlu2 %7721 }
 0x973   : > { %v7744_v3 = vmul.f32 %v7722_v50, %v7714_v54  ;;  %v9636_v54 = vor.u32 %v9887_v2, %v9633_v55  ;;  %v9652_v55 = vor.u32 %v9889_v41, %v9649_v37 }
 0x975   : > { %v7749_v48 = vsel %vm7683_vm1, %v7744_v3, 0.0  ;;  %v8005_v3 = vunpack.c.h.b16 %v7791_v19  ;;  %8094 = vmatpush.bf16.msra.mxu1 %v9636_v54 }
 0x977   : > { %v8029_v13 = vpack.c.b16 %v8005_v3, %v8005_v3 }
 0x979   : > { %v8071_v51 = vsel %vm5118_vm13, %v8029_v13, 0 }
 0x97a   : > { %v7742_v49 = vpop.permute.xlu2 %7741 }
 0x97b   : > { %v7748_v0 = vmul.f32 %v7742_v49, %v7718_v58  ;;  %v9901_v58 = vld [vmem:[%s10234_s12 + $0x6c] sm:$0xf0] }
 0x97c   : > { %v9680_v9 = vor.u32 %v9901_v58, %v9679_v4 }
 0x989   : > { %v7727_v35 = vpop.permute.xlu0 %7726  ;;  %v7732_v10 = vpop.permute.xlu1 %7731 }
 0x98a   : > { %v7745_v18 = vmul.f32 %v7727_v35, %v7715_v17  ;;  %v7746_v40 = vmul.f32 %v7732_v10, %v7716_v38  ;;  %v9640_v17 = vor.u32 %v9892_v7, %v9639_v42  ;;  %v8026_v38 = vpack.c.b16 %v8002_v27, %v8002_v27  ;;  %v7766_v7 = vld [vmem:[%s14079_s23] sm:$0xff] }
 0x98b   : > { %v8027_v10 = vpack.c.b16 %v8003_v46, %v8003_v46 }
 0x98c   : > { %v7750_v28 = vsel %vm7683_vm1, %v7745_v18, 0.0  ;;  %v7752_v61 = vsel %vm7683_vm1, %v7746_v40, 0.0  ;;  %v7756_v18 = vsel %vm7572_vm8, %v7748_v0, 0.0  ;;  %v9897_v40 = vld [vmem:[%s10234_s12 + $0x54] sm:$0xf]  ;;  %v8062_v52 = vsel %vm5118_vm13, %v8026_v38, 0  ;;  %8108 = vmatpush.bf16.msra.mxu2 %v9640_v17 }
 0x98d   : > { %v7751_v47 = vadd.f32 %v7750_v28, %v7749_v48  ;;  %v9644_v48 = vor.u32 %v9888_v26, %v9641_v57  ;;  %v8028_v28 = vpack.c.b16 %v8004_v62, %v8004_v62  ;;  %v8065_v30 = vsel %vm5118_vm13, %v8027_v10, 0  ;;  %8134 = vmatpush.bf16.msra.mxu0 %v8062_v52 }
 0x98e   : > { %8148 = vmatpush.bf16.msrb.mxu1 %v8065_v30  ;;  %v9684_v39 = vor.u32 %v9897_v40, %v9681_v24 }
 0x98f   : > { %v7753_v23 = vadd.f32 %v7752_v61, %v7751_v47  ;;  %v9898_v47 = vld [vmem:[%s10234_s12 + $0x5c] sm:$0xf]  ;;  %v8068_v31 = vsel %vm5118_vm13, %v8028_v28, 0  ;;  %8122 = vmatpush.bf16.msrb.mxu3 %v9644_v48 }
 0x990   : > { %8162 = vmatpush.bf16.msrb.mxu2 %v8068_v31  ;;  %v9692_v0 = vor.u32 %v9898_v47, %v9689_v11  ;;  %v9890_v61 = vld [vmem:[%s10234_s12 + $0x1c] sm:$0xf] }
 0x991   : > { %8135 = vmatpush.bf16.msra.mxu0 %v9680_v9  ;;  %v13604_v40 = vpop.permute.xlu1 %8189 }
 0x992   : > { %v7737_v36 = vpop.permute.xlu0 %7736  ;;  %8149 = vmatpush.bf16.msrb.mxu1 %v9684_v39 }
 0x993   : > { %v7747_v33 = vmul.f32 %v7737_v36, %v7717_v1  ;;  %8176 = vmatpush.bf16.msra.mxu3 %v8071_v51  ;;  %v9656_v36 = vor.u32 %v9894_v6, %v9655_v59 }
 0x994   : > { %8163 = vmatpush.bf16.msrb.mxu2 %v9688_v20 }
 0x995   : > { %v7754_v50 = vsel %vm7683_vm1, %v7747_v33, 0.0  ;;  %8136 = vmatpush.bf16.msra.mxu0 %v9648_v32  ;;  %v7767_v33 = vld [vmem:[%s14079_s23 + $0x8] sm:$0xff] }
 0x996   : > { %v7755_v35 = vadd.f32 %v7754_v50, %v7753_v23  ;;  %v9660_v23 = vor.u32 %v9890_v61, %v9657_v44  ;;  %8150 = vmatpush.bf16.msrb.mxu1 %v9652_v55 }
 0x997   : > { %8177 = vmatpush.bf16.msra.mxu3 %v9692_v0 }
 0x998   : > { %v7757_v49 = vadd.f32 %v7756_v18, %v7755_v35  ;;  %8164 = vmatpush.bf16.msrb.mxu2 %v9656_v36 }
 0x99a   : > { %v7758_v1 = vrot.slane %v7757_v49, 4  ;;  %v13608_v60 = vpop.permute.xlu0 %8194 }
 0x99b   : > { %8178 = vmatpush.bf16.msra.mxu3 %v9660_v23 }
 0x99c   : > { %v7759_v8 = vadd.f32 %v7758_v1, %v7757_v49 }
 0x99e   : > { %v7760_v2 = vrot.slane %v7759_v8, 2 }
 0x9a0   : > { %v7761_v22 = vadd.f32 %v7760_v2, %v7759_v8 }
 0x9a2   : > { %v7762_v25 = vrot.slane %v7761_v22, 1 }
 0x9a4   : > { %v7763_v34 = vadd.f32 %v7762_v25, %v7761_v22 }
 0x9a6   : > { %v7765_v42 = vadd.f32 %v7764_v14, %v7763_v34 }
 0x9a8   : > { %v7768_v43 = vperm.slane %v7765_v42, 0 }
 0x9aa   : > { %v7769_v63 = vmul.f32 %v7768_v43, %v7766_v7  ;;  %v7770_v21 = vmul.f32 %v7768_v43, %v7767_v33 }
 0x9ac   : > { %v7771_v19 = vpack.c.bf16 %v7770_v21, %v7769_v63 }
 0x9ae   : > { %9693 = vmatmul.msk.bf16.vlgmr.msrb.gmra.mxu0 %vm7683_vm1, %v7771_v19  ;;  %9694 = vmatmul.msk.bf16.vlgmr.msra.gmra.mxu1 %vm7683_vm1, %v7771_v19 }
 0x9af   : > { %9695 = vmatmul.msk.bf16.vlgmr.msra.gmra.mxu2 %vm7683_vm1, %v7771_v19  ;;  %9696 = vmatmul.msk.bf16.vlgmr.msrb.gmra.mxu3 %vm7683_vm1, %v7771_v19 }
 0x9b0   : > { %v7843_v12 = vpop.f32.mrf.mxu0  ;;  %v7857_v26 = vpop.f32.mrf.mxu1 }
 0x9b8   : > { %v7845_v46 = vpop.f32.mrf.mxu0  ;;  %v7859_v62 = vpop.f32.mrf.mxu1 }
 0x9b9   : > { %v7871_v57 = vpop.f32.mrf.mxu2  ;;  %v7885_v27 = vpop.f32.mrf.mxu3 }
 0x9be   : > { %9697 = vmatmul.msk.bf16.vlgmr.msra.gmra.mxu0 %vm7683_vm1, %v7771_v19  ;;  %9698 = vmatmul.msk.bf16.vlgmr.msrb.gmra.mxu1 %vm7683_vm1, %v7771_v19 }
 0x9bf   : > { %9699 = vmatmul.msk.bf16.vlgmr.msrb.gmra.mxu2 %vm7683_vm1, %v7771_v19  ;;  %9700 = vmatmul.msk.bf16.vlgmr.msra.gmra.mxu3 %vm7683_vm1, %v7771_v19 }
 0x9c0   : > { %v7899_v17 = vpop.f32.mrf.mxu0  ;;  %v7913_v3 = vpop.f32.mrf.mxu1 }
 0x9c1   : > { %v7873_v50 = vpop.f32.mrf.mxu2  ;;  %v7887_v54 = vpop.f32.mrf.mxu3 }
 0x9c8   : > { %v13596_v10 = vpop.f32.mrf.mxu0  ;;  %v13598_v18 = vpop.f32.mrf.mxu1 }
 0x9c9   : > { %v13592_v35 = vpop.f32.mrf.mxu2  ;;  %v13594_v38 = vpop.f32.mrf.mxu3 }
 0x9d1   : > { %v13600_v48 = vpop.f32.mrf.mxu2  ;;  %v13602_v28 = vpop.f32.mrf.mxu3 }
 0xa2b   : > { %v8082_v13 = vpop.f32.mrf.mxu0  ;;  %v8096_v4 = vpop.f32.mrf.mxu1 }
 0xa2c   : > { %v8083_v58 = vadd.f32 %v8082_v13, %v7843_v12  ;;  %v8097_v49 = vadd.f32 %v8096_v4, %v7857_v26 }
 0xa2e   : > { %v8197_v24 = vadd.f32 %v13604_v40, %v8083_v58  ;;  %v8198_v45 = vadd.f32 %v13604_v40, %v8097_v49 }
 0xa30   : > { %v8213_v52 = vsub.f32 0.0, %v8197_v24  ;;  %v8214_v30 = vsub.f32 0.0, %v8198_v45 }
 0xa32   : > { %v8229_v56 = vmul.f32 1.442695, %v8213_v52  ;;  %v8231_v47 = vmul.f32 1.442695, %v8214_v30  ;;  %v8110_v1 = vpop.f32.mrf.mxu2  ;;  %v8124_v31 = vpop.f32.mrf.mxu3 }
 0xa33   : > { %v8111_v51 = vadd.f32 %v8110_v1, %v7871_v57  ;;  %v8125_v11 = vadd.f32 %v8124_v31, %v7885_v27  ;;  %v8084_v8 = vpop.f32.mrf.mxu0  ;;  %v8098_v9 = vpop.f32.mrf.mxu1 }
 0xa34   : > { %9959 = vpow2.f32 %v8229_v56  ;;  %v8085_v39 = vadd.f32 %v8084_v8, %v7845_v46  ;;  %v8099_v29 = vadd.f32 %v8098_v9, %v7859_v62 }
 0xa35   : > { %9961 = vpow2.f32 %v8231_v47  ;;  %v8199_v41 = vadd.f32 %v13604_v40, %v8111_v51  ;;  %v8200_v20 = vadd.f32 %v13604_v40, %v8125_v11 }
 0xa36   : > { %v8205_v0 = vadd.f32 %v13608_v60, %v8085_v39  ;;  %v8206_v37 = vadd.f32 %v13608_v60, %v8099_v29 }
 0xa37   : > { %v8215_v59 = vsub.f32 0.0, %v8199_v41  ;;  %v8216_v6 = vsub.f32 0.0, %v8200_v20 }
 0xa38   : > { %v8221_v2 = vsub.f32 0.0, %v8205_v0  ;;  %v8222_v61 = vsub.f32 0.0, %v8206_v37 }
 0xa39   : > { %v8233_v44 = vmul.f32 1.442695, %v8215_v59  ;;  %v8235_v22 = vmul.f32 1.442695, %v8216_v6 }
 0xa3a   : > { %v9960_v32 = vpop.eup %9959  ;;  %v8112_v55 = vpop.f32.mrf.mxu2  ;;  %v8245_v25 = vmul.f32 1.442695, %v8221_v2  ;;  %v8247_v33 = vmul.f32 1.442695, %v8222_v61 }
 0xa3b   : > { %v9962_v36 = vpop.eup %9961  ;;  %v13614_v23 = vadd.f32 1.0, %v9960_v32  ;;  %9963 = vpow2.f32 %v8233_v44  ;;  %v8113_v14 = vadd.f32 %v8112_v55, %v7873_v50  ;;  %v8126_v34 = vpop.f32.mrf.mxu3 }
 0xa3c   : > { %v8138_v42 = vpop.f32.mrf.mxu0  ;;  %v13616_v7 = vadd.f32 1.0, %v9962_v36  ;;  %9965 = vpow2.f32 %v8235_v22  ;;  %v8152_v43 = vpop.f32.mrf.mxu1  ;;  %v8127_v63 = vadd.f32 %v8126_v34, %v7887_v54 }
 0xa3d   : > { %9967 = vrcp.f32 %v13614_v23  ;;  %v8139_v21 = vadd.f32 %v8138_v42, %v7899_v17  ;;  %v8207_v19 = vadd.f32 %v13608_v60, %v8113_v14  ;;  %v8153_v12 = vadd.f32 %v8152_v43, %v7913_v3 }
 0xa3e   : > { %9969 = vrcp.f32 %v13616_v7  ;;  %v8286_v26 = vand.u32 2147483647, %v13614_v23  ;;  %v8288_v57 = vand.u32 2147483648, %v13614_v23  ;;  %v8301_v46 = vand.u32 2147483647, %v13616_v7 }
 0xa3f   : > { %9971 = vpow2.f32 %v8245_v25  ;;  %v8303_v62 = vand.u32 2147483648, %v13616_v7  ;;  %v8223_v50 = vsub.f32 0.0, %v8207_v19  ;;  %v8208_v54 = vadd.f32 %v13608_v60, %v8127_v63 }
 0xa40   : > { %9973 = vpow2.f32 %v8247_v33  ;;  %v13629_v17 = vadd.f32 %v13604_v40, %v8139_v21  ;;  %vm8282_vm10 = vweird.f32 %v13614_v23  ;;  %vm8297_vm11 = vweird.f32 %v13616_v7 }
 0xa41   : > { %v9964_v27 = vpop.eup %9963  ;;  %v13636_v49 = vadd.f32 %v13604_v40, %v8153_v12  ;;  %vm13639_vm3 = vcmp.eq.f32.partialorder %v8286_v26, 8.507059e+37  ;;  %v8289_v30 = vor.u32 1.1754944e-38, %v8288_v57  ;;  %vm13645_vm5 = vcmp.eq.f32.partialorder %v8301_v46, 8.507059e+37 }
 0xa42   : > { %v9966_v13 = vpop.eup %9965  ;;  %v13625_v4 = vadd.f32 1.0, %v9964_v27  ;;  %v8304_v31 = vor.u32 1.1754944e-38, %v8303_v62  ;;  %v8249_v51 = vmul.f32 1.442695, %v8223_v50  ;;  %v8224_v9 = vsub.f32 0.0, %v8208_v54  ;;  %v10037_v54 = vld [vmem:[%s10267_s18] sm:$0xff] }
 0xa43   : > { %v9968_v3 = vpop.eup %9967  ;;  %v13633_v58 = vadd.f32 1.0, %v9966_v13  ;;  %v8217_v39 = vsub.f32 0.0, %v13629_v17  ;;  %v8218_v20 = vsub.f32 0.0, %v13636_v49  ;;  %v14092_v49 = vld [vmem:[#allocation36_spill] sm:$0xff] }
 0xa44   : > { %v9970_v24 = vpop.eup %9969  ;;  %v8278_v45 = vmul.f32 %v9968_v3, %v13614_v23  ;;  %9975 = vrcp.f32 %v13625_v4  ;;  %vm8283_vm6 = vweird.f32 %v9968_v3  ;;  %v8316_v41 = vand.u32 2147483647, %v13625_v4 }
 0xa45   : > { %v9972_v56 = vpop.eup %9971  ;;  %v8293_v47 = vmul.f32 %v9970_v24, %v13616_v7  ;;  %9977 = vrcp.f32 %v13633_v58  ;;  %v8318_v37 = vand.u32 2147483648, %v13625_v4  ;;  %vm8298_vm7 = vweird.f32 %v9970_v24  ;;  %vm8284_vm13 = vmor %vm8282_vm10, %vm8283_vm6 }
 0xa46   : > { %v9974_v11 = vpop.eup %9973  ;;  %v8279_v8 = vsub.f32 1.0, %v8278_v45  ;;  %v13654_v59 = vadd.f32 1.0, %v9972_v56  ;;  %v8331_v61 = vand.u32 2147483647, %v13633_v58  ;;  %9979 = vpow2.f32 %v8249_v51  ;;  %vm8299_vm15 = vmor %vm8297_vm11, %vm8298_vm7 }
 0xa47   : > { %v8294_v29 = vsub.f32 1.0, %v8293_v47  ;;  %v13656_v6 = vadd.f32 1.0, %v9974_v11  ;;  %vm8312_vm12 = vweird.f32 %v13625_v4  ;;  %v8333_v32 = vand.u32 2147483648, %v13633_v58 }
 0xa48   : > { %v8280_v0 = vmul.f32 %v9968_v3, %v8279_v8  ;;  %9981 = vrcp.f32 %v13654_v59  ;;  %vm13666_vm0 = vcmp.eq.f32.partialorder %v8316_v41, 8.507059e+37  ;;  %vm8327_vm14 = vweird.f32 %v13633_v58 }
 0xa49   : > { %v8295_v2 = vmul.f32 %v9970_v24, %v8294_v29  ;;  %v8319_v42 = vor.u32 1.1754944e-38, %v8318_v37  ;;  %9983 = vrcp.f32 %v13656_v6  ;;  %v8251_v23 = vmul.f32 1.442695, %v8224_v9 }
 0xa4a   : > { %v9976_v44 = vpop.eup %9975  ;;  %v8281_v22 = vadd.f32 %v9968_v3, %v8280_v0  ;;  %vm13678_vm2 = vcmp.eq.f32.partialorder %v8331_v61, 8.507059e+37  ;;  %v8334_v26 = vor.u32 1.1754944e-38, %v8333_v32  ;;  %v8406_v57 = vand.u32 2147483647, %v13654_v59  ;;  %v14090_v32 = vld [vmem:[#allocation19_spill] sm:$0xff] }
 0xa4b   : > { %v8296_v55 = vadd.f32 %v9970_v24, %v8295_v2  ;;  %v8308_v36 = vmul.f32 %v9976_v44, %v13625_v4  ;;  %v9978_v14 = vpop.eup %9977  ;;  %vm8313_vm4 = vweird.f32 %v9976_v44  ;;  %9985 = vpow2.f32 %v8251_v23  ;;  %v8166_v2 = vpop.f32.mrf.mxu2 }
 0xa4c   : > { %v8285_v34 = vsel %vm8284_vm13, %v9968_v3, %v8281_v22  ;;  %v8323_v21 = vmul.f32 %v9978_v14, %v13633_v58  ;;  %v9980_v27 = vpop.eup %9979  ;;  %vm8328_vm9 = vweird.f32 %v9978_v14  ;;  %vm8314_vm8 = vmor %vm8312_vm12, %vm8313_vm4  ;;  %vm8402_vm1 = vweird.f32 %v13654_v59 }
 0xa4d   : > { %v8290_v33 = vsel %vm13639_vm3, %v8289_v30, %v8285_v34  ;;  %v8300_v43 = vsel %vm8299_vm15, %v9970_v24, %v8296_v55  ;;  %v8309_v63 = vsub.f32 1.0, %v8308_v36  ;;  %v13693_v3 = vadd.f32 1.0, %v9980_v27  ;;  %v10038_v24 = vld [vmem:[%s10267_s18 + $0x8] sm:$0xff]  ;;  %vm8329_vm11 = vmor %vm8327_vm14, %vm8328_vm9 }
 0xa4e   : > { %v8517_v12 = vmul.f32 %v8290_v33, %v12450_v53  ;;  %v8305_v7 = vsel %vm13645_vm5, %v8304_v31, %v8300_v43  ;;  %v8324_v50 = vsub.f32 1.0, %v8323_v21  ;;  %v9982_v13 = vpop.eup %9981  ;;  %vm13702_vm10 = vcmp.eq.f32.partialorder %v8406_v57, 8.507059e+37 }
 0xa4f   : > { %v8518_v46 = vmul.f32 %v8305_v7, %v12439_v15  ;;  %v8310_v62 = vmul.f32 %v9976_v44, %v8309_v63  ;;  %v8398_v56 = vmul.f32 %v9982_v13, %v13654_v59  ;;  %v9984_v47 = vpop.eup %9983  ;;  %v8408_v1 = vand.u32 2147483648, %v13654_v59  ;;  %v8180_v7 = vpop.f32.mrf.mxu3 }
 0xa50   : > { %v8533_v53 = vadd.f32 %v10037_v54, %v8517_v12  ;;  %v8325_v30 = vmul.f32 %v9978_v14, %v8324_v50  ;;  %9987 = vrcp.f32 %v13693_v3  ;;  %v8413_v8 = vmul.f32 %v9984_v47, %v13656_v6  ;;  %v14094_v50 = vld [vmem:[#allocation39_spill] sm:$0xff]  ;;  %v8154_v15 = vpop.f32.mrf.mxu1 }
 0xa51   : > { %v8534_v45 = vadd.f32 %v10038_v24, %v8518_v46  ;;  %v8311_v52 = vadd.f32 %v9976_v44, %v8310_v62  ;;  %v8399_v11 = vsub.f32 1.0, %v8398_v56  ;;  %vm8403_vm3 = vweird.f32 %v9982_v13  ;;  %v9986_v61 = vpop.eup %9985  ;;  %v14093_v46 = vld [vmem:[#allocation17_spill] sm:$0xff] }
 0xa52   : > { %8549 = vst [vmem:[%s13689_s2] sm:$0xff] %v8533_v53  ;;  %v8326_v51 = vadd.f32 %v9978_v14, %v8325_v30  ;;  %vm8417_vm5 = vweird.f32 %v13656_v6  ;;  %v8421_v9 = vand.u32 2147483647, %v13656_v6  ;;  %v8414_v37 = vsub.f32 1.0, %v8413_v8  ;;  %vm8404_vm7 = vmor %vm8402_vm1, %vm8403_vm3  ;;  %v14095_v30 = vld [vmem:[#allocation18_spill] sm:$0xff] }
 0xa53   : > { %8550 = vst [vmem:[%s13689_s2 + $0x8] sm:$0xff] %v8534_v45  ;;  %v8315_v31 = vsel %vm8314_vm8, %v9976_v44, %v8311_v52  ;;  %v8400_v0 = vmul.f32 %v9982_v13, %v8399_v11  ;;  %vm8418_vm6 = vweird.f32 %v9984_v47  ;;  %v8423_v58 = vand.u32 2147483648, %v13656_v6 }
 0xa54   : > { %v8320_v4 = vsel %vm13666_vm0, %v8319_v42, %v8315_v31  ;;  %v8330_v41 = vsel %vm8329_vm11, %v9978_v14, %v8326_v51  ;;  %v8237_v22 = vmul.f32 1.442695, %v8217_v39  ;;  %v8415_v25 = vmul.f32 %v9984_v47, %v8414_v37  ;;  %v14091_v39 = vld [vmem:[#allocation20_spill] sm:$0xff]  ;;  %vm8419_vm12 = vmor %vm8417_vm5, %vm8418_vm6 }
 0xa55   : > { %v8519_v29 = vmul.f32 %v8320_v4, %v12466_v5  ;;  %v8335_v44 = vsel %vm13678_vm2, %v8334_v26, %v8330_v41  ;;  %v8401_v5 = vadd.f32 %v9982_v13, %v8400_v0  ;;  %v8409_v34 = vor.u32 1.1754944e-38, %v8408_v1  ;;  %v8140_v26 = vpop.f32.mrf.mxu0  ;;  %v8168_v1 = vpop.f32.mrf.mxu2  ;;  %v14096_v0 = vld [vmem:[#allocation40_spill] sm:$0xff] }
 0xa56   : > { %v8520_v36 = vmul.f32 %v8335_v44, %v12469_v16  ;;  %v9988_v14 = vpop.eup %9987  ;;  %v13728_v42 = vadd.f32 1.0, %v9986_v61  ;;  %9989 = vpow2.f32 %v8237_v22  ;;  %v8239_v17 = vmul.f32 1.442695, %v8218_v20 }
 0xa57   : > { %v8535_v55 = vadd.f32 %v8519_v29, %v14090_v32  ;;  %v8405_v33 = vsel %vm8404_vm7, %v9982_v13, %v8401_v5  ;;  %v8416_v16 = vadd.f32 %v9984_v47, %v8415_v25  ;;  %v8428_v43 = vmul.f32 %v9988_v14, %v13693_v3 }
 0xa58   : > { %v8536_v23 = vadd.f32 %v8520_v36, %v14091_v39  ;;  %v8410_v63 = vsel %vm13702_vm10, %v8409_v34, %v8405_v33  ;;  %vm8422_vm13 = vcmp.eq.f32.partialorder %v8421_v9, 8.507059e+37  ;;  %v8424_v59 = vor.u32 1.1754944e-38, %v8423_v58  ;;  %v8182_v39 = vpop.f32.mrf.mxu3 }
 0xa59   : > { %8551 = vst [vmem:[%s13689_s2 + $0x10] sm:$0xff] %v8535_v55  ;;  %9991 = vrcp.f32 %v13728_v42  ;;  %v8525_v20 = vmul.f32 %v8410_v63, %v14092_v49  ;;  %v8420_v21 = vsel %vm8419_vm12, %v9984_v47, %v8416_v16  ;;  %v8429_v19 = vsub.f32 1.0, %v8428_v43  ;;  %v14097_v55 = vld [vmem:[#allocation21_spill] sm:$0xff] }
 0xa5a   : > { %8552 = vst [vmem:[%s13689_s2 + $0x18] sm:$0xff] %v8536_v23  ;;  %v8436_v12 = vand.u32 2147483647, %v13693_v3  ;;  %v8425_v57 = vsel %vm8422_vm13, %v8424_v59, %v8420_v21  ;;  %v8438_v27 = vand.u32 2147483648, %v13693_v3  ;;  %9993 = vpow2.f32 %v8239_v17 }
 0xa5b   : > { %v8167_v6 = vadd.f32 %v8166_v2, %v13592_v35  ;;  %v8541_v62 = vadd.f32 %v8525_v20, %v14093_v46  ;;  %v8526_v13 = vmul.f32 %v8425_v57, %v14094_v50  ;;  %v8430_v54 = vmul.f32 %v9988_v14, %v8429_v19  ;;  %v14098_v19 = vld [vmem:[#allocation32_spill] sm:$0xff] }
 0xa5c   : > { %vm8433_vm0 = vweird.f32 %v9988_v14  ;;  %v9990_v53 = vpop.eup %9989  ;;  %v8181_v45 = vadd.f32 %v8180_v7, %v13594_v38  ;;  %v8141_v52 = vadd.f32 %v8140_v26, %v13596_v10  ;;  %vm8432_vm14 = vweird.f32 %v13693_v3 }
 0xa5d   : > { %v8203_v24 = vadd.f32 %v13604_v40, %v8167_v6  ;;  %8557 = vst [vmem:[%s13689_s2 + $0x40] sm:$0xff] %v8541_v62  ;;  %v8542_v56 = vadd.f32 %v8526_v13, %v14095_v30  ;;  %v8431_v47 = vadd.f32 %v9988_v14, %v8430_v54  ;;  %v13754_v35 = vadd.f32 1.0, %v9990_v53  ;;  %vm8434_vm15 = vmor %vm8432_vm14, %vm8433_vm0  ;;  %v14099_v62 = vld [vmem:[#allocation22_spill] sm:$0xff] }
 0xa5e   : > { %v8439_v51 = vor.u32 1.1754944e-38, %v8438_v27  ;;  %v8204_v8 = vadd.f32 %v13604_v40, %v8181_v45  ;;  %v8209_v38 = vadd.f32 %v13608_v60, %v8141_v52  ;;  %vm8437_vm2 = vcmp.eq.f32.partialorder %v8436_v12, 8.507059e+37 }
 0xa5f   : > { %v9992_v31 = vpop.eup %9991  ;;  %v8219_v11 = vsub.f32 0.0, %v8203_v24  ;;  %8558 = vst [vmem:[%s13689_s2 + $0x48] sm:$0xff] %v8542_v56  ;;  %v8435_v10 = vsel %vm8434_vm15, %v9988_v14, %v8431_v47  ;;  %9995 = vrcp.f32 %v13754_v35  ;;  %v8155_v29 = vadd.f32 %v8154_v15, %v13598_v18 }
 0xa60   : > { %v8443_v4 = vmul.f32 %v9992_v31, %v13728_v42  ;;  %v9994_v3 = vpop.eup %9993  ;;  %v8440_v9 = vsel %vm8437_vm2, %v8439_v51, %v8435_v10  ;;  %v8169_v41 = vadd.f32 %v8168_v1, %v13600_v48  ;;  %v8451_v44 = vand.u32 2147483647, %v13728_v42  ;;  %v14100_v51 = vld [vmem:[#allocation33_spill] sm:$0xff] }
 0xa61   : > { %v8527_v37 = vmul.f32 %v8440_v9, %v14096_v0  ;;  %v13764_v40 = vadd.f32 1.0, %v9994_v3  ;;  %v8241_v61 = vmul.f32 1.442695, %v8219_v11  ;;  %v8453_v58 = vand.u32 2147483648, %v13728_v42  ;;  %v14101_v3 = vld [vmem:[#allocation23_spill] sm:$0xff] }
 0xa62   : > { %v8444_v2 = vsub.f32 1.0, %v8443_v4  ;;  %v8220_v22 = vsub.f32 0.0, %v8204_v8  ;;  %v8225_v32 = vsub.f32 0.0, %v8209_v38  ;;  %vm8448_vm4 = vweird.f32 %v9992_v31 }
 0xa63   : > { %v8543_v36 = vadd.f32 %v8527_v37, %v14097_v55  ;;  %9997 = vrcp.f32 %v13764_v40  ;;  %vm8447_vm9 = vweird.f32 %v13728_v42  ;;  %v8210_v34 = vadd.f32 %v13608_v60, %v8155_v29  ;;  %v14103_v55 = vld [vmem:[#allocation24_spill] sm:$0xff] }
 0xa64   : > { %v8445_v5 = vmul.f32 %v9992_v31, %v8444_v2  ;;  %9999 = vpow2.f32 %v8241_v61  ;;  %v8243_v18 = vmul.f32 1.442695, %v8220_v22  ;;  %v8253_v14 = vmul.f32 1.442695, %v8225_v32  ;;  %vm8449_vm8 = vmor %vm8447_vm9, %vm8448_vm4 }
 0xa65   : > { %v9996_v48 = vpop.eup %9995  ;;  %8559 = vst [vmem:[%s13689_s2 + $0x50] sm:$0xff] %v8543_v36  ;;  %v8211_v17 = vadd.f32 %v13608_v60, %v8169_v41  ;;  %vm8452_vm1 = vcmp.eq.f32.partialorder %v8451_v44, 8.507059e+37  ;;  %v8454_v23 = vor.u32 1.1754944e-38, %v8453_v58  ;;  %v8346_v16 = vand.u32 2147483647, %v13754_v35 }
 0xa66   : > { %v8446_v25 = vadd.f32 %v9992_v31, %v8445_v5  ;;  %v8338_v33 = vmul.f32 %v9996_v48, %v13754_v35  ;;  %10001 = vpow2.f32 %v8243_v18  ;;  %v8226_v42 = vsub.f32 0.0, %v8210_v34 }
 0xa67   : > { %v8227_v63 = vsub.f32 0.0, %v8211_v17  ;;  %10003 = vpow2.f32 %v8253_v14  ;;  %v8183_v20 = vadd.f32 %v8182_v39, %v13602_v28  ;;  %v8348_v7 = vand.u32 2147483648, %v13754_v35 }
 0xa68   : > { %v8450_v43 = vsel %vm8449_vm8, %v9992_v31, %v8446_v25  ;;  %v8339_v49 = vsub.f32 1.0, %v8338_v33  ;;  %v8255_v26 = vmul.f32 1.442695, %v8226_v42  ;;  %vm8342_vm10 = vweird.f32 %v13754_v35 }
 0xa69   : > { %v8455_v59 = vsel %vm8452_vm1, %v8454_v23, %v8450_v43  ;;  %v9998_v21 = vpop.eup %9997  ;;  %v8257_v57 = vmul.f32 1.442695, %v8227_v63  ;;  %vm8343_vm11 = vweird.f32 %v9996_v48  ;;  %v8212_v28 = vadd.f32 %v13608_v60, %v8183_v20 }
 0xa6a   : > { %v8528_v12 = vmul.f32 %v8455_v59, %v14098_v19  ;;  %v10000_v27 = vpop.eup %9999  ;;  %v8340_v6 = vmul.f32 %v9996_v48, %v8339_v49  ;;  %v8353_v46 = vmul.f32 %v9998_v21, %v13764_v40  ;;  %10005 = vpow2.f32 %v8255_v26  ;;  %vm8344_vm5 = vmor %vm8342_vm10, %vm8343_vm11 }
 0xa6b   : > { %v13782_v13 = vadd.f32 1.0, %v10000_v27  ;;  %vm8347_vm3 = vcmp.eq.f32.partialorder %v8346_v16, 8.507059e+37  ;;  %10007 = vpow2.f32 %v8257_v57  ;;  %v8349_v45 = vor.u32 1.1754944e-38, %v8348_v7 }
 0xa6c   : > { %v8544_v50 = vadd.f32 %v8528_v12, %v14099_v62  ;;  %v8341_v54 = vadd.f32 %v9996_v48, %v8340_v6  ;;  %v8354_v53 = vsub.f32 1.0, %v8353_v46  ;;  %v10002_v24 = vpop.eup %10001  ;;  %v8361_v52 = vand.u32 2147483647, %v13764_v40 }
 0xa6d   : > { %v8363_v30 = vand.u32 2147483648, %v13764_v40  ;;  %10009 = vrcp.f32 %v13782_v13  ;;  %v10004_v56 = vpop.eup %10003  ;;  %vm8358_vm6 = vweird.f32 %v9998_v21  ;;  %v13789_v15 = vadd.f32 1.0, %v10002_v24 }
 0xa6e   : > { %8560 = vst [vmem:[%s13689_s2 + $0x58] sm:$0xff] %v8544_v50  ;;  %v8345_v47 = vsel %vm8344_vm5, %v9996_v48, %v8341_v54  ;;  %v8355_v35 = vmul.f32 %v9998_v21, %v8354_v53  ;;  %v13791_v1 = vadd.f32 1.0, %v10004_v56  ;;  %v8228_v31 = vsub.f32 0.0, %v8212_v28  ;;  %v14110_v50 = vld [vmem:[#allocation37_spill] sm:$0xff]  ;;  %v14111_v56 = vld [vmem:[#allocation27_spill] sm:$0xff] }
 0xa6f   : > { %v8350_v60 = vsel %vm8347_vm3, %v8349_v45, %v8345_v47  ;;  %vm8357_vm7 = vweird.f32 %v13764_v40  ;;  %10011 = vrcp.f32 %v13789_v15  ;;  %v8364_v10 = vor.u32 1.1754944e-38, %v8363_v30  ;;  %v14102_v40 = vld [vmem:[#allocation31_spill] sm:$0xff] }
 0xa70   : > { %v8521_v11 = vmul.f32 %v8350_v60, %v14100_v51  ;;  %v8356_v8 = vadd.f32 %v9998_v21, %v8355_v35  ;;  %v10006_v38 = vpop.eup %10005  ;;  %vm8359_vm12 = vmor %vm8357_vm7, %vm8358_vm6  ;;  %10013 = vrcp.f32 %v13791_v1  ;;  %vm8362_vm13 = vcmp.eq.f32.partialorder %v8361_v52, 8.507059e+37 }
 0xa71   : > { %v10008_v4 = vpop.eup %10007  ;;  %v8376_v41 = vand.u32 2147483647, %v13782_v13  ;;  %v13799_v2 = vadd.f32 1.0, %v10006_v38  ;;  %v8259_v61 = vmul.f32 1.442695, %v8228_v31  ;;  %v8378_v22 = vand.u32 2147483648, %v13782_v13 }
 0xa72   : > { %v8537_v9 = vadd.f32 %v8521_v11, %v14101_v3  ;;  %v8360_v29 = vsel %vm8359_vm12, %v9998_v21, %v8356_v8  ;;  %vm8372_vm0 = vweird.f32 %v13782_v13  ;;  %v13812_v48 = vadd.f32 1.0, %v10008_v4  ;;  %v14112_v31 = vld [vmem:[#allocation38_spill] sm:$0xff]  ;;  %v14113_v8 = vld [vmem:[#allocation35_spill] sm:$0xff]  ;;  %v14114_v4 = vld [vmem:[#allocation28_spill] sm:$0xff] }
 0xa73   : > { %v10010_v0 = vpop.eup %10009  ;;  %v8365_v37 = vsel %vm8362_vm13, %v8364_v10, %v8360_v29  ;;  %10015 = vrcp.f32 %v13799_v2  ;;  %vm13808_vm14 = vcmp.eq.f32.partialorder %v8376_v41, 8.507059e+37  ;;  %v8391_v34 = vand.u32 2147483647, %v13789_v15  ;;  %v14115_v41 = vld [vmem:[#allocation25_spill] sm:$0xff]  ;;  %v14120_v21 = vld [vmem:[#allocation42_spill] sm:$0xff] }
 0xa74   : > { %8553 = vst [vmem:[%s13689_s2 + $0x20] sm:$0xff] %v8537_v9  ;;  %v8522_v44 = vmul.f32 %v8365_v37, %v14102_v40  ;;  %v8368_v58 = vmul.f32 %v10010_v0, %v13782_v13  ;;  %v8393_v17 = vand.u32 2147483648, %v13789_v15  ;;  %10017 = vpow2.f32 %v8259_v61 }
 0xa75   : > { %v10012_v32 = vpop.eup %10011  ;;  %vm8373_vm15 = vweird.f32 %v10010_v0  ;;  %v8379_v23 = vor.u32 1.1754944e-38, %v8378_v22  ;;  %v8466_v43 = vand.u32 2147483647, %v13791_v1  ;;  %v8468_v42 = vand.u32 2147483648, %v13791_v1 }
 0xa76   : > { %v8538_v36 = vadd.f32 %v8522_v44, %v14103_v55  ;;  %v8369_v5 = vsub.f32 1.0, %v8368_v58  ;;  %v10014_v25 = vpop.eup %10013  ;;  %v8383_v14 = vmul.f32 %v10012_v32, %v13789_v15  ;;  %10019 = vrcp.f32 %v13812_v48  ;;  %vm8374_vm9 = vmor %vm8372_vm0, %vm8373_vm15  ;;  %v14116_v58 = vld [vmem:[#allocation34_spill] sm:$0xff] }
 0xa77   : > { %v8458_v33 = vmul.f32 %v10014_v25, %v13791_v1  ;;  %vm8387_vm2 = vweird.f32 %v13789_v15  ;;  %vm8462_vm4 = vweird.f32 %v13791_v1  ;;  %vm8388_vm8 = vweird.f32 %v10012_v32 }
 0xa78   : > { %8554 = vst [vmem:[%s13689_s2 + $0x28] sm:$0xff] %v8538_v36  ;;  %v8370_v39 = vmul.f32 %v10010_v0, %v8369_v5  ;;  %v8384_v16 = vsub.f32 1.0, %v8383_v14  ;;  %vm13826_vm1 = vcmp.eq.f32.partialorder %v8391_v34, 8.507059e+37  ;;  %v8394_v19 = vor.u32 1.1754944e-38, %v8393_v17  ;;  %vm8389_vm3 = vmor %vm8387_vm2, %vm8388_vm8  ;;  %v14117_v36 = vld [vmem:[#allocation26_spill] sm:$0xff]  ;;  %v14118_v17 = vld [vmem:[#allocation41_spill] sm:$0xff] }
 0xa79   : > { %v8459_v59 = vsub.f32 1.0, %v8458_v33  ;;  %v10016_v49 = vpop.eup %10015  ;;  %vm8463_vm10 = vweird.f32 %v10014_v25  ;;  %vm13833_vm11 = vcmp.eq.f32.partialorder %v8466_v43, 8.507059e+37  ;;  %v8469_v62 = vor.u32 1.1754944e-38, %v8468_v42 }
 0xa7a   : > { %v8371_v63 = vadd.f32 %v10010_v0, %v8370_v39  ;;  %v8385_v20 = vmul.f32 %v10012_v32, %v8384_v16  ;;  %v8473_v26 = vmul.f32 %v10016_v49, %v13799_v2  ;;  %v10018_v57 = vpop.eup %10017  ;;  %vm8464_vm5 = vmor %vm8462_vm4, %vm8463_vm10  ;;  %vm8478_vm6 = vweird.f32 %v10016_v49  ;;  %v14119_v16 = vld [vmem:[#allocation29_spill] sm:$0xff] }
 0xa7b   : > { %v8460_v7 = vmul.f32 %v10014_v25, %v8459_v59  ;;  %v8276_v53 = vadd.f32 1.0, %v10018_v57  ;;  %v8481_v52 = vand.u32 2147483647, %v13799_v2  ;;  %v8483_v30 = vand.u32 2147483648, %v13799_v2 }
 0xa7c   : > { %v8375_v12 = vsel %vm8374_vm9, %v10010_v0, %v8371_v63  ;;  %v8386_v6 = vadd.f32 %v10012_v32, %v8385_v20  ;;  %v8474_v54 = vsub.f32 1.0, %v8473_v26  ;;  %v10020_v24 = vpop.eup %10019  ;;  %vm8477_vm7 = vweird.f32 %v13799_v2 }
 0xa7d   : > { %v8380_v27 = vsel %vm13808_vm14, %v8379_v23, %v8375_v12  ;;  %v8461_v28 = vadd.f32 %v10014_v25, %v8460_v7  ;;  %v8488_v1 = vmul.f32 %v10020_v24, %v13812_v48  ;;  %10021 = vrcp.f32 %v8276_v53  ;;  %vm8479_vm12 = vmor %vm8477_vm7, %vm8478_vm6  ;;  %v14121_v12 = vld [vmem:[#allocation30_spill] sm:$0xff] }
 0xa7e   : > { %v8523_v13 = vmul.f32 %v8380_v27, %v14110_v50  ;;  %v8390_v45 = vsel %vm8389_vm3, %v10012_v32, %v8386_v6  ;;  %v8475_v60 = vmul.f32 %v10016_v49, %v8474_v54  ;;  %v8484_v9 = vor.u32 1.1754944e-38, %v8483_v30 }
 0xa7f   : > { %v8395_v35 = vsel %vm13826_vm1, %v8394_v19, %v8390_v45  ;;  %v8465_v15 = vsel %vm8464_vm5, %v10014_v25, %v8461_v28  ;;  %v8489_v29 = vsub.f32 1.0, %v8488_v1  ;;  %vm8482_vm13 = vcmp.eq.f32.partialorder %v8481_v52, 8.507059e+37 }
 0xa80   : > { %v8539_v47 = vadd.f32 %v8523_v13, %v14111_v56  ;;  %v8524_v51 = vmul.f32 %v8395_v35, %v14112_v31  ;;  %v8470_v11 = vsel %vm13833_vm11, %v8469_v62, %v8465_v15  ;;  %v8476_v10 = vadd.f32 %v10016_v49, %v8475_v60 }
 0xa81   : > { %v8529_v38 = vmul.f32 %v8470_v11, %v14113_v8  ;;  %v8498_v61 = vand.u32 2147483648, %v13812_v48  ;;  %v8490_v44 = vmul.f32 %v10020_v24, %v8489_v29  ;;  %vm8493_vm0 = vweird.f32 %v10020_v24 }
 0xa82   : > { %8555 = vst [vmem:[%s13689_s2 + $0x30] sm:$0xff] %v8539_v47  ;;  %v8540_v3 = vadd.f32 %v8524_v51, %v14114_v4  ;;  %v8480_v37 = vsel %vm8479_vm12, %v10016_v49, %v8476_v10  ;;  %v8496_v2 = vand.u32 2147483647, %v13812_v48  ;;  %vm8492_vm14 = vweird.f32 %v13812_v48 }
 0xa83   : > { %v8545_v0 = vadd.f32 %v8529_v38, %v14115_v41  ;;  %v8485_v40 = vsel %vm8482_vm13, %v8484_v9, %v8480_v37  ;;  %v8491_v32 = vadd.f32 %v10020_v24, %v8490_v44  ;;  %v10022_v55 = vpop.eup %10021  ;;  %vm8494_vm15 = vmor %vm8492_vm14, %vm8493_vm0  ;;  %v8499_v18 = vor.u32 1.1754944e-38, %v8498_v61 }
 0xa84   : > { %8556 = vst [vmem:[%s13689_s2 + $0x38] sm:$0xff] %v8540_v3  ;;  %v8530_v22 = vmul.f32 %v8485_v40, %v14116_v58  ;;  %vm8497_vm2 = vcmp.eq.f32.partialorder %v8496_v2, 8.507059e+37  ;;  %v8503_v14 = vmul.f32 %v10022_v55, %v8276_v53  ;;  %v8513_v33 = vand.u32 2147483648, %v8276_v53 }
 0xa85   : > { %8561 = vst [vmem:[%s13689_s2 + $0x60] sm:$0xff] %v8545_v0  ;;  %v8495_v25 = vsel %vm8494_vm15, %v10020_v24, %v8491_v32  ;;  %vm8508_vm4 = vweird.f32 %v10022_v55  ;;  %v8511_v48 = vand.u32 2147483647, %v8276_v53  ;;  %vm8507_vm9 = vweird.f32 %v8276_v53 }
 0xa86   : > { %v8546_v5 = vadd.f32 %v8530_v22, %v14117_v36  ;;  %v8500_v34 = vsel %vm8497_vm2, %v8499_v18, %v8495_v25  ;;  %v8504_v23 = vsub.f32 1.0, %v8503_v14  ;;  %vm8509_vm8 = vmor %vm8507_vm9, %vm8508_vm4  ;;  %v8514_v59 = vor.u32 1.1754944e-38, %v8513_v33 }
 0xa87   : > { %v8531_v39 = vmul.f32 %v8500_v34, %v14118_v17  ;;  %vm8512_vm1 = vcmp.eq.f32.partialorder %v8511_v48, 8.507059e+37 }
 0xa88   : > { %8562 = vst [vmem:[%s13689_s2 + $0x68] sm:$0xff] %v8546_v5  ;;  %v8505_v42 = vmul.f32 %v10022_v55, %v8504_v23 }
 0xa89   : > { %v8547_v43 = vadd.f32 %v8531_v39, %v14119_v16 }
 0xa8a   : > { %v8506_v63 = vadd.f32 %v10022_v55, %v8505_v42 }
 0xa8b   : > { %8563 = vst [vmem:[%s13689_s2 + $0x70] sm:$0xff] %v8547_v43 }
 0xa8c   : > { %v8510_v49 = vsel %vm8509_vm8, %v10022_v55, %v8506_v63 }
 0xa8d   : > { %v8515_v20 = vsel %vm8512_vm1, %v8514_v59, %v8510_v49 }
 0xa8e   : > { %v8532_v19 = vmul.f32 %v8515_v20, %v14120_v21 }
 0xa90   : > { %v8548_v7 = vadd.f32 %v8532_v19, %v14121_v12 }
 0xa92   : > { %8564 = vst [vmem:[%s13689_s2 + $0x78] sm:$0xff] %v8548_v7 }
 0xa93 PF: > { %s71_s15 = sadd.s32 1, %s10045_s15  }
 0xa94   : > { %p68_p4 = scmp.ge.s32.totalorder %s71_s15, 4  }
 0xa96   :  { %70 = sbr.rel (!%p68_p4) target bundleno = 48 (0x30), region = 231 }

</bundles_post_ra>
